<compile_context>
chip_gen: v7x
topology: tpu7x:2x2x1
jax: 0.10.0
libtpu: 0.0.40
codegen_flags: <defaults>
</compile_context>

<pallas_src>
import functools

import jax
import jax.numpy as jnp
import numpy as np
from jax.experimental import pallas as pl
from jax.experimental.pallas import tpu as pltpu


# --------------------------------------------------------------------------
# Fused whole-network kernel
# --------------------------------------------------------------------------
def _etds_fused_kernel(x_ref, w_all_ref, b_all_ref, w_lx_ref, b_lx_ref,
                       w_lr_ref, b_lr_ref, s_ref, r_ref, pad_a, pad_b,
                       *, H, W, C, CL, num_layers):
    """Whole ETDS forward for one (channel-padded) NHWC frame.

    x_ref    : (1, H, W, C)          input frame, channels zero-padded to C
    w_all_ref: (num_layers, 9*C, C)  fused (backbone | residual) conv weights
    b_all_ref: (num_layers, 1, C)
    w_lx_ref : (9*C, CL)             conv_last          (residual rows zeroed)
    w_lr_ref : (9*C, CL)             conv_residual_last (backbone rows zeroed)
    s_ref    : (1, H, W, CL)         conv_last(x) + conv_residual_last(r)
    r_ref    : (1, H, W, CL)         conv_residual_last(r)
    pad_a/b  : (H+2, W+2, C)         VMEM ping-pong activation buffers (halo = 0)
    """
    pad_a[...] = jnp.zeros_like(pad_a)
    pad_b[...] = jnp.zeros_like(pad_b)
    pad_a[1:H + 1, 1:W + 1, :] = x_ref[0]

    def conv3x3(src, w, b):
        """src: (H+2, W+2, C) value; w: (9*C, Cout); b: (1, Cout) -> (H*W, Cout)."""
        cout = w.shape[-1]
        acc = jnp.zeros((H * W, cout), jnp.float32)
        for tap in range(9):                       # static unroll: 9 MXU matmuls
            dy, dx = divmod(tap, 3)
            patch = src[dy:dy + H, dx:dx + W, :].reshape(H * W, C)
            acc = acc + jnp.dot(patch, w[tap * C:(tap + 1) * C, :],
                                preferred_element_type=jnp.float32)
        return acc + b

    # conv_first + num_block fused (backbone|residual) blocks, all with ReLU.
    src_ref, dst_ref = pad_a, pad_b
    for layer in range(num_layers):
        act = src_ref[...]
        y = jnp.maximum(conv3x3(act, w_all_ref[layer], b_all_ref[layer]), 0.0)
        dst_ref[1:H + 1, 1:W + 1, :] = y.reshape(H, W, C)
        src_ref, dst_ref = dst_ref, src_ref

    # conv_last / conv_residual_last (no ReLU); fuse the x + r add in-kernel.
    act = src_ref[...]
    x_last = conv3x3(act, w_lx_ref[...], b_lx_ref[...])       # (H*W, CL)
    r_last = conv3x3(act, w_lr_ref[...], b_lr_ref[...])       # (H*W, CL)
    s_ref[0] = (x_last + r_last).reshape(H, W, CL).astype(s_ref.dtype)
    r_ref[0] = r_last.reshape(H, W, CL).astype(r_ref.dtype)


def etds_fused_forward(fused, x_nchw, *, upscale, num_block):
    """Matches ETDSAblationResidual.forward: returns (x + r, r) in NCHW."""
    N, Cin, H, W = x_nchw.shape
    C = fused["w_all"].shape[-1]
    CL = fused["w_lx"].shape[-1]
    num_layers = num_block + 1

    # Layout glue: NCHW -> NHWC and channel-pad the (tiny) input to C once.
    x_nhwc = jnp.transpose(x_nchw, (0, 2, 3, 1))
    x_nhwc = jnp.pad(x_nhwc, ((0, 0), (0, 0), (0, 0), (0, C - Cin)))

    flops = 2 * N * H * W * 9 * C * (num_layers * C + 2 * CL)
    bytes_accessed = 4 * (x_nhwc.size + 2 * N * H * W * CL
                          + fused["w_all"].size + fused["b_all"].size
                          + 2 * (fused["w_lx"].size + fused["b_lx"].size))

    kernel = functools.partial(_etds_fused_kernel, H=H, W=W, C=C, CL=CL,
                               num_layers=num_layers)
    s, r = pl.pallas_call(
        kernel,
        out_shape=(jax.ShapeDtypeStruct((N, H, W, CL), jnp.float32),
                   jax.ShapeDtypeStruct((N, H, W, CL), jnp.float32)),
        grid=(N,),
        in_specs=[
            pl.BlockSpec((1, H, W, C), lambda n: (n, 0, 0, 0)),
            pl.BlockSpec((num_layers, 9 * C, C), lambda n: (0, 0, 0)),
            pl.BlockSpec((num_layers, 1, C), lambda n: (0, 0, 0)),
            pl.BlockSpec((9 * C, CL), lambda n: (0, 0)),
            pl.BlockSpec((1, CL), lambda n: (0, 0)),
            pl.BlockSpec((9 * C, CL), lambda n: (0, 0)),
            pl.BlockSpec((1, CL), lambda n: (0, 0)),
        ],
        out_specs=(pl.BlockSpec((1, H, W, CL), lambda n: (n, 0, 0, 0)),
                   pl.BlockSpec((1, H, W, CL), lambda n: (n, 0, 0, 0))),
        scratch_shapes=[pltpu.VMEM((H + 2, W + 2, C), jnp.float32),
                        pltpu.VMEM((H + 2, W + 2, C), jnp.float32)],
        compiler_params=pltpu.CompilerParams(dimension_semantics=("parallel",)),
        cost_estimate=pl.CostEstimate(flops=flops, transcendentals=0,
                                      bytes_accessed=bytes_accessed),
    )(x_nhwc, fused["w_all"], fused["b_all"],
      fused["w_lx"], fused["b_lx"], fused["w_lr"], fused["b_lr"])

    # PixelShuffle + NHWC->NCHW are pure layout glue on the final tensors.
    return (_pixel_shuffle_to_nchw(s, upscale),
            _pixel_shuffle_to_nchw(r, upscale))


def _pixel_shuffle_to_nchw(x, r):
    """PixelShuffle (PyTorch channel order) + NHWC->NCHW in one transpose."""
    N, H, W, C = x.shape
    c = C // (r * r)
    x = x.reshape(N, H, W, c, r, r)
    x = x.transpose(0, 3, 1, 4, 2, 5)            # (N, c, H, r, W, r)
    return x.reshape(N, c, H * r, W * r)


# --------------------------------------------------------------------------
# Parameter construction (matches the PyTorch module's init_weights)
# --------------------------------------------------------------------------
def make_params(key, num_in_ch, num_out_ch, upscale, num_block,
                num_feat, num_residual_feat):
    assert num_feat > num_residual_feat >= num_in_ch and num_out_ch == num_in_ch
    nf = num_feat - num_residual_feat            # backbone feature width
    nr = num_residual_feat
    r2 = upscale * upscale

    def rand_conv(k, cin, cout):
        kw, kb = jax.random.split(k)
        bound = 1.0 / (cin * 9) ** 0.5           # PyTorch default conv init range
        w = jax.random.uniform(kw, (9, cin, cout), jnp.float32, -bound, bound)
        b = jax.random.uniform(kb, (cout,), jnp.float32, -bound, bound)
        return w, b

    def identity_conv(cin, cout, pairs):
        # zero weights with 1.0 at the center tap (dy=1, dx=1) == tap index 4
        w = jnp.zeros((9, cin, cout), jnp.float32)
        for o, i in pairs:
            w = w.at[4, i, o].set(1.0)
        return w, jnp.zeros((cout,), jnp.float32)

    keys = jax.random.split(key, num_block + 2)
    return {
        "conv_first": rand_conv(keys[0], num_in_ch, nf),
        "conv_residual_first": identity_conv(
            num_in_ch, nr, [(i, i) for i in range(num_in_ch)]),
        "backbone_convs": [rand_conv(keys[1 + b], nf, nf)
                           for b in range(num_block)],
        "residual_convs": [identity_conv(nr, nr, [(i, i) for i in range(nr)])
                           for _ in range(num_block)],
        "conv_last": rand_conv(keys[num_block + 1], nf, num_out_ch * r2),
        "conv_residual_last": identity_conv(
            nr, num_out_ch * r2,
            [(i * r2 + j, i) for i in range(num_in_ch) for j in range(r2)]),
    }


def fuse_params(params, *, num_in_ch, nf, nr):
    """Fuse backbone/residual branch weights into block-diagonal layers.

    Row layout of every fused (9*C, Cout) weight is (tap, cin) row-major with
    tap = dy*3 + dx — identical to the unfused (9, Cin, Cout) convention.
    """
    C = nf + nr
    f32 = jnp.float32

    wf, bf = params["conv_first"]                  # (9, cin, nf)
    wrf, brf = params["conv_residual_first"]       # (9, cin, nr)
    w0 = jnp.zeros((9, C, C), f32)
    w0 = w0.at[:, :num_in_ch, :nf].set(wf)
    w0 = w0.at[:, :num_in_ch, nf:].set(wrf)
    ws, bs = [w0], [jnp.concatenate([bf, brf])]

    for (bw, bb), (rw, rb) in zip(params["backbone_convs"],
                                  params["residual_convs"]):
        wl = jnp.zeros((9, C, C), f32)
        wl = wl.at[:, :nf, :nf].set(bw)
        wl = wl.at[:, nf:, nf:].set(rw)
        ws.append(wl)
        bs.append(jnp.concatenate([bb, rb]))

    wlx, blx = params["conv_last"]                 # (9, nf, CL)
    wlr, blr = params["conv_residual_last"]        # (9, nr, CL)
    CL = wlx.shape[-1]
    w_lx = jnp.zeros((9, C, CL), f32).at[:, :nf, :].set(wlx).reshape(9 * C, CL)
    w_lr = jnp.zeros((9, C, CL), f32).at[:, nf:, :].set(wlr).reshape(9 * C, CL)

    return {
        "w_all": jnp.stack([w.reshape(9 * C, C) for w in ws]),
        "b_all": jnp.stack([b.reshape(1, C) for b in bs]),
        "w_lx": w_lx, "b_lx": blx.reshape(1, CL),
        "w_lr": w_lr, "b_lr": blr.reshape(1, CL),
    }


# --------------------------------------------------------------------------
# Pure-JAX reference of the unfused network (correctness cross-check only)
# --------------------------------------------------------------------------
def _conv_ref(x, w, b, relu):
    wh = w.reshape(3, 3, w.shape[1], w.shape[2])
    y = jax.lax.conv_general_dilated(
        x, wh, window_strides=(1, 1), padding="SAME",
        dimension_numbers=("NHWC", "HWIO", "NHWC")) + b
    return jnp.maximum(y, 0.0) if relu else y


def etds_reference(params, x_nchw, *, upscale):
    xh = jnp.transpose(x_nchw, (0, 2, 3, 1))
    x = _conv_ref(xh, *params["conv_first"], relu=True)
    r = _conv_ref(xh, *params["conv_residual_first"], relu=True)
    for (bw, bb), (rw, rb) in zip(params["backbone_convs"],
                                  params["residual_convs"]):
        x = _conv_ref(x, bw, bb, relu=True)
        r = _conv_ref(r, rw, rb, relu=True)
    x = _conv_ref(x, *params["conv_last"], relu=False)
    r = _conv_ref(r, *params["conv_residual_last"], relu=False)
    return (_pixel_shuffle_to_nchw(x + r, upscale),
            _pixel_shuffle_to_nchw(r, upscale))


if __name__ == "__main__":
    # Small, constraint-satisfying config:
    #   num_feat > num_residual_feat >= num_in_ch, num_out_ch == num_in_ch
    num_in_ch, num_out_ch = 4, 4
    upscale, num_block = 2, 2
    num_feat, num_residual_feat = 16, 8
    nf = num_feat - num_residual_feat
    nr = num_residual_feat

    key = jax.random.PRNGKey(0)
    kp, kx = jax.random.split(key)
    params = make_params(kp, num_in_ch, num_out_ch, upscale, num_block,
                         num_feat, num_residual_feat)
    fused = fuse_params(params, num_in_ch=num_in_ch, nf=nf, nr=nr)

    x = jax.random.normal(kx, (2, num_in_ch, 16, 16), jnp.float32)

    fwd = jax.jit(functools.partial(etds_fused_forward, upscale=upscale,
                                    num_block=num_block))
    out, r = fwd(fused, x)
    jax.block_until_ready((out, r))

    assert out.shape == (2, num_out_ch, 16 * upscale, 16 * upscale), out.shape
    assert r.shape == (2, num_out_ch, 16 * upscale, 16 * upscale), r.shape

    # Cross-check the fused Pallas kernel against the unfused plain-JAX model.
    ref_out, ref_r = jax.jit(
        functools.partial(etds_reference, upscale=upscale))(params, x)
    np.testing.assert_allclose(np.asarray(out), np.asarray(ref_out),
                               rtol=2e-4, atol=2e-4)
    np.testing.assert_allclose(np.asarray(r), np.asarray(ref_r),
                               rtol=2e-4, atol=2e-4)
    print("KERNEL_OK")
</pallas_src>

<mosaic_0001>
module attributes {stable_mosaic.version = 11 : i64} {
  func.func @_etds_fused_kernel(%arg0: i32, %arg1: memref<1x16x16x16xf32, #tpu.memory_space<vmem>>, %arg2: memref<3x144x16xf32, #tpu.memory_space<vmem>>, %arg3: memref<3x1x16xf32, #tpu.memory_space<vmem>>, %arg4: memref<144x16xf32, #tpu.memory_space<vmem>>, %arg5: memref<1x16xf32, #tpu.memory_space<vmem>>, %arg6: memref<144x16xf32, #tpu.memory_space<vmem>>, %arg7: memref<1x16xf32, #tpu.memory_space<vmem>>, %arg8: memref<1x16x16x16xf32, #tpu.memory_space<vmem>>, %arg9: memref<1x16x16x16xf32, #tpu.memory_space<vmem>>, %arg10: memref<18x18x16xf32, #tpu.memory_space<vmem>>, %arg11: memref<18x18x16xf32, #tpu.memory_space<vmem>>) attributes {dimension_semantics = [#tpu.dimension_semantics<parallel>], iteration_bounds = array<i64: 2>, scalar_prefetch = 0 : i64, scratch_operands = 2 : i64, tpu.core_type = #tpu.core_type<tc>, window_params = [{transform_indices = @transform_0, window_bounds = array<i64: 1, 16, 16, 16>}, {pipeline_mode = #tpu.pipeline_mode<synchronous>, transform_indices = @transform_1, window_bounds = array<i64: 3, 144, 16>}, {pipeline_mode = #tpu.pipeline_mode<synchronous>, transform_indices = @transform_2, window_bounds = array<i64: 3, 1, 16>}, {pipeline_mode = #tpu.pipeline_mode<synchronous>, transform_indices = @transform_3, window_bounds = array<i64: 144, 16>}, {pipeline_mode = #tpu.pipeline_mode<synchronous>, transform_indices = @transform_4, window_bounds = array<i64: 1, 16>}, {pipeline_mode = #tpu.pipeline_mode<synchronous>, transform_indices = @transform_5, window_bounds = array<i64: 144, 16>}, {pipeline_mode = #tpu.pipeline_mode<synchronous>, transform_indices = @transform_6, window_bounds = array<i64: 1, 16>}, {transform_indices = @transform_7, window_bounds = array<i64: 1, 16, 16, 16>}, {transform_indices = @transform_8, window_bounds = array<i64: 1, 16, 16, 16>}]} {
    %cst = arith.constant 0.000000e+00 : f32
    %0 = vector.broadcast %cst : f32 to vector<18x18x16xf32>
    %c0 = arith.constant 0 : index
    %c0_0 = arith.constant 0 : index
    %c0_1 = arith.constant 0 : index
    %1 = vector.load %arg10[%c0, %c0_0, %c0_1] : memref<18x18x16xf32, #tpu.memory_space<vmem>>, vector<18x18x16xf32>
    tpu.vector_store %arg10[%c0, %c0_0, %c0_1], %0 {strides = array<i32>} : memref<18x18x16xf32, #tpu.memory_space<vmem>>, vector<18x18x16xf32>,
    %cst_2 = arith.constant 0.000000e+00 : f32
    %2 = vector.broadcast %cst_2 : f32 to vector<18x18x16xf32>
    %c0_3 = arith.constant 0 : index
    %c0_4 = arith.constant 0 : index
    %c0_5 = arith.constant 0 : index
    %3 = vector.load %arg11[%c0_3, %c0_4, %c0_5] : memref<18x18x16xf32, #tpu.memory_space<vmem>>, vector<18x18x16xf32>
    tpu.vector_store %arg11[%c0_3, %c0_4, %c0_5], %2 {strides = array<i32>} : memref<18x18x16xf32, #tpu.memory_space<vmem>>, vector<18x18x16xf32>,
    %c0_6 = arith.constant 0 : index
    %c0_7 = arith.constant 0 : index
    %c0_8 = arith.constant 0 : index
    %c0_9 = arith.constant 0 : index
    %4 = vector.load %arg1[%c0_6, %c0_7, %c0_8, %c0_9] : memref<1x16x16x16xf32, #tpu.memory_space<vmem>>, vector<1x16x16x16xf32>
    %5 = vector.shape_cast %4 : vector<1x16x16x16xf32> to vector<16x16x16xf32>
    %c1 = arith.constant 1 : index
    %c1_10 = arith.constant 1 : index
    %c0_11 = arith.constant 0 : index
    %6 = vector.load %arg10[%c1, %c1_10, %c0_11] : memref<18x18x16xf32, #tpu.memory_space<vmem>>, vector<16x16x16xf32>
    tpu.vector_store %arg10[%c1, %c1_10, %c0_11], %5 {strides = array<i32>} : memref<18x18x16xf32, #tpu.memory_space<vmem>>, vector<16x16x16xf32>,
    %c0_12 = arith.constant 0 : index
    %c0_13 = arith.constant 0 : index
    %c0_14 = arith.constant 0 : index
    %7 = vector.load %arg10[%c0_12, %c0_13, %c0_14] : memref<18x18x16xf32, #tpu.memory_space<vmem>>, vector<18x18x16xf32>
    %c0_15 = arith.constant 0 : index
    %c0_16 = arith.constant 0 : index
    %c0_17 = arith.constant 0 : index
    %8 = vector.load %arg2[%c0_15, %c0_16, %c0_17] : memref<3x144x16xf32, #tpu.memory_space<vmem>>, vector<1x144x16xf32>
    %9 = vector.shape_cast %8 : vector<1x144x16xf32> to vector<144x16xf32>
    %c0_18 = arith.constant 0 : index
    %c0_19 = arith.constant 0 : index
    %c0_20 = arith.constant 0 : index
    %10 = vector.load %arg3[%c0_18, %c0_19, %c0_20] : memref<3x1x16xf32, #tpu.memory_space<vmem>>, vector<1x1x16xf32>
    %11 = vector.shape_cast %10 : vector<1x1x16xf32> to vector<1x16xf32>
    %cst_21 = arith.constant 0.000000e+00 : f32
    %12 = vector.broadcast %cst_21 : f32 to vector<256x16xf32>
    %13 = vector.extract_strided_slice %7 {offsets = [0, 0, 0], sizes = [16, 16, 16], strides = [1, 1, 1]} : vector<18x18x16xf32> to vector<16x16x16xf32>
    %14 = vector.shape_cast %13 : vector<16x16x16xf32> to vector<256x16xf32>
    %15 = vector.extract_strided_slice %9 {offsets = [0, 0], sizes = [16, 16], strides = [1, 1]} : vector<144x16xf32> to vector<16x16xf32>
    %cst_22 = arith.constant dense<0.000000e+00> : vector<256x16xf32>
    %16 = tpu.matmul %14, %15, %cst_22 {dimension_numbers = #tpu.dot_dimension_numbers<[1], [0], [0], [1], [0, 0, 1, 1], [], []>} : vector<256x16xf32>, vector<16x16xf32>, vector<256x16xf32> -> vector<256x16xf32>
    %17 = arith.addf %12, %16 : vector<256x16xf32>
    %18 = vector.extract_strided_slice %7 {offsets = [0, 1, 0], sizes = [16, 16, 16], strides = [1, 1, 1]} : vector<18x18x16xf32> to vector<16x16x16xf32>
    %19 = vector.shape_cast %18 : vector<16x16x16xf32> to vector<256x16xf32>
    %20 = vector.extract_strided_slice %9 {offsets = [16, 0], sizes = [16, 16], strides = [1, 1]} : vector<144x16xf32> to vector<16x16xf32>
    %cst_23 = arith.constant dense<0.000000e+00> : vector<256x16xf32>
    %21 = tpu.matmul %19, %20, %cst_23 {dimension_numbers = #tpu.dot_dimension_numbers<[1], [0], [0], [1], [0, 0, 1, 1], [], []>} : vector<256x16xf32>, vector<16x16xf32>, vector<256x16xf32> -> vector<256x16xf32>
    %22 = arith.addf %17, %21 : vector<256x16xf32>
    %23 = vector.extract_strided_slice %7 {offsets = [0, 2, 0], sizes = [16, 16, 16], strides = [1, 1, 1]} : vector<18x18x16xf32> to vector<16x16x16xf32>
    %24 = vector.shape_cast %23 : vector<16x16x16xf32> to vector<256x16xf32>
    %25 = vector.extract_strided_slice %9 {offsets = [32, 0], sizes = [16, 16], strides = [1, 1]} : vector<144x16xf32> to vector<16x16xf32>
    %cst_24 = arith.constant dense<0.000000e+00> : vector<256x16xf32>
    %26 = tpu.matmul %24, %25, %cst_24 {dimension_numbers = #tpu.dot_dimension_numbers<[1], [0], [0], [1], [0, 0, 1, 1], [], []>} : vector<256x16xf32>, vector<16x16xf32>, vector<256x16xf32> -> vector<256x16xf32>
    %27 = arith.addf %22, %26 : vector<256x16xf32>
    %28 = vector.extract_strided_slice %7 {offsets = [1, 0, 0], sizes = [16, 16, 16], strides = [1, 1, 1]} : vector<18x18x16xf32> to vector<16x16x16xf32>
    %29 = vector.shape_cast %28 : vector<16x16x16xf32> to vector<256x16xf32>
    %30 = vector.extract_strided_slice %9 {offsets = [48, 0], sizes = [16, 16], strides = [1, 1]} : vector<144x16xf32> to vector<16x16xf32>
    %cst_25 = arith.constant dense<0.000000e+00> : vector<256x16xf32>
    %31 = tpu.matmul %29, %30, %cst_25 {dimension_numbers = #tpu.dot_dimension_numbers<[1], [0], [0], [1], [0, 0, 1, 1], [], []>} : vector<256x16xf32>, vector<16x16xf32>, vector<256x16xf32> -> vector<256x16xf32>
    %32 = arith.addf %27, %31 : vector<256x16xf32>
    %33 = vector.extract_strided_slice %7 {offsets = [1, 1, 0], sizes = [16, 16, 16], strides = [1, 1, 1]} : vector<18x18x16xf32> to vector<16x16x16xf32>
    %34 = vector.shape_cast %33 : vector<16x16x16xf32> to vector<256x16xf32>
    %35 = vector.extract_strided_slice %9 {offsets = [64, 0], sizes = [16, 16], strides = [1, 1]} : vector<144x16xf32> to vector<16x16xf32>
    %cst_26 = arith.constant dense<0.000000e+00> : vector<256x16xf32>
    %36 = tpu.matmul %34, %35, %cst_26 {dimension_numbers = #tpu.dot_dimension_numbers<[1], [0], [0], [1], [0, 0, 1, 1], [], []>} : vector<256x16xf32>, vector<16x16xf32>, vector<256x16xf32> -> vector<256x16xf32>
    %37 = arith.addf %32, %36 : vector<256x16xf32>
    %38 = vector.extract_strided_slice %7 {offsets = [1, 2, 0], sizes = [16, 16, 16], strides = [1, 1, 1]} : vector<18x18x16xf32> to vector<16x16x16xf32>
    %39 = vector.shape_cast %38 : vector<16x16x16xf32> to vector<256x16xf32>
    %40 = vector.extract_strided_slice %9 {offsets = [80, 0], sizes = [16, 16], strides = [1, 1]} : vector<144x16xf32> to vector<16x16xf32>
    %cst_27 = arith.constant dense<0.000000e+00> : vector<256x16xf32>
    %41 = tpu.matmul %39, %40, %cst_27 {dimension_numbers = #tpu.dot_dimension_numbers<[1], [0], [0], [1], [0, 0, 1, 1], [], []>} : vector<256x16xf32>, vector<16x16xf32>, vector<256x16xf32> -> vector<256x16xf32>
    %42 = arith.addf %37, %41 : vector<256x16xf32>
    %43 = vector.extract_strided_slice %7 {offsets = [2, 0, 0], sizes = [16, 16, 16], strides = [1, 1, 1]} : vector<18x18x16xf32> to vector<16x16x16xf32>
    %44 = vector.shape_cast %43 : vector<16x16x16xf32> to vector<256x16xf32>
    %45 = vector.extract_strided_slice %9 {offsets = [96, 0], sizes = [16, 16], strides = [1, 1]} : vector<144x16xf32> to vector<16x16xf32>
    %cst_28 = arith.constant dense<0.000000e+00> : vector<256x16xf32>
    %46 = tpu.matmul %44, %45, %cst_28 {dimension_numbers = #tpu.dot_dimension_numbers<[1], [0], [0], [1], [0, 0, 1, 1], [], []>} : vector<256x16xf32>, vector<16x16xf32>, vector<256x16xf32> -> vector<256x16xf32>
    %47 = arith.addf %42, %46 : vector<256x16xf32>
    %48 = vector.extract_strided_slice %7 {offsets = [2, 1, 0], sizes = [16, 16, 16], strides = [1, 1, 1]} : vector<18x18x16xf32> to vector<16x16x16xf32>
    %49 = vector.shape_cast %48 : vector<16x16x16xf32> to vector<256x16xf32>
    %50 = vector.extract_strided_slice %9 {offsets = [112, 0], sizes = [16, 16], strides = [1, 1]} : vector<144x16xf32> to vector<16x16xf32>
    %cst_29 = arith.constant dense<0.000000e+00> : vector<256x16xf32>
    %51 = tpu.matmul %49, %50, %cst_29 {dimension_numbers = #tpu.dot_dimension_numbers<[1], [0], [0], [1], [0, 0, 1, 1], [], []>} : vector<256x16xf32>, vector<16x16xf32>, vector<256x16xf32> -> vector<256x16xf32>
    %52 = arith.addf %47, %51 : vector<256x16xf32>
    %53 = vector.extract_strided_slice %7 {offsets = [2, 2, 0], sizes = [16, 16, 16], strides = [1, 1, 1]} : vector<18x18x16xf32> to vector<16x16x16xf32>
    %54 = vector.shape_cast %53 : vector<16x16x16xf32> to vector<256x16xf32>
    %55 = vector.extract_strided_slice %9 {offsets = [128, 0], sizes = [16, 16], strides = [1, 1]} : vector<144x16xf32> to vector<16x16xf32>
    %cst_30 = arith.constant dense<0.000000e+00> : vector<256x16xf32>
    %56 = tpu.matmul %54, %55, %cst_30 {dimension_numbers = #tpu.dot_dimension_numbers<[1], [0], [0], [1], [0, 0, 1, 1], [], []>} : vector<256x16xf32>, vector<16x16xf32>, vector<256x16xf32> -> vector<256x16xf32>
    %57 = arith.addf %52, %56 : vector<256x16xf32>
    %58 = vector.broadcast %11 : vector<1x16xf32> to vector<256x16xf32>
    %59 = arith.addf %57, %58 : vector<256x16xf32>
    %cst_31 = arith.constant 0.000000e+00 : f32
    %60 = vector.broadcast %cst_31 : f32 to vector<256x16xf32>
    %61 = arith.maximumf %59, %60 : vector<256x16xf32>
    %62 = vector.shape_cast %61 : vector<256x16xf32> to vector<16x16x16xf32>
    %c1_32 = arith.constant 1 : index
    %c1_33 = arith.constant 1 : index
    %c0_34 = arith.constant 0 : index
    %63 = vector.load %arg11[%c1_32, %c1_33, %c0_34] : memref<18x18x16xf32, #tpu.memory_space<vmem>>, vector<16x16x16xf32>
    tpu.vector_store %arg11[%c1_32, %c1_33, %c0_34], %62 {strides = array<i32>} : memref<18x18x16xf32, #tpu.memory_space<vmem>>, vector<16x16x16xf32>,
    %c0_35 = arith.constant 0 : index
    %c0_36 = arith.constant 0 : index
    %c0_37 = arith.constant 0 : index
    %64 = vector.load %arg11[%c0_35, %c0_36, %c0_37] : memref<18x18x16xf32, #tpu.memory_space<vmem>>, vector<18x18x16xf32>
    %c1_38 = arith.constant 1 : index
    %c0_39 = arith.constant 0 : index
    %c0_40 = arith.constant 0 : index
    %65 = vector.load %arg2[%c1_38, %c0_39, %c0_40] : memref<3x144x16xf32, #tpu.memory_space<vmem>>, vector<1x144x16xf32>
    %66 = vector.shape_cast %65 : vector<1x144x16xf32> to vector<144x16xf32>
    %c1_41 = arith.constant 1 : index
    %c0_42 = arith.constant 0 : index
    %c0_43 = arith.constant 0 : index
    %67 = vector.load %arg3[%c1_41, %c0_42, %c0_43] : memref<3x1x16xf32, #tpu.memory_space<vmem>>, vector<1x1x16xf32>
    %68 = vector.shape_cast %67 : vector<1x1x16xf32> to vector<1x16xf32>
    %cst_44 = arith.constant 0.000000e+00 : f32
    %69 = vector.broadcast %cst_44 : f32 to vector<256x16xf32>
    %70 = vector.extract_strided_slice %64 {offsets = [0, 0, 0], sizes = [16, 16, 16], strides = [1, 1, 1]} : vector<18x18x16xf32> to vector<16x16x16xf32>
    %71 = vector.shape_cast %70 : vector<16x16x16xf32> to vector<256x16xf32>
    %72 = vector.extract_strided_slice %66 {offsets = [0, 0], sizes = [16, 16], strides = [1, 1]} : vector<144x16xf32> to vector<16x16xf32>
    %cst_45 = arith.constant dense<0.000000e+00> : vector<256x16xf32>
    %73 = tpu.matmul %71, %72, %cst_45 {dimension_numbers = #tpu.dot_dimension_numbers<[1], [0], [0], [1], [0, 0, 1, 1], [], []>} : vector<256x16xf32>, vector<16x16xf32>, vector<256x16xf32> -> vector<256x16xf32>
    %74 = arith.addf %69, %73 : vector<256x16xf32>
    %75 = vector.extract_strided_slice %64 {offsets = [0, 1, 0], sizes = [16, 16, 16], strides = [1, 1, 1]} : vector<18x18x16xf32> to vector<16x16x16xf32>
    %76 = vector.shape_cast %75 : vector<16x16x16xf32> to vector<256x16xf32>
    %77 = vector.extract_strided_slice %66 {offsets = [16, 0], sizes = [16, 16], strides = [1, 1]} : vector<144x16xf32> to vector<16x16xf32>
    %cst_46 = arith.constant dense<0.000000e+00> : vector<256x16xf32>
    %78 = tpu.matmul %76, %77, %cst_46 {dimension_numbers = #tpu.dot_dimension_numbers<[1], [0], [0], [1], [0, 0, 1, 1], [], []>} : vector<256x16xf32>, vector<16x16xf32>, vector<256x16xf32> -> vector<256x16xf32>
    %79 = arith.addf %74, %78 : vector<256x16xf32>
    %80 = vector.extract_strided_slice %64 {offsets = [0, 2, 0], sizes = [16, 16, 16], strides = [1, 1, 1]} : vector<18x18x16xf32> to vector<16x16x16xf32>
    %81 = vector.shape_cast %80 : vector<16x16x16xf32> to vector<256x16xf32>
    %82 = vector.extract_strided_slice %66 {offsets = [32, 0], sizes = [16, 16], strides = [1, 1]} : vector<144x16xf32> to vector<16x16xf32>
    %cst_47 = arith.constant dense<0.000000e+00> : vector<256x16xf32>
    %83 = tpu.matmul %81, %82, %cst_47 {dimension_numbers = #tpu.dot_dimension_numbers<[1], [0], [0], [1], [0, 0, 1, 1], [], []>} : vector<256x16xf32>, vector<16x16xf32>, vector<256x16xf32> -> vector<256x16xf32>
    %84 = arith.addf %79, %83 : vector<256x16xf32>
    %85 = vector.extract_strided_slice %64 {offsets = [1, 0, 0], sizes = [16, 16, 16], strides = [1, 1, 1]} : vector<18x18x16xf32> to vector<16x16x16xf32>
    %86 = vector.shape_cast %85 : vector<16x16x16xf32> to vector<256x16xf32>
    %87 = vector.extract_strided_slice %66 {offsets = [48, 0], sizes = [16, 16], strides = [1, 1]} : vector<144x16xf32> to vector<16x16xf32>
    %cst_48 = arith.constant dense<0.000000e+00> : vector<256x16xf32>
    %88 = tpu.matmul %86, %87, %cst_48 {dimension_numbers = #tpu.dot_dimension_numbers<[1], [0], [0], [1], [0, 0, 1, 1], [], []>} : vector<256x16xf32>, vector<16x16xf32>, vector<256x16xf32> -> vector<256x16xf32>
    %89 = arith.addf %84, %88 : vector<256x16xf32>
    %90 = vector.extract_strided_slice %64 {offsets = [1, 1, 0], sizes = [16, 16, 16], strides = [1, 1, 1]} : vector<18x18x16xf32> to vector<16x16x16xf32>
    %91 = vector.shape_cast %90 : vector<16x16x16xf32> to vector<256x16xf32>
    %92 = vector.extract_strided_slice %66 {offsets = [64, 0], sizes = [16, 16], strides = [1, 1]} : vector<144x16xf32> to vector<16x16xf32>
    %cst_49 = arith.constant dense<0.000000e+00> : vector<256x16xf32>
    %93 = tpu.matmul %91, %92, %cst_49 {dimension_numbers = #tpu.dot_dimension_numbers<[1], [0], [0], [1], [0, 0, 1, 1], [], []>} : vector<256x16xf32>, vector<16x16xf32>, vector<256x16xf32> -> vector<256x16xf32>
    %94 = arith.addf %89, %93 : vector<256x16xf32>
    %95 = vector.extract_strided_slice %64 {offsets = [1, 2, 0], sizes = [16, 16, 16], strides = [1, 1, 1]} : vector<18x18x16xf32> to vector<16x16x16xf32>
    %96 = vector.shape_cast %95 : vector<16x16x16xf32> to vector<256x16xf32>
    %97 = vector.extract_strided_slice %66 {offsets = [80, 0], sizes = [16, 16], strides = [1, 1]} : vector<144x16xf32> to vector<16x16xf32>
    %cst_50 = arith.constant dense<0.000000e+00> : vector<256x16xf32>
    %98 = tpu.matmul %96, %97, %cst_50 {dimension_numbers = #tpu.dot_dimension_numbers<[1], [0], [0], [1], [0, 0, 1, 1], [], []>} : vector<256x16xf32>, vector<16x16xf32>, vector<256x16xf32> -> vector<256x16xf32>
    %99 = arith.addf %94, %98 : vector<256x16xf32>
    %100 = vector.extract_strided_slice %64 {offsets = [2, 0, 0], sizes = [16, 16, 16], strides = [1, 1, 1]} : vector<18x18x16xf32> to vector<16x16x16xf32>
    %101 = vector.shape_cast %100 : vector<16x16x16xf32> to vector<256x16xf32>
    %102 = vector.extract_strided_slice %66 {offsets = [96, 0], sizes = [16, 16], strides = [1, 1]} : vector<144x16xf32> to vector<16x16xf32>
    %cst_51 = arith.constant dense<0.000000e+00> : vector<256x16xf32>
    %103 = tpu.matmul %101, %102, %cst_51 {dimension_numbers = #tpu.dot_dimension_numbers<[1], [0], [0], [1], [0, 0, 1, 1], [], []>} : vector<256x16xf32>, vector<16x16xf32>, vector<256x16xf32> -> vector<256x16xf32>
    %104 = arith.addf %99, %103 : vector<256x16xf32>
    %105 = vector.extract_strided_slice %64 {offsets = [2, 1, 0], sizes = [16, 16, 16], strides = [1, 1, 1]} : vector<18x18x16xf32> to vector<16x16x16xf32>
    %106 = vector.shape_cast %105 : vector<16x16x16xf32> to vector<256x16xf32>
    %107 = vector.extract_strided_slice %66 {offsets = [112, 0], sizes = [16, 16], strides = [1, 1]} : vector<144x16xf32> to vector<16x16xf32>
    %cst_52 = arith.constant dense<0.000000e+00> : vector<256x16xf32>
    %108 = tpu.matmul %106, %107, %cst_52 {dimension_numbers = #tpu.dot_dimension_numbers<[1], [0], [0], [1], [0, 0, 1, 1], [], []>} : vector<256x16xf32>, vector<16x16xf32>, vector<256x16xf32> -> vector<256x16xf32>
    %109 = arith.addf %104, %108 : vector<256x16xf32>
    %110 = vector.extract_strided_slice %64 {offsets = [2, 2, 0], sizes = [16, 16, 16], strides = [1, 1, 1]} : vector<18x18x16xf32> to vector<16x16x16xf32>
    %111 = vector.shape_cast %110 : vector<16x16x16xf32> to vector<256x16xf32>
    %112 = vector.extract_strided_slice %66 {offsets = [128, 0], sizes = [16, 16], strides = [1, 1]} : vector<144x16xf32> to vector<16x16xf32>
    %cst_53 = arith.constant dense<0.000000e+00> : vector<256x16xf32>
    %113 = tpu.matmul %111, %112, %cst_53 {dimension_numbers = #tpu.dot_dimension_numbers<[1], [0], [0], [1], [0, 0, 1, 1], [], []>} : vector<256x16xf32>, vector<16x16xf32>, vector<256x16xf32> -> vector<256x16xf32>
    %114 = arith.addf %109, %113 : vector<256x16xf32>
    %115 = vector.broadcast %68 : vector<1x16xf32> to vector<256x16xf32>
    %116 = arith.addf %114, %115 : vector<256x16xf32>
    %cst_54 = arith.constant 0.000000e+00 : f32
    %117 = vector.broadcast %cst_54 : f32 to vector<256x16xf32>
    %118 = arith.maximumf %116, %117 : vector<256x16xf32>
    %119 = vector.shape_cast %118 : vector<256x16xf32> to vector<16x16x16xf32>
    %c1_55 = arith.constant 1 : index
    %c1_56 = arith.constant 1 : index
    %c0_57 = arith.constant 0 : index
    %120 = vector.load %arg10[%c1_55, %c1_56, %c0_57] : memref<18x18x16xf32, #tpu.memory_space<vmem>>, vector<16x16x16xf32>
    tpu.vector_store %arg10[%c1_55, %c1_56, %c0_57], %119 {strides = array<i32>} : memref<18x18x16xf32, #tpu.memory_space<vmem>>, vector<16x16x16xf32>,
    %c0_58 = arith.constant 0 : index
    %c0_59 = arith.constant 0 : index
    %c0_60 = arith.constant 0 : index
    %121 = vector.load %arg10[%c0_58, %c0_59, %c0_60] : memref<18x18x16xf32, #tpu.memory_space<vmem>>, vector<18x18x16xf32>
    %c2 = arith.constant 2 : index
    %c0_61 = arith.constant 0 : index
    %c0_62 = arith.constant 0 : index
    %122 = vector.load %arg2[%c2, %c0_61, %c0_62] : memref<3x144x16xf32, #tpu.memory_space<vmem>>, vector<1x144x16xf32>
    %123 = vector.shape_cast %122 : vector<1x144x16xf32> to vector<144x16xf32>
    %c2_63 = arith.constant 2 : index
    %c0_64 = arith.constant 0 : index
    %c0_65 = arith.constant 0 : index
    %124 = vector.load %arg3[%c2_63, %c0_64, %c0_65] : memref<3x1x16xf32, #tpu.memory_space<vmem>>, vector<1x1x16xf32>
    %125 = vector.shape_cast %124 : vector<1x1x16xf32> to vector<1x16xf32>
    %cst_66 = arith.constant 0.000000e+00 : f32
    %126 = vector.broadcast %cst_66 : f32 to vector<256x16xf32>
    %127 = vector.extract_strided_slice %121 {offsets = [0, 0, 0], sizes = [16, 16, 16], strides = [1, 1, 1]} : vector<18x18x16xf32> to vector<16x16x16xf32>
    %128 = vector.shape_cast %127 : vector<16x16x16xf32> to vector<256x16xf32>
    %129 = vector.extract_strided_slice %123 {offsets = [0, 0], sizes = [16, 16], strides = [1, 1]} : vector<144x16xf32> to vector<16x16xf32>
    %cst_67 = arith.constant dense<0.000000e+00> : vector<256x16xf32>
    %130 = tpu.matmul %128, %129, %cst_67 {dimension_numbers = #tpu.dot_dimension_numbers<[1], [0], [0], [1], [0, 0, 1, 1], [], []>} : vector<256x16xf32>, vector<16x16xf32>, vector<256x16xf32> -> vector<256x16xf32>
    %131 = arith.addf %126, %130 : vector<256x16xf32>
    %132 = vector.extract_strided_slice %121 {offsets = [0, 1, 0], sizes = [16, 16, 16], strides = [1, 1, 1]} : vector<18x18x16xf32> to vector<16x16x16xf32>
    %133 = vector.shape_cast %132 : vector<16x16x16xf32> to vector<256x16xf32>
    %134 = vector.extract_strided_slice %123 {offsets = [16, 0], sizes = [16, 16], strides = [1, 1]} : vector<144x16xf32> to vector<16x16xf32>
    %cst_68 = arith.constant dense<0.000000e+00> : vector<256x16xf32>
    %135 = tpu.matmul %133, %134, %cst_68 {dimension_numbers = #tpu.dot_dimension_numbers<[1], [0], [0], [1], [0, 0, 1, 1], [], []>} : vector<256x16xf32>, vector<16x16xf32>, vector<256x16xf32> -> vector<256x16xf32>
    %136 = arith.addf %131, %135 : vector<256x16xf32>
    %137 = vector.extract_strided_slice %121 {offsets = [0, 2, 0], sizes = [16, 16, 16], strides = [1, 1, 1]} : vector<18x18x16xf32> to vector<16x16x16xf32>
    %138 = vector.shape_cast %137 : vector<16x16x16xf32> to vector<256x16xf32>
    %139 = vector.extract_strided_slice %123 {offsets = [32, 0], sizes = [16, 16], strides = [1, 1]} : vector<144x16xf32> to vector<16x16xf32>
    %cst_69 = arith.constant dense<0.000000e+00> : vector<256x16xf32>
    %140 = tpu.matmul %138, %139, %cst_69 {dimension_numbers = #tpu.dot_dimension_numbers<[1], [0], [0], [1], [0, 0, 1, 1], [], []>} : vector<256x16xf32>, vector<16x16xf32>, vector<256x16xf32> -> vector<256x16xf32>
    %141 = arith.addf %136, %140 : vector<256x16xf32>
    %142 = vector.extract_strided_slice %121 {offsets = [1, 0, 0], sizes = [16, 16, 16], strides = [1, 1, 1]} : vector<18x18x16xf32> to vector<16x16x16xf32>
    %143 = vector.shape_cast %142 : vector<16x16x16xf32> to vector<256x16xf32>
    %144 = vector.extract_strided_slice %123 {offsets = [48, 0], sizes = [16, 16], strides = [1, 1]} : vector<144x16xf32> to vector<16x16xf32>
    %cst_70 = arith.constant dense<0.000000e+00> : vector<256x16xf32>
    %145 = tpu.matmul %143, %144, %cst_70 {dimension_numbers = #tpu.dot_dimension_numbers<[1], [0], [0], [1], [0, 0, 1, 1], [], []>} : vector<256x16xf32>, vector<16x16xf32>, vector<256x16xf32> -> vector<256x16xf32>
    %146 = arith.addf %141, %145 : vector<256x16xf32>
    %147 = vector.extract_strided_slice %121 {offsets = [1, 1, 0], sizes = [16, 16, 16], strides = [1, 1, 1]} : vector<18x18x16xf32> to vector<16x16x16xf32>
    %148 = vector.shape_cast %147 : vector<16x16x16xf32> to vector<256x16xf32>
    %149 = vector.extract_strided_slice %123 {offsets = [64, 0], sizes = [16, 16], strides = [1, 1]} : vector<144x16xf32> to vector<16x16xf32>
    %cst_71 = arith.constant dense<0.000000e+00> : vector<256x16xf32>
    %150 = tpu.matmul %148, %149, %cst_71 {dimension_numbers = #tpu.dot_dimension_numbers<[1], [0], [0], [1], [0, 0, 1, 1], [], []>} : vector<256x16xf32>, vector<16x16xf32>, vector<256x16xf32> -> vector<256x16xf32>
    %151 = arith.addf %146, %150 : vector<256x16xf32>
    %152 = vector.extract_strided_slice %121 {offsets = [1, 2, 0], sizes = [16, 16, 16], strides = [1, 1, 1]} : vector<18x18x16xf32> to vector<16x16x16xf32>
    %153 = vector.shape_cast %152 : vector<16x16x16xf32> to vector<256x16xf32>
    %154 = vector.extract_strided_slice %123 {offsets = [80, 0], sizes = [16, 16], strides = [1, 1]} : vector<144x16xf32> to vector<16x16xf32>
    %cst_72 = arith.constant dense<0.000000e+00> : vector<256x16xf32>
    %155 = tpu.matmul %153, %154, %cst_72 {dimension_numbers = #tpu.dot_dimension_numbers<[1], [0], [0], [1], [0, 0, 1, 1], [], []>} : vector<256x16xf32>, vector<16x16xf32>, vector<256x16xf32> -> vector<256x16xf32>
    %156 = arith.addf %151, %155 : vector<256x16xf32>
    %157 = vector.extract_strided_slice %121 {offsets = [2, 0, 0], sizes = [16, 16, 16], strides = [1, 1, 1]} : vector<18x18x16xf32> to vector<16x16x16xf32>
    %158 = vector.shape_cast %157 : vector<16x16x16xf32> to vector<256x16xf32>
    %159 = vector.extract_strided_slice %123 {offsets = [96, 0], sizes = [16, 16], strides = [1, 1]} : vector<144x16xf32> to vector<16x16xf32>
    %cst_73 = arith.constant dense<0.000000e+00> : vector<256x16xf32>
    %160 = tpu.matmul %158, %159, %cst_73 {dimension_numbers = #tpu.dot_dimension_numbers<[1], [0], [0], [1], [0, 0, 1, 1], [], []>} : vector<256x16xf32>, vector<16x16xf32>, vector<256x16xf32> -> vector<256x16xf32>
    %161 = arith.addf %156, %160 : vector<256x16xf32>
    %162 = vector.extract_strided_slice %121 {offsets = [2, 1, 0], sizes = [16, 16, 16], strides = [1, 1, 1]} : vector<18x18x16xf32> to vector<16x16x16xf32>
    %163 = vector.shape_cast %162 : vector<16x16x16xf32> to vector<256x16xf32>
    %164 = vector.extract_strided_slice %123 {offsets = [112, 0], sizes = [16, 16], strides = [1, 1]} : vector<144x16xf32> to vector<16x16xf32>
    %cst_74 = arith.constant dense<0.000000e+00> : vector<256x16xf32>
    %165 = tpu.matmul %163, %164, %cst_74 {dimension_numbers = #tpu.dot_dimension_numbers<[1], [0], [0], [1], [0, 0, 1, 1], [], []>} : vector<256x16xf32>, vector<16x16xf32>, vector<256x16xf32> -> vector<256x16xf32>
    %166 = arith.addf %161, %165 : vector<256x16xf32>
    %167 = vector.extract_strided_slice %121 {offsets = [2, 2, 0], sizes = [16, 16, 16], strides = [1, 1, 1]} : vector<18x18x16xf32> to vector<16x16x16xf32>
    %168 = vector.shape_cast %167 : vector<16x16x16xf32> to vector<256x16xf32>
    %169 = vector.extract_strided_slice %123 {offsets = [128, 0], sizes = [16, 16], strides = [1, 1]} : vector<144x16xf32> to vector<16x16xf32>
    %cst_75 = arith.constant dense<0.000000e+00> : vector<256x16xf32>
    %170 = tpu.matmul %168, %169, %cst_75 {dimension_numbers = #tpu.dot_dimension_numbers<[1], [0], [0], [1], [0, 0, 1, 1], [], []>} : vector<256x16xf32>, vector<16x16xf32>, vector<256x16xf32> -> vector<256x16xf32>
    %171 = arith.addf %166, %170 : vector<256x16xf32>
    %172 = vector.broadcast %125 : vector<1x16xf32> to vector<256x16xf32>
    %173 = arith.addf %171, %172 : vector<256x16xf32>
    %cst_76 = arith.constant 0.000000e+00 : f32
    %174 = vector.broadcast %cst_76 : f32 to vector<256x16xf32>
    %175 = arith.maximumf %173, %174 : vector<256x16xf32>
    %176 = vector.shape_cast %175 : vector<256x16xf32> to vector<16x16x16xf32>
    %c1_77 = arith.constant 1 : index
    %c1_78 = arith.constant 1 : index
    %c0_79 = arith.constant 0 : index
    %177 = vector.load %arg11[%c1_77, %c1_78, %c0_79] : memref<18x18x16xf32, #tpu.memory_space<vmem>>, vector<16x16x16xf32>
    tpu.vector_store %arg11[%c1_77, %c1_78, %c0_79], %176 {strides = array<i32>} : memref<18x18x16xf32, #tpu.memory_space<vmem>>, vector<16x16x16xf32>,
    %c0_80 = arith.constant 0 : index
    %c0_81 = arith.constant 0 : index
    %c0_82 = arith.constant 0 : index
    %178 = vector.load %arg11[%c0_80, %c0_81, %c0_82] : memref<18x18x16xf32, #tpu.memory_space<vmem>>, vector<18x18x16xf32>
    %c0_83 = arith.constant 0 : index
    %c0_84 = arith.constant 0 : index
    %179 = vector.load %arg4[%c0_83, %c0_84] : memref<144x16xf32, #tpu.memory_space<vmem>>, vector<144x16xf32>
    %c0_85 = arith.constant 0 : index
    %c0_86 = arith.constant 0 : index
    %180 = vector.load %arg5[%c0_85, %c0_86] : memref<1x16xf32, #tpu.memory_space<vmem>>, vector<1x16xf32>
    %cst_87 = arith.constant 0.000000e+00 : f32
    %181 = vector.broadcast %cst_87 : f32 to vector<256x16xf32>
    %182 = vector.extract_strided_slice %178 {offsets = [0, 0, 0], sizes = [16, 16, 16], strides = [1, 1, 1]} : vector<18x18x16xf32> to vector<16x16x16xf32>
    %183 = vector.shape_cast %182 : vector<16x16x16xf32> to vector<256x16xf32>
    %184 = vector.extract_strided_slice %179 {offsets = [0, 0], sizes = [16, 16], strides = [1, 1]} : vector<144x16xf32> to vector<16x16xf32>
    %cst_88 = arith.constant dense<0.000000e+00> : vector<256x16xf32>
    %185 = tpu.matmul %183, %184, %cst_88 {dimension_numbers = #tpu.dot_dimension_numbers<[1], [0], [0], [1], [0, 0, 1, 1], [], []>} : vector<256x16xf32>, vector<16x16xf32>, vector<256x16xf32> -> vector<256x16xf32>
    %186 = arith.addf %181, %185 : vector<256x16xf32>
    %187 = vector.extract_strided_slice %178 {offsets = [0, 1, 0], sizes = [16, 16, 16], strides = [1, 1, 1]} : vector<18x18x16xf32> to vector<16x16x16xf32>
    %188 = vector.shape_cast %187 : vector<16x16x16xf32> to vector<256x16xf32>
    %189 = vector.extract_strided_slice %179 {offsets = [16, 0], sizes = [16, 16], strides = [1, 1]} : vector<144x16xf32> to vector<16x16xf32>
    %cst_89 = arith.constant dense<0.000000e+00> : vector<256x16xf32>
    %190 = tpu.matmul %188, %189, %cst_89 {dimension_numbers = #tpu.dot_dimension_numbers<[1], [0], [0], [1], [0, 0, 1, 1], [], []>} : vector<256x16xf32>, vector<16x16xf32>, vector<256x16xf32> -> vector<256x16xf32>
    %191 = arith.addf %186, %190 : vector<256x16xf32>
    %192 = vector.extract_strided_slice %178 {offsets = [0, 2, 0], sizes = [16, 16, 16], strides = [1, 1, 1]} : vector<18x18x16xf32> to vector<16x16x16xf32>
    %193 = vector.shape_cast %192 : vector<16x16x16xf32> to vector<256x16xf32>
    %194 = vector.extract_strided_slice %179 {offsets = [32, 0], sizes = [16, 16], strides = [1, 1]} : vector<144x16xf32> to vector<16x16xf32>
    %cst_90 = arith.constant dense<0.000000e+00> : vector<256x16xf32>
    %195 = tpu.matmul %193, %194, %cst_90 {dimension_numbers = #tpu.dot_dimension_numbers<[1], [0], [0], [1], [0, 0, 1, 1], [], []>} : vector<256x16xf32>, vector<16x16xf32>, vector<256x16xf32> -> vector<256x16xf32>
    %196 = arith.addf %191, %195 : vector<256x16xf32>
    %197 = vector.extract_strided_slice %178 {offsets = [1, 0, 0], sizes = [16, 16, 16], strides = [1, 1, 1]} : vector<18x18x16xf32> to vector<16x16x16xf32>
    %198 = vector.shape_cast %197 : vector<16x16x16xf32> to vector<256x16xf32>
    %199 = vector.extract_strided_slice %179 {offsets = [48, 0], sizes = [16, 16], strides = [1, 1]} : vector<144x16xf32> to vector<16x16xf32>
    %cst_91 = arith.constant dense<0.000000e+00> : vector<256x16xf32>
    %200 = tpu.matmul %198, %199, %cst_91 {dimension_numbers = #tpu.dot_dimension_numbers<[1], [0], [0], [1], [0, 0, 1, 1], [], []>} : vector<256x16xf32>, vector<16x16xf32>, vector<256x16xf32> -> vector<256x16xf32>
    %201 = arith.addf %196, %200 : vector<256x16xf32>
    %202 = vector.extract_strided_slice %178 {offsets = [1, 1, 0], sizes = [16, 16, 16], strides = [1, 1, 1]} : vector<18x18x16xf32> to vector<16x16x16xf32>
    %203 = vector.shape_cast %202 : vector<16x16x16xf32> to vector<256x16xf32>
    %204 = vector.extract_strided_slice %179 {offsets = [64, 0], sizes = [16, 16], strides = [1, 1]} : vector<144x16xf32> to vector<16x16xf32>
    %cst_92 = arith.constant dense<0.000000e+00> : vector<256x16xf32>
    %205 = tpu.matmul %203, %204, %cst_92 {dimension_numbers = #tpu.dot_dimension_numbers<[1], [0], [0], [1], [0, 0, 1, 1], [], []>} : vector<256x16xf32>, vector<16x16xf32>, vector<256x16xf32> -> vector<256x16xf32>
    %206 = arith.addf %201, %205 : vector<256x16xf32>
    %207 = vector.extract_strided_slice %178 {offsets = [1, 2, 0], sizes = [16, 16, 16], strides = [1, 1, 1]} : vector<18x18x16xf32> to vector<16x16x16xf32>
    %208 = vector.shape_cast %207 : vector<16x16x16xf32> to vector<256x16xf32>
    %209 = vector.extract_strided_slice %179 {offsets = [80, 0], sizes = [16, 16], strides = [1, 1]} : vector<144x16xf32> to vector<16x16xf32>
    %cst_93 = arith.constant dense<0.000000e+00> : vector<256x16xf32>
    %210 = tpu.matmul %208, %209, %cst_93 {dimension_numbers = #tpu.dot_dimension_numbers<[1], [0], [0], [1], [0, 0, 1, 1], [], []>} : vector<256x16xf32>, vector<16x16xf32>, vector<256x16xf32> -> vector<256x16xf32>
    %211 = arith.addf %206, %210 : vector<256x16xf32>
    %212 = vector.extract_strided_slice %178 {offsets = [2, 0, 0], sizes = [16, 16, 16], strides = [1, 1, 1]} : vector<18x18x16xf32> to vector<16x16x16xf32>
    %213 = vector.shape_cast %212 : vector<16x16x16xf32> to vector<256x16xf32>
    %214 = vector.extract_strided_slice %179 {offsets = [96, 0], sizes = [16, 16], strides = [1, 1]} : vector<144x16xf32> to vector<16x16xf32>
    %cst_94 = arith.constant dense<0.000000e+00> : vector<256x16xf32>
    %215 = tpu.matmul %213, %214, %cst_94 {dimension_numbers = #tpu.dot_dimension_numbers<[1], [0], [0], [1], [0, 0, 1, 1], [], []>} : vector<256x16xf32>, vector<16x16xf32>, vector<256x16xf32> -> vector<256x16xf32>
    %216 = arith.addf %211, %215 : vector<256x16xf32>
    %217 = vector.extract_strided_slice %178 {offsets = [2, 1, 0], sizes = [16, 16, 16], strides = [1, 1, 1]} : vector<18x18x16xf32> to vector<16x16x16xf32>
    %218 = vector.shape_cast %217 : vector<16x16x16xf32> to vector<256x16xf32>
    %219 = vector.extract_strided_slice %179 {offsets = [112, 0], sizes = [16, 16], strides = [1, 1]} : vector<144x16xf32> to vector<16x16xf32>
    %cst_95 = arith.constant dense<0.000000e+00> : vector<256x16xf32>
    %220 = tpu.matmul %218, %219, %cst_95 {dimension_numbers = #tpu.dot_dimension_numbers<[1], [0], [0], [1], [0, 0, 1, 1], [], []>} : vector<256x16xf32>, vector<16x16xf32>, vector<256x16xf32> -> vector<256x16xf32>
    %221 = arith.addf %216, %220 : vector<256x16xf32>
    %222 = vector.extract_strided_slice %178 {offsets = [2, 2, 0], sizes = [16, 16, 16], strides = [1, 1, 1]} : vector<18x18x16xf32> to vector<16x16x16xf32>
    %223 = vector.shape_cast %222 : vector<16x16x16xf32> to vector<256x16xf32>
    %224 = vector.extract_strided_slice %179 {offsets = [128, 0], sizes = [16, 16], strides = [1, 1]} : vector<144x16xf32> to vector<16x16xf32>
    %cst_96 = arith.constant dense<0.000000e+00> : vector<256x16xf32>
    %225 = tpu.matmul %223, %224, %cst_96 {dimension_numbers = #tpu.dot_dimension_numbers<[1], [0], [0], [1], [0, 0, 1, 1], [], []>} : vector<256x16xf32>, vector<16x16xf32>, vector<256x16xf32> -> vector<256x16xf32>
    %226 = arith.addf %221, %225 : vector<256x16xf32>
    %227 = vector.broadcast %180 : vector<1x16xf32> to vector<256x16xf32>
    %228 = arith.addf %226, %227 : vector<256x16xf32>
    %c0_97 = arith.constant 0 : index
    %c0_98 = arith.constant 0 : index
    %229 = vector.load %arg6[%c0_97, %c0_98] : memref<144x16xf32, #tpu.memory_space<vmem>>, vector<144x16xf32>
    %c0_99 = arith.constant 0 : index
    %c0_100 = arith.constant 0 : index
    %230 = vector.load %arg7[%c0_99, %c0_100] : memref<1x16xf32, #tpu.memory_space<vmem>>, vector<1x16xf32>
    %cst_101 = arith.constant 0.000000e+00 : f32
    %231 = vector.broadcast %cst_101 : f32 to vector<256x16xf32>
    %232 = vector.extract_strided_slice %178 {offsets = [0, 0, 0], sizes = [16, 16, 16], strides = [1, 1, 1]} : vector<18x18x16xf32> to vector<16x16x16xf32>
    %233 = vector.shape_cast %232 : vector<16x16x16xf32> to vector<256x16xf32>
    %234 = vector.extract_strided_slice %229 {offsets = [0, 0], sizes = [16, 16], strides = [1, 1]} : vector<144x16xf32> to vector<16x16xf32>
    %cst_102 = arith.constant dense<0.000000e+00> : vector<256x16xf32>
    %235 = tpu.matmul %233, %234, %cst_102 {dimension_numbers = #tpu.dot_dimension_numbers<[1], [0], [0], [1], [0, 0, 1, 1], [], []>} : vector<256x16xf32>, vector<16x16xf32>, vector<256x16xf32> -> vector<256x16xf32>
    %236 = arith.addf %231, %235 : vector<256x16xf32>
    %237 = vector.extract_strided_slice %178 {offsets = [0, 1, 0], sizes = [16, 16, 16], strides = [1, 1, 1]} : vector<18x18x16xf32> to vector<16x16x16xf32>
    %238 = vector.shape_cast %237 : vector<16x16x16xf32> to vector<256x16xf32>
    %239 = vector.extract_strided_slice %229 {offsets = [16, 0], sizes = [16, 16], strides = [1, 1]} : vector<144x16xf32> to vector<16x16xf32>
    %cst_103 = arith.constant dense<0.000000e+00> : vector<256x16xf32>
    %240 = tpu.matmul %238, %239, %cst_103 {dimension_numbers = #tpu.dot_dimension_numbers<[1], [0], [0], [1], [0, 0, 1, 1], [], []>} : vector<256x16xf32>, vector<16x16xf32>, vector<256x16xf32> -> vector<256x16xf32>
    %241 = arith.addf %236, %240 : vector<256x16xf32>
    %242 = vector.extract_strided_slice %178 {offsets = [0, 2, 0], sizes = [16, 16, 16], strides = [1, 1, 1]} : vector<18x18x16xf32> to vector<16x16x16xf32>
    %243 = vector.shape_cast %242 : vector<16x16x16xf32> to vector<256x16xf32>
    %244 = vector.extract_strided_slice %229 {offsets = [32, 0], sizes = [16, 16], strides = [1, 1]} : vector<144x16xf32> to vector<16x16xf32>
    %cst_104 = arith.constant dense<0.000000e+00> : vector<256x16xf32>
    %245 = tpu.matmul %243, %244, %cst_104 {dimension_numbers = #tpu.dot_dimension_numbers<[1], [0], [0], [1], [0, 0, 1, 1], [], []>} : vector<256x16xf32>, vector<16x16xf32>, vector<256x16xf32> -> vector<256x16xf32>
    %246 = arith.addf %241, %245 : vector<256x16xf32>
    %247 = vector.extract_strided_slice %178 {offsets = [1, 0, 0], sizes = [16, 16, 16], strides = [1, 1, 1]} : vector<18x18x16xf32> to vector<16x16x16xf32>
    %248 = vector.shape_cast %247 : vector<16x16x16xf32> to vector<256x16xf32>
    %249 = vector.extract_strided_slice %229 {offsets = [48, 0], sizes = [16, 16], strides = [1, 1]} : vector<144x16xf32> to vector<16x16xf32>
    %cst_105 = arith.constant dense<0.000000e+00> : vector<256x16xf32>
    %250 = tpu.matmul %248, %249, %cst_105 {dimension_numbers = #tpu.dot_dimension_numbers<[1], [0], [0], [1], [0, 0, 1, 1], [], []>} : vector<256x16xf32>, vector<16x16xf32>, vector<256x16xf32> -> vector<256x16xf32>
    %251 = arith.addf %246, %250 : vector<256x16xf32>
    %252 = vector.extract_strided_slice %178 {offsets = [1, 1, 0], sizes = [16, 16, 16], strides = [1, 1, 1]} : vector<18x18x16xf32> to vector<16x16x16xf32>
    %253 = vector.shape_cast %252 : vector<16x16x16xf32> to vector<256x16xf32>
    %254 = vector.extract_strided_slice %229 {offsets = [64, 0], sizes = [16, 16], strides = [1, 1]} : vector<144x16xf32> to vector<16x16xf32>
    %cst_106 = arith.constant dense<0.000000e+00> : vector<256x16xf32>
    %255 = tpu.matmul %253, %254, %cst_106 {dimension_numbers = #tpu.dot_dimension_numbers<[1], [0], [0], [1], [0, 0, 1, 1], [], []>} : vector<256x16xf32>, vector<16x16xf32>, vector<256x16xf32> -> vector<256x16xf32>
    %256 = arith.addf %251, %255 : vector<256x16xf32>
    %257 = vector.extract_strided_slice %178 {offsets = [1, 2, 0], sizes = [16, 16, 16], strides = [1, 1, 1]} : vector<18x18x16xf32> to vector<16x16x16xf32>
    %258 = vector.shape_cast %257 : vector<16x16x16xf32> to vector<256x16xf32>
    %259 = vector.extract_strided_slice %229 {offsets = [80, 0], sizes = [16, 16], strides = [1, 1]} : vector<144x16xf32> to vector<16x16xf32>
    %cst_107 = arith.constant dense<0.000000e+00> : vector<256x16xf32>
    %260 = tpu.matmul %258, %259, %cst_107 {dimension_numbers = #tpu.dot_dimension_numbers<[1], [0], [0], [1], [0, 0, 1, 1], [], []>} : vector<256x16xf32>, vector<16x16xf32>, vector<256x16xf32> -> vector<256x16xf32>
    %261 = arith.addf %256, %260 : vector<256x16xf32>
    %262 = vector.extract_strided_slice %178 {offsets = [2, 0, 0], sizes = [16, 16, 16], strides = [1, 1, 1]} : vector<18x18x16xf32> to vector<16x16x16xf32>
    %263 = vector.shape_cast %262 : vector<16x16x16xf32> to vector<256x16xf32>
    %264 = vector.extract_strided_slice %229 {offsets = [96, 0], sizes = [16, 16], strides = [1, 1]} : vector<144x16xf32> to vector<16x16xf32>
    %cst_108 = arith.constant dense<0.000000e+00> : vector<256x16xf32>
    %265 = tpu.matmul %263, %264, %cst_108 {dimension_numbers = #tpu.dot_dimension_numbers<[1], [0], [0], [1], [0, 0, 1, 1], [], []>} : vector<256x16xf32>, vector<16x16xf32>, vector<256x16xf32> -> vector<256x16xf32>
    %266 = arith.addf %261, %265 : vector<256x16xf32>
    %267 = vector.extract_strided_slice %178 {offsets = [2, 1, 0], sizes = [16, 16, 16], strides = [1, 1, 1]} : vector<18x18x16xf32> to vector<16x16x16xf32>
    %268 = vector.shape_cast %267 : vector<16x16x16xf32> to vector<256x16xf32>
    %269 = vector.extract_strided_slice %229 {offsets = [112, 0], sizes = [16, 16], strides = [1, 1]} : vector<144x16xf32> to vector<16x16xf32>
    %cst_109 = arith.constant dense<0.000000e+00> : vector<256x16xf32>
    %270 = tpu.matmul %268, %269, %cst_109 {dimension_numbers = #tpu.dot_dimension_numbers<[1], [0], [0], [1], [0, 0, 1, 1], [], []>} : vector<256x16xf32>, vector<16x16xf32>, vector<256x16xf32> -> vector<256x16xf32>
    %271 = arith.addf %266, %270 : vector<256x16xf32>
    %272 = vector.extract_strided_slice %178 {offsets = [2, 2, 0], sizes = [16, 16, 16], strides = [1, 1, 1]} : vector<18x18x16xf32> to vector<16x16x16xf32>
    %273 = vector.shape_cast %272 : vector<16x16x16xf32> to vector<256x16xf32>
    %274 = vector.extract_strided_slice %229 {offsets = [128, 0], sizes = [16, 16], strides = [1, 1]} : vector<144x16xf32> to vector<16x16xf32>
    %cst_110 = arith.constant dense<0.000000e+00> : vector<256x16xf32>
    %275 = tpu.matmul %273, %274, %cst_110 {dimension_numbers = #tpu.dot_dimension_numbers<[1], [0], [0], [1], [0, 0, 1, 1], [], []>} : vector<256x16xf32>, vector<16x16xf32>, vector<256x16xf32> -> vector<256x16xf32>
    %276 = arith.addf %271, %275 : vector<256x16xf32>
    %277 = vector.broadcast %230 : vector<1x16xf32> to vector<256x16xf32>
    %278 = arith.addf %276, %277 : vector<256x16xf32>
    %279 = arith.addf %228, %278 : vector<256x16xf32>
    %280 = vector.shape_cast %279 : vector<256x16xf32> to vector<16x16x16xf32>
    %c0_111 = arith.constant 0 : index
    %c0_112 = arith.constant 0 : index
    %c0_113 = arith.constant 0 : index
    %c0_114 = arith.constant 0 : index
    %281 = vector.load %arg8[%c0_111, %c0_112, %c0_113, %c0_114] : memref<1x16x16x16xf32, #tpu.memory_space<vmem>>, vector<1x16x16x16xf32>
    %282 = vector.shape_cast %281 : vector<1x16x16x16xf32> to vector<16x16x16xf32>
    %283 = vector.shape_cast %280 : vector<16x16x16xf32> to vector<1x16x16x16xf32>
    tpu.vector_store %arg8[%c0_111, %c0_112, %c0_113, %c0_114], %283 {strides = array<i32>} : memref<1x16x16x16xf32, #tpu.memory_space<vmem>>, vector<1x16x16x16xf32>,
    %284 = vector.shape_cast %278 : vector<256x16xf32> to vector<16x16x16xf32>
    %c0_115 = arith.constant 0 : index
    %c0_116 = arith.constant 0 : index
    %c0_117 = arith.constant 0 : index
    %c0_118 = arith.constant 0 : index
    %285 = vector.load %arg9[%c0_115, %c0_116, %c0_117, %c0_118] : memref<1x16x16x16xf32, #tpu.memory_space<vmem>>, vector<1x16x16x16xf32>
    %286 = vector.shape_cast %285 : vector<1x16x16x16xf32> to vector<16x16x16xf32>
    %287 = vector.shape_cast %284 : vector<16x16x16xf32> to vector<1x16x16x16xf32>
    tpu.vector_store %arg9[%c0_115, %c0_116, %c0_117, %c0_118], %287 {strides = array<i32>} : memref<1x16x16x16xf32, #tpu.memory_space<vmem>>, vector<1x16x16x16xf32>,
    return
  }
  func.func @transform_0(%arg0: i32) -> (i32, i32, i32, i32) {
    %c0_i32 = arith.constant 0 : i32
    %c0_i32_0 = arith.constant 0 : i32
    %c0_i32_1 = arith.constant 0 : i32
    %c0_i32_2 = arith.constant 0 : i32
    return %arg0, %c0_i32, %c0_i32_0, %c0_i32_1 : i32, i32, i32, i32
  }
  func.func @transform_1(%arg0: i32) -> (i32, i32, i32) {
    %c0_i32 = arith.constant 0 : i32
    %c0_i32_0 = arith.constant 0 : i32
    %c0_i32_1 = arith.constant 0 : i32
    %c0_i32_2 = arith.constant 0 : i32
    return %c0_i32, %c0_i32_0, %c0_i32_1 : i32, i32, i32
  }
  func.func @transform_2(%arg0: i32) -> (i32, i32, i32) {
    %c0_i32 = arith.constant 0 : i32
    %c0_i32_0 = arith.constant 0 : i32
    %c0_i32_1 = arith.constant 0 : i32
    %c0_i32_2 = arith.constant 0 : i32
    return %c0_i32, %c0_i32_0, %c0_i32_1 : i32, i32, i32
  }
  func.func @transform_3(%arg0: i32) -> (i32, i32) {
    %c0_i32 = arith.constant 0 : i32
    %c0_i32_0 = arith.constant 0 : i32
    %c0_i32_1 = arith.constant 0 : i32
    return %c0_i32, %c0_i32_0 : i32, i32
  }
  func.func @transform_4(%arg0: i32) -> (i32, i32) {
    %c0_i32 = arith.constant 0 : i32
    %c0_i32_0 = arith.constant 0 : i32
    %c0_i32_1 = arith.constant 0 : i32
    return %c0_i32, %c0_i32_0 : i32, i32
  }
  func.func @transform_5(%arg0: i32) -> (i32, i32) {
    %c0_i32 = arith.constant 0 : i32
    %c0_i32_0 = arith.constant 0 : i32
    %c0_i32_1 = arith.constant 0 : i32
    return %c0_i32, %c0_i32_0 : i32, i32
  }
  func.func @transform_6(%arg0: i32) -> (i32, i32) {
    %c0_i32 = arith.constant 0 : i32
    %c0_i32_0 = arith.constant 0 : i32
    %c0_i32_1 = arith.constant 0 : i32
    return %c0_i32, %c0_i32_0 : i32, i32
  }
  func.func @transform_7(%arg0: i32) -> (i32, i32, i32, i32) {
    %c0_i32 = arith.constant 0 : i32
    %c0_i32_0 = arith.constant 0 : i32
    %c0_i32_1 = arith.constant 0 : i32
    %c0_i32_2 = arith.constant 0 : i32
    return %arg0, %c0_i32, %c0_i32_0, %c0_i32_1 : i32, i32, i32, i32
  }
  func.func @transform_8(%arg0: i32) -> (i32, i32, i32, i32) {
    %c0_i32 = arith.constant 0 : i32
    %c0_i32_0 = arith.constant 0 : i32
    %c0_i32_1 = arith.constant 0 : i32
    %c0_i32_2 = arith.constant 0 : i32
    return %arg0, %c0_i32, %c0_i32_0, %c0_i32_1 : i32, i32, i32, i32
  }
}

</mosaic_0001>

<bundles_post_ra>
// kernel: etds_fused_forward.1
= control target key start
LH: loop header
LB: loop body
LE: loop exit
PB: predicated region body
PF: predicated region fallthrough
CT: control target
= control target key end

     0   :  { %s21355_s27 = smov 0   ;;  %s26894_s0 = inlined_call_operand.vmem [shape: f32[2,16,16,16], index: 0, kind: input, shape index: {}]   ;;  %s26895_s1 = inlined_call_operand.vmem [shape: f32[3,144,16], index: 1, kind: input, shape index: {}]   ;;  %s26896_s2 = inlined_call_operand.vmem [shape: f32[3,1,16], index: 2, kind: input, shape index: {}]   ;;  %s26897_s3 = inlined_call_operand.vmem [shape: f32[144,16], index: 3, kind: input, shape index: {}]   ;;  %s26898_s4 = inlined_call_operand.vmem [shape: f32[1,16], index: 4, kind: input, shape index: {}]   ;;  %s26899_s5 = inlined_call_operand.vmem [shape: f32[144,16], index: 5, kind: input, shape index: {}]   ;;  %s26900_s6 = inlined_call_operand.vmem [shape: f32[1,16], index: 6, kind: input, shape index: {}]   ;;  %s26901_s7 = inlined_call_operand.vmem [shape: f32[2,16,16,16], index: 7, kind: output, shape index: {0}]   ;;  %s26902_s8 = inlined_call_operand.vmem [shape: f32[2,16,16,16], index: 8, kind: output, shape index: {1}]  }
   0x1 LB: > { %s14423_s28 = sadd.s32 4294967295, %s21307_s27   ;;  %p14427_p0 = scmp.ge.s32.totalorder %s21307_s27, 1  ;;  %s21307_s27 = sphi %s21355_s27, %s19_s27  }
   0x2   : > { %p265_p1 = scmp.lt.s32.totalorder %s21307_s27, 3 }
   0x4   : > { %p266_p2 = pnand %p14427_p0, %p265_p1 }
   0x6   : > { %269 = sbr.rel (%p266_p2) target bundleno = 2798 (0xaee), region = 48 }
   0xd   : > { %v550_v0 = vld [vmem:[%s26895_s1 + $0x10] sm:$0xff]  ;;  %v551_v1 = vld [vmem:[%s26895_s1 + $0x18] sm:$0xff]  ;;  %vm319_vm0 = vcmask 130048   ;;  %v21372_v2 = vld [vmem:[%s26895_s1 + $0x40] sm:$0xff]  ;;  %v21309_v4 = vmov 0.0   ;;  %vm322_vm1 = vcmask 123904  }
   0xe   : > { %v21374_v3 = vpack.c.bf16 %v551_v1, %v550_v0  ;;  %320 = vst.msk [vmem:[#allocation2] sm:$0xff] %vm319_vm0, %v21309_v4  ;;  %321 = vst.msk [vmem:[#allocation2 + $0x8] sm:$0xff] %vm319_vm0, %v21309_v4  ;;  %v557_v5 = vld [vmem:[%s26895_s1 + $0x48] sm:$0xff]  ;;  %p21525_p3 = scmp.lt.s32.totalorder %s14423_s28, 1  ;;  %v548_v6 = vld [vmem:[%s26895_s1] sm:$0xff]  ;;  %vm615_vm2 = vcmask 1046528  }
   0xf   : > { %324 = vst.msk [vmem:[#allocation2 + $0x18] sm:$0xff] %vm319_vm0, %v21309_v4  ;;  %325 = vst.msk [vmem:[#allocation2 + $0x20] sm:$0xff] %vm319_vm0, %v21309_v4  ;;  %v549_v7 = vld [vmem:[%s26895_s1 + $0x8] sm:$0xff]  ;;  %v21536_v8 = vpack.c.bf16 %v557_v5, %v21372_v2  ;;  %v558_v10 = vld [vmem:[%s26895_s1 + $0x50] sm:$0xff]  ;;  %vm1274_vm3 = vcmask 1045504  }
  0x10   : > { %327 = vst.msk [vmem:[#allocation2 + $0x30] sm:$0xff] %vm319_vm0, %v21309_v4  ;;  %328 = vst.msk [vmem:[#allocation2 + $0x38] sm:$0xff] %vm319_vm0, %v21309_v4  ;;  %v19796_v9 = vpack.c.bf16 %v549_v7, %v548_v6  ;;  %v559_v11 = vld [vmem:[%s26895_s1 + $0x58] sm:$0xff]  ;;  %19793 = vmatprep.subr.bf16.mxu1 %v21374_v3  ;;  %s27605_s28 = smov (!%p21525_p3, %s14423_s28), 1  ;;  %v552_v13 = vld [vmem:[%s26895_s1 + $0x20] sm:$0xff] }
  0x11   : > { %330 = vst.msk [vmem:[#allocation2 + $0x48] sm:$0xff] %vm319_vm0, %v21309_v4  ;;  %331 = vst.msk [vmem:[#allocation2 + $0x50] sm:$0xff] %vm319_vm0, %v21309_v4  ;;  %v21621_v12 = vpack.c.bf16 %v559_v11, %v558_v10  ;;  %19795 = vmatpush3.bf16.msra.mxu1 %v21374_v3  ;;  %19809 = vmatprep.subr.bf16.mxu0 %v21536_v8  ;;  %s21626_s24 = sshll.u32 %s27605_s28, 8  ;;  %v553_v14 = vld [vmem:[%s26895_s1 + $0x28] sm:$0xff]  ;;  %v560_v39 = vld [vmem:[%s26895_s1 + $0x60] sm:$0xff] }
  0x12   : > { %333 = vst.msk [vmem:[#allocation2 + $0x60] sm:$0xff] %vm319_vm0, %v21309_v4  ;;  %334 = vst.msk [vmem:[#allocation2 + $0x68] sm:$0xff] %vm319_vm0, %v21309_v4  ;;  %19811 = vmatpush3.bf16.msra.mxu0 %v21536_v8  ;;  %19797 = vmatprep.subr.bf16.mxu1 %v19796_v9  ;;  %s21632_s29 = scalar_lea.vmem %s26894_s0, %s21626_s24  ;;  %v21672_v34 = vpack.c.bf16 %v553_v14, %v552_v13  ;;  %v561_v40 = vld [vmem:[%s26895_s1 + $0x68] sm:$0xff]  ;;  %s26691_s23 = scalar_lea.vmem %s26902_s8, %s21626_s24 }
  0x13   : > { %336 = vst.msk [vmem:[#allocation2 + $0x78] sm:$0xff] %vm319_vm0, %v21309_v4  ;;  %337 = vst.msk [vmem:[#allocation2 + $0x80] sm:$0xff] %vm319_vm0, %v21309_v4  ;;  %19813 = vmatprep.subr.bf16.mxu0 %v21621_v12  ;;  %v429_v15 = vld [vmem:[%s21632_s29] sm:$0xff]  ;;  %v430_v16 = vld [vmem:[%s21632_s29 + $0x8] sm:$0xff]  ;;  %v21726_v60 = vpack.c.bf16 %v561_v40, %v560_v39 }
  0x14   : > { %339 = vst.msk [vmem:[#allocation2 + $0x90] sm:$0xff] %vm319_vm0, %v21309_v4  ;;  %340 = vst.msk [vmem:[#allocation2 + $0x98] sm:$0xff] %vm319_vm0, %v21309_v4  ;;  %v431_v17 = vld [vmem:[%s21632_s29 + $0x10] sm:$0xff]  ;;  %v432_v20 = vld [vmem:[%s21632_s29 + $0x18] sm:$0xff] }
  0x15   : > { %342 = vst.msk [vmem:[#allocation2 + $0xa8] sm:$0xff] %vm319_vm0, %v21309_v4  ;;  %343 = vst.msk [vmem:[#allocation2 + $0xb0] sm:$0xff] %vm319_vm0, %v21309_v4  ;;  %v21644_v18 = vld [vmem:[#allocation2] sm:$0xff]  ;;  %v21646_v19 = vld [vmem:[#allocation2 + $0x8] sm:$0xff] }
  0x16   : > { %345 = vst.msk [vmem:[#allocation2 + $0xc0] sm:$0xff] %vm319_vm0, %v21309_v4  ;;  %346 = vst.msk [vmem:[#allocation2 + $0xc8] sm:$0xff] %vm319_vm0, %v21309_v4  ;;  %v616_v21 = vrot.slane %v21644_v18, 1  ;;  %v617_v22 = vrot.slane %v21646_v19, 1  ;;  %v433_v24 = vld [vmem:[%s21632_s29 + $0x20] sm:$0xff]  ;;  %v434_v25 = vld [vmem:[%s21632_s29 + $0x28] sm:$0xff] }
  0x17   : > { %348 = vst.msk [vmem:[#allocation2 + $0xd8] sm:$0xff] %vm319_vm0, %v21309_v4  ;;  %349 = vst.msk [vmem:[#allocation2 + $0xe0] sm:$0xff] %vm319_vm0, %v21309_v4  ;;  %v435_v27 = vld [vmem:[%s21632_s29 + $0x30] sm:$0xff]  ;;  %v436_v28 = vld [vmem:[%s21632_s29 + $0x38] sm:$0xff] }
  0x18   : > { %351 = vst.msk [vmem:[#allocation2 + $0xf0] sm:$0xff] %vm319_vm0, %v21309_v4  ;;  %352 = vst.msk [vmem:[#allocation2 + $0xf8] sm:$0xff] %vm319_vm0, %v21309_v4  ;;  %v437_v29 = vld [vmem:[%s21632_s29 + $0x40] sm:$0xff]  ;;  %v618_v30 = vsel %vm615_vm2, %v616_v21, %v617_v22  ;;  %v438_v31 = vld [vmem:[%s21632_s29 + $0x48] sm:$0xff] }
  0x19   : > { %354 = vst.msk [vmem:[#allocation2 + $0x108] sm:$0xff] %vm319_vm0, %v21309_v4  ;;  %355 = vst.msk [vmem:[#allocation2 + $0x110] sm:$0xff] %vm319_vm0, %v21309_v4  ;;  %v439_v32 = vld [vmem:[%s21632_s29 + $0x50] sm:$0xff]  ;;  %v440_v33 = vld [vmem:[%s21632_s29 + $0x58] sm:$0xff]  ;;  %17456 = vmatprep.mubr.msk.f32.mxu1 %vm319_vm0, %v618_v30 }
  0x1a   : > { %357 = vst.msk [vmem:[#allocation2 + $0x120] sm:$0xff] %vm319_vm0, %v21309_v4  ;;  %358 = vst.msk [vmem:[#allocation2 + $0x128] sm:$0xff] %vm319_vm0, %v21309_v4  ;;  %v441_v36 = vld [vmem:[%s21632_s29 + $0x60] sm:$0xff]  ;;  %v442_v37 = vld [vmem:[%s21632_s29 + $0x68] sm:$0xff] }
  0x1b   : > { %360 = vst.msk [vmem:[#allocation2 + $0x138] sm:$0xff] %vm319_vm0, %v21309_v4  ;;  %361 = vst.msk [vmem:[#allocation2 + $0x140] sm:$0xff] %vm319_vm0, %v21309_v4  ;;  %v443_v38 = vld [vmem:[%s21632_s29 + $0x70] sm:$0xff]  ;;  %v444_v41 = vld [vmem:[%s21632_s29 + $0x78] sm:$0xff] }
  0x1c   : > { %363 = vst.msk [vmem:[#allocation2 + $0x150] sm:$0xff] %vm319_vm0, %v21309_v4  ;;  %364 = vst.msk [vmem:[#allocation2 + $0x158] sm:$0xff] %vm319_vm0, %v21309_v4  ;;  %v445_v42 = vld [vmem:[%s21632_s29 + $0x80] sm:$0xff]  ;;  %v446_v43 = vld [vmem:[%s21632_s29 + $0x88] sm:$0xff] }
  0x1d   : > { %366 = vst.msk [vmem:[#allocation2 + $0x168] sm:$0xff] %vm319_vm0, %v21309_v4  ;;  %367 = vst.msk [vmem:[#allocation2 + $0x170] sm:$0xff] %vm319_vm0, %v21309_v4  ;;  %v447_v44 = vld [vmem:[%s21632_s29 + $0x90] sm:$0xff]  ;;  %v448_v45 = vld [vmem:[%s21632_s29 + $0x98] sm:$0xff] }
  0x1e   : > { %369 = vst.msk [vmem:[#allocation2 + $0x180] sm:$0xff] %vm319_vm0, %v21309_v4  ;;  %370 = vst.msk [vmem:[#allocation2 + $0x188] sm:$0xff] %vm319_vm0, %v21309_v4  ;;  %v449_v46 = vld [vmem:[%s21632_s29 + $0xa0] sm:$0xff]  ;;  %v454_v30 = vld [vmem:[%s21632_s29 + $0xc8] sm:$0xff] }
  0x1f   : > { %372 = vst.msk [vmem:[#allocation2 + $0x198] sm:$0xff] %vm319_vm0, %v21309_v4  ;;  %373 = vst.msk [vmem:[#allocation2 + $0x1a0] sm:$0xff] %vm319_vm0, %v21309_v4 }
  0x20   : > { %375 = vst.msk [vmem:[#allocation3] sm:$0xff] %vm319_vm0, %v21309_v4  ;;  %376 = vst.msk [vmem:[#allocation3 + $0x8] sm:$0xff] %vm319_vm0, %v21309_v4 }
  0x21   : > { %378 = vst.msk [vmem:[#allocation3 + $0x18] sm:$0xff] %vm319_vm0, %v21309_v4  ;;  %379 = vst.msk [vmem:[#allocation3 + $0x20] sm:$0xff] %vm319_vm0, %v21309_v4 }
  0x22   : > { %381 = vst.msk [vmem:[#allocation3 + $0x30] sm:$0xff] %vm319_vm0, %v21309_v4  ;;  %382 = vst.msk [vmem:[#allocation3 + $0x38] sm:$0xff] %vm319_vm0, %v21309_v4 }
  0x23   : > { %384 = vst.msk [vmem:[#allocation3 + $0x48] sm:$0xff] %vm319_vm0, %v21309_v4  ;;  %385 = vst.msk [vmem:[#allocation3 + $0x50] sm:$0xff] %vm319_vm0, %v21309_v4 }
  0x24   : > { %387 = vst.msk [vmem:[#allocation3 + $0x60] sm:$0xff] %vm319_vm0, %v21309_v4  ;;  %388 = vst.msk [vmem:[#allocation3 + $0x68] sm:$0xff] %vm319_vm0, %v21309_v4 }
  0x25   : > { %390 = vst.msk [vmem:[#allocation3 + $0x78] sm:$0xff] %vm319_vm0, %v21309_v4  ;;  %391 = vst.msk [vmem:[#allocation3 + $0x80] sm:$0xff] %vm319_vm0, %v21309_v4 }
  0x26   : > { %393 = vst.msk [vmem:[#allocation3 + $0x90] sm:$0xff] %vm319_vm0, %v21309_v4  ;;  %394 = vst.msk [vmem:[#allocation3 + $0x98] sm:$0xff] %vm319_vm0, %v21309_v4 }
  0x27   : > { %396 = vst.msk [vmem:[#allocation3 + $0xa8] sm:$0xff] %vm319_vm0, %v21309_v4  ;;  %397 = vst.msk [vmem:[#allocation3 + $0xb0] sm:$0xff] %vm319_vm0, %v21309_v4 }
  0x28   : > { %399 = vst.msk [vmem:[#allocation3 + $0xc0] sm:$0xff] %vm319_vm0, %v21309_v4  ;;  %400 = vst.msk [vmem:[#allocation3 + $0xc8] sm:$0xff] %vm319_vm0, %v21309_v4 }
  0x29   : > { %402 = vst.msk [vmem:[#allocation3 + $0xd8] sm:$0xff] %vm319_vm0, %v21309_v4  ;;  %403 = vst.msk [vmem:[#allocation3 + $0xe0] sm:$0xff] %vm319_vm0, %v21309_v4 }
  0x2a   : > { %405 = vst.msk [vmem:[#allocation3 + $0xf0] sm:$0xff] %vm319_vm0, %v21309_v4  ;;  %406 = vst.msk [vmem:[#allocation3 + $0xf8] sm:$0xff] %vm319_vm0, %v21309_v4 }
  0x2b   : > { %408 = vst.msk [vmem:[#allocation3 + $0x108] sm:$0xff] %vm319_vm0, %v21309_v4  ;;  %409 = vst.msk [vmem:[#allocation3 + $0x110] sm:$0xff] %vm319_vm0, %v21309_v4 }
  0x2c   : > { %411 = vst.msk [vmem:[#allocation3 + $0x120] sm:$0xff] %vm319_vm0, %v21309_v4  ;;  %412 = vst.msk [vmem:[#allocation3 + $0x128] sm:$0xff] %vm319_vm0, %v21309_v4 }
  0x2d   : > { %414 = vst.msk [vmem:[#allocation3 + $0x138] sm:$0xff] %vm319_vm0, %v21309_v4  ;;  %415 = vst.msk [vmem:[#allocation3 + $0x140] sm:$0xff] %vm319_vm0, %v21309_v4 }
  0x2e   : > { %417 = vst.msk [vmem:[#allocation3 + $0x150] sm:$0xff] %vm319_vm0, %v21309_v4  ;;  %418 = vst.msk [vmem:[#allocation3 + $0x158] sm:$0xff] %vm319_vm0, %v21309_v4 }
  0x2f   : > { %420 = vst.msk [vmem:[#allocation3 + $0x168] sm:$0xff] %vm319_vm0, %v21309_v4  ;;  %421 = vst.msk [vmem:[#allocation3 + $0x170] sm:$0xff] %vm319_vm0, %v21309_v4 }
  0x30   : > { %423 = vst.msk [vmem:[#allocation3 + $0x180] sm:$0xff] %vm319_vm0, %v21309_v4  ;;  %424 = vst.msk [vmem:[#allocation3 + $0x188] sm:$0xff] %vm319_vm0, %v21309_v4 }
  0x31   : > { %426 = vst.msk [vmem:[#allocation3 + $0x198] sm:$0xff] %vm319_vm0, %v21309_v4  ;;  %427 = vst.msk [vmem:[#allocation3 + $0x1a0] sm:$0xff] %vm319_vm0, %v21309_v4 }
  0x32   : > { %323 = vst.msk [vmem:[#allocation2 + $0x10] sm:$0x3] %vm322_vm1, %v21309_v4  ;;  %326 = vst.msk [vmem:[#allocation2 + $0x28] sm:$0x3] %vm322_vm1, %v21309_v4 }
  0x33   : > { %329 = vst.msk [vmem:[#allocation2 + $0x40] sm:$0x3] %vm322_vm1, %v21309_v4  ;;  %332 = vst.msk [vmem:[#allocation2 + $0x58] sm:$0x3] %vm322_vm1, %v21309_v4 }
  0x34   : > { %335 = vst.msk [vmem:[#allocation2 + $0x70] sm:$0x3] %vm322_vm1, %v21309_v4  ;;  %338 = vst.msk [vmem:[#allocation2 + $0x88] sm:$0x3] %vm322_vm1, %v21309_v4 }
  0x35   : > { %341 = vst.msk [vmem:[#allocation2 + $0xa0] sm:$0x3] %vm322_vm1, %v21309_v4  ;;  %344 = vst.msk [vmem:[#allocation2 + $0xb8] sm:$0x3] %vm322_vm1, %v21309_v4 }
  0x36   : > { %347 = vst.msk [vmem:[#allocation2 + $0xd0] sm:$0x3] %vm322_vm1, %v21309_v4  ;;  %350 = vst.msk [vmem:[#allocation2 + $0xe8] sm:$0x3] %vm322_vm1, %v21309_v4 }
  0x37   : > { %353 = vst.msk [vmem:[#allocation2 + $0x100] sm:$0x3] %vm322_vm1, %v21309_v4  ;;  %356 = vst.msk [vmem:[#allocation2 + $0x118] sm:$0x3] %vm322_vm1, %v21309_v4 }
  0x38   : > { %359 = vst.msk [vmem:[#allocation2 + $0x130] sm:$0x3] %vm322_vm1, %v21309_v4  ;;  %362 = vst.msk [vmem:[#allocation2 + $0x148] sm:$0x3] %vm322_vm1, %v21309_v4 }
  0x39   : > { %365 = vst.msk [vmem:[#allocation2 + $0x160] sm:$0x3] %vm322_vm1, %v21309_v4  ;;  %368 = vst.msk [vmem:[#allocation2 + $0x178] sm:$0x3] %vm322_vm1, %v21309_v4  ;;  %v21654_v23 = vld [vmem:[#allocation2 + $0x10] sm:$0x3] }
  0x3a   : > { %371 = vst.msk [vmem:[#allocation2 + $0x190] sm:$0x3] %vm322_vm1, %v21309_v4  ;;  %374 = vst.msk [vmem:[#allocation2 + $0x1a8] sm:$0x3] %vm322_vm1, %v21309_v4  ;;  %v619_v26 = vrot.slane %v21654_v23, 1 }
  0x3b   : > { %377 = vst.msk [vmem:[#allocation3 + $0x10] sm:$0x3] %vm322_vm1, %v21309_v4  ;;  %380 = vst.msk [vmem:[#allocation3 + $0x28] sm:$0x3] %vm322_vm1, %v21309_v4 }
  0x3c   : > { %383 = vst.msk [vmem:[#allocation3 + $0x40] sm:$0x3] %vm322_vm1, %v21309_v4  ;;  %386 = vst.msk [vmem:[#allocation3 + $0x58] sm:$0x3] %vm322_vm1, %v21309_v4  ;;  %v620_v35 = vsel %vm615_vm2, %v617_v22, %v619_v26  ;;  %v450_v26 = vld [vmem:[%s21632_s29 + $0xa8] sm:$0xff] }
  0x3d   : > { %389 = vst.msk [vmem:[#allocation3 + $0x70] sm:$0x3] %vm322_vm1, %v21309_v4  ;;  %392 = vst.msk [vmem:[#allocation3 + $0x88] sm:$0x3] %vm322_vm1, %v21309_v4  ;;  %17457 = vmatmul.mubr.msk.f32.vlgmr.msra.gmra.mrb[0].mxu1 %vm319_vm0, %v620_v35 }
  0x3e   : > { %395 = vst.msk [vmem:[#allocation3 + $0xa0] sm:$0x3] %vm322_vm1, %v21309_v4  ;;  %398 = vst.msk [vmem:[#allocation3 + $0xb8] sm:$0x3] %vm322_vm1, %v21309_v4  ;;  %19799 = vmatpush3.bf16.msra.mxu1 %v19796_v9 }
  0x3f   : > { %401 = vst.msk [vmem:[#allocation3 + $0xd0] sm:$0x3] %vm322_vm1, %v21309_v4  ;;  %404 = vst.msk [vmem:[#allocation3 + $0xe8] sm:$0x3] %vm322_vm1, %v21309_v4  ;;  %19801 = vmatprep.subr.bf16.mxu1 %v21672_v34 }
  0x40   : > { %407 = vst.msk [vmem:[#allocation3 + $0x100] sm:$0x3] %vm322_vm1, %v21309_v4  ;;  %410 = vst.msk [vmem:[#allocation3 + $0x118] sm:$0x3] %vm322_vm1, %v21309_v4 }
  0x41   : > { %413 = vst.msk [vmem:[#allocation3 + $0x130] sm:$0x3] %vm322_vm1, %v21309_v4  ;;  %416 = vst.msk [vmem:[#allocation3 + $0x148] sm:$0x3] %vm322_vm1, %v21309_v4 }
  0x42   : > { %419 = vst.msk [vmem:[#allocation3 + $0x160] sm:$0x3] %vm322_vm1, %v21309_v4  ;;  %422 = vst.msk [vmem:[#allocation3 + $0x178] sm:$0x3] %vm322_vm1, %v21309_v4 }
  0x43   : > { %425 = vst.msk [vmem:[#allocation3 + $0x190] sm:$0x3] %vm322_vm1, %v21309_v4  ;;  %428 = vst.msk [vmem:[#allocation3 + $0x1a8] sm:$0x3] %vm322_vm1, %v21309_v4 }
  0x44   : > { %462 = vst.msk [vmem:[#allocation2 + $0x19] sm:$0xff] %vm319_vm0, %v429_v15  ;;  %463 = vst.msk [vmem:[#allocation2 + $0x21] sm:$0xff] %vm319_vm0, %v430_v16 }
  0x45   : > { %464 = vst.msk [vmem:[#allocation2 + $0x31] sm:$0xff] %vm319_vm0, %v431_v17  ;;  %465 = vst.msk [vmem:[#allocation2 + $0x39] sm:$0xff] %vm319_vm0, %v432_v20 }
  0x46   : > { %466 = vst.msk [vmem:[#allocation2 + $0x49] sm:$0xff] %vm319_vm0, %v433_v24  ;;  %467 = vst.msk [vmem:[#allocation2 + $0x51] sm:$0xff] %vm319_vm0, %v434_v25 }
  0x47   : > { %468 = vst.msk [vmem:[#allocation2 + $0x61] sm:$0xff] %vm319_vm0, %v435_v27  ;;  %469 = vst.msk [vmem:[#allocation2 + $0x69] sm:$0xff] %vm319_vm0, %v436_v28  ;;  %v451_v27 = vld [vmem:[%s21632_s29 + $0xb0] sm:$0xff]  ;;  %v452_v28 = vld [vmem:[%s21632_s29 + $0xb8] sm:$0xff] }
  0x48   : > { %470 = vst.msk [vmem:[#allocation2 + $0x79] sm:$0xff] %vm319_vm0, %v437_v29  ;;  %471 = vst.msk [vmem:[#allocation2 + $0x81] sm:$0xff] %vm319_vm0, %v438_v31  ;;  %v453_v29 = vld [vmem:[%s21632_s29 + $0xc0] sm:$0xff]  ;;  %v455_v31 = vld [vmem:[%s21632_s29 + $0xd0] sm:$0xff] }
  0x49   : > { %472 = vst.msk [vmem:[#allocation2 + $0x91] sm:$0xff] %vm319_vm0, %v439_v32  ;;  %473 = vst.msk [vmem:[#allocation2 + $0x99] sm:$0xff] %vm319_vm0, %v440_v33  ;;  %v456_v32 = vld [vmem:[%s21632_s29 + $0xd8] sm:$0xff] }
  0x4a   : > { %474 = vst.msk [vmem:[#allocation2 + $0xa9] sm:$0xff] %vm319_vm0, %v441_v36  ;;  %475 = vst.msk [vmem:[#allocation2 + $0xb1] sm:$0xff] %vm319_vm0, %v442_v37  ;;  %v457_v36 = vld [vmem:[%s21632_s29 + $0xe0] sm:$0xff]  ;;  %v458_v37 = vld [vmem:[%s21632_s29 + $0xe8] sm:$0xff] }
  0x4b   : > { %476 = vst.msk [vmem:[#allocation2 + $0xc1] sm:$0xff] %vm319_vm0, %v443_v38  ;;  %477 = vst.msk [vmem:[#allocation2 + $0xc9] sm:$0xff] %vm319_vm0, %v444_v41  ;;  %v21701_v47 = vld [vmem:[#allocation2 + $0x18] sm:$0xff]  ;;  %v21703_v48 = vld [vmem:[#allocation2 + $0x20] sm:$0xff] }
  0x4c   : > { %478 = vst.msk [vmem:[#allocation2 + $0xd9] sm:$0xff] %vm319_vm0, %v445_v42  ;;  %479 = vst.msk [vmem:[#allocation2 + $0xe1] sm:$0xff] %vm319_vm0, %v446_v43  ;;  %v21705_v49 = vld [vmem:[#allocation2 + $0x28] sm:$0x3]  ;;  %v621_v50 = vrot.slane %v21701_v47, 1  ;;  %v622_v51 = vrot.slane %v21703_v48, 1 }
  0x4d   : > { %27210 = vst [vmem:[#allocation4_spill] sm:$0xff] %v21701_v47  ;;  %27211 = vst [vmem:[#allocation5_spill] sm:$0xff] %v21703_v48  ;;  %v624_v52 = vrot.slane %v21705_v49, 1  ;;  %v21714_v53 = vld [vmem:[#allocation2 + $0x30] sm:$0xff]  ;;  %v21716_v54 = vld [vmem:[#allocation2 + $0x38] sm:$0xff] }
  0x4e   : > { %480 = vst.msk [vmem:[#allocation2 + $0xf1] sm:$0xff] %vm319_vm0, %v447_v44  ;;  %481 = vst.msk [vmem:[#allocation2 + $0xf9] sm:$0xff] %vm319_vm0, %v448_v45  ;;  %v626_v55 = vrot.slane %v21714_v53, 1  ;;  %v627_v56 = vrot.slane %v21716_v54, 1  ;;  %v21720_v57 = vld [vmem:[#allocation2 + $0x40] sm:$0x3]  ;;  %v623_v61 = vsel %vm615_vm2, %v621_v50, %v622_v51 }
  0x4f   : > { %482 = vst.msk [vmem:[#allocation2 + $0x109] sm:$0xff] %vm319_vm0, %v449_v46  ;;  %v21722_v58 = vld [vmem:[#allocation2 + $0x48] sm:$0xff]  ;;  %v21724_v59 = vld [vmem:[#allocation2 + $0x50] sm:$0xff]  ;;  %v625_v62 = vsel %vm615_vm2, %v622_v51, %v624_v52  ;;  %v629_v63 = vrot.slane %v21720_v57, 1  ;;  %v21732_v1 = vld [vmem:[#allocation2 + $0x58] sm:$0x3]  ;;  %17459 = vmatprep.mubr.msk.f32.mxu1 %vm319_vm0, %v623_v61  ;;  %17664 = vmatprep.mubr.msk.f32.mxu0 %vm319_vm0, %v623_v61 }
  0x50   : > { %v631_v0 = vrot.slane %v21722_v58, 1  ;;  %v21737_v2 = vsel %vm615_vm2, %v626_v55, %v627_v56  ;;  %v632_v3 = vrot.slane %v21724_v59, 1  ;;  %v21740_v4 = vld [vmem:[#allocation2 + $0x60] sm:$0xff]  ;;  %v21742_v5 = vld [vmem:[#allocation2 + $0x68] sm:$0xff]  ;;  %17460 = vmatmul.mubr.msk.f32.gmra.mrb[2].mxu1 %vm319_vm0, %v625_v62  ;;  %17665 = vmatmul.mubr.msk.f32.vlgmr.msra.gmra.mrb[0].mxu0 %vm319_vm0, %v625_v62  ;;  %v634_v7 = vrot.slane %v21732_v1, 1  ;;  %v21786_v24 = vld [vmem:[#allocation2 + $0x90] sm:$0xff] }
  0x51   : > { %27212 = vst [vmem:[#allocation6_spill] sm:$0xff] %v21737_v2  ;;  %19815 = vmatpush3.bf16.msra.mxu0 %v21621_v12  ;;  %17462 = vmatprep.mubr.msk.f32.mxu1 %vm319_vm0, %v21737_v2  ;;  %v21750_v6 = vsel %vm615_vm2, %v627_v56, %v629_v63  ;;  %v636_v10 = vrot.slane %v21740_v4, 1  ;;  %v637_v11 = vrot.slane %v21742_v5, 1  ;;  %v21760_v13 = vld [vmem:[#allocation2 + $0x70] sm:$0x3]  ;;  %v21763_v12 = vld [vmem:[#allocation2 + $0x78] sm:$0xff] }
  0x52   : > { %27213 = vst [vmem:[#allocation7_spill] sm:$0xff] %v21750_v6  ;;  %17667 = vmatprep.mubr.msk.f32.mxu0 %vm319_vm0, %v21737_v2  ;;  %v21756_v9 = vsel %vm615_vm2, %v631_v0, %v632_v3  ;;  %19817 = vmatprep.subr.bf16.mxu0 %v21726_v60  ;;  %v21765_v14 = vld [vmem:[#allocation2 + $0x80] sm:$0xff]  ;;  %v21776_v15 = vsel %vm615_vm2, %v632_v3, %v634_v7  ;;  %v639_v16 = vrot.slane %v21760_v13, 1  ;;  %v21779_v17 = vld [vmem:[#allocation2 + $0x88] sm:$0x3]  ;;  %v641_v21 = vrot.slane %v21763_v12, 1 }
  0x53   : > { %27214 = vst [vmem:[#allocation8_spill] sm:$0xff] %v21756_v9  ;;  %27215 = vst [vmem:[#allocation9_spill] sm:$0xff] %v21776_v15  ;;  %v21782_v20 = vsel %vm615_vm2, %v636_v10, %v637_v11  ;;  %v642_v22 = vrot.slane %v21765_v14, 1  ;;  %v21788_v25 = vld [vmem:[#allocation2 + $0x98] sm:$0xff]  ;;  %v644_v35 = vrot.slane %v21779_v17, 1  ;;  %v459_v38 = vld [vmem:[%s21632_s29 + $0xf0] sm:$0xff] }
  0x54   : > { %17463 = vmatmul.mubr.msk.f32.gmra.mrb[4].mxu1 %vm319_vm0, %v21750_v6  ;;  %17668 = vmatmul.mubr.msk.f32.gmra.mrb[2].mxu0 %vm319_vm0, %v21750_v6  ;;  %27216 = vst [vmem:[#allocation10_spill] sm:$0xff] %v21782_v20  ;;  %483 = vst.msk [vmem:[#allocation2 + $0x111] sm:$0xff] %vm319_vm0, %v450_v26  ;;  %v21810_v33 = vsel %vm615_vm2, %v637_v11, %v639_v16  ;;  %v646_v40 = vrot.slane %v21786_v24, 1  ;;  %v647_v41 = vrot.slane %v21788_v25, 1  ;;  %v21824_v42 = vld [vmem:[#allocation2 + $0xa0] sm:$0x3] }
  0x55   : > { %17465 = vmatprep.mubr.msk.f32.mxu1 %vm319_vm0, %v21756_v9  ;;  %17670 = vmatprep.mubr.msk.f32.mxu0 %vm319_vm0, %v21756_v9  ;;  %484 = vst.msk [vmem:[#allocation2 + $0x121] sm:$0xff] %vm319_vm0, %v451_v27  ;;  %485 = vst.msk [vmem:[#allocation2 + $0x129] sm:$0xff] %vm319_vm0, %v452_v28  ;;  %v21820_v39 = vsel %vm615_vm2, %v641_v21, %v642_v22  ;;  %v460_v43 = vld [vmem:[%s21632_s29 + $0xf8] sm:$0xff]  ;;  %v21830_v44 = vld [vmem:[#allocation2 + $0xa8] sm:$0xff]  ;;  %v21844_v46 = vsel %vm615_vm2, %v642_v22, %v644_v35  ;;  %v649_v50 = vrot.slane %v21824_v42, 1  ;;  %s26699_s29 = scalar_lea.vmem %s26901_s7, %s21626_s24 }
  0x56   : > { %486 = vst.msk [vmem:[#allocation2 + $0x139] sm:$0xff] %vm319_vm0, %v453_v29  ;;  %27217 = vst [vmem:[#allocation11_spill] sm:$0xff] %v21810_v33  ;;  %v21832_v45 = vld [vmem:[#allocation2 + $0xb0] sm:$0xff]  ;;  %v21848_v51 = vsel %vm615_vm2, %v646_v40, %v647_v41  ;;  %v651_v52 = vrot.slane %v21830_v44, 1  ;;  %v21852_v56 = vld [vmem:[#allocation2 + $0xb8] sm:$0x3] }
  0x57   : > { %487 = vst.msk [vmem:[#allocation2 + $0x141] sm:$0xff] %vm319_vm0, %v454_v30  ;;  %488 = vst.msk [vmem:[#allocation2 + $0x151] sm:$0xff] %vm319_vm0, %v455_v31  ;;  %v652_v55 = vrot.slane %v21832_v45, 1  ;;  %v21854_v61 = vld [vmem:[#allocation2 + $0xc0] sm:$0xff]  ;;  %v21856_v62 = vld [vmem:[#allocation2 + $0xc8] sm:$0xff]  ;;  %v21867_v63 = vsel %vm615_vm2, %v647_v41, %v649_v50  ;;  %v654_v0 = vrot.slane %v21852_v56, 1 }
  0x58   : > { %17466 = vmatmul.mubr.msk.f32.gmra.mrb[6].mxu1 %vm319_vm0, %v21776_v15  ;;  %17671 = vmatmul.mubr.msk.f32.gmra.mrb[4].mxu0 %vm319_vm0, %v21776_v15  ;;  %489 = vst.msk [vmem:[#allocation2 + $0x159] sm:$0xff] %vm319_vm0, %v456_v32  ;;  %27218 = vst [vmem:[#allocation12_spill] sm:$0xff] %v21820_v39  ;;  %v656_v7 = vrot.slane %v21854_v61, 1  ;;  %v657_v10 = vrot.slane %v21856_v62, 1  ;;  %v21875_v11 = vld [vmem:[#allocation2 + $0xd0] sm:$0x3] }
  0x59   : > { %17468 = vmatprep.mubr.msk.f32.mxu1 %vm319_vm0, %v21782_v20  ;;  %17673 = vmatprep.mubr.msk.f32.mxu0 %vm319_vm0, %v21782_v20  ;;  %490 = vst.msk [vmem:[#allocation2 + $0x169] sm:$0xff] %vm319_vm0, %v457_v36  ;;  %491 = vst.msk [vmem:[#allocation2 + $0x171] sm:$0xff] %vm319_vm0, %v458_v37  ;;  %v21871_v3 = vsel %vm615_vm2, %v651_v52, %v652_v55  ;;  %v21877_v16 = vld [vmem:[#allocation2 + $0xd8] sm:$0xff]  ;;  %v21879_v21 = vld [vmem:[#allocation2 + $0xe0] sm:$0xff]  ;;  %v21890_v22 = vsel %vm615_vm2, %v652_v55, %v654_v0  ;;  %v659_v26 = vrot.slane %v21875_v11, 1 }
  0x5a   : > { %492 = vst.msk [vmem:[#allocation2 + $0x181] sm:$0xff] %vm319_vm0, %v459_v38  ;;  %493 = vst.msk [vmem:[#allocation2 + $0x189] sm:$0xff] %vm319_vm0, %v460_v43  ;;  %v661_v27 = vrot.slane %v21877_v16, 1  ;;  %v21894_v28 = vld [vmem:[#allocation2 + $0xf0] sm:$0xff]  ;;  %v21897_v29 = vsel %vm615_vm2, %v656_v7, %v657_v10  ;;  %v662_v30 = vrot.slane %v21879_v21, 1  ;;  %v1280_v31 = vrot.slane %v21701_v47, 2 }
  0x5b   : > { %27219 = vst [vmem:[#allocation13_spill] sm:$0xff] %v21844_v46  ;;  %27220 = vst [vmem:[#allocation14_spill] sm:$0xff] %v21848_v51  ;;  %v1281_v32 = vrot.slane %v21703_v48, 2  ;;  %v21902_v35 = vld [vmem:[#allocation2 + $0xe8] sm:$0x3]  ;;  %v21904_v36 = vld [vmem:[#allocation2 + $0xf8] sm:$0xff]  ;;  %v21919_v40 = vsel %vm615_vm2, %v657_v10, %v659_v26 }
  0x5c   : > { %17469 = vmatmul.mubr.msk.f32.gmra.mrb[8].mxu1 %vm319_vm0, %v21810_v33  ;;  %17674 = vmatmul.mubr.msk.f32.gmra.mrb[6].mxu0 %vm319_vm0, %v21810_v33  ;;  %27221 = vst [vmem:[#allocation15_spill] sm:$0xff] %v21867_v63  ;;  %27222 = vst [vmem:[#allocation16_spill] sm:$0xff] %v21871_v3  ;;  %v1283_v37 = vrot.slane %v21705_v49, 2  ;;  %v562_v38 = vld [vmem:[%s26895_s1 + $0x70] sm:$0xff]  ;;  %v664_v49 = vrot.slane %v21902_v35, 1  ;;  %v666_v41 = vrot.slane %v21894_v28, 1  ;;  %v21930_v55 = vsel %vm615_vm2, %v661_v27, %v662_v30 }
  0x5d   : > { %17471 = vmatprep.mubr.msk.f32.mxu1 %vm319_vm0, %v21820_v39  ;;  %17676 = vmatprep.mubr.msk.f32.mxu0 %vm319_vm0, %v21820_v39  ;;  %27223 = vst [vmem:[#allocation17_spill] sm:$0xff] %v21890_v22  ;;  %27224 = vst [vmem:[#allocation18_spill] sm:$0xff] %v21897_v29  ;;  %v667_v43 = vrot.slane %v21904_v36, 1  ;;  %v21924_v50 = vld [vmem:[#allocation2 + $0x100] sm:$0x3]  ;;  %v563_v52 = vld [vmem:[%s26895_s1 + $0x78] sm:$0xff]  ;;  %v21933_v0 = vsel %vm1274_vm3, %v1280_v31, %v1281_v32 }
  0x5e   : > { %27225 = vst [vmem:[#allocation19_spill] sm:$0xff] %v21919_v40  ;;  %27226 = vst [vmem:[#allocation20_spill] sm:$0xff] %v21930_v55  ;;  %v1285_v7 = vrot.slane %v21714_v53, 2  ;;  %v1286_v10 = vrot.slane %v21716_v54, 2  ;;  %v21937_v26 = vld [vmem:[#allocation2 + $0x108] sm:$0xff]  ;;  %v669_v27 = vrot.slane %v21924_v50, 1  ;;  %v21953_v31 = vsel %vm615_vm2, %v662_v30, %v664_v49 }
  0x5f   : > { %27227 = vst [vmem:[#allocation21_spill] sm:$0xff] %v21953_v31  ;;  %v1293_v49 = vrot.slane %v21732_v1, 2  ;;  %v1296_v39 = vrot.slane %v21742_v5, 2  ;;  %v1300_v15 = vrot.slane %v21763_v12, 2  ;;  %v1301_v9 = vrot.slane %v21765_v14, 2 }
  0x60   : > { %17472 = vmatmul.mubr.msk.f32.gmra.mrb[10].mxu1 %vm319_vm0, %v21844_v46  ;;  %17677 = vmatmul.mubr.msk.f32.gmra.mrb[8].mxu0 %vm319_vm0, %v21844_v46  ;;  %v21966_v46 = vld [vmem:[#allocation2 + $0x118] sm:$0x3]  ;;  %v21969_v30 = vsel %vm1274_vm3, %v1285_v7, %v1286_v10 }
  0x61   : > { %17474 = vmatprep.mubr.msk.f32.mxu1 %vm319_vm0, %v21848_v51  ;;  %17679 = vmatprep.mubr.msk.f32.mxu0 %vm319_vm0, %v21848_v51  ;;  %v1291_v51 = vrot.slane %v21724_v59, 2  ;;  %v674_v7 = vrot.slane %v21966_v46, 1 }
  0x64   : > { %17475 = vmatmul.mubr.msk.f32.gmra.mrb[12].mxu1 %vm319_vm0, %v21867_v63  ;;  %17680 = vmatmul.mubr.msk.f32.gmra.mrb[10].mxu0 %vm319_vm0, %v21867_v63  ;;  %v21959_v63 = vsel %vm615_vm2, %v666_v41, %v667_v43 }
  0x65   : > { %17477 = vmatprep.mubr.msk.f32.mxu1 %vm319_vm0, %v21871_v3  ;;  %17682 = vmatprep.mubr.msk.f32.mxu0 %vm319_vm0, %v21871_v3  ;;  %v21956_v3 = vsel %vm1274_vm3, %v1281_v32, %v1283_v37  ;;  %27228 = vst [vmem:[#allocation22_spill] sm:$0xff] %v21959_v63  ;;  %v21971_v32 = vld [vmem:[#allocation2 + $0x120] sm:$0xff]  ;;  %v21973_v37 = vld [vmem:[#allocation2 + $0x128] sm:$0xff] }
  0x66   : > { %v676_v1 = vrot.slane %v21971_v32, 1 }
  0x68   : > { %17478 = vmatmul.mubr.msk.f32.gmra.mrb[14].mxu1 %vm319_vm0, %v21890_v22  ;;  %17683 = vmatmul.mubr.msk.f32.gmra.mrb[12].mxu0 %vm319_vm0, %v21890_v22  ;;  %v21946_v22 = vpack.c.bf16 %v563_v52, %v562_v38  ;;  %v671_v38 = vrot.slane %v21937_v26, 1 }
  0x69   : > { %17480 = vmatprep.mubr.msk.f32.mxu1 %vm319_vm0, %v21897_v29  ;;  %17685 = vmatprep.mubr.msk.f32.mxu0 %vm319_vm0, %v21897_v29  ;;  %v21939_v29 = vld [vmem:[#allocation2 + $0x110] sm:$0xff] }
  0x6a   : > { %v672_v52 = vrot.slane %v21939_v29, 1 }
  0x6c   : > { %17481 = vmatmul.mubr.msk.f32.gmra.mrb[16].mxu1 %vm319_vm0, %v21919_v40  ;;  %17686 = vmatmul.mubr.msk.f32.gmra.mrb[14].mxu0 %vm319_vm0, %v21919_v40  ;;  %v1288_v40 = vrot.slane %v21720_v57, 2  ;;  %v21980_v57 = vsel %vm615_vm2, %v667_v43, %v669_v27  ;;  %v21995_v43 = vsel %vm615_vm2, %v671_v38, %v672_v52  ;;  %v22005_v27 = vld [vmem:[#allocation2 + $0x138] sm:$0xff]  ;;  %v1298_v38 = vrot.slane %v21760_v13, 2 }
  0x6d   : > { %17483 = vmatprep.mubr.msk.f32.mxu1 %vm319_vm0, %v21930_v55  ;;  %17716 = vmatprep.mubr.msk.f32.mxu0 %vm319_vm0, %v21933_v0  ;;  %v1290_v55 = vrot.slane %v21722_v58, 2  ;;  %27229 = vst [vmem:[#allocation23_spill] sm:$0xff] %v21980_v57  ;;  %27231 = vst [vmem:[#allocation25_spill] sm:$0xff] %v21995_v43  ;;  %v22022_v33 = vsel %vm615_vm2, %v672_v52, %v674_v7  ;;  %v22037_v52 = vld [vmem:[#allocation2 + $0x150] sm:$0xff]  ;;  %v22039_v7 = vld [vmem:[#allocation2 + $0x158] sm:$0xff] }
  0x6e   : > { %v21987_v41 = vsel %vm1274_vm3, %v1286_v10, %v1288_v40  ;;  %v677_v40 = vrot.slane %v21973_v37, 1  ;;  %v22002_v10 = vld [vmem:[#allocation2 + $0x130] sm:$0x3]  ;;  %27234 = vst [vmem:[#allocation28_spill] sm:$0xff] %v22022_v33  ;;  %v22055_v2 = vsel %vm1274_vm3, %v1296_v39, %v1298_v38 }
  0x6f   : > { %27230 = vst [vmem:[#allocation24_spill] sm:$0xff] %v21987_v41  ;;  %27238 = vst [vmem:[#allocation32_spill] sm:$0xff] %v22055_v2 }
  0x70   : > { %17484 = vmatmul.mubr.msk.f32.gmra.mrb[18].mxu1 %vm319_vm0, %v21953_v31  ;;  %17717 = vmatmul.mubr.msk.f32.vlgmr.msra.gmra.mrb[0].mxu0 %vm319_vm0, %v21956_v3  ;;  %v1295_v31 = vrot.slane %v21740_v4, 2  ;;  %v22032_v13 = vsel %vm615_vm2, %v676_v1, %v677_v40  ;;  %v1303_v1 = vrot.slane %v21779_v17, 2  ;;  %v22063_v17 = vsel %vm1274_vm3, %v1300_v15, %v1301_v9 }
  0x71   : > { %19819 = vmatpush3.bf16.msra.mxu0 %v21726_v60  ;;  %17486 = vmatprep.mubr.msk.f32.mxu1 %vm319_vm0, %v21959_v63  ;;  %v21998_v60 = vsel %vm1274_vm3, %v1290_v55, %v1291_v51  ;;  %v22007_v63 = vld [vmem:[#allocation2 + $0x140] sm:$0xff]  ;;  %v22014_v55 = vsel %vm1274_vm3, %v1291_v51, %v1293_v49  ;;  %v22029_v51 = vld [vmem:[#allocation2 + $0x148] sm:$0x3]  ;;  %27236 = vst [vmem:[#allocation30_spill] sm:$0xff] %v22032_v13  ;;  %v681_v49 = vrot.slane %v22005_v27, 1  ;;  %27240 = vst [vmem:[#allocation34_spill] sm:$0xff] %v22063_v17 }
  0x72   : > { %17719 = vmatprep.mubr.msk.f32.mxu0 %vm319_vm0, %v21969_v30  ;;  %27232 = vst [vmem:[#allocation26_spill] sm:$0xff] %v21998_v60  ;;  %19821 = vmatprep.subr.bf16.mxu0 %v21946_v22  ;;  %27233 = vst [vmem:[#allocation27_spill] sm:$0xff] %v22014_v55  ;;  %v22025_v20 = vsel %vm1274_vm3, %v1295_v31, %v1296_v39  ;;  %v684_v31 = vrot.slane %v22029_v51, 1  ;;  %v22071_v39 = vld [vmem:[#allocation2 + $0x170] sm:$0xff]  ;;  %v22081_v15 = vsel %vm1274_vm3, %v1301_v9, %v1303_v1 }
  0x73   : > { %27235 = vst [vmem:[#allocation29_spill] sm:$0xff] %v22025_v20  ;;  %27242 = vst [vmem:[#allocation36_spill] sm:$0xff] %v22081_v15  ;;  %v692_v9 = vrot.slane %v22071_v39, 1  ;;  %v1311_v1 = vrot.slane %v21832_v45, 2 }
  0x74   : > { %17487 = vmatmul.mubr.msk.f32.gmra.mrb[20].mxu1 %vm319_vm0, %v21980_v57  ;;  %17720 = vmatmul.mubr.msk.f32.gmra.mrb[2].mxu0 %vm319_vm0, %v21987_v41  ;;  %v679_v57 = vrot.slane %v22002_v10, 1  ;;  %v22067_v41 = vld [vmem:[#allocation2 + $0x160] sm:$0x3] }
  0x75   : > { %17489 = vmatprep.mubr.msk.f32.mxu1 %vm319_vm0, %v21995_v43  ;;  %17722 = vmatprep.mubr.msk.f32.mxu0 %vm319_vm0, %v21998_v60  ;;  %v682_v43 = vrot.slane %v22007_v63, 1 }
  0x76   : > { %v22052_v6 = vsel %vm615_vm2, %v677_v40, %v679_v57  ;;  %v22069_v57 = vld [vmem:[#allocation2 + $0x168] sm:$0xff] }
  0x77   : > { %27237 = vst [vmem:[#allocation31_spill] sm:$0xff] %v22052_v6  ;;  %v22060_v60 = vsel %vm615_vm2, %v681_v49, %v682_v43  ;;  %v22078_v40 = vsel %vm615_vm2, %v682_v43, %v684_v31  ;;  %v689_v49 = vrot.slane %v22067_v41, 1  ;;  %v1310_v31 = vrot.slane %v21830_v44, 2 }
  0x78   : > { %17490 = vmatmul.mubr.msk.f32.gmra.mrb[22].mxu1 %vm319_vm0, %v22022_v33  ;;  %17723 = vmatmul.mubr.msk.f32.gmra.mrb[4].mxu0 %vm319_vm0, %v22014_v55  ;;  %v686_v33 = vrot.slane %v22037_v52, 1  ;;  %v687_v55 = vrot.slane %v22039_v7, 1  ;;  %27239 = vst [vmem:[#allocation33_spill] sm:$0xff] %v22060_v60  ;;  %27241 = vst [vmem:[#allocation35_spill] sm:$0xff] %v22078_v40 }
  0x79   : > { %17492 = vmatprep.mubr.msk.f32.mxu1 %vm319_vm0, %v22032_v13  ;;  %17725 = vmatprep.mubr.msk.f32.mxu0 %vm319_vm0, %v22025_v20  ;;  %v1305_v13 = vrot.slane %v21786_v24, 2  ;;  %v1306_v20 = vrot.slane %v21788_v25, 2 }
  0x7a   : > { %v22088_v38 = vsel %vm615_vm2, %v686_v33, %v687_v55  ;;  %v22110_v33 = vsel %vm615_vm2, %v687_v55, %v689_v49  ;;  %v1320_v55 = vrot.slane %v21877_v16, 2  ;;  %v1321_v49 = vrot.slane %v21879_v21, 2 }
  0x7b   : > { %27243 = vst [vmem:[#allocation37_spill] sm:$0xff] %v22088_v38  ;;  %v22094_v43 = vsel %vm1274_vm3, %v1305_v13, %v1306_v20  ;;  %27245 = vst [vmem:[#allocation39_spill] sm:$0xff] %v22110_v33 }
  0x7c   : > { %17493 = vmatmul.mubr.msk.f32.gmra.mrb[24].mxu1 %vm319_vm0, %v22052_v6  ;;  %17726 = vmatmul.mubr.msk.f32.gmra.mrb[6].mxu0 %vm319_vm0, %v22055_v2  ;;  %v1308_v6 = vrot.slane %v21824_v42, 2  ;;  %v691_v2 = vrot.slane %v22069_v57, 1  ;;  %27244 = vst [vmem:[#allocation38_spill] sm:$0xff] %v22094_v43 }
  0x7d   : > { %17495 = vmatprep.mubr.msk.f32.mxu1 %vm319_vm0, %v22060_v60  ;;  %17728 = vmatprep.mubr.msk.f32.mxu0 %vm319_vm0, %v22063_v17  ;;  %v22099_v60 = vld [vmem:[#allocation2 + $0x178] sm:$0x3]  ;;  %v1313_v17 = vrot.slane %v21852_v56, 2 }
  0x7e   : > { %v22113_v42 = vsel %vm1274_vm3, %v1306_v20, %v1308_v6  ;;  %v694_v13 = vrot.slane %v22099_v60, 1  ;;  %v1318_v20 = vrot.slane %v21875_v11, 2  ;;  %v555_v11 = vld [vmem:[%s26895_s1 + $0x38] sm:$0xff] }
  0x7f   : > { %v22137_v6 = vsel %vm1274_vm3, %v1311_v1, %v1313_v17  ;;  %v554_v17 = vld [vmem:[%s26895_s1 + $0x30] sm:$0xff] }
  0x80   : > { %17496 = vmatmul.mubr.msk.f32.gmra.mrb[26].mxu1 %vm319_vm0, %v22078_v40  ;;  %17729 = vmatmul.mubr.msk.f32.gmra.mrb[8].mxu0 %vm319_vm0, %v22081_v15  ;;  %v22118_v40 = vsel %vm615_vm2, %v691_v2, %v692_v9  ;;  %v22121_v15 = vsel %vm1274_vm3, %v1310_v31, %v1311_v1  ;;  %v22134_v2 = vsel %vm615_vm2, %v692_v9, %v694_v13  ;;  %v1323_v9 = vrot.slane %v21902_v35, 2 }
  0x81   : > { %17498 = vmatprep.mubr.msk.f32.mxu1 %vm319_vm0, %v22088_v38  ;;  %17731 = vmatprep.mubr.msk.f32.mxu0 %vm319_vm0, %v22094_v43  ;;  %27246 = vst [vmem:[#allocation40_spill] sm:$0xff] %v22118_v40  ;;  %v1315_v38 = vrot.slane %v21854_v61, 2  ;;  %v1316_v43 = vrot.slane %v21856_v62, 2  ;;  %27247 = vst [vmem:[#allocation41_spill] sm:$0xff] %v22134_v2  ;;  %v22164_v31 = vsel %vm1274_vm3, %v1320_v55, %v1321_v49  ;;  %v1325_v1 = vrot.slane %v21894_v28, 2 }
  0x82   : > { %27248 = vst [vmem:[#allocation42_spill] sm:$0xff] %v22164_v31  ;;  %v1326_v13 = vrot.slane %v21904_v36, 2  ;;  %v22179_v35 = vsel %vm1274_vm3, %v1321_v49, %v1323_v9  ;;  %v1330_v55 = vrot.slane %v21937_v26, 2  ;;  %v1336_v9 = vrot.slane %v21973_v37, 2 }
  0x83   : > { %v22141_v56 = vsel %vm1274_vm3, %v1315_v38, %v1316_v43  ;;  %v22160_v38 = vsel %vm1274_vm3, %v1316_v43, %v1318_v20  ;;  %v1328_v43 = vrot.slane %v21924_v50, 2  ;;  %v1333_v50 = vrot.slane %v21966_v46, 2 }
  0x84   : > { %17499 = vmatmul.mubr.msk.f32.gmra.mrb[28].mxu1 %vm319_vm0, %v22110_v33  ;;  %17732 = vmatmul.mubr.msk.f32.gmra.mrb[10].mxu0 %vm319_vm0, %v22113_v42  ;;  %v22184_v20 = vsel %vm1274_vm3, %v1325_v1, %v1326_v13  ;;  %v1338_v1 = vrot.slane %v22002_v10, 2  ;;  %v1351_v33 = vrot.slane %v22071_v39, 2 }
  0x85   : > { %17501 = vmatprep.mubr.msk.f32.mxu1 %vm319_vm0, %v22118_v40  ;;  %17734 = vmatprep.mubr.msk.f32.mxu0 %vm319_vm0, %v22121_v15  ;;  %v1346_v40 = vrot.slane %v22039_v7, 2 }
  0x86   : > { %v22232_v10 = vsel %vm1274_vm3, %v1336_v9, %v1338_v1 }
  0x87   : > { %27250 = vst [vmem:[#allocation44_spill] sm:$0xff] %v22232_v10 }
  0x88   : > { %17502 = vmatmul.mubr.msk.f32.gmra.mrb[30].mxu1 %vm319_vm0, %v22134_v2  ;;  %17735 = vmatmul.mubr.msk.f32.gmra.mrb[12].mxu0 %vm319_vm0, %v22137_v6  ;;  %v22168_v2 = vpack.c.bf16 %v555_v11, %v554_v17  ;;  %v1331_v17 = vrot.slane %v21939_v29, 2  ;;  %v1335_v11 = vrot.slane %v21971_v32, 2 }
  0x89   : > { %17508 = vmatprep.mubr.msk.f32.mxu1 %vm319_vm0, %v21644_v18  ;;  %17737 = vmatprep.mubr.msk.f32.mxu0 %vm319_vm0, %v22141_v56 }
  0x8a   : > { %v22202_v49 = vsel %vm1274_vm3, %v1330_v55, %v1331_v17  ;;  %v22215_v46 = vsel %vm1274_vm3, %v1331_v17, %v1333_v50  ;;  %v1341_v55 = vrot.slane %v22007_v63, 2  ;;  %v1343_v17 = vrot.slane %v22029_v51, 2 }
  0x8b   : > { %27249 = vst [vmem:[#allocation43_spill] sm:$0xff] %v22202_v49 }
  0x8c   : > { %17509 = vmatmul.mubr.msk.f32.vlgmr.msra.gmra.mrb[0].mxu1 %vm319_vm0, %v21646_v19  ;;  %17738 = vmatmul.mubr.msk.f32.gmra.mrb[14].mxu0 %vm319_vm0, %v22160_v38  ;;  %v22249_v51 = vsel %vm1274_vm3, %v1341_v55, %v1343_v17 }
  0x8d   : > { %17511 = vmatprep.mubr.msk.f32.mxu1 %vm319_vm0, %v21701_v47  ;;  %17740 = vmatprep.mubr.msk.f32.mxu0 %vm319_vm0, %v22164_v31  ;;  %27252 = vst [vmem:[#allocation46_spill] sm:$0xff] %v22249_v51  ;;  %v22259_v47 = vld [vmem:[#allocation2 + $0x188] sm:$0xff] }
  0x8e   : > { %19803 = vmatpush3.bf16.msra.mxu1 %v21672_v34  ;;  %v22198_v34 = vsel %vm1274_vm3, %v1326_v13, %v1328_v43  ;;  %v22219_v13 = vsel %vm1274_vm3, %v1335_v11, %v1336_v9  ;;  %v1340_v43 = vrot.slane %v22005_v27, 2  ;;  %v1345_v11 = vrot.slane %v22037_v52, 2 }
  0x8f   : > { %19805 = vmatprep.subr.bf16.mxu1 %v22168_v2  ;;  %v1348_v9 = vrot.slane %v22067_v41, 2 }
  0x90   : > { %17512 = vmatmul.mubr.msk.f32.gmra.mrb[2].mxu1 %vm319_vm0, %v21703_v48  ;;  %17741 = vmatmul.mubr.msk.f32.gmra.mrb[16].mxu0 %vm319_vm0, %v22179_v35  ;;  %v22236_v50 = vsel %vm1274_vm3, %v1340_v43, %v1341_v55  ;;  %v22253_v1 = vsel %vm1274_vm3, %v1345_v11, %v1346_v40  ;;  %v1350_v43 = vrot.slane %v22069_v57, 2  ;;  %v22257_v48 = vld [vmem:[#allocation2 + $0x180] sm:$0xff]  ;;  %v1353_v55 = vrot.slane %v22099_v60, 2 }
  0x91   : > { %17514 = vmatprep.mubr.msk.f32.mxu1 %vm319_vm0, %v21714_v53  ;;  %17743 = vmatprep.mubr.msk.f32.mxu0 %vm319_vm0, %v22184_v20  ;;  %27251 = vst [vmem:[#allocation45_spill] sm:$0xff] %v22236_v50  ;;  %27253 = vst [vmem:[#allocation47_spill] sm:$0xff] %v22253_v1  ;;  %v22270_v41 = vsel %vm1274_vm3, %v1346_v40, %v1348_v9  ;;  %v2206_v11 = vrot.slane %v22257_v48, 2 }
  0x92   : > { %27254 = vst [vmem:[#allocation48_spill] sm:$0xff] %v22270_v41  ;;  %v22274_v17 = vsel %vm1274_vm3, %v1350_v43, %v1351_v33  ;;  %v22289_v60 = vsel %vm1274_vm3, %v1351_v33, %v1353_v55  ;;  %v564_v43 = vld [vmem:[%s26895_s1 + $0x80] sm:$0xff]  ;;  %v565_v55 = vld [vmem:[%s26895_s1 + $0x88] sm:$0xff] }
  0x93   : > { %27255 = vst [vmem:[#allocation49_spill] sm:$0xff] %v22274_v17  ;;  %27256 = vst [vmem:[#allocation50_spill] sm:$0xff] %v22289_v60 }
  0x94   : > { %17515 = vmatmul.mubr.msk.f32.gmra.mrb[4].mxu1 %vm319_vm0, %v21716_v54  ;;  %17744 = vmatmul.mubr.msk.f32.gmra.mrb[18].mxu0 %vm319_vm0, %v22198_v34 }
  0x95   : > { %17517 = vmatprep.mubr.msk.f32.mxu1 %vm319_vm0, %v21722_v58  ;;  %17746 = vmatprep.mubr.msk.f32.mxu0 %vm319_vm0, %v22202_v49 }
  0x98   : > { %17518 = vmatmul.mubr.msk.f32.gmra.mrb[6].mxu1 %vm319_vm0, %v21724_v59  ;;  %17747 = vmatmul.mubr.msk.f32.gmra.mrb[20].mxu0 %vm319_vm0, %v22215_v46 }
  0x99   : > { %17520 = vmatprep.mubr.msk.f32.mxu1 %vm319_vm0, %v21740_v4  ;;  %17749 = vmatprep.mubr.msk.f32.mxu0 %vm319_vm0, %v22219_v13 }
  0x9c   : > { %17521 = vmatmul.mubr.msk.f32.gmra.mrb[8].mxu1 %vm319_vm0, %v21742_v5  ;;  %17750 = vmatmul.mubr.msk.f32.gmra.mrb[22].mxu0 %vm319_vm0, %v22232_v10  ;;  %v22278_v10 = vld [vmem:[#allocation2 + $0x190] sm:$0x3] }
  0x9d   : > { %17523 = vmatprep.mubr.msk.f32.mxu1 %vm319_vm0, %v21763_v12  ;;  %17752 = vmatprep.mubr.msk.f32.mxu0 %vm319_vm0, %v22236_v50  ;;  %v2207_v50 = vrot.slane %v22259_v47, 2  ;;  %v2209_v40 = vrot.slane %v22278_v10, 2 }
  0x9f   : > { %v22293_v9 = vsel %vm1274_vm3, %v2206_v11, %v2207_v50  ;;  %v22304_v33 = vsel %vm1274_vm3, %v2207_v50, %v2209_v40  ;;  %v22320_v50 = vpack.c.bf16 %v565_v55, %v564_v43  ;;  %v1276_v11 = vrot.slane %v21646_v19, 2  ;;  %v27259_v19 = vld [vmem:[#allocation24_spill] sm:$0xff]  ;;  %v27264_v55 = vld [vmem:[#allocation34_spill] sm:$0xff] }
  0xa0   : > { %17524 = vmatmul.mubr.msk.f32.gmra.mrb[10].mxu1 %vm319_vm0, %v21765_v14  ;;  %17753 = vmatmul.mubr.msk.f32.gmra.mrb[24].mxu0 %vm319_vm0, %v22249_v51  ;;  %27257 = vst [vmem:[#allocation51_spill] sm:$0xff] %v22293_v9  ;;  %27258 = vst [vmem:[#allocation52_spill] sm:$0xff] %v22304_v33  ;;  %v1278_v40 = vrot.slane %v21654_v23, 2  ;;  %v27260_v23 = vld [vmem:[#allocation26_spill] sm:$0xff] }
  0xa1   : > { %17526 = vmatprep.mubr.msk.f32.mxu1 %vm319_vm0, %v21786_v24  ;;  %17755 = vmatprep.mubr.msk.f32.mxu0 %vm319_vm0, %v22253_v1 }
  0xa4   : > { %17527 = vmatmul.mubr.msk.f32.gmra.mrb[12].mxu1 %vm319_vm0, %v21788_v25  ;;  %17756 = vmatmul.mubr.msk.f32.gmra.mrb[26].mxu0 %vm319_vm0, %v22270_v41 }
  0xa5   : > { %17529 = vmatprep.mubr.msk.f32.mxu1 %vm319_vm0, %v21830_v44  ;;  %17758 = vmatprep.mubr.msk.f32.mxu0 %vm319_vm0, %v22274_v17 }
  0xa8   : > { %17530 = vmatmul.mubr.msk.f32.gmra.mrb[14].mxu1 %vm319_vm0, %v21832_v45  ;;  %17759 = vmatmul.mubr.msk.f32.gmra.mrb[28].mxu0 %vm319_vm0, %v22289_v60 }
  0xa9   : > { %17532 = vmatprep.mubr.msk.f32.mxu1 %vm319_vm0, %v21854_v61  ;;  %17761 = vmatprep.mubr.msk.f32.mxu0 %vm319_vm0, %v22293_v9  ;;  %v27269_v9 = vld [vmem:[#allocation8_spill] sm:$0xff] }
  0xac   : > { %17533 = vmatmul.mubr.msk.f32.gmra.mrb[16].mxu1 %vm319_vm0, %v21856_v62  ;;  %17762 = vmatmul.mubr.msk.f32.gmra.mrb[30].mxu0 %vm319_vm0, %v22304_v33  ;;  %v27268_v33 = vld [vmem:[#allocation7_spill] sm:$0xff] }
  0xad   : > { %17535 = vmatprep.mubr.msk.f32.mxu1 %vm319_vm0, %v21877_v16  ;;  %17768 = vmatprep.mubr.msk.f32.mxu0 %vm319_vm0, %v21714_v53 }
  0xb0   : > { %17536 = vmatmul.mubr.msk.f32.gmra.mrb[18].mxu1 %vm319_vm0, %v21879_v21  ;;  %17769 = vmatmul.mubr.msk.f32.vlgmr.msra.gmra.mrb[0].mxu0 %vm319_vm0, %v21716_v54 }
  0xb1   : > { %19823 = vmatpush3.bf16.msra.mxu0 %v21946_v22  ;;  %17538 = vmatprep.mubr.msk.f32.mxu1 %vm319_vm0, %v21894_v28  ;;  %v1275_v22 = vrot.slane %v21644_v18, 2  ;;  %v1279_v18 = vsel %vm1274_vm3, %v1276_v11, %v1278_v40  ;;  %v22441_v40 = vld [vmem:[#allocation2 + $0x198] sm:$0xff] }
  0xb2   : > { %17771 = vmatprep.mubr.msk.f32.mxu0 %vm319_vm0, %v21722_v58  ;;  %19825 = vmatprep.subr.bf16.mxu0 %v22320_v50 }
  0xb3   : > { %v1277_v43 = vsel %vm1274_vm3, %v1275_v22, %v1276_v11  ;;  %v27265_v22 = vld [vmem:[#allocation36_spill] sm:$0xff]  ;;  %v27266_v11 = vld [vmem:[#allocation38_spill] sm:$0xff] }
  0xb4   : > { %17539 = vmatmul.mubr.msk.f32.gmra.mrb[20].mxu1 %vm319_vm0, %v21904_v36  ;;  %17772 = vmatmul.mubr.msk.f32.gmra.mrb[2].mxu0 %vm319_vm0, %v21724_v59 }
  0xb5   : > { %17541 = vmatprep.mubr.msk.f32.mxu1 %vm319_vm0, %v21937_v26  ;;  %17774 = vmatprep.mubr.msk.f32.mxu0 %vm319_vm0, %v21740_v4 }
  0xb8   : > { %17542 = vmatmul.mubr.msk.f32.gmra.mrb[22].mxu1 %vm319_vm0, %v21939_v29  ;;  %17775 = vmatmul.mubr.msk.f32.gmra.mrb[4].mxu0 %vm319_vm0, %v21742_v5 }
  0xb9   : > { %17544 = vmatprep.mubr.msk.f32.mxu1 %vm319_vm0, %v21971_v32  ;;  %17777 = vmatprep.mubr.msk.f32.mxu0 %vm319_vm0, %v21763_v12 }
  0xbc   : > { %17545 = vmatmul.mubr.msk.f32.gmra.mrb[24].mxu1 %vm319_vm0, %v21973_v37  ;;  %17778 = vmatmul.mubr.msk.f32.gmra.mrb[6].mxu0 %vm319_vm0, %v21765_v14 }
  0xbd   : > { %17547 = vmatprep.mubr.msk.f32.mxu1 %vm319_vm0, %v22005_v27  ;;  %17780 = vmatprep.mubr.msk.f32.mxu0 %vm319_vm0, %v21786_v24 }
  0xc0   : > { %17548 = vmatmul.mubr.msk.f32.gmra.mrb[26].mxu1 %vm319_vm0, %v22007_v63  ;;  %17781 = vmatmul.mubr.msk.f32.gmra.mrb[8].mxu0 %vm319_vm0, %v21788_v25 }
  0xc1   : > { %17550 = vmatprep.mubr.msk.f32.mxu1 %vm319_vm0, %v22037_v52  ;;  %17783 = vmatprep.mubr.msk.f32.mxu0 %vm319_vm0, %v21830_v44 }
  0xc4   : > { %17551 = vmatmul.mubr.msk.f32.gmra.mrb[28].mxu1 %vm319_vm0, %v22039_v7  ;;  %17784 = vmatmul.mubr.msk.f32.gmra.mrb[10].mxu0 %vm319_vm0, %v21832_v45 }
  0xc5   : > { %17553 = vmatprep.mubr.msk.f32.mxu1 %vm319_vm0, %v22069_v57  ;;  %17786 = vmatprep.mubr.msk.f32.mxu0 %vm319_vm0, %v21854_v61 }
  0xc8   : > { %17554 = vmatmul.mubr.msk.f32.gmra.mrb[30].mxu1 %vm319_vm0, %v22071_v39  ;;  %17787 = vmatmul.mubr.msk.f32.gmra.mrb[12].mxu0 %vm319_vm0, %v21856_v62 }
  0xc9   : > { %17560 = vmatprep.mubr.msk.f32.mxu1 %vm319_vm0, %v1277_v43  ;;  %17789 = vmatprep.mubr.msk.f32.mxu0 %vm319_vm0, %v21877_v16  ;;  %v22451_v43 = vld [vmem:[#allocation2 + $0x1a0] sm:$0xff] }
  0xcc   : > { %17561 = vmatmul.mubr.msk.f32.vlgmr.msra.gmra.mrb[0].mxu1 %vm319_vm0, %v1279_v18  ;;  %17790 = vmatmul.mubr.msk.f32.gmra.mrb[14].mxu0 %vm319_vm0, %v21879_v21  ;;  %v27267_v18 = vld [vmem:[#allocation6_spill] sm:$0xff] }
  0xcd   : > { %17563 = vmatprep.mubr.msk.f32.mxu1 %vm319_vm0, %v21933_v0  ;;  %17792 = vmatprep.mubr.msk.f32.mxu0 %vm319_vm0, %v21894_v28  ;;  %v27262_v0 = vld [vmem:[#allocation29_spill] sm:$0xff] }
  0xce   : > { %19807 = vmatpush3.bf16.msra.mxu1 %v22168_v2  ;;  %v27263_v2 = vld [vmem:[#allocation32_spill] sm:$0xff] }
  0xcf   : > { %19972 = vmatprep.subr.bf16.mxu1 %v21536_v8 }
  0xd0   : > { %17564 = vmatmul.mubr.msk.f32.gmra.mrb[2].mxu1 %vm319_vm0, %v21956_v3  ;;  %17793 = vmatmul.mubr.msk.f32.gmra.mrb[16].mxu0 %vm319_vm0, %v21904_v36  ;;  %v27261_v3 = vld [vmem:[#allocation27_spill] sm:$0xff] }
  0xd1   : > { %17566 = vmatprep.mubr.msk.f32.mxu1 %vm319_vm0, %v21969_v30  ;;  %17795 = vmatprep.mubr.msk.f32.mxu0 %vm319_vm0, %v21937_v26 }
  0xd4   : > { %17567 = vmatmul.mubr.msk.f32.gmra.mrb[4].mxu1 %vm319_vm0, %v27259_v19  ;;  %17796 = vmatmul.mubr.msk.f32.gmra.mrb[18].mxu0 %vm319_vm0, %v21939_v29 }
  0xd5   : > { %17569 = vmatprep.mubr.msk.f32.mxu1 %vm319_vm0, %v27260_v23  ;;  %17798 = vmatprep.mubr.msk.f32.mxu0 %vm319_vm0, %v21971_v32 }
  0xd8   : > { %17570 = vmatmul.mubr.msk.f32.gmra.mrb[6].mxu1 %vm319_vm0, %v27261_v3  ;;  %17799 = vmatmul.mubr.msk.f32.gmra.mrb[20].mxu0 %vm319_vm0, %v21973_v37 }
  0xd9   : > { %17572 = vmatprep.mubr.msk.f32.mxu1 %vm319_vm0, %v27262_v0  ;;  %17801 = vmatprep.mubr.msk.f32.mxu0 %vm319_vm0, %v22005_v27 }
  0xdc   : > { %17573 = vmatmul.mubr.msk.f32.gmra.mrb[8].mxu1 %vm319_vm0, %v27263_v2  ;;  %17802 = vmatmul.mubr.msk.f32.gmra.mrb[22].mxu0 %vm319_vm0, %v22007_v63 }
  0xdd   : > { %17575 = vmatprep.mubr.msk.f32.mxu1 %vm319_vm0, %v27264_v55  ;;  %17804 = vmatprep.mubr.msk.f32.mxu0 %vm319_vm0, %v22037_v52 }
  0xe0   : > { %17576 = vmatmul.mubr.msk.f32.gmra.mrb[10].mxu1 %vm319_vm0, %v27265_v22  ;;  %17805 = vmatmul.mubr.msk.f32.gmra.mrb[24].mxu0 %vm319_vm0, %v22039_v7 }
  0xe1   : > { %17578 = vmatprep.mubr.msk.f32.mxu1 %vm319_vm0, %v27266_v11  ;;  %17807 = vmatprep.mubr.msk.f32.mxu0 %vm319_vm0, %v22069_v57 }
  0xe4   : > { %17579 = vmatmul.mubr.msk.f32.gmra.mrb[12].mxu1 %vm319_vm0, %v22113_v42  ;;  %17808 = vmatmul.mubr.msk.f32.gmra.mrb[26].mxu0 %vm319_vm0, %v22071_v39 }
  0xe5   : > { %17581 = vmatprep.mubr.msk.f32.mxu1 %vm319_vm0, %v22121_v15  ;;  %17810 = vmatprep.mubr.msk.f32.mxu0 %vm319_vm0, %v22257_v48 }
  0xe8   : > { %17582 = vmatmul.mubr.msk.f32.gmra.mrb[14].mxu1 %vm319_vm0, %v22137_v6  ;;  %17811 = vmatmul.mubr.msk.f32.gmra.mrb[28].mxu0 %vm319_vm0, %v22259_v47 }
  0xe9   : > { %17584 = vmatprep.mubr.msk.f32.mxu1 %vm319_vm0, %v22141_v56  ;;  %17813 = vmatprep.mubr.msk.f32.mxu0 %vm319_vm0, %v22441_v40 }
  0xec   : > { %17585 = vmatmul.mubr.msk.f32.gmra.mrb[16].mxu1 %vm319_vm0, %v22160_v38  ;;  %17814 = vmatmul.mubr.msk.f32.gmra.mrb[30].mxu0 %vm319_vm0, %v22451_v43 }
  0xed   : > { %17587 = vmatprep.mubr.msk.f32.mxu1 %vm319_vm0, %v22164_v31  ;;  %17820 = vmatprep.mubr.msk.f32.mxu0 %vm319_vm0, %v27267_v18  ;;  %v27270_v31 = vld [vmem:[#allocation9_spill] sm:$0xff]  ;;  %v27271_v18 = vld [vmem:[#allocation10_spill] sm:$0xff] }
  0xf0   : > { %17588 = vmatmul.mubr.msk.f32.gmra.mrb[18].mxu1 %vm319_vm0, %v22179_v35  ;;  %17821 = vmatmul.mubr.msk.f32.vlgmr.msra.gmra.mrb[0].mxu0 %vm319_vm0, %v27268_v33  ;;  %v27272_v33 = vld [vmem:[#allocation11_spill] sm:$0xff] }
  0xf1   : > { %19827 = vmatpush3.bf16.msra.mxu0 %v22320_v50  ;;  %17590 = vmatprep.mubr.msk.f32.mxu1 %vm319_vm0, %v22184_v20  ;;  %v27274_v50 = vld [vmem:[#allocation44_spill] sm:$0xff] }
  0xf2   : > { %17823 = vmatprep.mubr.msk.f32.mxu0 %vm319_vm0, %v27269_v9  ;;  %v27273_v9 = vld [vmem:[#allocation12_spill] sm:$0xff] }
  0xf4   : > { %17591 = vmatmul.mubr.msk.f32.gmra.mrb[20].mxu1 %vm319_vm0, %v22198_v34  ;;  %17824 = vmatmul.mubr.msk.f32.gmra.mrb[2].mxu0 %vm319_vm0, %v27270_v31  ;;  %v27275_v31 = vld [vmem:[#allocation13_spill] sm:$0xff] }
  0xf5   : > { %17593 = vmatprep.mubr.msk.f32.mxu1 %vm319_vm0, %v22202_v49  ;;  %17826 = vmatprep.mubr.msk.f32.mxu0 %vm319_vm0, %v27271_v18  ;;  %v27276_v49 = vld [vmem:[#allocation45_spill] sm:$0xff]  ;;  %v27277_v18 = vld [vmem:[#allocation14_spill] sm:$0xff] }
  0xf8   : > { %17594 = vmatmul.mubr.msk.f32.gmra.mrb[22].mxu1 %vm319_vm0, %v22215_v46  ;;  %17827 = vmatmul.mubr.msk.f32.gmra.mrb[4].mxu0 %vm319_vm0, %v27272_v33  ;;  %v27278_v33 = vld [vmem:[#allocation15_spill] sm:$0xff] }
  0xf9   : > { %17596 = vmatprep.mubr.msk.f32.mxu1 %vm319_vm0, %v22219_v13  ;;  %17829 = vmatprep.mubr.msk.f32.mxu0 %vm319_vm0, %v27273_v9  ;;  %v27279_v9 = vld [vmem:[#allocation16_spill] sm:$0xff] }
  0xfc   : > { %17597 = vmatmul.mubr.msk.f32.gmra.mrb[24].mxu1 %vm319_vm0, %v27274_v50  ;;  %17830 = vmatmul.mubr.msk.f32.gmra.mrb[6].mxu0 %vm319_vm0, %v27275_v31  ;;  %v27280_v31 = vld [vmem:[#allocation17_spill] sm:$0xff] }
  0xfd   : > { %17599 = vmatprep.mubr.msk.f32.mxu1 %vm319_vm0, %v27276_v49  ;;  %17832 = vmatprep.mubr.msk.f32.mxu0 %vm319_vm0, %v27277_v18  ;;  %v27281_v18 = vld [vmem:[#allocation18_spill] sm:$0xff] }
 0x100   : > { %17600 = vmatmul.mubr.msk.f32.gmra.mrb[26].mxu1 %vm319_vm0, %v22249_v51  ;;  %17833 = vmatmul.mubr.msk.f32.gmra.mrb[8].mxu0 %vm319_vm0, %v27278_v33  ;;  %v27282_v33 = vld [vmem:[#allocation19_spill] sm:$0xff]  ;;  %v22575_v51 = vld [vmem:[#allocation2 + $0x1a8] sm:$0x3] }
 0x101   : > { %17602 = vmatprep.mubr.msk.f32.mxu1 %vm319_vm0, %v22253_v1  ;;  %17835 = vmatprep.mubr.msk.f32.mxu0 %vm319_vm0, %v27279_v9  ;;  %v27283_v1 = vld [vmem:[#allocation4_spill] sm:$0xff] }
 0x102   : > { %v27284_v9 = vld [vmem:[#allocation20_spill] sm:$0xff] }
 0x104   : > { %17603 = vmatmul.mubr.msk.f32.gmra.mrb[28].mxu1 %vm319_vm0, %v22270_v41  ;;  %17836 = vmatmul.mubr.msk.f32.gmra.mrb[10].mxu0 %vm319_vm0, %v27280_v31  ;;  %v27285_v41 = vld [vmem:[#allocation5_spill] sm:$0xff] }
 0x105   : > { %17605 = vmatprep.mubr.msk.f32.mxu1 %vm319_vm0, %v22274_v17  ;;  %17838 = vmatprep.mubr.msk.f32.mxu0 %vm319_vm0, %v27281_v18  ;;  %v27286_v31 = vld [vmem:[#allocation21_spill] sm:$0xff]  ;;  %v27287_v18 = vld [vmem:[#allocation22_spill] sm:$0xff]  ;;  %v2737_v17 = vrot.slane %v22451_v43, 1 }
 0x108   : > { %17606 = vmatmul.mubr.msk.f32.gmra.mrb[30].mxu1 %vm319_vm0, %v22289_v60  ;;  %17839 = vmatmul.mubr.msk.f32.gmra.mrb[12].mxu0 %vm319_vm0, %v27282_v33  ;;  %v1941_v33 = vrot.slane %v22259_v47, 1  ;;  %v2736_v60 = vrot.slane %v22441_v40, 1 }
 0x109   : > { %17612 = vmatprep.mubr.msk.f32.mxu1 %vm319_vm0, %v27283_v1  ;;  %17841 = vmatprep.mubr.msk.f32.mxu0 %vm319_vm0, %v27284_v9  ;;  %v27288_v1 = vld [vmem:[#allocation23_spill] sm:$0xff] }
 0x10c   : > { %17613 = vmatmul.mubr.msk.f32.vlgmr.msra.gmra.mrb[0].mxu1 %vm319_vm0, %v27285_v41  ;;  %17842 = vmatmul.mubr.msk.f32.gmra.mrb[14].mxu0 %vm319_vm0, %v27286_v31  ;;  %v27289_v41 = vld [vmem:[#allocation25_spill] sm:$0xff] }
 0x10d   : > { %17615 = vmatprep.mubr.msk.f32.mxu1 %vm319_vm0, %v21714_v53  ;;  %17844 = vmatprep.mubr.msk.f32.mxu0 %vm319_vm0, %v27287_v18  ;;  %v27290_v53 = vld [vmem:[#allocation28_spill] sm:$0xff] }
 0x10e   : > { %19973 = vmatpush3.bf16.msra.mxu1 %v21536_v8  ;;  %v27291_v8 = vld [vmem:[#allocation30_spill] sm:$0xff] }
 0x110   : > { %17616 = vmatmul.mubr.msk.f32.gmra.mrb[2].mxu1 %vm319_vm0, %v21716_v54  ;;  %17845 = vmatmul.mubr.msk.f32.gmra.mrb[16].mxu0 %vm319_vm0, %v27288_v1  ;;  %v27292_v54 = vld [vmem:[#allocation31_spill] sm:$0xff] }
 0x111   : > { %17618 = vmatprep.mubr.msk.f32.mxu1 %vm319_vm0, %v21722_v58  ;;  %17847 = vmatprep.mubr.msk.f32.mxu0 %vm319_vm0, %v27289_v41  ;;  %v27293_v58 = vld [vmem:[#allocation33_spill] sm:$0xff] }
 0x114   : > { %17619 = vmatmul.mubr.msk.f32.gmra.mrb[4].mxu1 %vm319_vm0, %v21724_v59  ;;  %17848 = vmatmul.mubr.msk.f32.gmra.mrb[18].mxu0 %vm319_vm0, %v27290_v53  ;;  %v27294_v59 = vld [vmem:[#allocation35_spill] sm:$0xff] }
 0x115   : > { %17621 = vmatprep.mubr.msk.f32.mxu1 %vm319_vm0, %v21740_v4  ;;  %17850 = vmatprep.mubr.msk.f32.mxu0 %vm319_vm0, %v27291_v8  ;;  %v27295_v4 = vld [vmem:[#allocation37_spill] sm:$0xff] }
 0x118   : > { %17622 = vmatmul.mubr.msk.f32.gmra.mrb[6].mxu1 %vm319_vm0, %v21742_v5  ;;  %17851 = vmatmul.mubr.msk.f32.gmra.mrb[20].mxu0 %vm319_vm0, %v27292_v54  ;;  %v1940_v5 = vrot.slane %v22257_v48, 1 }
 0x119   : > { %17624 = vmatprep.mubr.msk.f32.mxu1 %vm319_vm0, %v21763_v12  ;;  %17853 = vmatprep.mubr.msk.f32.mxu0 %vm319_vm0, %v27293_v58  ;;  %v27296_v12 = vld [vmem:[#allocation39_spill] sm:$0xff] }
 0x11c   : > { %17625 = vmatmul.mubr.msk.f32.gmra.mrb[8].mxu1 %vm319_vm0, %v21765_v14  ;;  %17854 = vmatmul.mubr.msk.f32.gmra.mrb[22].mxu0 %vm319_vm0, %v27294_v59  ;;  %v27297_v14 = vld [vmem:[#allocation40_spill] sm:$0xff] }
 0x11d   : > { %17627 = vmatprep.mubr.msk.f32.mxu1 %vm319_vm0, %v21786_v24  ;;  %17856 = vmatprep.mubr.msk.f32.mxu0 %vm319_vm0, %v27295_v4  ;;  %v1943_v24 = vrot.slane %v22278_v10, 1  ;;  %v22573_v4 = vsel %vm615_vm2, %v1940_v5, %v1941_v33  ;;  %v2739_v10 = vrot.slane %v22575_v51, 1  ;;  %v2738_v5 = vsel %vm615_vm2, %v2736_v60, %v2737_v17 }
 0x120   : > { %17628 = vmatmul.mubr.msk.f32.gmra.mrb[10].mxu1 %vm319_vm0, %v21788_v25  ;;  %17857 = vmatmul.mubr.msk.f32.gmra.mrb[24].mxu0 %vm319_vm0, %v27296_v12  ;;  %v27298_v25 = vld [vmem:[#allocation41_spill] sm:$0xff] }
 0x121   : > { %17630 = vmatprep.mubr.msk.f32.mxu1 %vm319_vm0, %v21830_v44  ;;  %17859 = vmatprep.mubr.msk.f32.mxu0 %vm319_vm0, %v27297_v14  ;;  %v22586_v44 = vsel %vm615_vm2, %v1941_v33, %v1943_v24 }
 0x124   : > { %17631 = vmatmul.mubr.msk.f32.gmra.mrb[12].mxu1 %vm319_vm0, %v21832_v45  ;;  %17860 = vmatmul.mubr.msk.f32.gmra.mrb[26].mxu0 %vm319_vm0, %v27298_v25  ;;  %v2740_v45 = vsel %vm615_vm2, %v2737_v17, %v2739_v10 }
 0x125   : > { %17633 = vmatprep.mubr.msk.f32.mxu1 %vm319_vm0, %v21854_v61  ;;  %17862 = vmatprep.mubr.msk.f32.mxu0 %vm319_vm0, %v22573_v4  ;;  %v27299_v61 = vld [vmem:[#allocation42_spill] sm:$0xff] }
 0x128   : > { %17634 = vmatmul.mubr.msk.f32.gmra.mrb[14].mxu1 %vm319_vm0, %v21856_v62  ;;  %17863 = vmatmul.mubr.msk.f32.gmra.mrb[28].mxu0 %vm319_vm0, %v22586_v44  ;;  %v27302_v62 = vld [vmem:[#allocation37_spill] sm:$0xff] }
 0x129   : > { %17636 = vmatprep.mubr.msk.f32.mxu1 %vm319_vm0, %v21877_v16  ;;  %17865 = vmatprep.mubr.msk.f32.mxu0 %vm319_vm0, %v2738_v5  ;;  %v27304_v16 = vld [vmem:[#allocation48_spill] sm:$0xff] }
 0x12c   : > { %17637 = vmatmul.mubr.msk.f32.gmra.mrb[16].mxu1 %vm319_vm0, %v21879_v21  ;;  %17866 = vmatmul.mubr.msk.f32.gmra.mrb[30].mxu0 %vm319_vm0, %v2740_v45  ;;  %v27305_v21 = vld [vmem:[#allocation49_spill] sm:$0xff] }
 0x12d   : > { %17639 = vmatprep.mubr.msk.f32.mxu1 %vm319_vm0, %v21894_v28  ;;  %17872 = vmatprep.mubr.msk.f32.mxu0 %vm319_vm0, %v21969_v30  ;;  %v3002_v28 = vrot.slane %v22441_v40, 2  ;;  %v3005_v30 = vrot.slane %v22575_v51, 2  ;;  %v14728_v51 = vld [vmem:[%s26895_s1 + $0xb8] sm:$0xff] }
 0x130   : > { %17640 = vmatmul.mubr.msk.f32.gmra.mrb[18].mxu1 %vm319_vm0, %v21904_v36  ;;  %17873 = vmatmul.mubr.msk.f32.vlgmr.msra.gmra.mrb[0].mxu0 %vm319_vm0, %v27259_v19  ;;  %v27306_v36 = vld [vmem:[#allocation50_spill] sm:$0xff] }
 0x131   : > { %17642 = vmatprep.mubr.msk.f32.mxu1 %vm319_vm0, %v21937_v26  ;;  %17875 = vmatprep.mubr.msk.f32.mxu0 %vm319_vm0, %v27260_v23  ;;  %v27307_v26 = vld [vmem:[#allocation51_spill] sm:$0xff] }
 0x134   : > { %17643 = vmatmul.mubr.msk.f32.gmra.mrb[20].mxu1 %vm319_vm0, %v21939_v29  ;;  %17876 = vmatmul.mubr.msk.f32.gmra.mrb[2].mxu0 %vm319_vm0, %v27261_v3  ;;  %v3003_v29 = vrot.slane %v22451_v43, 2 }
 0x135   : > { %17645 = vmatprep.mubr.msk.f32.mxu1 %vm319_vm0, %v21971_v32  ;;  %17878 = vmatprep.mubr.msk.f32.mxu0 %vm319_vm0, %v27262_v0 }
 0x136   : > { %v3004_v32 = vsel %vm1274_vm3, %v3002_v28, %v3003_v29 }
 0x138   : > { %17646 = vmatmul.mubr.msk.f32.gmra.mrb[22].mxu1 %vm319_vm0, %v21973_v37  ;;  %17879 = vmatmul.mubr.msk.f32.gmra.mrb[4].mxu0 %vm319_vm0, %v27263_v2  ;;  %v27308_v37 = vld [vmem:[#allocation52_spill] sm:$0xff] }
 0x139   : > { %17648 = vmatprep.mubr.msk.f32.mxu1 %vm319_vm0, %v22005_v27  ;;  %17881 = vmatprep.mubr.msk.f32.mxu0 %vm319_vm0, %v27264_v55  ;;  %v3006_v27 = vsel %vm1274_vm3, %v3003_v29, %v3005_v30 }
 0x13c   : > { %17649 = vmatmul.mubr.msk.f32.gmra.mrb[24].mxu1 %vm319_vm0, %v22007_v63  ;;  %17882 = vmatmul.mubr.msk.f32.gmra.mrb[6].mxu0 %vm319_vm0, %v27265_v22  ;;  %v27303_v63 = vld [vmem:[#allocation47_spill] sm:$0xff] }
 0x13d   : > { %17651 = vmatprep.mubr.msk.f32.mxu1 %vm319_vm0, %v22037_v52  ;;  %17884 = vmatprep.mubr.msk.f32.mxu0 %vm319_vm0, %v27266_v11  ;;  %v14725_v52 = vld [vmem:[%s26895_s1 + $0xa0] sm:$0xff] }
 0x140   : > { %17652 = vmatmul.mubr.msk.f32.gmra.mrb[26].mxu1 %vm319_vm0, %v22039_v7  ;;  %17885 = vmatmul.mubr.msk.f32.gmra.mrb[8].mxu0 %vm319_vm0, %v22113_v42  ;;  %v14726_v7 = vld [vmem:[%s26895_s1 + $0xa8] sm:$0xff] }
 0x141   : > { %17654 = vmatprep.mubr.msk.f32.mxu1 %vm319_vm0, %v22069_v57  ;;  %17887 = vmatprep.mubr.msk.f32.mxu0 %vm319_vm0, %v22121_v15  ;;  %v19828_v57 = vpack.c.bf16 %v14726_v7, %v14725_v52  ;;  %v22736_v15 = vld [vmem:[#allocation3 + $0x8] sm:$0xff] }
 0x143   : > { %19829 = vmatprep.subr.bf16.mxu1 %v19828_v57 }
 0x144   : > { %17655 = vmatmul.mubr.msk.f32.gmra.mrb[28].mxu1 %vm319_vm0, %v22071_v39  ;;  %17888 = vmatmul.mubr.msk.f32.gmra.mrb[10].mxu0 %vm319_vm0, %v22137_v6  ;;  %v22734_v39 = vld [vmem:[#allocation3] sm:$0xff]  ;;  %v3495_v6 = vrot.slane %v22736_v15, 1 }
 0x145   : > { %17657 = vmatprep.mubr.msk.f32.mxu1 %vm319_vm0, %v22257_v48  ;;  %17890 = vmatprep.mubr.msk.f32.mxu0 %vm319_vm0, %v22141_v56  ;;  %v27301_v48 = vld [vmem:[#allocation46_spill] sm:$0xff]  ;;  %v3494_v42 = vrot.slane %v22734_v39, 1  ;;  %v22740_v56 = vld [vmem:[#allocation3 + $0x10] sm:$0x3] }
 0x148   : > { %17658 = vmatmul.mubr.msk.f32.gmra.mrb[30].mxu1 %vm319_vm0, %v22259_v47  ;;  %17891 = vmatmul.mubr.msk.f32.gmra.mrb[12].mxu0 %vm319_vm0, %v22160_v38  ;;  %v27300_v47 = vld [vmem:[#allocation43_spill] sm:$0xff]  ;;  %v3497_v38 = vrot.slane %v22740_v56, 1 }
 0x149   : > { %17688 = vmatprep.mubr.msk.f32.mxu1 %vm319_vm0, %v27284_v9  ;;  %17893 = vmatprep.mubr.msk.f32.mxu0 %vm319_vm0, %v27299_v61 }
 0x14c   : > { %17689 = vmatmul.mubr.msk.f32.vlgmr.msra.gmra.mrb[16].mxu1 %vm319_vm0, %v27286_v31  ;;  %17894 = vmatmul.mubr.msk.f32.gmra.mrb[14].mxu0 %vm319_vm0, %v22179_v35  ;;  %v3496_v35 = vsel %vm615_vm2, %v3494_v42, %v3495_v6 }
 0x14d   : > { %17691 = vmatprep.mubr.msk.f32.mxu1 %vm319_vm0, %v27287_v18  ;;  %17896 = vmatprep.mubr.msk.f32.mxu0 %vm319_vm0, %v22184_v20  ;;  %v3498_v20 = vsel %vm615_vm2, %v3495_v6, %v3497_v38 }
 0x14e   : > { %19831 = vmatpush3.bf16.msra.mxu1 %v19828_v57 }
 0x150   : > { %17692 = vmatmul.mubr.msk.f32.gmra.mrb[18].mxu1 %vm319_vm0, %v27288_v1  ;;  %17897 = vmatmul.mubr.msk.f32.gmra.mrb[16].mxu0 %vm319_vm0, %v22198_v34  ;;  %v14723_v34 = vld [vmem:[%s26895_s1 + $0x90] sm:$0xff] }
 0x151   : > { %17694 = vmatprep.mubr.msk.f32.mxu1 %vm319_vm0, %v27289_v41  ;;  %17899 = vmatprep.mubr.msk.f32.mxu0 %vm319_vm0, %v27300_v47  ;;  %v22777_v41 = vld [vmem:[%s26896_s2] ss:$0 sm:$0xff] }
 0x154   : > { %17695 = vmatmul.mubr.msk.f32.gmra.mrb[20].mxu1 %vm319_vm0, %v27290_v53  ;;  %17900 = vmatmul.mubr.msk.f32.gmra.mrb[18].mxu0 %vm319_vm0, %v22215_v46 }
 0x155   : > { %17697 = vmatprep.mubr.msk.f32.mxu1 %vm319_vm0, %v27291_v8  ;;  %17902 = vmatprep.mubr.msk.f32.mxu0 %vm319_vm0, %v22219_v13  ;;  %v14727_v13 = vld [vmem:[%s26895_s1 + $0xb0] sm:$0xff] }
 0x156   : > { %v22759_v17 = vpack.c.bf16 %v14728_v51, %v14727_v13 }
 0x158   : > { %17698 = vmatmul.mubr.msk.f32.gmra.mrb[22].mxu1 %vm319_vm0, %v27292_v54  ;;  %17903 = vmatmul.mubr.msk.f32.gmra.mrb[20].mxu0 %vm319_vm0, %v27274_v50 }
 0x159   : > { %17700 = vmatprep.mubr.msk.f32.mxu1 %vm319_vm0, %v27293_v58  ;;  %17905 = vmatprep.mubr.msk.f32.mxu0 %vm319_vm0, %v27276_v49  ;;  %v14724_v49 = vld [vmem:[%s26895_s1 + $0x98] sm:$0xff] }
 0x15a   : > { %v19832_v46 = vpack.c.bf16 %v14724_v49, %v14723_v34 }
 0x15c   : > { %17701 = vmatmul.mubr.msk.f32.gmra.mrb[24].mxu1 %vm319_vm0, %v27294_v59  ;;  %17906 = vmatmul.mubr.msk.f32.gmra.mrb[22].mxu0 %vm319_vm0, %v27301_v48 }
 0x15d   : > { %17703 = vmatprep.mubr.msk.f32.mxu1 %vm319_vm0, %v27302_v62  ;;  %17908 = vmatprep.mubr.msk.f32.mxu0 %vm319_vm0, %v27303_v63 }
 0x15e   : > { %19833 = vmatprep.subr.bf16.mxu1 %v19832_v46 }
 0x160   : > { %17704 = vmatmul.mubr.msk.f32.gmra.mrb[26].mxu1 %vm319_vm0, %v27296_v12  ;;  %17909 = vmatmul.mubr.msk.f32.gmra.mrb[24].mxu0 %vm319_vm0, %v27304_v16 }
 0x161   : > { %17706 = vmatprep.mubr.msk.f32.mxu1 %vm319_vm0, %v27297_v14  ;;  %17911 = vmatprep.mubr.msk.f32.mxu0 %vm319_vm0, %v27305_v21 }
 0x164   : > { %17707 = vmatmul.mubr.msk.f32.gmra.mrb[28].mxu1 %vm319_vm0, %v27298_v25  ;;  %17912 = vmatmul.mubr.msk.f32.gmra.mrb[26].mxu0 %vm319_vm0, %v27306_v36 }
 0x165   : > { %17709 = vmatprep.mubr.msk.f32.mxu1 %vm319_vm0, %v22573_v4  ;;  %17914 = vmatprep.mubr.msk.f32.mxu0 %vm319_vm0, %v27307_v26 }
 0x168   : > { %17710 = vmatmul.mubr.msk.f32.gmra.mrb[30].mxu1 %vm319_vm0, %v22586_v44  ;;  %17915 = vmatmul.mubr.msk.f32.gmra.mrb[28].mxu0 %vm319_vm0, %v27308_v37 }
 0x169   : > { %17917 = vmatprep.mubr.msk.f32.mxu0 %vm319_vm0, %v3004_v32  ;;  %17924 = vmatprep.mubr.msk.f32.mxu1 %vm319_vm0, %v3496_v35 }
 0x16c   : > { %17918 = vmatmul.mubr.msk.f32.gmra.mrb[30].mxu0 %vm319_vm0, %v3006_v27  ;;  %17925 = vmatmul.mubr.msk.f32.vlgmr.msra.gmra.mrb[32].mxu1 %vm319_vm0, %v3498_v20 }
 0x16d   : > { %19835 = vmatpush3.bf16.msra.mxu1 %v19832_v46 }
 0x16e   : > { %19837 = vmatprep.subr.bf16.mxu1 %v22759_v17 }
 0x1df   : > { %v17614_v60 = vpop.f32.mrb[0].mxu1 }
 0x1e0   : > { %v1748_v19 = vpop.f32.mrb[1].mxu1 }
 0x1e3   : > { %v17617_v23 = vpop.f32.mrb[2].mxu1 }
 0x1e4   : > { %v1758_v3 = vpop.f32.mrb[3].mxu1 }
 0x1e7   : > { %v17620_v0 = vpop.f32.mrb[4].mxu1 }
 0x1e8   : > { %v1768_v2 = vpop.f32.mrb[5].mxu1 }
 0x1eb   : > { %v17623_v55 = vpop.f32.mrb[6].mxu1 }
 0x1ec   : > { %v1778_v22 = vpop.f32.mrb[7].mxu1 }
 0x1ef   : > { %v17626_v11 = vpop.f32.mrb[8].mxu1 }
 0x1f0   : > { %v1788_v40 = vpop.f32.mrb[9].mxu1 }
 0x1f3   : > { %v22762_v43 = vpop.f32.mrb[10].mxu1 }
 0x1f4   : > { %v22764_v50 = vpop.f32.mrb[11].mxu1 }
 0x1f7   : > { %v22766_v9 = vpop.f32.mrb[12].mxu1 }
 0x1f8   : > { %v22768_v31 = vpop.f32.mrb[13].mxu1 }
 0x1fb   : > { %v22770_v18 = vpop.f32.mrb[14].mxu1 }
 0x1fc   : > { %v22772_v1 = vpop.f32.mrb[15].mxu1 }
 0x203   : > { %v17874_v53 = vpop.f32.mrb[0].mxu0 }
 0x204   : > { %v19974_v8 = vadd.f32 %v17874_v53, %v17614_v60  ;;  %v3077_v54 = vpop.f32.mrb[1].mxu0 }
 0x205   : > { %v19975_v58 = vadd.f32 %v3077_v54, %v1748_v19 }
 0x206   : > { %v3275_v59 = vadd.f32 %v19974_v8, %v22777_v41 }
 0x207   : > { %v3274_v4 = vadd.f32 %v19975_v58, %v22777_v41  ;;  %v17877_v33 = vpop.f32.mrb[2].mxu0 }
 0x208   : > { %v3307_v12 = vmax.f32 %v3275_v59, 0.0  ;;  %v19976_v14 = vadd.f32 %v17877_v33, %v17617_v23  ;;  %v3087_v24 = vpop.f32.mrb[3].mxu0 }
 0x209   : > { %v3306_v25 = vmax.f32 %v3274_v4, 0.0  ;;  %v19977_v44 = vadd.f32 %v3087_v24, %v1758_v3 }
 0x20a   : > { %3340 = vst.msk [vmem:[#allocation3 + $0x21] sm:$0xff] %vm319_vm0, %v3307_v12  ;;  %v3277_v10 = vadd.f32 %v19976_v14, %v22777_v41 }
 0x20b   : > { %3339 = vst.msk [vmem:[#allocation3 + $0x19] sm:$0xff] %vm319_vm0, %v3306_v25  ;;  %v3276_v5 = vadd.f32 %v19977_v44, %v22777_v41  ;;  %v17880_v45 = vpop.f32.mrb[4].mxu0 }
 0x20c   : > { %v3309_v61 = vmax.f32 %v3277_v10, 0.0  ;;  %v19978_v47 = vadd.f32 %v17880_v45, %v17620_v0  ;;  %v3097_v48 = vpop.f32.mrb[5].mxu0 }
 0x20d   : > { %v3308_v62 = vmax.f32 %v3276_v5, 0.0  ;;  %v19979_v63 = vadd.f32 %v3097_v48, %v1768_v2 }
 0x20e   : > { %3342 = vst.msk [vmem:[#allocation3 + $0x39] sm:$0xff] %vm319_vm0, %v3309_v61  ;;  %v3279_v16 = vadd.f32 %v19978_v47, %v22777_v41 }
 0x20f   : > { %3341 = vst.msk [vmem:[#allocation3 + $0x31] sm:$0xff] %vm319_vm0, %v3308_v62  ;;  %v3278_v21 = vadd.f32 %v19979_v63, %v22777_v41  ;;  %v17883_v28 = vpop.f32.mrb[6].mxu0 }
 0x210   : > { %v3311_v29 = vmax.f32 %v3279_v16, 0.0  ;;  %v19980_v36 = vadd.f32 %v17883_v28, %v17623_v55  ;;  %v3107_v26 = vpop.f32.mrb[7].mxu0 }
 0x211   : > { %v3310_v30 = vmax.f32 %v3278_v21, 0.0  ;;  %v19981_v32 = vadd.f32 %v3107_v26, %v1778_v22  ;;  %v22789_v37 = vld [vmem:[#allocation3 + $0x28] sm:$0x3] }
 0x212   : > { %3344 = vst.msk [vmem:[#allocation3 + $0x51] sm:$0xff] %vm319_vm0, %v3311_v29  ;;  %v3281_v27 = vadd.f32 %v19980_v36, %v22777_v41  ;;  %v22793_v52 = vld [vmem:[#allocation3 + $0x18] sm:$0xff]  ;;  %v22795_v7 = vld [vmem:[#allocation3 + $0x20] sm:$0xff]  ;;  %v3502_v57 = vrot.slane %v22789_v37, 1 }
 0x213   : > { %3343 = vst.msk [vmem:[#allocation3 + $0x49] sm:$0xff] %vm319_vm0, %v3310_v30  ;;  %v3280_v42 = vadd.f32 %v19981_v32, %v22777_v41  ;;  %v17886_v6 = vpop.f32.mrb[8].mxu0  ;;  %v3499_v38 = vrot.slane %v22793_v52, 1  ;;  %v3500_v35 = vrot.slane %v22795_v7, 1 }
 0x214   : > { %v3313_v20 = vmax.f32 %v3281_v27, 0.0  ;;  %v19982_v34 = vadd.f32 %v17886_v6, %v17626_v11  ;;  %v3117_v49 = vpop.f32.mrb[9].mxu0 }
 0x215   : > { %v3312_v46 = vmax.f32 %v3280_v42, 0.0  ;;  %v19983_v13 = vadd.f32 %v3117_v49, %v1788_v40  ;;  %v22803_v51 = vsel %vm615_vm2, %v3499_v38, %v3500_v35  ;;  %v22806_v60 = vsel %vm615_vm2, %v3500_v35, %v3502_v57  ;;  %v22808_v19 = vld [vmem:[#allocation3 + $0x40] sm:$0x3] }
 0x216   : > { %3346 = vst.msk [vmem:[#allocation3 + $0x69] sm:$0xff] %vm319_vm0, %v3313_v20  ;;  %v3283_v23 = vadd.f32 %v19982_v34, %v22777_v41  ;;  %17927 = vmatprep.mubr.msk.f32.mxu1 %vm319_vm0, %v22803_v51  ;;  %v22814_v3 = vld [vmem:[#allocation3 + $0x30] sm:$0xff]  ;;  %v22816_v0 = vld [vmem:[#allocation3 + $0x38] sm:$0xff]  ;;  %v3507_v2 = vrot.slane %v22808_v19, 1 }
 0x217   : > { %3345 = vst.msk [vmem:[#allocation3 + $0x61] sm:$0xff] %vm319_vm0, %v3312_v46  ;;  %v3282_v55 = vadd.f32 %v19983_v13, %v22777_v41  ;;  %v17889_v22 = vpop.f32.mrb[10].mxu0  ;;  %17928 = vmatmul.mubr.msk.f32.gmra.mrb[34].mxu1 %vm319_vm0, %v22806_v60  ;;  %v3504_v11 = vrot.slane %v22814_v3, 1  ;;  %v3505_v40 = vrot.slane %v22816_v0, 1 }
 0x218   : > { %v3315_v53 = vmax.f32 %v3283_v23, 0.0  ;;  %v19984_v8 = vadd.f32 %v17889_v22, %v22762_v43  ;;  %v3127_v54 = vpop.f32.mrb[11].mxu0 }
 0x219   : > { %v3314_v58 = vmax.f32 %v3282_v55, 0.0  ;;  %v19985_v59 = vadd.f32 %v3127_v54, %v22764_v50  ;;  %v22828_v4 = vsel %vm615_vm2, %v3504_v11, %v3505_v40  ;;  %v22831_v33 = vsel %vm615_vm2, %v3505_v40, %v3507_v2  ;;  %v22833_v12 = vld [vmem:[#allocation3 + $0x58] sm:$0x3] }
 0x21a   : > { %3348 = vst.msk [vmem:[#allocation3 + $0x81] sm:$0xff] %vm319_vm0, %v3315_v53  ;;  %v3285_v14 = vadd.f32 %v19984_v8, %v22777_v41  ;;  %17930 = vmatprep.mubr.msk.f32.mxu1 %vm319_vm0, %v22828_v4  ;;  %v22839_v43 = vld [vmem:[#allocation3 + $0x48] sm:$0xff]  ;;  %v22841_v24 = vld [vmem:[#allocation3 + $0x50] sm:$0xff]  ;;  %v3512_v50 = vrot.slane %v22833_v12, 1 }
 0x21b   : > { %3347 = vst.msk [vmem:[#allocation3 + $0x79] sm:$0xff] %vm319_vm0, %v3314_v58  ;;  %v3284_v25 = vadd.f32 %v19985_v59, %v22777_v41  ;;  %v17892_v44 = vpop.f32.mrb[12].mxu0  ;;  %17931 = vmatmul.mubr.msk.f32.gmra.mrb[36].mxu1 %vm319_vm0, %v22831_v33  ;;  %v3509_v10 = vrot.slane %v22839_v43, 1  ;;  %v3510_v5 = vrot.slane %v22841_v24, 1 }
 0x21c   : > { %v3317_v45 = vmax.f32 %v3285_v14, 0.0  ;;  %v19986_v61 = vadd.f32 %v17892_v44, %v22766_v9  ;;  %v3137_v47 = vpop.f32.mrb[13].mxu0 }
 0x21d   : > { %v3316_v48 = vmax.f32 %v3284_v25, 0.0  ;;  %v19987_v62 = vadd.f32 %v3137_v47, %v22768_v31  ;;  %v22853_v63 = vsel %vm615_vm2, %v3509_v10, %v3510_v5  ;;  %v22856_v16 = vsel %vm615_vm2, %v3510_v5, %v3512_v50  ;;  %v22858_v21 = vld [vmem:[#allocation3 + $0x70] sm:$0x3] }
 0x21e   : > { %27309 = vst [vmem:[#allocation24_spill] sm:$0xff] %v22856_v16  ;;  %3350 = vst.msk [vmem:[#allocation3 + $0x99] sm:$0xff] %vm319_vm0, %v3317_v45  ;;  %v3287_v28 = vadd.f32 %v19986_v61, %v22777_v41  ;;  %17933 = vmatprep.mubr.msk.f32.mxu1 %vm319_vm0, %v22853_v63  ;;  %v22864_v9 = vld [vmem:[#allocation3 + $0x60] sm:$0xff]  ;;  %v22866_v29 = vld [vmem:[#allocation3 + $0x68] sm:$0xff]  ;;  %v3517_v31 = vrot.slane %v22858_v21, 1 }
 0x21f   : > { %3349 = vst.msk [vmem:[#allocation3 + $0x91] sm:$0xff] %vm319_vm0, %v3316_v48  ;;  %v3286_v36 = vadd.f32 %v19987_v62, %v22777_v41  ;;  %v17690_v26 = vpop.f32.mrb[16].mxu1  ;;  %v17895_v30 = vpop.f32.mrb[14].mxu0  ;;  %17934 = vmatmul.mubr.msk.f32.gmra.mrb[38].mxu1 %vm319_vm0, %v22856_v16  ;;  %v3514_v32 = vrot.slane %v22864_v9, 1  ;;  %v3515_v27 = vrot.slane %v22866_v29, 1  ;;  %v4163_v16 = vrot.slane %v22816_v0, 2 }
 0x220   : > { %v3319_v57 = vmax.f32 %v3287_v28, 0.0  ;;  %v19988_v42 = vadd.f32 %v17895_v30, %v22770_v18  ;;  %v2095_v6 = vpop.f32.mrb[17].mxu1  ;;  %v3147_v38 = vpop.f32.mrb[15].mxu0 }
 0x221   : > { %v3318_v35 = vmax.f32 %v3286_v36, 0.0  ;;  %v19989_v20 = vadd.f32 %v3147_v38, %v22772_v1  ;;  %v22878_v34 = vsel %vm615_vm2, %v3514_v32, %v3515_v27  ;;  %v22881_v49 = vsel %vm615_vm2, %v3515_v27, %v3517_v31  ;;  %v22883_v46 = vld [vmem:[#allocation3 + $0x88] sm:$0x3] }
 0x222   : > { %27310 = vst [vmem:[#allocation26_spill] sm:$0xff] %v22878_v34  ;;  %27311 = vst [vmem:[#allocation27_spill] sm:$0xff] %v22881_v49  ;;  %v3289_v13 = vadd.f32 %v19988_v42, %v22777_v41  ;;  %17936 = vmatprep.mubr.msk.f32.mxu1 %vm319_vm0, %v22878_v34  ;;  %v22889_v18 = vld [vmem:[#allocation3 + $0x78] sm:$0xff]  ;;  %v22891_v23 = vld [vmem:[#allocation3 + $0x80] sm:$0xff]  ;;  %v3522_v1 = vrot.slane %v22883_v46, 1 }
 0x223   : > { %3352 = vst.msk [vmem:[#allocation3 + $0xb1] sm:$0xff] %vm319_vm0, %v3319_v57  ;;  %3351 = vst.msk [vmem:[#allocation3 + $0xa9] sm:$0xff] %vm319_vm0, %v3318_v35  ;;  %v3288_v2 = vadd.f32 %v19989_v20, %v22777_v41  ;;  %v17693_v55 = vpop.f32.mrb[18].mxu1  ;;  %v17898_v22 = vpop.f32.mrb[16].mxu0  ;;  %17937 = vmatmul.mubr.msk.f32.gmra.mrb[40].mxu1 %vm319_vm0, %v22881_v49  ;;  %v3519_v11 = vrot.slane %v22889_v18, 1  ;;  %v3520_v40 = vrot.slane %v22891_v23, 1 }
 0x224   : > { %v3321_v53 = vmax.f32 %v3289_v13, 0.0  ;;  %v19990_v8 = vadd.f32 %v17898_v22, %v17690_v26  ;;  %v2105_v54 = vpop.f32.mrb[19].mxu1  ;;  %v3157_v58 = vpop.f32.mrb[17].mxu0 }
 0x225   : > { %v3320_v59 = vmax.f32 %v3288_v2, 0.0  ;;  %v19991_v14 = vadd.f32 %v3157_v58, %v2095_v6  ;;  %v22901_v50 = vsel %vm615_vm2, %v3519_v11, %v3520_v40  ;;  %v22904_v25 = vsel %vm615_vm2, %v3520_v40, %v3522_v1  ;;  %v22906_v44 = vld [vmem:[#allocation3 + $0xa0] sm:$0x3] }
 0x226   : > { %27312 = vst [vmem:[#allocation29_spill] sm:$0xff] %v22901_v50  ;;  %27313 = vst [vmem:[#allocation32_spill] sm:$0xff] %v22904_v25  ;;  %v3291_v10 = vadd.f32 %v19990_v8, %v22777_v41  ;;  %17939 = vmatprep.mubr.msk.f32.mxu1 %vm319_vm0, %v22901_v50  ;;  %v22912_v5 = vld [vmem:[#allocation3 + $0x90] sm:$0xff]  ;;  %v22914_v45 = vld [vmem:[#allocation3 + $0x98] sm:$0xff]  ;;  %v3527_v61 = vrot.slane %v22906_v44, 1 }
 0x227   : > { %3354 = vst.msk [vmem:[#allocation3 + $0xc9] sm:$0xff] %vm319_vm0, %v3321_v53  ;;  %3353 = vst.msk [vmem:[#allocation3 + $0xc1] sm:$0xff] %vm319_vm0, %v3320_v59  ;;  %v3290_v47 = vadd.f32 %v19991_v14, %v22777_v41  ;;  %v17696_v48 = vpop.f32.mrb[20].mxu1  ;;  %v17901_v62 = vpop.f32.mrb[18].mxu0  ;;  %17940 = vmatmul.mubr.msk.f32.gmra.mrb[42].mxu1 %vm319_vm0, %v22904_v25  ;;  %v3524_v28 = vrot.slane %v22912_v5, 1  ;;  %v3525_v31 = vrot.slane %v22914_v45, 1 }
 0x228   : > { %v3323_v36 = vmax.f32 %v3291_v10, 0.0  ;;  %v19992_v26 = vadd.f32 %v17901_v62, %v17693_v55  ;;  %v2115_v30 = vpop.f32.mrb[21].mxu1  ;;  %v3167_v32 = vpop.f32.mrb[19].mxu0 }
 0x229   : > { %v3322_v27 = vmax.f32 %v3290_v47, 0.0  ;;  %v19993_v57 = vadd.f32 %v3167_v32, %v2105_v54  ;;  %v22924_v42 = vsel %vm615_vm2, %v3524_v28, %v3525_v31  ;;  %v22927_v6 = vsel %vm615_vm2, %v3525_v31, %v3527_v61 }
 0x22a   : > { %27314 = vst [vmem:[#allocation34_spill] sm:$0xff] %v22924_v42  ;;  %27315 = vst [vmem:[#allocation36_spill] sm:$0xff] %v22927_v6  ;;  %v22929_v38 = vld [vmem:[#allocation3 + $0xb8] sm:$0x3]  ;;  %v3293_v35 = vadd.f32 %v19992_v26, %v22777_v41  ;;  %17942 = vmatprep.mubr.msk.f32.mxu1 %vm319_vm0, %v22924_v42  ;;  %v22935_v20 = vld [vmem:[#allocation3 + $0xa8] sm:$0xff] }
 0x22b   : > { %3356 = vst.msk [vmem:[#allocation3 + $0xe1] sm:$0xff] %vm319_vm0, %v3323_v36  ;;  %v22937_v13 = vld [vmem:[#allocation3 + $0xb0] sm:$0xff]  ;;  %v3532_v1 = vrot.slane %v22929_v38, 1  ;;  %3355 = vst.msk [vmem:[#allocation3 + $0xd9] sm:$0xff] %vm319_vm0, %v3322_v27  ;;  %v3292_v2 = vadd.f32 %v19993_v57, %v22777_v41  ;;  %v17699_v55 = vpop.f32.mrb[22].mxu1  ;;  %v17904_v22 = vpop.f32.mrb[20].mxu0  ;;  %17943 = vmatmul.mubr.msk.f32.gmra.mrb[44].mxu1 %vm319_vm0, %v22927_v6 }
 0x22c   : > { %v3529_v11 = vrot.slane %v22935_v20, 1  ;;  %v3530_v40 = vrot.slane %v22937_v13, 1  ;;  %v3325_v53 = vmax.f32 %v3293_v35, 0.0  ;;  %v19994_v8 = vadd.f32 %v17904_v22, %v17696_v48  ;;  %v2125_v54 = vpop.f32.mrb[23].mxu1  ;;  %v3177_v58 = vpop.f32.mrb[21].mxu0 }
 0x22d   : > { %v3324_v59 = vmax.f32 %v3292_v2, 0.0  ;;  %v19995_v14 = vadd.f32 %v3177_v58, %v2115_v30 }
 0x22e   : > { %v22947_v10 = vsel %vm615_vm2, %v3529_v11, %v3530_v40  ;;  %v22950_v61 = vsel %vm615_vm2, %v3530_v40, %v3532_v1  ;;  %v22952_v47 = vld [vmem:[#allocation3 + $0xd0] sm:$0x3]  ;;  %3358 = vst.msk [vmem:[#allocation3 + $0xf9] sm:$0xff] %vm319_vm0, %v3325_v53  ;;  %v3295_v62 = vadd.f32 %v19994_v8, %v22777_v41  ;;  %v22958_v48 = vld [vmem:[#allocation3 + $0xc0] sm:$0xff]  ;;  %v22960_v28 = vld [vmem:[#allocation3 + $0xc8] sm:$0xff] }
 0x22f   : > { %27316 = vst [vmem:[#allocation38_spill] sm:$0xff] %v22947_v10  ;;  %27317 = vst [vmem:[#allocation6_spill] sm:$0xff] %v22950_v61  ;;  %17945 = vmatprep.mubr.msk.f32.mxu1 %vm319_vm0, %v22947_v10  ;;  %v3537_v31 = vrot.slane %v22952_v47, 1  ;;  %v3294_v36 = vadd.f32 %v19995_v14, %v22777_v41  ;;  %v17702_v26 = vpop.f32.mrb[24].mxu1  ;;  %v17907_v30 = vpop.f32.mrb[22].mxu0  ;;  %v3534_v32 = vrot.slane %v22958_v48, 1 }
 0x230   : > { %3357 = vst.msk [vmem:[#allocation3 + $0xf1] sm:$0xff] %vm319_vm0, %v3324_v59  ;;  %17946 = vmatmul.mubr.msk.f32.gmra.mrb[46].mxu1 %vm319_vm0, %v22950_v61  ;;  %v3535_v27 = vrot.slane %v22960_v28, 1  ;;  %v3327_v57 = vmax.f32 %v3295_v62, 0.0  ;;  %v19996_v35 = vadd.f32 %v17907_v30, %v17699_v55  ;;  %v2135_v1 = vpop.f32.mrb[25].mxu1  ;;  %v3187_v2 = vpop.f32.mrb[23].mxu0 }
 0x231   : > { %v3326_v22 = vmax.f32 %v3294_v36, 0.0  ;;  %v19997_v11 = vadd.f32 %v3187_v2, %v2125_v54 }
 0x232   : > { %v22970_v40 = vsel %vm615_vm2, %v3534_v32, %v3535_v27  ;;  %v22973_v53 = vsel %vm615_vm2, %v3535_v27, %v3537_v31  ;;  %v22975_v8 = vld [vmem:[#allocation3 + $0xe8] sm:$0x3]  ;;  %3360 = vst.msk [vmem:[#allocation3 + $0x111] sm:$0xff] %vm319_vm0, %v3327_v57  ;;  %v3297_v58 = vadd.f32 %v19996_v35, %v22777_v41  ;;  %v22981_v55 = vld [vmem:[#allocation3 + $0xd8] sm:$0xff]  ;;  %v22983_v59 = vld [vmem:[#allocation3 + $0xe0] sm:$0xff] }
 0x233   : > { %27318 = vst [vmem:[#allocation7_spill] sm:$0xff] %v22970_v40  ;;  %27319 = vst [vmem:[#allocation8_spill] sm:$0xff] %v22973_v53  ;;  %17948 = vmatprep.mubr.msk.f32.mxu1 %vm319_vm0, %v22970_v40  ;;  %v3542_v54 = vrot.slane %v22975_v8, 1  ;;  %v3296_v14 = vadd.f32 %v19997_v11, %v22777_v41  ;;  %v17705_v62 = vpop.f32.mrb[26].mxu1  ;;  %v17910_v31 = vpop.f32.mrb[24].mxu0  ;;  %v3539_v36 = vrot.slane %v22981_v55, 1 }
 0x234   : > { %3359 = vst.msk [vmem:[#allocation3 + $0x109] sm:$0xff] %vm319_vm0, %v3326_v22  ;;  %17949 = vmatmul.mubr.msk.f32.gmra.mrb[48].mxu1 %vm319_vm0, %v22973_v53  ;;  %v3540_v30 = vrot.slane %v22983_v59, 1  ;;  %v3329_v32 = vmax.f32 %v3297_v58, 0.0  ;;  %v19998_v27 = vadd.f32 %v17910_v31, %v17702_v26  ;;  %v2145_v57 = vpop.f32.mrb[27].mxu1  ;;  %v3197_v35 = vpop.f32.mrb[25].mxu0 }
 0x235   : > { %v3328_v2 = vmax.f32 %v3296_v14, 0.0  ;;  %v19999_v40 = vadd.f32 %v3197_v35, %v2135_v1  ;;  %v22998_v11 = vld [vmem:[#allocation3 + $0x100] sm:$0x3] }
 0x236   : > { %v22993_v61 = vsel %vm615_vm2, %v3539_v36, %v3540_v30  ;;  %v22996_v22 = vsel %vm615_vm2, %v3540_v30, %v3542_v54  ;;  %3362 = vst.msk [vmem:[#allocation3 + $0x129] sm:$0xff] %vm319_vm0, %v3329_v32  ;;  %v3299_v53 = vadd.f32 %v19998_v27, %v22777_v41  ;;  %v3547_v1 = vrot.slane %v22998_v11, 1 }
 0x237   : > { %27320 = vst [vmem:[#allocation9_spill] sm:$0xff] %v22993_v61  ;;  %27321 = vst [vmem:[#allocation10_spill] sm:$0xff] %v22996_v22  ;;  %17951 = vmatprep.mubr.msk.f32.mxu1 %vm319_vm0, %v22993_v61  ;;  %v23004_v26 = vld [vmem:[#allocation3 + $0xf0] sm:$0xff]  ;;  %v23006_v58 = vld [vmem:[#allocation3 + $0xf8] sm:$0xff]  ;;  %v3298_v54 = vadd.f32 %v19999_v40, %v22777_v41  ;;  %v17708_v14 = vpop.f32.mrb[28].mxu1  ;;  %v17913_v31 = vpop.f32.mrb[26].mxu0 }
 0x238   : > { %3361 = vst.msk [vmem:[#allocation3 + $0x121] sm:$0xff] %vm319_vm0, %v3328_v2  ;;  %17952 = vmatmul.mubr.msk.f32.gmra.mrb[50].mxu1 %vm319_vm0, %v22996_v22  ;;  %v3544_v36 = vrot.slane %v23004_v26, 1  ;;  %v3545_v30 = vrot.slane %v23006_v58, 1  ;;  %v3331_v32 = vmax.f32 %v3299_v53, 0.0  ;;  %v20000_v27 = vadd.f32 %v17913_v31, %v17705_v62  ;;  %v2155_v35 = vpop.f32.mrb[29].mxu1  ;;  %v3207_v61 = vpop.f32.mrb[27].mxu0 }
 0x239   : > { %v3330_v10 = vmax.f32 %v3298_v54, 0.0  ;;  %v20001_v6 = vadd.f32 %v3207_v61, %v2145_v57  ;;  %v23021_v2 = vld [vmem:[#allocation3 + $0x118] sm:$0x3] }
 0x23a   : > { %v23016_v42 = vsel %vm615_vm2, %v3544_v36, %v3545_v30  ;;  %v23019_v40 = vsel %vm615_vm2, %v3545_v30, %v3547_v1  ;;  %3364 = vst.msk [vmem:[#allocation3 + $0x141] sm:$0xff] %vm319_vm0, %v3331_v32  ;;  %v3301_v22 = vadd.f32 %v20000_v27, %v22777_v41  ;;  %v3552_v61 = vrot.slane %v23021_v2, 1 }
 0x23b   : > { %27322 = vst [vmem:[#allocation11_spill] sm:$0xff] %v23016_v42  ;;  %27323 = vst [vmem:[#allocation12_spill] sm:$0xff] %v23019_v40  ;;  %17954 = vmatprep.mubr.msk.f32.mxu1 %vm319_vm0, %v23016_v42  ;;  %v23027_v53 = vld [vmem:[#allocation3 + $0x108] sm:$0xff]  ;;  %v23029_v62 = vld [vmem:[#allocation3 + $0x110] sm:$0xff]  ;;  %v3300_v57 = vadd.f32 %v20001_v6, %v22777_v41  ;;  %v17711_v1 = vpop.f32.mrb[30].mxu1  ;;  %v17916_v54 = vpop.f32.mrb[28].mxu0 }
 0x23c   : > { %3363 = vst.msk [vmem:[#allocation3 + $0x139] sm:$0xff] %vm319_vm0, %v3330_v10  ;;  %17955 = vmatmul.mubr.msk.f32.gmra.mrb[52].mxu1 %vm319_vm0, %v23019_v40  ;;  %v3549_v31 = vrot.slane %v23027_v53, 1  ;;  %v3550_v36 = vrot.slane %v23029_v62, 1  ;;  %v3333_v30 = vmax.f32 %v3301_v22, 0.0  ;;  %v20002_v32 = vadd.f32 %v17916_v54, %v17708_v14  ;;  %v2165_v27 = vpop.f32.mrb[31].mxu1  ;;  %v3217_v42 = vpop.f32.mrb[29].mxu0 }
 0x23d   : > { %v3332_v25 = vmax.f32 %v3300_v57, 0.0  ;;  %v20003_v50 = vadd.f32 %v3217_v42, %v2155_v35  ;;  %v23044_v10 = vld [vmem:[#allocation3 + $0x130] sm:$0x3] }
 0x23e   : > { %v23039_v49 = vsel %vm615_vm2, %v3549_v31, %v3550_v36  ;;  %v23042_v6 = vsel %vm615_vm2, %v3550_v36, %v3552_v61  ;;  %3366 = vst.msk [vmem:[#allocation3 + $0x159] sm:$0xff] %vm319_vm0, %v3333_v30  ;;  %v3303_v40 = vadd.f32 %v20002_v32, %v22777_v41  ;;  %v3557_v42 = vrot.slane %v23044_v10, 1 }
 0x23f   : > { %27324 = vst [vmem:[#allocation44_spill] sm:$0xff] %v23039_v49  ;;  %27325 = vst [vmem:[#allocation13_spill] sm:$0xff] %v23042_v6  ;;  %17957 = vmatprep.mubr.msk.f32.mxu1 %vm319_vm0, %v23039_v49  ;;  %v23050_v22 = vld [vmem:[#allocation3 + $0x120] sm:$0xff]  ;;  %v23052_v14 = vld [vmem:[#allocation3 + $0x128] sm:$0xff]  ;;  %v3302_v35 = vadd.f32 %v20003_v50, %v22777_v41  ;;  %v17919_v61 = vpop.f32.mrb[30].mxu0 }
 0x240   : > { %3365 = vst.msk [vmem:[#allocation3 + $0x151] sm:$0xff] %vm319_vm0, %v3332_v25  ;;  %17958 = vmatmul.mubr.msk.f32.gmra.mrb[54].mxu1 %vm319_vm0, %v23042_v6  ;;  %v3554_v57 = vrot.slane %v23050_v22, 1  ;;  %v3555_v54 = vrot.slane %v23052_v14, 1  ;;  %v3335_v31 = vmax.f32 %v3303_v40, 0.0  ;;  %v20004_v36 = vadd.f32 %v17919_v61, %v17711_v1  ;;  %v3227_v30 = vpop.f32.mrb[31].mxu0 }
 0x241   : > { %v3334_v32 = vmax.f32 %v3302_v35, 0.0  ;;  %v20005_v49 = vadd.f32 %v3227_v30, %v2165_v27  ;;  %v23067_v50 = vld [vmem:[#allocation3 + $0x148] sm:$0x3] }
 0x242   : > { %v23062_v34 = vsel %vm615_vm2, %v3554_v57, %v3555_v54  ;;  %v23065_v25 = vsel %vm615_vm2, %v3555_v54, %v3557_v42  ;;  %3368 = vst.msk [vmem:[#allocation3 + $0x171] sm:$0xff] %vm319_vm0, %v3335_v31  ;;  %v3305_v6 = vadd.f32 %v20004_v36, %v22777_v41  ;;  %v3562_v27 = vrot.slane %v23067_v50, 1 }
 0x243   : > { %27326 = vst [vmem:[#allocation45_spill] sm:$0xff] %v23062_v34  ;;  %27327 = vst [vmem:[#allocation14_spill] sm:$0xff] %v23065_v25  ;;  %17960 = vmatprep.mubr.msk.f32.mxu1 %vm319_vm0, %v23062_v34  ;;  %v23073_v40 = vld [vmem:[#allocation3 + $0x138] sm:$0xff]  ;;  %v23075_v1 = vld [vmem:[#allocation3 + $0x140] sm:$0xff]  ;;  %v3304_v42 = vadd.f32 %v20005_v49, %v22777_v41  ;;  %v4162_v34 = vrot.slane %v22814_v3, 2 }
 0x244   : > { %3367 = vst.msk [vmem:[#allocation3 + $0x169] sm:$0xff] %vm319_vm0, %v3334_v32  ;;  %17961 = vmatmul.mubr.msk.f32.gmra.mrb[56].mxu1 %vm319_vm0, %v23065_v25  ;;  %v3559_v35 = vrot.slane %v23073_v40, 1  ;;  %v3560_v61 = vrot.slane %v23075_v1, 1  ;;  %v3337_v57 = vmax.f32 %v3305_v6, 0.0 }
 0x245   : > { %v3336_v54 = vmax.f32 %v3304_v42, 0.0  ;;  %v23090_v30 = vld [vmem:[#allocation3 + $0x160] sm:$0x3] }
 0x246   : > { %v23085_v31 = vsel %vm615_vm2, %v3559_v35, %v3560_v61  ;;  %v23088_v36 = vsel %vm615_vm2, %v3560_v61, %v3562_v27  ;;  %3370 = vst.msk [vmem:[#allocation3 + $0x189] sm:$0xff] %vm319_vm0, %v3337_v57  ;;  %v3567_v6 = vrot.slane %v23090_v30, 1 }
 0x247   : > { %27328 = vst [vmem:[#allocation15_spill] sm:$0xff] %v23085_v31  ;;  %27329 = vst [vmem:[#allocation16_spill] sm:$0xff] %v23088_v36  ;;  %17963 = vmatprep.mubr.msk.f32.mxu1 %vm319_vm0, %v23085_v31  ;;  %v23095_v41 = vld [vmem:[#allocation3 + $0x150] sm:$0xff]  ;;  %v23097_v49 = vld [vmem:[#allocation3 + $0x158] sm:$0xff] }
 0x248   : > { %3369 = vst.msk [vmem:[#allocation3 + $0x181] sm:$0xff] %vm319_vm0, %v3336_v54  ;;  %17964 = vmatmul.mubr.msk.f32.gmra.mrb[58].mxu1 %vm319_vm0, %v23088_v36  ;;  %v3564_v32 = vrot.slane %v23095_v41, 1  ;;  %v3565_v27 = vrot.slane %v23097_v49, 1 }
 0x249   : > { %v23111_v61 = vld [vmem:[#allocation3 + $0x178] sm:$0x3] }
 0x24a   : > { %v23106_v42 = vsel %vm615_vm2, %v3564_v32, %v3565_v27  ;;  %v23109_v35 = vsel %vm615_vm2, %v3565_v27, %v3567_v6  ;;  %v3572_v36 = vrot.slane %v23111_v61, 1 }
 0x24b   : > { %27330 = vst [vmem:[#allocation17_spill] sm:$0xff] %v23106_v42  ;;  %27331 = vst [vmem:[#allocation18_spill] sm:$0xff] %v23109_v35  ;;  %17966 = vmatprep.mubr.msk.f32.mxu1 %vm319_vm0, %v23106_v42  ;;  %v23115_v57 = vld [vmem:[#allocation3 + $0x168] sm:$0xff]  ;;  %v23117_v54 = vld [vmem:[#allocation3 + $0x170] sm:$0xff] }
 0x24c   : > { %17967 = vmatmul.mubr.msk.f32.gmra.mrb[60].mxu1 %vm319_vm0, %v23109_v35  ;;  %v3569_v32 = vrot.slane %v23115_v57, 1  ;;  %v3570_v31 = vrot.slane %v23117_v54, 1  ;;  %v14729_v42 = vld [vmem:[%s26895_s1 + $0xc0] sm:$0xff]  ;;  %v14730_v35 = vld [vmem:[%s26895_s1 + $0xc8] sm:$0xff] }
 0x24e   : > { %v23125_v6 = vsel %vm615_vm2, %v3569_v32, %v3570_v31  ;;  %v23128_v27 = vsel %vm615_vm2, %v3570_v31, %v3572_v36  ;;  %v19840_v32 = vpack.c.bf16 %v14730_v35, %v14729_v42  ;;  %v4153_v31 = vrot.slane %v22736_v15, 2  ;;  %v14731_v35 = vld [vmem:[%s26895_s1 + $0xd0] sm:$0xff] }
 0x24f   : > { %27332 = vst [vmem:[#allocation19_spill] sm:$0xff] %v23125_v6  ;;  %27333 = vst [vmem:[#allocation4_spill] sm:$0xff] %v23128_v27  ;;  %17969 = vmatprep.mubr.msk.f32.mxu1 %vm319_vm0, %v23125_v6  ;;  %v4155_v36 = vrot.slane %v22740_v56, 2  ;;  %v4160_v6 = vrot.slane %v22789_v37, 2  ;;  %v4165_v37 = vrot.slane %v22808_v19, 2 }
 0x250   : > { %17970 = vmatmul.mubr.msk.f32.gmra.mrb[62].mxu1 %vm319_vm0, %v23128_v27  ;;  %v4158_v27 = vrot.slane %v22795_v7, 2 }
 0x251   : > { %17976 = vmatprep.mubr.msk.f32.mxu1 %vm319_vm0, %v22734_v39  ;;  %v4156_v56 = vsel %vm1274_vm3, %v4153_v31, %v4155_v36  ;;  %v23238_v36 = vsel %vm1274_vm3, %v4162_v34, %v4163_v16  ;;  %v4172_v34 = vrot.slane %v22864_v9, 2 }
 0x254   : > { %17977 = vmatmul.mubr.msk.f32.vlgmr.msra.gmra.mrb[32].mxu1 %vm319_vm0, %v22736_v15  ;;  %v4157_v15 = vrot.slane %v22793_v52, 2 }
 0x255   : > { %19839 = vmatpush3.bf16.msra.mxu1 %v22759_v17  ;;  %17979 = vmatprep.mubr.msk.f32.mxu1 %vm319_vm0, %v22793_v52  ;;  %v4152_v17 = vrot.slane %v22734_v39, 2  ;;  %v14732_v39 = vld [vmem:[%s26895_s1 + $0xd8] sm:$0xff] }
 0x256   : > { %19841 = vmatprep.subr.bf16.mxu1 %v19840_v32  ;;  %v23224_v25 = vsel %vm1274_vm3, %v4157_v15, %v4158_v27  ;;  %v4177_v15 = vrot.slane %v22889_v18, 2 }
 0x257   : > { %v4154_v42 = vsel %vm1274_vm3, %v4152_v17, %v4153_v31  ;;  %v23219_v17 = vpack.c.bf16 %v14732_v39, %v14731_v35  ;;  %v23232_v31 = vsel %vm1274_vm3, %v4158_v27, %v4160_v6  ;;  %v23245_v35 = vsel %vm1274_vm3, %v4163_v16, %v4165_v37 }
 0x258   : > { %17980 = vmatmul.mubr.msk.f32.gmra.mrb[34].mxu1 %vm319_vm0, %v22795_v7  ;;  %v4170_v6 = vrot.slane %v22833_v12, 2  ;;  %v4173_v27 = vrot.slane %v22866_v29, 2  ;;  %v4175_v16 = vrot.slane %v22858_v21, 2 }
 0x259   : > { %17982 = vmatprep.mubr.msk.f32.mxu1 %vm319_vm0, %v22814_v3 }
 0x25a   : > { %v23264_v12 = vsel %vm1274_vm3, %v4172_v34, %v4173_v27  ;;  %v23271_v37 = vsel %vm1274_vm3, %v4173_v27, %v4175_v16  ;;  %v4185_v27 = vrot.slane %v22906_v44, 2  ;;  %v4187_v16 = vrot.slane %v22935_v20, 2 }
 0x25c   : > { %17983 = vmatmul.mubr.msk.f32.gmra.mrb[36].mxu1 %vm319_vm0, %v22816_v0 }
 0x25d   : > { %17985 = vmatprep.mubr.msk.f32.mxu1 %vm319_vm0, %v22839_v43 }
 0x260   : > { %17986 = vmatmul.mubr.msk.f32.gmra.mrb[38].mxu1 %vm319_vm0, %v22841_v24 }
 0x261   : > { %17988 = vmatprep.mubr.msk.f32.mxu1 %vm319_vm0, %v22864_v9 }
 0x264   : > { %17989 = vmatmul.mubr.msk.f32.gmra.mrb[40].mxu1 %vm319_vm0, %v22866_v29 }
 0x265   : > { %17991 = vmatprep.mubr.msk.f32.mxu1 %vm319_vm0, %v22889_v18 }
 0x268   : > { %17992 = vmatmul.mubr.msk.f32.gmra.mrb[42].mxu1 %vm319_vm0, %v22891_v23 }
 0x269   : > { %17994 = vmatprep.mubr.msk.f32.mxu1 %vm319_vm0, %v22912_v5 }
 0x26c   : > { %17995 = vmatmul.mubr.msk.f32.gmra.mrb[44].mxu1 %vm319_vm0, %v22914_v45 }
 0x26d   : > { %17997 = vmatprep.mubr.msk.f32.mxu1 %vm319_vm0, %v22935_v20 }
 0x270   : > { %17998 = vmatmul.mubr.msk.f32.gmra.mrb[46].mxu1 %vm319_vm0, %v22937_v13 }
 0x271   : > { %18000 = vmatprep.mubr.msk.f32.mxu1 %vm319_vm0, %v22958_v48 }
 0x274   : > { %18001 = vmatmul.mubr.msk.f32.gmra.mrb[48].mxu1 %vm319_vm0, %v22960_v28 }
 0x275   : > { %18003 = vmatprep.mubr.msk.f32.mxu1 %vm319_vm0, %v22981_v55 }
 0x278   : > { %18004 = vmatmul.mubr.msk.f32.gmra.mrb[50].mxu1 %vm319_vm0, %v22983_v59 }
 0x279   : > { %18006 = vmatprep.mubr.msk.f32.mxu1 %vm319_vm0, %v23004_v26 }
 0x27c   : > { %18007 = vmatmul.mubr.msk.f32.gmra.mrb[52].mxu1 %vm319_vm0, %v23006_v58 }
 0x27d   : > { %18009 = vmatprep.mubr.msk.f32.mxu1 %vm319_vm0, %v23027_v53 }
 0x280   : > { %18010 = vmatmul.mubr.msk.f32.gmra.mrb[54].mxu1 %vm319_vm0, %v23029_v62 }
 0x281   : > { %18012 = vmatprep.mubr.msk.f32.mxu1 %vm319_vm0, %v23050_v22 }
 0x284   : > { %18013 = vmatmul.mubr.msk.f32.gmra.mrb[56].mxu1 %vm319_vm0, %v23052_v14 }
 0x285   : > { %18015 = vmatprep.mubr.msk.f32.mxu1 %vm319_vm0, %v23073_v40 }
 0x288   : > { %18016 = vmatmul.mubr.msk.f32.gmra.mrb[58].mxu1 %vm319_vm0, %v23075_v1 }
 0x289   : > { %18018 = vmatprep.mubr.msk.f32.mxu1 %vm319_vm0, %v23095_v41 }
 0x28c   : > { %18019 = vmatmul.mubr.msk.f32.gmra.mrb[60].mxu1 %vm319_vm0, %v23097_v49 }
 0x28d   : > { %18021 = vmatprep.mubr.msk.f32.mxu1 %vm319_vm0, %v23115_v57 }
 0x290   : > { %18022 = vmatmul.mubr.msk.f32.gmra.mrb[62].mxu1 %vm319_vm0, %v23117_v54 }
 0x291   : > { %18028 = vmatprep.mubr.msk.f32.mxu1 %vm319_vm0, %v4154_v42  ;;  %v4167_v42 = vrot.slane %v22839_v43, 2 }
 0x294   : > { %18029 = vmatmul.mubr.msk.f32.vlgmr.msra.gmra.mrb[32].mxu1 %vm319_vm0, %v4156_v56  ;;  %v4178_v56 = vrot.slane %v22891_v23, 2 }
 0x295   : > { %19843 = vmatpush3.bf16.msra.mxu1 %v19840_v32  ;;  %18031 = vmatprep.mubr.msk.f32.mxu1 %vm319_vm0, %v23224_v25  ;;  %v4168_v32 = vrot.slane %v22841_v24, 2 }
 0x296   : > { %19845 = vmatprep.subr.bf16.mxu1 %v23219_v17  ;;  %v23277_v21 = vsel %vm1274_vm3, %v4177_v15, %v4178_v56  ;;  %v4188_v15 = vrot.slane %v22937_v13, 2 }
 0x297   : > { %v23251_v19 = vsel %vm1274_vm3, %v4167_v42, %v4168_v32  ;;  %v23258_v39 = vsel %vm1274_vm3, %v4168_v32, %v4170_v6  ;;  %v4180_v42 = vrot.slane %v22883_v46, 2  ;;  %27334 = vst [vmem:[#allocation20_spill] sm:$0xff] %v23277_v21  ;;  %v4182_v32 = vrot.slane %v22912_v5, 2 }
 0x298   : > { %18032 = vmatmul.mubr.msk.f32.gmra.mrb[34].mxu1 %vm319_vm0, %v23232_v31  ;;  %v4183_v6 = vrot.slane %v22914_v45, 2  ;;  %v23303_v44 = vsel %vm1274_vm3, %v4187_v16, %v4188_v15  ;;  %v4198_v16 = vrot.slane %v22983_v59, 2 }
 0x299   : > { %18034 = vmatprep.mubr.msk.f32.mxu1 %vm319_vm0, %v23238_v36  ;;  %v23284_v34 = vsel %vm1274_vm3, %v4178_v56, %v4180_v42  ;;  %v4190_v56 = vrot.slane %v22929_v38, 2  ;;  %27336 = vst [vmem:[#allocation21_spill] sm:$0xff] %v23303_v44  ;;  %v4192_v42 = vrot.slane %v22958_v48, 2 }
 0x29a   : > { %v23290_v46 = vsel %vm1274_vm3, %v4182_v32, %v4183_v6  ;;  %v4193_v32 = vrot.slane %v22960_v28, 2 }
 0x29b   : > { %27335 = vst [vmem:[#allocation5_spill] sm:$0xff] %v23290_v46 }
 0x29c   : > { %18035 = vmatmul.mubr.msk.f32.gmra.mrb[36].mxu1 %vm319_vm0, %v23245_v35  ;;  %v23316_v38 = vsel %vm1274_vm3, %v4192_v42, %v4193_v32  ;;  %v4203_v42 = vrot.slane %v23006_v58, 2 }
 0x29d   : > { %18037 = vmatprep.mubr.msk.f32.mxu1 %vm319_vm0, %v23251_v19  ;;  %27337 = vst [vmem:[#allocation22_spill] sm:$0xff] %v23316_v38 }
 0x2a0   : > { %18038 = vmatmul.mubr.msk.f32.gmra.mrb[38].mxu1 %vm319_vm0, %v23258_v39 }
 0x2a1   : > { %18040 = vmatprep.mubr.msk.f32.mxu1 %vm319_vm0, %v23264_v12 }
 0x2a4   : > { %18041 = vmatmul.mubr.msk.f32.gmra.mrb[40].mxu1 %vm319_vm0, %v23271_v37 }
 0x2a5   : > { %18043 = vmatprep.mubr.msk.f32.mxu1 %vm319_vm0, %v23277_v21  ;;  %v23297_v21 = vsel %vm1274_vm3, %v4183_v6, %v4185_v27  ;;  %v4195_v6 = vrot.slane %v22952_v47, 2  ;;  %v4197_v27 = vrot.slane %v22981_v55, 2 }
 0x2a7   : > { %v23329_v47 = vsel %vm1274_vm3, %v4197_v27, %v4198_v16  ;;  %v4208_v27 = vrot.slane %v23029_v62, 2 }
 0x2a8   : > { %18044 = vmatmul.mubr.msk.f32.gmra.mrb[42].mxu1 %vm319_vm0, %v23284_v34  ;;  %27338 = vst [vmem:[#allocation23_spill] sm:$0xff] %v23329_v47 }
 0x2a9   : > { %18046 = vmatprep.mubr.msk.f32.mxu1 %vm319_vm0, %v23290_v46  ;;  %v23310_v46 = vsel %vm1274_vm3, %v4188_v15, %v4190_v56  ;;  %v4200_v15 = vrot.slane %v22975_v8, 2  ;;  %v4202_v56 = vrot.slane %v23004_v26, 2 }
 0x2ab   : > { %v23342_v8 = vsel %vm1274_vm3, %v4202_v56, %v4203_v42  ;;  %v4213_v56 = vrot.slane %v23052_v14, 2 }
 0x2ac   : > { %18047 = vmatmul.mubr.msk.f32.gmra.mrb[44].mxu1 %vm319_vm0, %v23297_v21  ;;  %27339 = vst [vmem:[#allocation25_spill] sm:$0xff] %v23342_v8 }
 0x2ad   : > { %18049 = vmatprep.mubr.msk.f32.mxu1 %vm319_vm0, %v23303_v44  ;;  %v23323_v44 = vsel %vm1274_vm3, %v4193_v32, %v4195_v6  ;;  %v4205_v32 = vrot.slane %v22998_v11, 2  ;;  %v4207_v6 = vrot.slane %v23027_v53, 2 }
 0x2af   : > { %v23355_v11 = vsel %vm1274_vm3, %v4207_v6, %v4208_v27  ;;  %v4218_v6 = vrot.slane %v23075_v1, 2 }
 0x2b0   : > { %18050 = vmatmul.mubr.msk.f32.gmra.mrb[46].mxu1 %vm319_vm0, %v23310_v46  ;;  %27340 = vst [vmem:[#allocation28_spill] sm:$0xff] %v23355_v11 }
 0x2b1   : > { %18052 = vmatprep.mubr.msk.f32.mxu1 %vm319_vm0, %v23316_v38  ;;  %v23336_v38 = vsel %vm1274_vm3, %v4198_v16, %v4200_v15  ;;  %v4210_v16 = vrot.slane %v23021_v2, 2  ;;  %v4212_v15 = vrot.slane %v23050_v22, 2 }
 0x2b3   : > { %v23368_v2 = vsel %vm1274_vm3, %v4212_v15, %v4213_v56  ;;  %v4223_v15 = vrot.slane %v23097_v49, 2 }
 0x2b4   : > { %18053 = vmatmul.mubr.msk.f32.gmra.mrb[48].mxu1 %vm319_vm0, %v23323_v44  ;;  %27342 = vst [vmem:[#allocation31_spill] sm:$0xff] %v23368_v2 }
 0x2b5   : > { %18055 = vmatprep.mubr.msk.f32.mxu1 %vm319_vm0, %v23329_v47  ;;  %v23349_v47 = vsel %vm1274_vm3, %v4203_v42, %v4205_v32  ;;  %v4215_v42 = vrot.slane %v23044_v10, 2  ;;  %v4217_v32 = vrot.slane %v23073_v40, 2 }
 0x2b7   : > { %v23381_v10 = vsel %vm1274_vm3, %v4217_v32, %v4218_v6  ;;  %v4228_v32 = vrot.slane %v23117_v54, 2 }
 0x2b8   : > { %18056 = vmatmul.mubr.msk.f32.gmra.mrb[50].mxu1 %vm319_vm0, %v23336_v38  ;;  %27344 = vst [vmem:[#allocation35_spill] sm:$0xff] %v23381_v10 }
 0x2b9   : > { %18058 = vmatprep.mubr.msk.f32.mxu1 %vm319_vm0, %v23342_v8  ;;  %v23362_v8 = vsel %vm1274_vm3, %v4208_v27, %v4210_v16  ;;  %v4220_v27 = vrot.slane %v23067_v50, 2  ;;  %v4222_v16 = vrot.slane %v23095_v41, 2 }
 0x2ba   : > { %27341 = vst [vmem:[#allocation30_spill] sm:$0xff] %v23362_v8 }
 0x2bb   : > { %v23394_v50 = vsel %vm1274_vm3, %v4222_v16, %v4223_v15  ;;  %v14733_v16 = vld [vmem:[%s26895_s1 + $0xe0] sm:$0xff] }
 0x2bc   : > { %18059 = vmatmul.mubr.msk.f32.gmra.mrb[52].mxu1 %vm319_vm0, %v23349_v47  ;;  %27346 = vst [vmem:[#allocation40_spill] sm:$0xff] %v23394_v50 }
 0x2bd   : > { %18061 = vmatprep.mubr.msk.f32.mxu1 %vm319_vm0, %v23355_v11  ;;  %v23375_v11 = vsel %vm1274_vm3, %v4213_v56, %v4215_v42  ;;  %v4225_v56 = vrot.slane %v23090_v30, 2  ;;  %v4227_v42 = vrot.slane %v23115_v57, 2 }
 0x2be   : > { %27343 = vst [vmem:[#allocation33_spill] sm:$0xff] %v23375_v11 }
 0x2bf   : > { %v23407_v30 = vsel %vm1274_vm3, %v4227_v42, %v4228_v32  ;;  %v27357_v42 = vld [vmem:[#allocation38_spill] sm:$0xff] }
 0x2c0   : > { %18062 = vmatmul.mubr.msk.f32.gmra.mrb[54].mxu1 %vm319_vm0, %v23362_v8  ;;  %27348 = vst [vmem:[#allocation42_spill] sm:$0xff] %v23407_v30 }
 0x2c1   : > { %18064 = vmatprep.mubr.msk.f32.mxu1 %vm319_vm0, %v23368_v2  ;;  %v23388_v2 = vsel %vm1274_vm3, %v4218_v6, %v4220_v27  ;;  %v4230_v6 = vrot.slane %v23111_v61, 2  ;;  %v14734_v61 = vld [vmem:[%s26895_s1 + $0xe8] sm:$0xff] }
 0x2c2   : > { %27345 = vst [vmem:[#allocation39_spill] sm:$0xff] %v23388_v2 }
 0x2c3   : > { %v23412_v27 = vsel %vm1274_vm3, %v4228_v32, %v4230_v6  ;;  %v27358_v32 = vld [vmem:[#allocation6_spill] sm:$0xff]  ;;  %v27359_v6 = vld [vmem:[#allocation7_spill] sm:$0xff] }
 0x2c4   : > { %18065 = vmatmul.mubr.msk.f32.gmra.mrb[56].mxu1 %vm319_vm0, %v23375_v11  ;;  %27349 = vst [vmem:[#allocation43_spill] sm:$0xff] %v23412_v27 }
 0x2c5   : > { %18067 = vmatprep.mubr.msk.f32.mxu1 %vm319_vm0, %v23381_v10  ;;  %v23401_v10 = vsel %vm1274_vm3, %v4223_v15, %v4225_v56  ;;  %v19848_v15 = vpack.c.bf16 %v14734_v61, %v14733_v16  ;;  %v27356_v56 = vld [vmem:[#allocation36_spill] sm:$0xff]  ;;  %v27361_v61 = vld [vmem:[#allocation9_spill] sm:$0xff] }
 0x2c6   : > { %27347 = vst [vmem:[#allocation41_spill] sm:$0xff] %v23401_v10  ;;  %v27360_v16 = vld [vmem:[#allocation8_spill] sm:$0xff] }
 0x2c8   : > { %18068 = vmatmul.mubr.msk.f32.gmra.mrb[58].mxu1 %vm319_vm0, %v23388_v2 }
 0x2c9   : > { %18070 = vmatprep.mubr.msk.f32.mxu1 %vm319_vm0, %v23394_v50 }
 0x2cc   : > { %18071 = vmatmul.mubr.msk.f32.gmra.mrb[60].mxu1 %vm319_vm0, %v23401_v10 }
 0x2cd   : > { %18073 = vmatprep.mubr.msk.f32.mxu1 %vm319_vm0, %v23407_v30 }
 0x2d0   : > { %18074 = vmatmul.mubr.msk.f32.gmra.mrb[62].mxu1 %vm319_vm0, %v23412_v27 }
 0x2d1   : > { %18080 = vmatprep.mubr.msk.f32.mxu1 %vm319_vm0, %v22793_v52  ;;  %v23483_v52 = vld [vmem:[#allocation3 + $0x180] sm:$0xff] }
 0x2d4   : > { %18081 = vmatmul.mubr.msk.f32.vlgmr.msra.gmra.mrb[32].mxu1 %vm319_vm0, %v22795_v7  ;;  %v23487_v7 = vld [vmem:[#allocation3 + $0x188] sm:$0xff] }
 0x2d5   : > { %19847 = vmatpush3.bf16.msra.mxu1 %v23219_v17  ;;  %18083 = vmatprep.mubr.msk.f32.mxu1 %vm319_vm0, %v22814_v3  ;;  %v14735_v3 = vld [vmem:[%s26895_s1 + $0xf0] sm:$0xff] }
 0x2d6   : > { %19849 = vmatprep.subr.bf16.mxu1 %v19848_v15  ;;  %v27355_v17 = vld [vmem:[#allocation34_spill] sm:$0xff] }
 0x2d8   : > { %18084 = vmatmul.mubr.msk.f32.gmra.mrb[34].mxu1 %vm319_vm0, %v22816_v0  ;;  %v14736_v0 = vld [vmem:[%s26895_s1 + $0xf8] sm:$0xff] }
 0x2d9   : > { %18086 = vmatprep.mubr.msk.f32.mxu1 %vm319_vm0, %v22839_v43  ;;  %v19852_v43 = vpack.c.bf16 %v14736_v0, %v14735_v3  ;;  %v27363_v3 = vld [vmem:[#allocation11_spill] sm:$0xff]  ;;  %v27364_v0 = vld [vmem:[#allocation12_spill] sm:$0xff] }
 0x2dc   : > { %18087 = vmatmul.mubr.msk.f32.gmra.mrb[36].mxu1 %vm319_vm0, %v22841_v24  ;;  %v27350_v24 = vld [vmem:[#allocation24_spill] sm:$0xff] }
 0x2dd   : > { %18089 = vmatprep.mubr.msk.f32.mxu1 %vm319_vm0, %v22864_v9  ;;  %v27351_v9 = vld [vmem:[#allocation26_spill] sm:$0xff] }
 0x2e0   : > { %18090 = vmatmul.mubr.msk.f32.gmra.mrb[38].mxu1 %vm319_vm0, %v22866_v29  ;;  %v27354_v29 = vld [vmem:[#allocation32_spill] sm:$0xff] }
 0x2e1   : > { %18092 = vmatprep.mubr.msk.f32.mxu1 %vm319_vm0, %v22889_v18 }
 0x2e4   : > { %18093 = vmatmul.mubr.msk.f32.gmra.mrb[40].mxu1 %vm319_vm0, %v22891_v23 }
 0x2e5   : > { %18095 = vmatprep.mubr.msk.f32.mxu1 %vm319_vm0, %v22912_v5 }
 0x2e8   : > { %18096 = vmatmul.mubr.msk.f32.gmra.mrb[42].mxu1 %vm319_vm0, %v22914_v45 }
 0x2e9   : > { %18098 = vmatprep.mubr.msk.f32.mxu1 %vm319_vm0, %v22935_v20 }
 0x2ec   : > { %18099 = vmatmul.mubr.msk.f32.gmra.mrb[44].mxu1 %vm319_vm0, %v22937_v13 }
 0x2ed   : > { %18101 = vmatprep.mubr.msk.f32.mxu1 %vm319_vm0, %v22958_v48 }
 0x2f0   : > { %18102 = vmatmul.mubr.msk.f32.gmra.mrb[46].mxu1 %vm319_vm0, %v22960_v28 }
 0x2f1   : > { %18104 = vmatprep.mubr.msk.f32.mxu1 %vm319_vm0, %v22981_v55 }
 0x2f4   : > { %18105 = vmatmul.mubr.msk.f32.gmra.mrb[48].mxu1 %vm319_vm0, %v22983_v59 }
 0x2f5   : > { %18107 = vmatprep.mubr.msk.f32.mxu1 %vm319_vm0, %v23004_v26 }
 0x2f8   : > { %18108 = vmatmul.mubr.msk.f32.gmra.mrb[50].mxu1 %vm319_vm0, %v23006_v58 }
 0x2f9   : > { %18110 = vmatprep.mubr.msk.f32.mxu1 %vm319_vm0, %v23027_v53 }
 0x2fc   : > { %18111 = vmatmul.mubr.msk.f32.gmra.mrb[52].mxu1 %vm319_vm0, %v23029_v62 }
 0x2fd   : > { %18113 = vmatprep.mubr.msk.f32.mxu1 %vm319_vm0, %v23050_v22 }
 0x300   : > { %18114 = vmatmul.mubr.msk.f32.gmra.mrb[54].mxu1 %vm319_vm0, %v23052_v14 }
 0x301   : > { %18116 = vmatprep.mubr.msk.f32.mxu1 %vm319_vm0, %v23073_v40 }
 0x304   : > { %18117 = vmatmul.mubr.msk.f32.gmra.mrb[56].mxu1 %vm319_vm0, %v23075_v1 }
 0x305   : > { %18119 = vmatprep.mubr.msk.f32.mxu1 %vm319_vm0, %v23095_v41 }
 0x308   : > { %18120 = vmatmul.mubr.msk.f32.gmra.mrb[58].mxu1 %vm319_vm0, %v23097_v49 }
 0x309   : > { %18122 = vmatprep.mubr.msk.f32.mxu1 %vm319_vm0, %v23115_v57 }
 0x30c   : > { %18123 = vmatmul.mubr.msk.f32.gmra.mrb[60].mxu1 %vm319_vm0, %v23117_v54 }
 0x30d   : > { %18125 = vmatprep.mubr.msk.f32.mxu1 %vm319_vm0, %v23483_v52 }
 0x310   : > { %18126 = vmatmul.mubr.msk.f32.gmra.mrb[62].mxu1 %vm319_vm0, %v23487_v7 }
 0x311   : > { %18132 = vmatprep.mubr.msk.f32.mxu1 %vm319_vm0, %v22803_v51  ;;  %v27352_v51 = vld [vmem:[#allocation27_spill] sm:$0xff] }
 0x314   : > { %18133 = vmatmul.mubr.msk.f32.vlgmr.msra.gmra.mrb[32].mxu1 %vm319_vm0, %v22806_v60  ;;  %v27353_v60 = vld [vmem:[#allocation29_spill] sm:$0xff] }
 0x315   : > { %19851 = vmatpush3.bf16.msra.mxu1 %v19848_v15  ;;  %18135 = vmatprep.mubr.msk.f32.mxu1 %vm319_vm0, %v22828_v4  ;;  %v27362_v15 = vld [vmem:[#allocation10_spill] sm:$0xff] }
 0x316   : > { %19853 = vmatprep.subr.bf16.mxu1 %v19852_v43 }
 0x318   : > { %18136 = vmatmul.mubr.msk.f32.gmra.mrb[34].mxu1 %vm319_vm0, %v22831_v33 }
 0x319   : > { %18138 = vmatprep.mubr.msk.f32.mxu1 %vm319_vm0, %v22853_v63 }
 0x31c   : > { %18139 = vmatmul.mubr.msk.f32.gmra.mrb[36].mxu1 %vm319_vm0, %v27350_v24 }
 0x31d   : > { %18141 = vmatprep.mubr.msk.f32.mxu1 %vm319_vm0, %v27351_v9 }
 0x320   : > { %18142 = vmatmul.mubr.msk.f32.gmra.mrb[38].mxu1 %vm319_vm0, %v27352_v51 }
 0x321   : > { %18144 = vmatprep.mubr.msk.f32.mxu1 %vm319_vm0, %v27353_v60 }
 0x324   : > { %18145 = vmatmul.mubr.msk.f32.gmra.mrb[40].mxu1 %vm319_vm0, %v27354_v29 }
 0x325   : > { %18147 = vmatprep.mubr.msk.f32.mxu1 %vm319_vm0, %v27355_v17  ;;  %v27374_v17 = vld [vmem:[#allocation4_spill] sm:$0xff] }
 0x328   : > { %18148 = vmatmul.mubr.msk.f32.gmra.mrb[42].mxu1 %vm319_vm0, %v27356_v56  ;;  %v27373_v56 = vld [vmem:[#allocation19_spill] sm:$0xff] }
 0x329   : > { %18150 = vmatprep.mubr.msk.f32.mxu1 %vm319_vm0, %v27357_v42  ;;  %v27365_v42 = vld [vmem:[#allocation44_spill] sm:$0xff] }
 0x32c   : > { %18151 = vmatmul.mubr.msk.f32.gmra.mrb[44].mxu1 %vm319_vm0, %v27358_v32  ;;  %v27366_v32 = vld [vmem:[#allocation13_spill] sm:$0xff] }
 0x32d   : > { %18153 = vmatprep.mubr.msk.f32.mxu1 %vm319_vm0, %v27359_v6  ;;  %v27367_v6 = vld [vmem:[#allocation45_spill] sm:$0xff] }
 0x330   : > { %18154 = vmatmul.mubr.msk.f32.gmra.mrb[46].mxu1 %vm319_vm0, %v27360_v16  ;;  %v27368_v16 = vld [vmem:[#allocation14_spill] sm:$0xff] }
 0x331   : > { %18156 = vmatprep.mubr.msk.f32.mxu1 %vm319_vm0, %v27361_v61  ;;  %v27369_v61 = vld [vmem:[#allocation15_spill] sm:$0xff] }
 0x334   : > { %18157 = vmatmul.mubr.msk.f32.gmra.mrb[48].mxu1 %vm319_vm0, %v27362_v15  ;;  %v27370_v15 = vld [vmem:[#allocation16_spill] sm:$0xff] }
 0x335   : > { %18159 = vmatprep.mubr.msk.f32.mxu1 %vm319_vm0, %v27363_v3  ;;  %v27371_v3 = vld [vmem:[#allocation17_spill] sm:$0xff] }
 0x338   : > { %18160 = vmatmul.mubr.msk.f32.gmra.mrb[50].mxu1 %vm319_vm0, %v27364_v0  ;;  %v27372_v0 = vld [vmem:[#allocation18_spill] sm:$0xff] }
 0x339   : > { %18162 = vmatprep.mubr.msk.f32.mxu1 %vm319_vm0, %v27365_v42  ;;  %v4818_v42 = vrot.slane %v23487_v7, 1 }
 0x33c   : > { %18163 = vmatmul.mubr.msk.f32.gmra.mrb[52].mxu1 %vm319_vm0, %v27366_v32  ;;  %v4817_v32 = vrot.slane %v23483_v52, 1 }
 0x33d   : > { %18165 = vmatprep.mubr.msk.f32.mxu1 %vm319_vm0, %v27367_v6  ;;  %v3421_v6 = vld [vmem:[#allocation3 + $0x190] sm:$0x3] }
 0x340   : > { %18166 = vmatmul.mubr.msk.f32.gmra.mrb[54].mxu1 %vm319_vm0, %v27368_v16  ;;  %v4820_v16 = vrot.slane %v3421_v6, 1 }
 0x341   : > { %18168 = vmatprep.mubr.msk.f32.mxu1 %vm319_vm0, %v27369_v61 }
 0x344   : > { %18169 = vmatmul.mubr.msk.f32.gmra.mrb[56].mxu1 %vm319_vm0, %v27370_v15  ;;  %v23560_v15 = vsel %vm615_vm2, %v4817_v32, %v4818_v42 }
 0x345   : > { %18171 = vmatprep.mubr.msk.f32.mxu1 %vm319_vm0, %v27371_v3  ;;  %v14737_v3 = vld [vmem:[%s26895_s1 + $0x100] sm:$0xff] }
 0x348   : > { %18172 = vmatmul.mubr.msk.f32.gmra.mrb[58].mxu1 %vm319_vm0, %v27372_v0  ;;  %v23565_v0 = vsel %vm615_vm2, %v4818_v42, %v4820_v16  ;;  %v27379_v42 = vld [vmem:[#allocation23_spill] sm:$0xff]  ;;  %v27380_v16 = vld [vmem:[#allocation25_spill] sm:$0xff] }
 0x349   : > { %18174 = vmatprep.mubr.msk.f32.mxu1 %vm319_vm0, %v27373_v56  ;;  %v14738_v56 = vld [vmem:[%s26895_s1 + $0x108] sm:$0xff] }
 0x34a   : > { %v19856_v32 = vpack.c.bf16 %v14738_v56, %v14737_v3  ;;  %v27378_v56 = vld [vmem:[#allocation22_spill] sm:$0xff]  ;;  %v27381_v3 = vld [vmem:[#allocation28_spill] sm:$0xff] }
 0x34c   : > { %18175 = vmatmul.mubr.msk.f32.gmra.mrb[60].mxu1 %vm319_vm0, %v27374_v17 }
 0x34d   : > { %18177 = vmatprep.mubr.msk.f32.mxu1 %vm319_vm0, %v23560_v15 }
 0x350   : > { %18178 = vmatmul.mubr.msk.f32.gmra.mrb[62].mxu1 %vm319_vm0, %v23565_v0 }
 0x351   : > { %18184 = vmatprep.mubr.msk.f32.mxu1 %vm319_vm0, %v23224_v25  ;;  %v27375_v25 = vld [vmem:[#allocation20_spill] sm:$0xff] }
 0x354   : > { %18185 = vmatmul.mubr.msk.f32.vlgmr.msra.gmra.mrb[32].mxu1 %vm319_vm0, %v23232_v31  ;;  %v27376_v31 = vld [vmem:[#allocation5_spill] sm:$0xff] }
 0x355   : > { %19855 = vmatpush3.bf16.msra.mxu1 %v19852_v43  ;;  %18187 = vmatprep.mubr.msk.f32.mxu1 %vm319_vm0, %v23238_v36  ;;  %v27377_v43 = vld [vmem:[#allocation21_spill] sm:$0xff] }
 0x356   : > { %19857 = vmatprep.subr.bf16.mxu1 %v19856_v32 }
 0x358   : > { %18188 = vmatmul.mubr.msk.f32.gmra.mrb[34].mxu1 %vm319_vm0, %v23245_v35 }
 0x359   : > { %18190 = vmatprep.mubr.msk.f32.mxu1 %vm319_vm0, %v23251_v19 }
 0x35c   : > { %18191 = vmatmul.mubr.msk.f32.gmra.mrb[36].mxu1 %vm319_vm0, %v23258_v39 }
 0x35d   : > { %18193 = vmatprep.mubr.msk.f32.mxu1 %vm319_vm0, %v23264_v12 }
 0x360   : > { %18194 = vmatmul.mubr.msk.f32.gmra.mrb[38].mxu1 %vm319_vm0, %v23271_v37 }
 0x361   : > { %18196 = vmatprep.mubr.msk.f32.mxu1 %vm319_vm0, %v27375_v25 }
 0x364   : > { %18197 = vmatmul.mubr.msk.f32.gmra.mrb[40].mxu1 %vm319_vm0, %v23284_v34 }
 0x365   : > { %18199 = vmatprep.mubr.msk.f32.mxu1 %vm319_vm0, %v27376_v31 }
 0x368   : > { %18200 = vmatmul.mubr.msk.f32.gmra.mrb[42].mxu1 %vm319_vm0, %v23297_v21 }
 0x369   : > { %18202 = vmatprep.mubr.msk.f32.mxu1 %vm319_vm0, %v27377_v43 }
 0x36c   : > { %18203 = vmatmul.mubr.msk.f32.gmra.mrb[44].mxu1 %vm319_vm0, %v23310_v46 }
 0x36d   : > { %18205 = vmatprep.mubr.msk.f32.mxu1 %vm319_vm0, %v27378_v56  ;;  %v27382_v56 = vld [vmem:[#allocation31_spill] sm:$0xff] }
 0x370   : > { %18206 = vmatmul.mubr.msk.f32.gmra.mrb[46].mxu1 %vm319_vm0, %v23323_v44 }
 0x371   : > { %18208 = vmatprep.mubr.msk.f32.mxu1 %vm319_vm0, %v27379_v42  ;;  %v27383_v42 = vld [vmem:[#allocation35_spill] sm:$0xff] }
 0x374   : > { %18209 = vmatmul.mubr.msk.f32.gmra.mrb[48].mxu1 %vm319_vm0, %v23336_v38 }
 0x375   : > { %18211 = vmatprep.mubr.msk.f32.mxu1 %vm319_vm0, %v27380_v16 }
 0x378   : > { %18212 = vmatmul.mubr.msk.f32.gmra.mrb[50].mxu1 %vm319_vm0, %v23349_v47 }
 0x379   : > { %18214 = vmatprep.mubr.msk.f32.mxu1 %vm319_vm0, %v27381_v3  ;;  %v5084_v3 = vrot.slane %v23487_v7, 2 }
 0x37c   : > { %18215 = vmatmul.mubr.msk.f32.gmra.mrb[52].mxu1 %vm319_vm0, %v23362_v8  ;;  %v5083_v8 = vrot.slane %v23483_v52, 2 }
 0x37d   : > { %18217 = vmatprep.mubr.msk.f32.mxu1 %vm319_vm0, %v27382_v56 }
 0x380   : > { %18218 = vmatmul.mubr.msk.f32.gmra.mrb[54].mxu1 %vm319_vm0, %v23375_v11  ;;  %v5086_v11 = vrot.slane %v3421_v6, 2  ;;  %v14740_v6 = vld [vmem:[%s26895_s1 + $0x118] sm:$0xff] }
 0x381   : > { %18220 = vmatprep.mubr.msk.f32.mxu1 %vm319_vm0, %v27383_v42  ;;  %v23638_v42 = vsel %vm1274_vm3, %v5083_v8, %v5084_v3 }
 0x382   : > { %27384 = vst [vmem:[#allocation46_spill] sm:$0xff] %v23638_v42 }
 0x384   : > { %18221 = vmatmul.mubr.msk.f32.gmra.mrb[56].mxu1 %vm319_vm0, %v23388_v2  ;;  %v21268_v2 = vld [vmem:[#allocation3 + $0x68] sm:$0xff] }
 0x385   : > { %18223 = vmatprep.mubr.msk.f32.mxu1 %vm319_vm0, %v23394_v50  ;;  %v23643_v50 = vsel %vm1274_vm3, %v5084_v3, %v5086_v11  ;;  %v21265_v11 = vld [vmem:[#allocation3 + $0x48] sm:$0xff]  ;;  %v21266_v3 = vld [vmem:[#allocation3 + $0x50] sm:$0xff] }
 0x388   : > { %18224 = vmatmul.mubr.msk.f32.gmra.mrb[58].mxu1 %vm319_vm0, %v23401_v10  ;;  %v14739_v10 = vld [vmem:[%s26895_s1 + $0x110] sm:$0xff] }
 0x389   : > { %18226 = vmatprep.mubr.msk.f32.mxu1 %vm319_vm0, %v23407_v30  ;;  %v19860_v8 = vpack.c.bf16 %v14740_v6, %v14739_v10  ;;  %v21264_v30 = vld [vmem:[#allocation3 + $0x38] sm:$0xff]  ;;  %v23884_v6 = vld [vmem:[%s26896_s2 + $0x1] ss:$0 sm:$0xff] }
 0x38c   : > { %18227 = vmatmul.mubr.msk.f32.gmra.mrb[60].mxu1 %vm319_vm0, %v23412_v27  ;;  %v21263_v27 = vld [vmem:[#allocation3 + $0x30] sm:$0xff] }
 0x38d   : > { %18229 = vmatprep.mubr.msk.f32.mxu1 %vm319_vm0, %v23638_v42  ;;  %v21267_v42 = vld [vmem:[#allocation3 + $0x60] sm:$0xff] }
 0x390   : > { %18230 = vmatmul.mubr.msk.f32.gmra.mrb[62].mxu1 %vm319_vm0, %v23643_v50 }
 0x391   : > { %18236 = vmatprep.mubr.msk.f32.mxu1 %vm319_vm0, %v21263_v27 }
 0x394   : > { %18237 = vmatmul.mubr.msk.f32.vlgmr.msra.gmra.mrb[32].mxu1 %vm319_vm0, %v21264_v30 }
 0x395   : > { %19859 = vmatpush3.bf16.msra.mxu1 %v19856_v32  ;;  %18239 = vmatprep.mubr.msk.f32.mxu1 %vm319_vm0, %v21265_v11 }
 0x396   : > { %19861 = vmatprep.subr.bf16.mxu1 %v19860_v8 }
 0x398   : > { %18240 = vmatmul.mubr.msk.f32.gmra.mrb[34].mxu1 %vm319_vm0, %v21266_v3 }
 0x399   : > { %18242 = vmatprep.mubr.msk.f32.mxu1 %vm319_vm0, %v21267_v42  ;;  %v15036_v42 = vld [vmem:[%s26895_s1 + $0x148] sm:$0xff] }
 0x39c   : > { %18243 = vmatmul.mubr.msk.f32.gmra.mrb[36].mxu1 %vm319_vm0, %v21268_v2  ;;  %v3424_v2 = vld [vmem:[#allocation3 + $0x1a8] sm:$0x3] }
 0x39d   : > { %18245 = vmatprep.mubr.msk.f32.mxu1 %vm319_vm0, %v22889_v18  ;;  %v23705_v18 = vld [vmem:[#allocation3 + $0x198] sm:$0xff]  ;;  %v5616_v10 = vrot.slane %v3424_v2, 1 }
 0x3a0   : > { %18246 = vmatmul.mubr.msk.f32.gmra.mrb[38].mxu1 %vm319_vm0, %v22891_v23  ;;  %v23711_v23 = vld [vmem:[#allocation3 + $0x1a0] sm:$0xff] }
 0x3a1   : > { %18248 = vmatprep.mubr.msk.f32.mxu1 %vm319_vm0, %v22912_v5  ;;  %v15033_v5 = vld [vmem:[%s26895_s1 + $0x130] sm:$0xff] }
 0x3a4   : > { %18249 = vmatmul.mubr.msk.f32.gmra.mrb[40].mxu1 %vm319_vm0, %v22914_v45  ;;  %v15034_v45 = vld [vmem:[%s26895_s1 + $0x138] sm:$0xff] }
 0x3a5   : > { %18251 = vmatprep.mubr.msk.f32.mxu1 %vm319_vm0, %v22935_v20  ;;  %v19864_v20 = vpack.c.bf16 %v15034_v45, %v15033_v5 }
 0x3a7   : > { %19865 = vmatprep.subr.bf16.mxu0 %v19864_v20 }
 0x3a8   : > { %18252 = vmatmul.mubr.msk.f32.gmra.mrb[42].mxu1 %vm319_vm0, %v22937_v13  ;;  %19867 = vmatpush3.bf16.msra.mxu0 %v19864_v20  ;;  %v27388_v13 = vld [vmem:[#allocation6_spill] sm:$0xff] }
 0x3a9   : > { %18254 = vmatprep.mubr.msk.f32.mxu1 %vm319_vm0, %v22958_v48  ;;  %v27389_v48 = vld [vmem:[#allocation7_spill] sm:$0xff] }
 0x3ac   : > { %18255 = vmatmul.mubr.msk.f32.gmra.mrb[44].mxu1 %vm319_vm0, %v22960_v28  ;;  %v27390_v28 = vld [vmem:[#allocation8_spill] sm:$0xff] }
 0x3ad   : > { %18257 = vmatprep.mubr.msk.f32.mxu1 %vm319_vm0, %v22981_v55  ;;  %v27391_v55 = vld [vmem:[#allocation9_spill] sm:$0xff] }
 0x3b0   : > { %18258 = vmatmul.mubr.msk.f32.gmra.mrb[46].mxu1 %vm319_vm0, %v22983_v59  ;;  %v27392_v59 = vld [vmem:[#allocation10_spill] sm:$0xff] }
 0x3b1   : > { %18260 = vmatprep.mubr.msk.f32.mxu1 %vm319_vm0, %v23004_v26  ;;  %v27393_v26 = vld [vmem:[#allocation11_spill] sm:$0xff] }
 0x3b4   : > { %18261 = vmatmul.mubr.msk.f32.gmra.mrb[48].mxu1 %vm319_vm0, %v23006_v58  ;;  %v27394_v58 = vld [vmem:[#allocation12_spill] sm:$0xff] }
 0x3b5   : > { %18263 = vmatprep.mubr.msk.f32.mxu1 %vm319_vm0, %v23027_v53  ;;  %v27395_v53 = vld [vmem:[#allocation44_spill] sm:$0xff] }
 0x3b8   : > { %18264 = vmatmul.mubr.msk.f32.gmra.mrb[50].mxu1 %vm319_vm0, %v23029_v62  ;;  %v27396_v62 = vld [vmem:[#allocation13_spill] sm:$0xff] }
 0x3b9   : > { %18266 = vmatprep.mubr.msk.f32.mxu1 %vm319_vm0, %v23050_v22  ;;  %v27397_v22 = vld [vmem:[#allocation45_spill] sm:$0xff] }
 0x3bc   : > { %18267 = vmatmul.mubr.msk.f32.gmra.mrb[52].mxu1 %vm319_vm0, %v23052_v14  ;;  %v27398_v14 = vld [vmem:[#allocation14_spill] sm:$0xff] }
 0x3bd   : > { %18269 = vmatprep.mubr.msk.f32.mxu1 %vm319_vm0, %v23073_v40  ;;  %v27399_v40 = vld [vmem:[#allocation16_spill] sm:$0xff] }
 0x3c0   : > { %18270 = vmatmul.mubr.msk.f32.gmra.mrb[54].mxu1 %vm319_vm0, %v23075_v1  ;;  %v27400_v1 = vld [vmem:[#allocation17_spill] sm:$0xff] }
 0x3c1   : > { %18272 = vmatprep.mubr.msk.f32.mxu1 %vm319_vm0, %v23095_v41  ;;  %v27401_v41 = vld [vmem:[#allocation18_spill] sm:$0xff] }
 0x3c4   : > { %18273 = vmatmul.mubr.msk.f32.gmra.mrb[56].mxu1 %vm319_vm0, %v23097_v49  ;;  %v27402_v49 = vld [vmem:[#allocation19_spill] sm:$0xff] }
 0x3c5   : > { %18275 = vmatprep.mubr.msk.f32.mxu1 %vm319_vm0, %v23115_v57  ;;  %v5613_v57 = vrot.slane %v23705_v18, 1 }
 0x3c8   : > { %18276 = vmatmul.mubr.msk.f32.gmra.mrb[58].mxu1 %vm319_vm0, %v23117_v54  ;;  %v5614_v54 = vrot.slane %v23711_v23, 1 }
 0x3c9   : > { %18278 = vmatprep.mubr.msk.f32.mxu1 %vm319_vm0, %v23483_v52  ;;  %v27413_v52 = vld [vmem:[#allocation43_spill] sm:$0xff] }
 0x3ca   : > { %v5615_v30 = vsel %vm615_vm2, %v5613_v57, %v5614_v54  ;;  %v5617_v27 = vsel %vm615_vm2, %v5614_v54, %v5616_v10 }
 0x3cc   : > { %18279 = vmatmul.mubr.msk.f32.gmra.mrb[60].mxu1 %vm319_vm0, %v23487_v7  ;;  %v27414_v7 = vld [vmem:[#allocation46_spill] sm:$0xff] }
 0x3cd   : > { %18281 = vmatprep.mubr.msk.f32.mxu1 %vm319_vm0, %v23705_v18 }
 0x3d0   : > { %18282 = vmatmul.mubr.msk.f32.gmra.mrb[62].mxu1 %vm319_vm0, %v23711_v23 }
 0x3d1   : > { %18288 = vmatprep.mubr.msk.f32.mxu1 %vm319_vm0, %v22828_v4  ;;  %v27385_v4 = vld [vmem:[#allocation34_spill] sm:$0xff] }
 0x3d4   : > { %18289 = vmatmul.mubr.msk.f32.vlgmr.msra.gmra.mrb[32].mxu1 %vm319_vm0, %v22831_v33  ;;  %v27386_v33 = vld [vmem:[#allocation36_spill] sm:$0xff] }
 0x3d5   : > { %19863 = vmatpush3.bf16.msra.mxu1 %v19860_v8  ;;  %18291 = vmatprep.mubr.msk.f32.mxu1 %vm319_vm0, %v22853_v63  ;;  %v27387_v63 = vld [vmem:[#allocation38_spill] sm:$0xff] }
 0x3d8   : > { %18292 = vmatmul.mubr.msk.f32.gmra.mrb[34].mxu1 %vm319_vm0, %v27350_v24  ;;  %v5882_v24 = vrot.slane %v3424_v2, 2 }
 0x3d9   : > { %18294 = vmatprep.mubr.msk.f32.mxu1 %vm319_vm0, %v27351_v9 }
 0x3dc   : > { %18295 = vmatmul.mubr.msk.f32.gmra.mrb[36].mxu1 %vm319_vm0, %v27352_v51 }
 0x3dd   : > { %18297 = vmatprep.mubr.msk.f32.mxu1 %vm319_vm0, %v27353_v60  ;;  %v23853_v60 = vld [vmem:[#allocation2] sm:$0xff] }
 0x3e0   : > { %18298 = vmatmul.mubr.msk.f32.gmra.mrb[38].mxu1 %vm319_vm0, %v27354_v29  ;;  %v23855_v29 = vld [vmem:[#allocation2 + $0x8] sm:$0xff] }
 0x3e1   : > { %18300 = vmatprep.mubr.msk.f32.mxu1 %vm319_vm0, %v27385_v4 }
 0x3e4   : > { %18301 = vmatmul.mubr.msk.f32.gmra.mrb[40].mxu1 %vm319_vm0, %v27386_v33 }
 0x3e5   : > { %18303 = vmatprep.mubr.msk.f32.mxu1 %vm319_vm0, %v27387_v63 }
 0x3e8   : > { %18304 = vmatmul.mubr.msk.f32.gmra.mrb[42].mxu1 %vm319_vm0, %v27388_v13 }
 0x3e9   : > { %18306 = vmatprep.mubr.msk.f32.mxu1 %vm319_vm0, %v27389_v48 }
 0x3ec   : > { %18307 = vmatmul.mubr.msk.f32.gmra.mrb[44].mxu1 %vm319_vm0, %v27390_v28 }
 0x3ed   : > { %18309 = vmatprep.mubr.msk.f32.mxu1 %vm319_vm0, %v27391_v55 }
 0x3f0   : > { %18310 = vmatmul.mubr.msk.f32.gmra.mrb[46].mxu1 %vm319_vm0, %v27392_v59 }
 0x3f1   : > { %18312 = vmatprep.mubr.msk.f32.mxu1 %vm319_vm0, %v27393_v26 }
 0x3f4   : > { %18313 = vmatmul.mubr.msk.f32.gmra.mrb[48].mxu1 %vm319_vm0, %v27394_v58 }
 0x3f5   : > { %18315 = vmatprep.mubr.msk.f32.mxu1 %vm319_vm0, %v27395_v53 }
 0x3f8   : > { %18316 = vmatmul.mubr.msk.f32.gmra.mrb[50].mxu1 %vm319_vm0, %v27396_v62 }
 0x3f9   : > { %18318 = vmatprep.mubr.msk.f32.mxu1 %vm319_vm0, %v27397_v22 }
 0x3fc   : > { %18319 = vmatmul.mubr.msk.f32.gmra.mrb[52].mxu1 %vm319_vm0, %v27398_v14 }
 0x3fd   : > { %18321 = vmatprep.mubr.msk.f32.mxu1 %vm319_vm0, %v27369_v61  ;;  %v6371_v61 = vrot.slane %v23855_v29, 1 }
 0x400   : > { %18322 = vmatmul.mubr.msk.f32.gmra.mrb[54].mxu1 %vm319_vm0, %v27399_v40 }
 0x401   : > { %18324 = vmatprep.mubr.msk.f32.mxu1 %vm319_vm0, %v27400_v1 }
 0x404   : > { %18325 = vmatmul.mubr.msk.f32.gmra.mrb[56].mxu1 %vm319_vm0, %v27401_v41 }
 0x405   : > { %18327 = vmatprep.mubr.msk.f32.mxu1 %vm319_vm0, %v27402_v49 }
 0x408   : > { %18328 = vmatmul.mubr.msk.f32.gmra.mrb[58].mxu1 %vm319_vm0, %v27374_v17  ;;  %v6370_v17 = vrot.slane %v23853_v60, 1 }
 0x409   : > { %18330 = vmatprep.mubr.msk.f32.mxu1 %vm319_vm0, %v23560_v15  ;;  %v23859_v15 = vld [vmem:[#allocation2 + $0x10] sm:$0x3] }
 0x40c   : > { %18331 = vmatmul.mubr.msk.f32.gmra.mrb[60].mxu1 %vm319_vm0, %v23565_v0  ;;  %v6373_v0 = vrot.slane %v23859_v15, 1 }
 0x40d   : > { %18333 = vmatprep.mubr.msk.f32.mxu1 %vm319_vm0, %v5615_v30 }
 0x40e   : > { %v6374_v32 = vsel %vm615_vm2, %v6371_v61, %v6373_v0 }
 0x410   : > { %18334 = vmatmul.mubr.msk.f32.gmra.mrb[62].mxu1 %vm319_vm0, %v5617_v27 }
 0x411   : > { %18340 = vmatprep.mubr.msk.f32.mxu1 %vm319_vm0, %v23238_v36  ;;  %v27403_v36 = vld [vmem:[#allocation22_spill] sm:$0xff] }
 0x414   : > { %18341 = vmatmul.mubr.msk.f32.vlgmr.msra.gmra.mrb[32].mxu1 %vm319_vm0, %v23245_v35  ;;  %v27404_v35 = vld [vmem:[#allocation23_spill] sm:$0xff] }
 0x415   : > { %18343 = vmatprep.mubr.msk.f32.mxu1 %vm319_vm0, %v23251_v19  ;;  %v27405_v19 = vld [vmem:[#allocation28_spill] sm:$0xff] }
 0x418   : > { %18344 = vmatmul.mubr.msk.f32.gmra.mrb[34].mxu1 %vm319_vm0, %v23258_v39  ;;  %v27406_v39 = vld [vmem:[#allocation30_spill] sm:$0xff] }
 0x419   : > { %18346 = vmatprep.mubr.msk.f32.mxu1 %vm319_vm0, %v23264_v12  ;;  %v27407_v12 = vld [vmem:[#allocation33_spill] sm:$0xff] }
 0x41c   : > { %18347 = vmatmul.mubr.msk.f32.gmra.mrb[36].mxu1 %vm319_vm0, %v23271_v37  ;;  %v27408_v37 = vld [vmem:[#allocation35_spill] sm:$0xff] }
 0x41d   : > { %18349 = vmatprep.mubr.msk.f32.mxu1 %vm319_vm0, %v27375_v25  ;;  %v15031_v25 = vld [vmem:[%s26895_s1 + $0x120] sm:$0xff] }
 0x420   : > { %18350 = vmatmul.mubr.msk.f32.gmra.mrb[38].mxu1 %vm319_vm0, %v23284_v34  ;;  %v27410_v34 = vld [vmem:[#allocation40_spill] sm:$0xff] }
 0x421   : > { %18352 = vmatprep.mubr.msk.f32.mxu1 %vm319_vm0, %v27376_v31  ;;  %v15032_v31 = vld [vmem:[%s26895_s1 + $0x128] sm:$0xff] }
 0x424   : > { %18353 = vmatmul.mubr.msk.f32.gmra.mrb[40].mxu1 %vm319_vm0, %v23297_v21  ;;  %v27409_v21 = vld [vmem:[#allocation39_spill] sm:$0xff] }
 0x425   : > { %18355 = vmatprep.mubr.msk.f32.mxu1 %vm319_vm0, %v27377_v43  ;;  %v19868_v43 = vpack.c.bf16 %v15032_v31, %v15031_v25 }
 0x427   : > { %19869 = vmatprep.subr.bf16.mxu0 %v19868_v43 }
 0x428   : > { %18356 = vmatmul.mubr.msk.f32.gmra.mrb[42].mxu1 %vm319_vm0, %v23310_v46  ;;  %v27411_v46 = vld [vmem:[#allocation41_spill] sm:$0xff] }
 0x429   : > { %18358 = vmatprep.mubr.msk.f32.mxu1 %vm319_vm0, %v27403_v36 }
 0x42c   : > { %18359 = vmatmul.mubr.msk.f32.gmra.mrb[44].mxu1 %vm319_vm0, %v23323_v44  ;;  %v27412_v44 = vld [vmem:[#allocation42_spill] sm:$0xff] }
 0x42d   : > { %18361 = vmatprep.mubr.msk.f32.mxu1 %vm319_vm0, %v27404_v35 }
 0x430   : > { %18362 = vmatmul.mubr.msk.f32.gmra.mrb[46].mxu1 %vm319_vm0, %v23336_v38  ;;  %v5879_v38 = vrot.slane %v23705_v18, 2 }
 0x431   : > { %18364 = vmatprep.mubr.msk.f32.mxu1 %vm319_vm0, %v27380_v16 }
 0x434   : > { %18365 = vmatmul.mubr.msk.f32.gmra.mrb[48].mxu1 %vm319_vm0, %v23349_v47  ;;  %v5880_v47 = vrot.slane %v23711_v23, 2 }
 0x435   : > { %18367 = vmatprep.mubr.msk.f32.mxu1 %vm319_vm0, %v27405_v19 }
 0x436   : > { %v5881_v9 = vsel %vm1274_vm3, %v5879_v38, %v5880_v47  ;;  %v5883_v51 = vsel %vm1274_vm3, %v5880_v47, %v5882_v24 }
 0x438   : > { %18368 = vmatmul.mubr.msk.f32.gmra.mrb[50].mxu1 %vm319_vm0, %v27406_v39 }
 0x439   : > { %18370 = vmatprep.mubr.msk.f32.mxu1 %vm319_vm0, %v27382_v56  ;;  %v15035_v56 = vld [vmem:[%s26895_s1 + $0x140] sm:$0xff] }
 0x43a   : > { %v23878_v16 = vpack.c.bf16 %v15036_v42, %v15035_v56 }
 0x43c   : > { %18371 = vmatmul.mubr.msk.f32.gmra.mrb[52].mxu1 %vm319_vm0, %v27407_v12 }
 0x43d   : > { %18373 = vmatprep.mubr.msk.f32.mxu1 %vm319_vm0, %v27408_v37 }
 0x440   : > { %18374 = vmatmul.mubr.msk.f32.gmra.mrb[54].mxu1 %vm319_vm0, %v27409_v21 }
 0x441   : > { %18376 = vmatprep.mubr.msk.f32.mxu1 %vm319_vm0, %v27410_v34 }
 0x444   : > { %18377 = vmatmul.mubr.msk.f32.gmra.mrb[56].mxu1 %vm319_vm0, %v27411_v46 }
 0x445   : > { %18379 = vmatprep.mubr.msk.f32.mxu1 %vm319_vm0, %v27412_v44 }
 0x448   : > { %18380 = vmatmul.mubr.msk.f32.gmra.mrb[58].mxu1 %vm319_vm0, %v27413_v52 }
 0x449   : > { %18382 = vmatprep.mubr.msk.f32.mxu1 %vm319_vm0, %v27414_v7 }
 0x44c   : > { %18383 = vmatmul.mubr.msk.f32.gmra.mrb[60].mxu1 %vm319_vm0, %v23643_v50  ;;  %v6372_v50 = vsel %vm615_vm2, %v6370_v17, %v6371_v61 }
 0x44d   : > { %18385 = vmatprep.mubr.msk.f32.mxu1 %vm319_vm0, %v5881_v9  ;;  %18392 = vmatprep.mubr.msk.f32.mxu0 %vm319_vm0, %v6372_v50 }
 0x44e   : > { %18393 = vmatmul.mubr.msk.f32.vlgmr.msra.gmra.mrb[32].mxu0 %vm319_vm0, %v6374_v32 }
 0x44f   : > { %19871 = vmatpush3.bf16.msra.mxu0 %v19868_v43 }
 0x450   : > { %18386 = vmatmul.mubr.msk.f32.gmra.mrb[62].mxu1 %vm319_vm0, %v5883_v51  ;;  %19873 = vmatprep.subr.bf16.mxu0 %v23878_v16 }
 0x4e7   : > { %v18342_v8 = vpop.f32.mrb[32].mxu1 }
 0x4e8   : > { %v6152_v11 = vadd.f32 %v18342_v8, %v23884_v6  ;;  %v5954_v3 = vpop.f32.mrb[33].mxu1 }
 0x4e9   : > { %v6151_v18 = vadd.f32 %v23884_v6, %v5954_v3 }
 0x4ea   : > { %v6184_v23 = vmax.f32 %v6152_v11, 0.0 }
 0x4eb   : > { %v6183_v5 = vmax.f32 %v6151_v18, 0.0  ;;  %v18345_v45 = vpop.f32.mrb[34].mxu1 }
 0x4ec   : > { %6216 = vst.msk [vmem:[#allocation2 + $0x21] sm:$0xff] %vm319_vm0, %v6184_v23  ;;  %v6154_v20 = vadd.f32 %v18345_v45, %v23884_v6  ;;  %v5964_v4 = vpop.f32.mrb[35].mxu1 }
 0x4ed   : > { %6215 = vst.msk [vmem:[#allocation2 + $0x19] sm:$0xff] %vm319_vm0, %v6183_v5  ;;  %v6153_v33 = vadd.f32 %v23884_v6, %v5964_v4 }
 0x4ee   : > { %v6186_v63 = vmax.f32 %v6154_v20, 0.0 }
 0x4ef   : > { %v6185_v13 = vmax.f32 %v6153_v33, 0.0  ;;  %v18348_v48 = vpop.f32.mrb[36].mxu1 }
 0x4f0   : > { %6218 = vst.msk [vmem:[#allocation2 + $0x39] sm:$0xff] %vm319_vm0, %v6186_v63  ;;  %v6156_v28 = vadd.f32 %v18348_v48, %v23884_v6  ;;  %v5974_v55 = vpop.f32.mrb[37].mxu1 }
 0x4f1   : > { %6217 = vst.msk [vmem:[#allocation2 + $0x31] sm:$0xff] %vm319_vm0, %v6185_v13  ;;  %v6155_v59 = vadd.f32 %v23884_v6, %v5974_v55 }
 0x4f2   : > { %v6188_v26 = vmax.f32 %v6156_v28, 0.0 }
 0x4f3   : > { %v6187_v58 = vmax.f32 %v6155_v59, 0.0  ;;  %v18351_v53 = vpop.f32.mrb[38].mxu1  ;;  %v23896_v62 = vld [vmem:[#allocation2 + $0x28] sm:$0x3] }
 0x4f4   : > { %6220 = vst.msk [vmem:[#allocation2 + $0x51] sm:$0xff] %vm319_vm0, %v6188_v26  ;;  %v6158_v22 = vadd.f32 %v18351_v53, %v23884_v6  ;;  %v5984_v14 = vpop.f32.mrb[39].mxu1  ;;  %v23900_v40 = vld [vmem:[#allocation2 + $0x18] sm:$0xff]  ;;  %v23902_v1 = vld [vmem:[#allocation2 + $0x20] sm:$0xff]  ;;  %v6378_v41 = vrot.slane %v23896_v62, 1 }
 0x4f5   : > { %6219 = vst.msk [vmem:[#allocation2 + $0x49] sm:$0xff] %vm319_vm0, %v6187_v58  ;;  %v6157_v49 = vadd.f32 %v23884_v6, %v5984_v14  ;;  %v6375_v57 = vrot.slane %v23900_v40, 1  ;;  %v6376_v54 = vrot.slane %v23902_v1, 1 }
 0x4f6   : > { %v6190_v2 = vmax.f32 %v6158_v22, 0.0 }
 0x4f7   : > { %v6189_v10 = vmax.f32 %v6157_v49, 0.0  ;;  %v18354_v30 = vpop.f32.mrb[40].mxu1  ;;  %v23910_v27 = vsel %vm615_vm2, %v6375_v57, %v6376_v54  ;;  %v23913_v36 = vsel %vm615_vm2, %v6376_v54, %v6378_v41  ;;  %v23915_v35 = vld [vmem:[#allocation2 + $0x40] sm:$0x3] }
 0x4f8   : > { %6222 = vst.msk [vmem:[#allocation2 + $0x69] sm:$0xff] %vm319_vm0, %v6190_v2  ;;  %v6160_v19 = vadd.f32 %v18354_v30, %v23884_v6  ;;  %v5994_v39 = vpop.f32.mrb[41].mxu1  ;;  %18395 = vmatprep.mubr.msk.f32.mxu0 %vm319_vm0, %v23910_v27  ;;  %v23921_v12 = vld [vmem:[#allocation2 + $0x30] sm:$0xff]  ;;  %v23923_v37 = vld [vmem:[#allocation2 + $0x38] sm:$0xff]  ;;  %v6383_v21 = vrot.slane %v23915_v35, 1 }
 0x4f9   : > { %6221 = vst.msk [vmem:[#allocation2 + $0x61] sm:$0xff] %vm319_vm0, %v6189_v10  ;;  %v6159_v34 = vadd.f32 %v23884_v6, %v5994_v39  ;;  %18396 = vmatmul.mubr.msk.f32.gmra.mrb[34].mxu0 %vm319_vm0, %v23913_v36  ;;  %v6380_v46 = vrot.slane %v23921_v12, 1  ;;  %v6381_v44 = vrot.slane %v23923_v37, 1 }
 0x4fa   : > { %v6192_v38 = vmax.f32 %v6160_v19, 0.0 }
 0x4fb   : > { %v6191_v47 = vmax.f32 %v6159_v34, 0.0  ;;  %v18357_v52 = vpop.f32.mrb[42].mxu1  ;;  %v23933_v7 = vsel %vm615_vm2, %v6380_v46, %v6381_v44  ;;  %v23936_v24 = vsel %vm615_vm2, %v6381_v44, %v6383_v21  ;;  %v23938_v9 = vld [vmem:[#allocation2 + $0x58] sm:$0x3] }
 0x4fc   : > { %6224 = vst.msk [vmem:[#allocation2 + $0x81] sm:$0xff] %vm319_vm0, %v6192_v38  ;;  %v6162_v51 = vadd.f32 %v18357_v52, %v23884_v6  ;;  %v6004_v17 = vpop.f32.mrb[43].mxu1  ;;  %18398 = vmatprep.mubr.msk.f32.mxu0 %vm319_vm0, %v23933_v7  ;;  %v23944_v61 = vld [vmem:[#allocation2 + $0x48] sm:$0xff]  ;;  %v23946_v0 = vld [vmem:[#allocation2 + $0x50] sm:$0xff]  ;;  %v6388_v50 = vrot.slane %v23938_v9, 1 }
 0x4fd   : > { %6223 = vst.msk [vmem:[#allocation2 + $0x79] sm:$0xff] %vm319_vm0, %v6191_v47  ;;  %v6161_v32 = vadd.f32 %v23884_v6, %v6004_v17  ;;  %18399 = vmatmul.mubr.msk.f32.gmra.mrb[36].mxu0 %vm319_vm0, %v23936_v24  ;;  %v6385_v25 = vrot.slane %v23944_v61, 1  ;;  %v6386_v31 = vrot.slane %v23946_v0, 1 }
 0x4fe   : > { %v6194_v43 = vmax.f32 %v6162_v51, 0.0 }
 0x4ff   : > { %v6193_v56 = vmax.f32 %v6161_v32, 0.0  ;;  %v18360_v42 = vpop.f32.mrb[44].mxu1  ;;  %v23956_v8 = vsel %vm615_vm2, %v6385_v25, %v6386_v31  ;;  %v23959_v11 = vsel %vm615_vm2, %v6386_v31, %v6388_v50  ;;  %v23961_v3 = vld [vmem:[#allocation2 + $0x70] sm:$0x3] }
 0x500   : > { %27415 = vst [vmem:[#allocation37_spill] sm:$0xff] %v23959_v11  ;;  %6226 = vst.msk [vmem:[#allocation2 + $0x99] sm:$0xff] %vm319_vm0, %v6194_v43  ;;  %v6164_v18 = vadd.f32 %v18360_v42, %v23884_v6  ;;  %v6014_v23 = vpop.f32.mrb[45].mxu1  ;;  %18401 = vmatprep.mubr.msk.f32.mxu0 %vm319_vm0, %v23956_v8  ;;  %v23967_v5 = vld [vmem:[#allocation2 + $0x60] sm:$0xff]  ;;  %v23969_v45 = vld [vmem:[#allocation2 + $0x68] sm:$0xff]  ;;  %v6393_v20 = vrot.slane %v23961_v3, 1 }
 0x501   : > { %6225 = vst.msk [vmem:[#allocation2 + $0x91] sm:$0xff] %vm319_vm0, %v6193_v56  ;;  %v6163_v4 = vadd.f32 %v23884_v6, %v6014_v23  ;;  %18402 = vmatmul.mubr.msk.f32.gmra.mrb[38].mxu0 %vm319_vm0, %v23959_v11  ;;  %v6390_v33 = vrot.slane %v23967_v5, 1  ;;  %v6391_v63 = vrot.slane %v23969_v45, 1  ;;  %v7039_v11 = vrot.slane %v23923_v37, 2 }
 0x502   : > { %v6196_v13 = vmax.f32 %v6164_v18, 0.0 }
 0x503   : > { %v6195_v48 = vmax.f32 %v6163_v4, 0.0  ;;  %v18363_v28 = vpop.f32.mrb[46].mxu1  ;;  %v23979_v55 = vsel %vm615_vm2, %v6390_v33, %v6391_v63  ;;  %v23982_v59 = vsel %vm615_vm2, %v6391_v63, %v6393_v20  ;;  %v23984_v26 = vld [vmem:[#allocation2 + $0x88] sm:$0x3] }
 0x504   : > { %27416 = vst [vmem:[#allocation47_spill] sm:$0xff] %v23979_v55  ;;  %27417 = vst [vmem:[#allocation48_spill] sm:$0xff] %v23982_v59  ;;  %v6166_v58 = vadd.f32 %v18363_v28, %v23884_v6  ;;  %v6024_v53 = vpop.f32.mrb[47].mxu1  ;;  %18404 = vmatprep.mubr.msk.f32.mxu0 %vm319_vm0, %v23979_v55  ;;  %v23990_v22 = vld [vmem:[#allocation2 + $0x78] sm:$0xff]  ;;  %v23992_v14 = vld [vmem:[#allocation2 + $0x80] sm:$0xff]  ;;  %v6398_v41 = vrot.slane %v23984_v26, 1 }
 0x505   : > { %6228 = vst.msk [vmem:[#allocation2 + $0xb1] sm:$0xff] %vm319_vm0, %v6196_v13  ;;  %6227 = vst.msk [vmem:[#allocation2 + $0xa9] sm:$0xff] %vm319_vm0, %v6195_v48  ;;  %v6165_v49 = vadd.f32 %v23884_v6, %v6024_v53  ;;  %18405 = vmatmul.mubr.msk.f32.gmra.mrb[40].mxu0 %vm319_vm0, %v23982_v59  ;;  %v6395_v57 = vrot.slane %v23990_v22, 1  ;;  %v6396_v54 = vrot.slane %v23992_v14, 1  ;;  %v7038_v55 = vrot.slane %v23921_v12, 2 }
 0x506   : > { %v6198_v2 = vmax.f32 %v6166_v58, 0.0 }
 0x507   : > { %v6197_v10 = vmax.f32 %v6165_v49, 0.0  ;;  %v18366_v30 = vpop.f32.mrb[48].mxu1  ;;  %v24002_v19 = vsel %vm615_vm2, %v6395_v57, %v6396_v54  ;;  %v24005_v39 = vsel %vm615_vm2, %v6396_v54, %v6398_v41  ;;  %v24007_v21 = vld [vmem:[#allocation2 + $0xa0] sm:$0x3] }
 0x508   : > { %27418 = vst [vmem:[#allocation49_spill] sm:$0xff] %v24002_v19  ;;  %27419 = vst [vmem:[#allocation50_spill] sm:$0xff] %v24005_v39  ;;  %v6168_v34 = vadd.f32 %v18366_v30, %v23884_v6  ;;  %v6034_v46 = vpop.f32.mrb[49].mxu1  ;;  %18407 = vmatprep.mubr.msk.f32.mxu0 %vm319_vm0, %v24002_v19  ;;  %v24013_v44 = vld [vmem:[#allocation2 + $0x90] sm:$0xff]  ;;  %v24015_v38 = vld [vmem:[#allocation2 + $0x98] sm:$0xff]  ;;  %v6403_v47 = vrot.slane %v24007_v21, 1 }
 0x509   : > { %6230 = vst.msk [vmem:[#allocation2 + $0xc9] sm:$0xff] %vm319_vm0, %v6198_v2  ;;  %6229 = vst.msk [vmem:[#allocation2 + $0xc1] sm:$0xff] %vm319_vm0, %v6197_v10  ;;  %v6167_v52 = vadd.f32 %v23884_v6, %v6034_v46  ;;  %18408 = vmatmul.mubr.msk.f32.gmra.mrb[42].mxu0 %vm319_vm0, %v24005_v39  ;;  %v6400_v51 = vrot.slane %v24013_v44, 1  ;;  %v6401_v17 = vrot.slane %v24015_v38, 1 }
 0x50a   : > { %v6200_v50 = vmax.f32 %v6168_v34, 0.0 }
 0x50b   : > { %v6199_v32 = vmax.f32 %v6167_v52, 0.0  ;;  %v18369_v25 = vpop.f32.mrb[50].mxu1  ;;  %v24025_v31 = vsel %vm615_vm2, %v6400_v51, %v6401_v17  ;;  %v24028_v43 = vsel %vm615_vm2, %v6401_v17, %v6403_v47 }
 0x50c   : > { %27420 = vst [vmem:[#allocation51_spill] sm:$0xff] %v24025_v31  ;;  %27421 = vst [vmem:[#allocation52_spill] sm:$0xff] %v24028_v43  ;;  %v24030_v56 = vld [vmem:[#allocation2 + $0xb8] sm:$0x3]  ;;  %v6170_v42 = vadd.f32 %v18369_v25, %v23884_v6  ;;  %v6044_v18 = vpop.f32.mrb[51].mxu1  ;;  %18410 = vmatprep.mubr.msk.f32.mxu0 %vm319_vm0, %v24025_v31  ;;  %v24036_v23 = vld [vmem:[#allocation2 + $0xa8] sm:$0xff] }
 0x50d   : > { %6232 = vst.msk [vmem:[#allocation2 + $0xe1] sm:$0xff] %vm319_vm0, %v6200_v50  ;;  %v24038_v20 = vld [vmem:[#allocation2 + $0xb0] sm:$0xff]  ;;  %v6408_v4 = vrot.slane %v24030_v56, 1  ;;  %6231 = vst.msk [vmem:[#allocation2 + $0xd9] sm:$0xff] %vm319_vm0, %v6199_v32  ;;  %v6169_v33 = vadd.f32 %v23884_v6, %v6044_v18  ;;  %18411 = vmatmul.mubr.msk.f32.gmra.mrb[44].mxu0 %vm319_vm0, %v24028_v43  ;;  %v6405_v63 = vrot.slane %v24036_v23, 1 }
 0x50e   : > { %v6406_v13 = vrot.slane %v24038_v20, 1  ;;  %v6202_v48 = vmax.f32 %v6170_v42, 0.0 }
 0x50f   : > { %v6201_v28 = vmax.f32 %v6169_v33, 0.0  ;;  %v18372_v58 = vpop.f32.mrb[52].mxu1 }
 0x510   : > { %v24048_v53 = vsel %vm615_vm2, %v6405_v63, %v6406_v13  ;;  %v24051_v41 = vsel %vm615_vm2, %v6406_v13, %v6408_v4  ;;  %v24053_v49 = vld [vmem:[#allocation2 + $0xd0] sm:$0x3]  ;;  %6234 = vst.msk [vmem:[#allocation2 + $0xf9] sm:$0xff] %vm319_vm0, %v6202_v48  ;;  %v6172_v57 = vadd.f32 %v18372_v58, %v23884_v6  ;;  %v6054_v54 = vpop.f32.mrb[53].mxu1  ;;  %v24059_v2 = vld [vmem:[#allocation2 + $0xc0] sm:$0xff]  ;;  %v24061_v10 = vld [vmem:[#allocation2 + $0xc8] sm:$0xff] }
 0x511   : > { %27422 = vst [vmem:[#allocation24_spill] sm:$0xff] %v24048_v53  ;;  %27423 = vst [vmem:[#allocation26_spill] sm:$0xff] %v24051_v41  ;;  %18413 = vmatprep.mubr.msk.f32.mxu0 %vm319_vm0, %v24048_v53  ;;  %v6413_v30 = vrot.slane %v24053_v49, 1  ;;  %v6171_v34 = vadd.f32 %v23884_v6, %v6054_v54  ;;  %v6410_v46 = vrot.slane %v24059_v2, 1  ;;  %v6411_v47 = vrot.slane %v24061_v10, 1 }
 0x512   : > { %6233 = vst.msk [vmem:[#allocation2 + $0xf1] sm:$0xff] %vm319_vm0, %v6201_v28  ;;  %18414 = vmatmul.mubr.msk.f32.gmra.mrb[46].mxu0 %vm319_vm0, %v24051_v41  ;;  %v6204_v52 = vmax.f32 %v6172_v57, 0.0 }
 0x513   : > { %v6203_v51 = vmax.f32 %v6171_v34, 0.0  ;;  %v18375_v17 = vpop.f32.mrb[54].mxu1  ;;  %v24071_v50 = vsel %vm615_vm2, %v6410_v46, %v6411_v47  ;;  %v24074_v32 = vsel %vm615_vm2, %v6411_v47, %v6413_v30 }
 0x514   : > { %27424 = vst [vmem:[#allocation27_spill] sm:$0xff] %v24071_v50  ;;  %27425 = vst [vmem:[#allocation29_spill] sm:$0xff] %v24074_v32  ;;  %v24076_v25 = vld [vmem:[#allocation2 + $0xe8] sm:$0x3]  ;;  %v6174_v42 = vadd.f32 %v18375_v17, %v23884_v6  ;;  %v6064_v18 = vpop.f32.mrb[55].mxu1  ;;  %18416 = vmatprep.mubr.msk.f32.mxu0 %vm319_vm0, %v24071_v50  ;;  %v24082_v4 = vld [vmem:[#allocation2 + $0xd8] sm:$0xff] }
 0x515   : > { %6236 = vst.msk [vmem:[#allocation2 + $0x111] sm:$0xff] %vm319_vm0, %v6204_v52  ;;  %v24084_v33 = vld [vmem:[#allocation2 + $0xe0] sm:$0xff]  ;;  %v6418_v63 = vrot.slane %v24076_v25, 1  ;;  %6235 = vst.msk [vmem:[#allocation2 + $0x109] sm:$0xff] %vm319_vm0, %v6203_v51  ;;  %v6173_v13 = vadd.f32 %v23884_v6, %v6064_v18  ;;  %v6415_v48 = vrot.slane %v24082_v4, 1 }
 0x516   : > { %18417 = vmatmul.mubr.msk.f32.gmra.mrb[48].mxu0 %vm319_vm0, %v24074_v32  ;;  %v6416_v28 = vrot.slane %v24084_v33, 1  ;;  %v6206_v58 = vmax.f32 %v6174_v42, 0.0 }
 0x517   : > { %v6205_v57 = vmax.f32 %v6173_v13, 0.0  ;;  %v18378_v54 = vpop.f32.mrb[56].mxu1  ;;  %v24099_v46 = vld [vmem:[#allocation2 + $0x100] sm:$0x3] }
 0x518   : > { %v24094_v30 = vsel %vm615_vm2, %v6415_v48, %v6416_v28  ;;  %v24097_v34 = vsel %vm615_vm2, %v6416_v28, %v6418_v63  ;;  %6238 = vst.msk [vmem:[#allocation2 + $0x129] sm:$0xff] %vm319_vm0, %v6206_v58  ;;  %v6176_v47 = vadd.f32 %v18378_v54, %v23884_v6  ;;  %v6074_v52 = vpop.f32.mrb[57].mxu1  ;;  %v6423_v42 = vrot.slane %v24099_v46, 1 }
 0x519   : > { %27426 = vst [vmem:[#allocation32_spill] sm:$0xff] %v24094_v30  ;;  %27427 = vst [vmem:[#allocation15_spill] sm:$0xff] %v24097_v34  ;;  %18419 = vmatprep.mubr.msk.f32.mxu0 %vm319_vm0, %v24094_v30  ;;  %v24105_v51 = vld [vmem:[#allocation2 + $0xf0] sm:$0xff]  ;;  %v24107_v17 = vld [vmem:[#allocation2 + $0xf8] sm:$0xff]  ;;  %v6175_v18 = vadd.f32 %v23884_v6, %v6074_v52 }
 0x51a   : > { %6237 = vst.msk [vmem:[#allocation2 + $0x121] sm:$0xff] %vm319_vm0, %v6205_v57  ;;  %18420 = vmatmul.mubr.msk.f32.gmra.mrb[50].mxu0 %vm319_vm0, %v24097_v34  ;;  %v6420_v63 = vrot.slane %v24105_v51, 1  ;;  %v6421_v13 = vrot.slane %v24107_v17, 1  ;;  %v6208_v48 = vmax.f32 %v6176_v47, 0.0 }
 0x51b   : > { %v6207_v28 = vmax.f32 %v6175_v18, 0.0  ;;  %v18381_v58 = vpop.f32.mrb[58].mxu1 }
 0x51c   : > { %v24117_v54 = vsel %vm615_vm2, %v6420_v63, %v6421_v13  ;;  %v24120_v30 = vsel %vm615_vm2, %v6421_v13, %v6423_v42  ;;  %v24122_v32 = vld [vmem:[#allocation2 + $0x118] sm:$0x3]  ;;  %6240 = vst.msk [vmem:[#allocation2 + $0x141] sm:$0xff] %vm319_vm0, %v6208_v48  ;;  %v6178_v57 = vadd.f32 %v18381_v58, %v23884_v6  ;;  %v6084_v52 = vpop.f32.mrb[59].mxu1  ;;  %v24128_v34 = vld [vmem:[#allocation2 + $0x108] sm:$0xff]  ;;  %v24130_v47 = vld [vmem:[#allocation2 + $0x110] sm:$0xff] }
 0x51d   : > { %27428 = vst [vmem:[#allocation4_spill] sm:$0xff] %v24117_v54  ;;  %27429 = vst [vmem:[#allocation20_spill] sm:$0xff] %v24120_v30  ;;  %18422 = vmatprep.mubr.msk.f32.mxu0 %vm319_vm0, %v24117_v54  ;;  %v6428_v18 = vrot.slane %v24122_v32, 1  ;;  %v6177_v42 = vadd.f32 %v23884_v6, %v6084_v52  ;;  %v6425_v63 = vrot.slane %v24128_v34, 1  ;;  %v6426_v13 = vrot.slane %v24130_v47, 1 }
 0x51e   : > { %6239 = vst.msk [vmem:[#allocation2 + $0x139] sm:$0xff] %vm319_vm0, %v6207_v28  ;;  %18423 = vmatmul.mubr.msk.f32.gmra.mrb[52].mxu0 %vm319_vm0, %v24120_v30  ;;  %v6210_v48 = vmax.f32 %v6178_v57, 0.0 }
 0x51f   : > { %v6209_v58 = vmax.f32 %v6177_v42, 0.0  ;;  %v18384_v54 = vpop.f32.mrb[60].mxu1  ;;  %v24140_v50 = vsel %vm615_vm2, %v6425_v63, %v6426_v13  ;;  %v24143_v41 = vsel %vm615_vm2, %v6426_v13, %v6428_v18  ;;  %v24145_v53 = vld [vmem:[#allocation2 + $0x130] sm:$0x3] }
 0x520   : > { %27430 = vst [vmem:[#allocation5_spill] sm:$0xff] %v24140_v50  ;;  %27431 = vst [vmem:[#allocation21_spill] sm:$0xff] %v24143_v41  ;;  %v6180_v28 = vadd.f32 %v18384_v54, %v23884_v6  ;;  %v6094_v52 = vpop.f32.mrb[61].mxu1  ;;  %18425 = vmatprep.mubr.msk.f32.mxu0 %vm319_vm0, %v24140_v50  ;;  %v6433_v42 = vrot.slane %v24145_v53, 1 }
 0x521   : > { %6242 = vst.msk [vmem:[#allocation2 + $0x159] sm:$0xff] %vm319_vm0, %v6210_v48  ;;  %v24151_v30 = vld [vmem:[#allocation2 + $0x120] sm:$0xff]  ;;  %v24153_v57 = vld [vmem:[#allocation2 + $0x128] sm:$0xff]  ;;  %6241 = vst.msk [vmem:[#allocation2 + $0x151] sm:$0xff] %vm319_vm0, %v6209_v58  ;;  %v6179_v18 = vadd.f32 %v23884_v6, %v6094_v52 }
 0x522   : > { %18426 = vmatmul.mubr.msk.f32.gmra.mrb[54].mxu0 %vm319_vm0, %v24143_v41  ;;  %v6430_v63 = vrot.slane %v24151_v30, 1  ;;  %v6431_v54 = vrot.slane %v24153_v57, 1  ;;  %v6212_v13 = vmax.f32 %v6180_v28, 0.0 }
 0x523   : > { %v6211_v48 = vmax.f32 %v6179_v18, 0.0  ;;  %v18387_v50 = vpop.f32.mrb[62].mxu1  ;;  %v24168_v39 = vld [vmem:[#allocation2 + $0x148] sm:$0x3] }
 0x524   : > { %v24163_v43 = vsel %vm615_vm2, %v6430_v63, %v6431_v54  ;;  %v24166_v31 = vsel %vm615_vm2, %v6431_v54, %v6433_v42  ;;  %6244 = vst.msk [vmem:[#allocation2 + $0x171] sm:$0xff] %vm319_vm0, %v6212_v13  ;;  %v6182_v58 = vadd.f32 %v18387_v50, %v23884_v6  ;;  %v6104_v52 = vpop.f32.mrb[63].mxu1  ;;  %v6438_v18 = vrot.slane %v24168_v39, 1 }
 0x525   : > { %27432 = vst [vmem:[#allocation25_spill] sm:$0xff] %v24163_v43  ;;  %27433 = vst [vmem:[#allocation31_spill] sm:$0xff] %v24166_v31  ;;  %18428 = vmatprep.mubr.msk.f32.mxu0 %vm319_vm0, %v24163_v43  ;;  %v24174_v41 = vld [vmem:[#allocation2 + $0x138] sm:$0xff]  ;;  %v24176_v28 = vld [vmem:[#allocation2 + $0x140] sm:$0xff]  ;;  %v6181_v42 = vadd.f32 %v23884_v6, %v6104_v52 }
 0x526   : > { %6243 = vst.msk [vmem:[#allocation2 + $0x169] sm:$0xff] %vm319_vm0, %v6211_v48  ;;  %18429 = vmatmul.mubr.msk.f32.gmra.mrb[56].mxu0 %vm319_vm0, %v24166_v31  ;;  %v6435_v63 = vrot.slane %v24174_v41, 1  ;;  %v6436_v50 = vrot.slane %v24176_v28, 1  ;;  %v6214_v54 = vmax.f32 %v6182_v58, 0.0 }
 0x527   : > { %v6213_v13 = vmax.f32 %v6181_v42, 0.0 }
 0x528   : > { %v24186_v43 = vsel %vm615_vm2, %v6435_v63, %v6436_v50  ;;  %v24189_v19 = vsel %vm615_vm2, %v6436_v50, %v6438_v18  ;;  %v24191_v59 = vld [vmem:[#allocation2 + $0x160] sm:$0x3]  ;;  %6246 = vst.msk [vmem:[#allocation2 + $0x189] sm:$0xff] %vm319_vm0, %v6214_v54  ;;  %v24196_v6 = vld [vmem:[#allocation2 + $0x150] sm:$0xff]  ;;  %v24198_v48 = vld [vmem:[#allocation2 + $0x158] sm:$0xff] }
 0x529   : > { %27434 = vst [vmem:[#allocation34_spill] sm:$0xff] %v24186_v43  ;;  %27435 = vst [vmem:[#allocation36_spill] sm:$0xff] %v24189_v19  ;;  %18431 = vmatprep.mubr.msk.f32.mxu0 %vm319_vm0, %v24186_v43  ;;  %v6443_v58 = vrot.slane %v24191_v59, 1  ;;  %v6440_v52 = vrot.slane %v24196_v6, 1  ;;  %v6441_v18 = vrot.slane %v24198_v48, 1 }
 0x52a   : > { %6245 = vst.msk [vmem:[#allocation2 + $0x181] sm:$0xff] %vm319_vm0, %v6213_v13  ;;  %18432 = vmatmul.mubr.msk.f32.gmra.mrb[58].mxu0 %vm319_vm0, %v24189_v19 }
 0x52b   : > { %v24207_v42 = vsel %vm615_vm2, %v6440_v52, %v6441_v18  ;;  %v24210_v63 = vsel %vm615_vm2, %v6441_v18, %v6443_v58  ;;  %v24212_v50 = vld [vmem:[#allocation2 + $0x178] sm:$0x3] }
 0x52c   : > { %27436 = vst [vmem:[#allocation38_spill] sm:$0xff] %v24207_v42  ;;  %27437 = vst [vmem:[#allocation6_spill] sm:$0xff] %v24210_v63  ;;  %18434 = vmatprep.mubr.msk.f32.mxu0 %vm319_vm0, %v24207_v42  ;;  %v6448_v19 = vrot.slane %v24212_v50, 1  ;;  %v15037_v42 = vld [vmem:[%s26895_s1 + $0x150] sm:$0xff] }
 0x52d   : > { %v24216_v54 = vld [vmem:[#allocation2 + $0x168] sm:$0xff]  ;;  %v24218_v13 = vld [vmem:[#allocation2 + $0x170] sm:$0xff] }
 0x52e   : > { %18435 = vmatmul.mubr.msk.f32.gmra.mrb[60].mxu0 %vm319_vm0, %v24210_v63  ;;  %v6445_v52 = vrot.slane %v24216_v54, 1  ;;  %v6446_v43 = vrot.slane %v24218_v13, 1  ;;  %v15038_v63 = vld [vmem:[%s26895_s1 + $0x158] sm:$0xff] }
 0x530   : > { %v24226_v58 = vsel %vm615_vm2, %v6445_v52, %v6446_v43  ;;  %v24229_v18 = vsel %vm615_vm2, %v6446_v43, %v6448_v19  ;;  %v19876_v52 = vpack.c.bf16 %v15038_v63, %v15037_v42  ;;  %v7029_v19 = vrot.slane %v23855_v29, 2  ;;  %v15039_v63 = vld [vmem:[%s26895_s1 + $0x160] sm:$0xff] }
 0x531   : > { %27438 = vst [vmem:[#allocation7_spill] sm:$0xff] %v24226_v58  ;;  %27439 = vst [vmem:[#allocation8_spill] sm:$0xff] %v24229_v18  ;;  %18437 = vmatprep.mubr.msk.f32.mxu0 %vm319_vm0, %v24226_v58  ;;  %v7031_v43 = vrot.slane %v23859_v15, 2  ;;  %v7036_v58 = vrot.slane %v23896_v62, 2  ;;  %v7041_v62 = vrot.slane %v23915_v35, 2 }
 0x532   : > { %18438 = vmatmul.mubr.msk.f32.gmra.mrb[62].mxu0 %vm319_vm0, %v24229_v18  ;;  %v7034_v18 = vrot.slane %v23902_v1, 2 }
 0x533   : > { %18444 = vmatprep.mubr.msk.f32.mxu0 %vm319_vm0, %v23853_v60  ;;  %v7032_v15 = vsel %vm1274_vm3, %v7029_v19, %v7031_v43  ;;  %v24339_v43 = vsel %vm1274_vm3, %v7038_v55, %v7039_v11  ;;  %v7048_v55 = vrot.slane %v23967_v5, 2 }
 0x536   : > { %18445 = vmatmul.mubr.msk.f32.vlgmr.msra.gmra.mrb[32].mxu0 %vm319_vm0, %v23855_v29  ;;  %v7033_v29 = vrot.slane %v23900_v40, 2 }
 0x537   : > { %19875 = vmatpush3.bf16.msra.mxu0 %v23878_v16  ;;  %18447 = vmatprep.mubr.msk.f32.mxu0 %vm319_vm0, %v23900_v40  ;;  %v7028_v16 = vrot.slane %v23853_v60, 2  ;;  %v15040_v60 = vld [vmem:[%s26895_s1 + $0x168] sm:$0xff] }
 0x538   : > { %19877 = vmatprep.subr.bf16.mxu0 %v19876_v52  ;;  %v24325_v31 = vsel %vm1274_vm3, %v7033_v29, %v7034_v18  ;;  %v7053_v29 = vrot.slane %v23990_v22, 2 }
 0x539   : > { %v7030_v42 = vsel %vm1274_vm3, %v7028_v16, %v7029_v19  ;;  %v24320_v16 = vpack.c.bf16 %v15040_v60, %v15039_v63  ;;  %v24333_v19 = vsel %vm1274_vm3, %v7034_v18, %v7036_v58  ;;  %v24346_v63 = vsel %vm1274_vm3, %v7039_v11, %v7041_v62 }
 0x53a   : > { %18448 = vmatmul.mubr.msk.f32.gmra.mrb[34].mxu0 %vm319_vm0, %v23902_v1  ;;  %v7046_v58 = vrot.slane %v23938_v9, 2  ;;  %v7049_v18 = vrot.slane %v23969_v45, 2  ;;  %v7051_v11 = vrot.slane %v23961_v3, 2 }
 0x53b   : > { %18450 = vmatprep.mubr.msk.f32.mxu0 %vm319_vm0, %v23921_v12 }
 0x53c   : > { %v24365_v9 = vsel %vm1274_vm3, %v7048_v55, %v7049_v18  ;;  %v24372_v62 = vsel %vm1274_vm3, %v7049_v18, %v7051_v11  ;;  %v7061_v18 = vrot.slane %v24007_v21, 2  ;;  %v7063_v11 = vrot.slane %v24036_v23, 2 }
 0x53e   : > { %18451 = vmatmul.mubr.msk.f32.gmra.mrb[36].mxu0 %vm319_vm0, %v23923_v37 }
 0x53f   : > { %18453 = vmatprep.mubr.msk.f32.mxu0 %vm319_vm0, %v23944_v61 }
 0x542   : > { %18454 = vmatmul.mubr.msk.f32.gmra.mrb[38].mxu0 %vm319_vm0, %v23946_v0 }
 0x543   : > { %18456 = vmatprep.mubr.msk.f32.mxu0 %vm319_vm0, %v23967_v5 }
 0x546   : > { %18457 = vmatmul.mubr.msk.f32.gmra.mrb[40].mxu0 %vm319_vm0, %v23969_v45 }
 0x547   : > { %18459 = vmatprep.mubr.msk.f32.mxu0 %vm319_vm0, %v23990_v22 }
 0x54a   : > { %18460 = vmatmul.mubr.msk.f32.gmra.mrb[42].mxu0 %vm319_vm0, %v23992_v14 }
 0x54b   : > { %18462 = vmatprep.mubr.msk.f32.mxu0 %vm319_vm0, %v24013_v44 }
 0x54e   : > { %18463 = vmatmul.mubr.msk.f32.gmra.mrb[44].mxu0 %vm319_vm0, %v24015_v38 }
 0x54f   : > { %18465 = vmatprep.mubr.msk.f32.mxu0 %vm319_vm0, %v24036_v23 }
 0x552   : > { %18466 = vmatmul.mubr.msk.f32.gmra.mrb[46].mxu0 %vm319_vm0, %v24038_v20 }
 0x553   : > { %18468 = vmatprep.mubr.msk.f32.mxu0 %vm319_vm0, %v24059_v2 }
 0x556   : > { %18469 = vmatmul.mubr.msk.f32.gmra.mrb[48].mxu0 %vm319_vm0, %v24061_v10 }
 0x557   : > { %18471 = vmatprep.mubr.msk.f32.mxu0 %vm319_vm0, %v24082_v4 }
 0x55a   : > { %18472 = vmatmul.mubr.msk.f32.gmra.mrb[50].mxu0 %vm319_vm0, %v24084_v33 }
 0x55b   : > { %18474 = vmatprep.mubr.msk.f32.mxu0 %vm319_vm0, %v24105_v51 }
 0x55e   : > { %18475 = vmatmul.mubr.msk.f32.gmra.mrb[52].mxu0 %vm319_vm0, %v24107_v17 }
 0x55f   : > { %18477 = vmatprep.mubr.msk.f32.mxu0 %vm319_vm0, %v24128_v34 }
 0x562   : > { %18478 = vmatmul.mubr.msk.f32.gmra.mrb[54].mxu0 %vm319_vm0, %v24130_v47 }
 0x563   : > { %18480 = vmatprep.mubr.msk.f32.mxu0 %vm319_vm0, %v24151_v30 }
 0x566   : > { %18481 = vmatmul.mubr.msk.f32.gmra.mrb[56].mxu0 %vm319_vm0, %v24153_v57 }
 0x567   : > { %18483 = vmatprep.mubr.msk.f32.mxu0 %vm319_vm0, %v24174_v41 }
 0x56a   : > { %18484 = vmatmul.mubr.msk.f32.gmra.mrb[58].mxu0 %vm319_vm0, %v24176_v28 }
 0x56b   : > { %18486 = vmatprep.mubr.msk.f32.mxu0 %vm319_vm0, %v24196_v6 }
 0x56e   : > { %18487 = vmatmul.mubr.msk.f32.gmra.mrb[60].mxu0 %vm319_vm0, %v24198_v48 }
 0x56f   : > { %18489 = vmatprep.mubr.msk.f32.mxu0 %vm319_vm0, %v24216_v54 }
 0x572   : > { %18490 = vmatmul.mubr.msk.f32.gmra.mrb[62].mxu0 %vm319_vm0, %v24218_v13 }
 0x573   : > { %18496 = vmatprep.mubr.msk.f32.mxu0 %vm319_vm0, %v7030_v42  ;;  %v7043_v42 = vrot.slane %v23944_v61, 2 }
 0x576   : > { %18497 = vmatmul.mubr.msk.f32.vlgmr.msra.gmra.mrb[32].mxu0 %vm319_vm0, %v7032_v15  ;;  %v7054_v15 = vrot.slane %v23992_v14, 2 }
 0x577   : > { %19879 = vmatpush3.bf16.msra.mxu0 %v19876_v52  ;;  %18499 = vmatprep.mubr.msk.f32.mxu0 %vm319_vm0, %v24325_v31  ;;  %v7044_v52 = vrot.slane %v23946_v0, 2 }
 0x578   : > { %19881 = vmatprep.subr.bf16.mxu0 %v24320_v16  ;;  %v24378_v3 = vsel %vm1274_vm3, %v7053_v29, %v7054_v15  ;;  %v7064_v29 = vrot.slane %v24038_v20, 2 }
 0x579   : > { %v24352_v35 = vsel %vm1274_vm3, %v7043_v42, %v7044_v52  ;;  %v24359_v60 = vsel %vm1274_vm3, %v7044_v52, %v7046_v58  ;;  %v7056_v42 = vrot.slane %v23984_v26, 2  ;;  %27440 = vst [vmem:[#allocation9_spill] sm:$0xff] %v24378_v3  ;;  %v7058_v52 = vrot.slane %v24013_v44, 2 }
 0x57a   : > { %18500 = vmatmul.mubr.msk.f32.gmra.mrb[34].mxu0 %vm319_vm0, %v24333_v19  ;;  %v7059_v58 = vrot.slane %v24015_v38, 2  ;;  %v24404_v21 = vsel %vm1274_vm3, %v7063_v11, %v7064_v29  ;;  %v7074_v11 = vrot.slane %v24084_v33, 2 }
 0x57b   : > { %18502 = vmatprep.mubr.msk.f32.mxu0 %vm319_vm0, %v24339_v43  ;;  %v24385_v55 = vsel %vm1274_vm3, %v7054_v15, %v7056_v42  ;;  %v7066_v15 = vrot.slane %v24030_v56, 2  ;;  %27442 = vst [vmem:[#allocation11_spill] sm:$0xff] %v24404_v21  ;;  %v7068_v42 = vrot.slane %v24059_v2, 2 }
 0x57c   : > { %v24391_v26 = vsel %vm1274_vm3, %v7058_v52, %v7059_v58  ;;  %v7069_v52 = vrot.slane %v24061_v10, 2 }
 0x57d   : > { %27441 = vst [vmem:[#allocation10_spill] sm:$0xff] %v24391_v26 }
 0x57e   : > { %18503 = vmatmul.mubr.msk.f32.gmra.mrb[36].mxu0 %vm319_vm0, %v24346_v63  ;;  %v24417_v56 = vsel %vm1274_vm3, %v7068_v42, %v7069_v52  ;;  %v7079_v42 = vrot.slane %v24107_v17, 2 }
 0x57f   : > { %18505 = vmatprep.mubr.msk.f32.mxu0 %vm319_vm0, %v24352_v35  ;;  %27443 = vst [vmem:[#allocation12_spill] sm:$0xff] %v24417_v56 }
 0x582   : > { %18506 = vmatmul.mubr.msk.f32.gmra.mrb[38].mxu0 %vm319_vm0, %v24359_v60 }
 0x583   : > { %18508 = vmatprep.mubr.msk.f32.mxu0 %vm319_vm0, %v24365_v9 }
 0x586   : > { %18509 = vmatmul.mubr.msk.f32.gmra.mrb[40].mxu0 %vm319_vm0, %v24372_v62 }
 0x587   : > { %18511 = vmatprep.mubr.msk.f32.mxu0 %vm319_vm0, %v24378_v3  ;;  %v24398_v3 = vsel %vm1274_vm3, %v7059_v58, %v7061_v18  ;;  %v7071_v58 = vrot.slane %v24053_v49, 2  ;;  %v7073_v18 = vrot.slane %v24082_v4, 2 }
 0x589   : > { %v24430_v49 = vsel %vm1274_vm3, %v7073_v18, %v7074_v11  ;;  %v7084_v18 = vrot.slane %v24130_v47, 2 }
 0x58a   : > { %18512 = vmatmul.mubr.msk.f32.gmra.mrb[42].mxu0 %vm319_vm0, %v24385_v55  ;;  %27444 = vst [vmem:[#allocation44_spill] sm:$0xff] %v24430_v49 }
 0x58b   : > { %18514 = vmatprep.mubr.msk.f32.mxu0 %vm319_vm0, %v24391_v26  ;;  %v24411_v26 = vsel %vm1274_vm3, %v7064_v29, %v7066_v15  ;;  %v7076_v29 = vrot.slane %v24076_v25, 2  ;;  %v7078_v15 = vrot.slane %v24105_v51, 2 }
 0x58d   : > { %v24443_v25 = vsel %vm1274_vm3, %v7078_v15, %v7079_v42  ;;  %v7089_v15 = vrot.slane %v24153_v57, 2 }
 0x58e   : > { %18515 = vmatmul.mubr.msk.f32.gmra.mrb[44].mxu0 %vm319_vm0, %v24398_v3  ;;  %27445 = vst [vmem:[#allocation13_spill] sm:$0xff] %v24443_v25 }
 0x58f   : > { %18517 = vmatprep.mubr.msk.f32.mxu0 %vm319_vm0, %v24404_v21  ;;  %v24424_v21 = vsel %vm1274_vm3, %v7069_v52, %v7071_v58  ;;  %v7081_v52 = vrot.slane %v24099_v46, 2  ;;  %v7083_v58 = vrot.slane %v24128_v34, 2 }
 0x591   : > { %v24456_v46 = vsel %vm1274_vm3, %v7083_v58, %v7084_v18  ;;  %v7094_v58 = vrot.slane %v24176_v28, 2 }
 0x592   : > { %18518 = vmatmul.mubr.msk.f32.gmra.mrb[46].mxu0 %vm319_vm0, %v24411_v26  ;;  %27447 = vst [vmem:[#allocation14_spill] sm:$0xff] %v24456_v46 }
 0x593   : > { %18520 = vmatprep.mubr.msk.f32.mxu0 %vm319_vm0, %v24417_v56  ;;  %v24437_v56 = vsel %vm1274_vm3, %v7074_v11, %v7076_v29  ;;  %v7086_v11 = vrot.slane %v24122_v32, 2  ;;  %v7088_v29 = vrot.slane %v24151_v30, 2 }
 0x595   : > { %v24469_v32 = vsel %vm1274_vm3, %v7088_v29, %v7089_v15  ;;  %v7099_v29 = vrot.slane %v24198_v48, 2 }
 0x596   : > { %18521 = vmatmul.mubr.msk.f32.gmra.mrb[48].mxu0 %vm319_vm0, %v24424_v21  ;;  %27448 = vst [vmem:[#allocation16_spill] sm:$0xff] %v24469_v32 }
 0x597   : > { %18523 = vmatprep.mubr.msk.f32.mxu0 %vm319_vm0, %v24430_v49  ;;  %v24450_v49 = vsel %vm1274_vm3, %v7079_v42, %v7081_v52  ;;  %v7091_v42 = vrot.slane %v24145_v53, 2  ;;  %v7093_v52 = vrot.slane %v24174_v41, 2 }
 0x598   : > { %27446 = vst [vmem:[#allocation45_spill] sm:$0xff] %v24450_v49 }
 0x599   : > { %v24482_v53 = vsel %vm1274_vm3, %v7093_v52, %v7094_v58  ;;  %v7104_v52 = vrot.slane %v24218_v13, 2 }
 0x59a   : > { %18524 = vmatmul.mubr.msk.f32.gmra.mrb[50].mxu0 %vm319_vm0, %v24437_v56  ;;  %27450 = vst [vmem:[#allocation18_spill] sm:$0xff] %v24482_v53 }
 0x59b   : > { %18526 = vmatprep.mubr.msk.f32.mxu0 %vm319_vm0, %v24443_v25  ;;  %v24463_v25 = vsel %vm1274_vm3, %v7084_v18, %v7086_v11  ;;  %v7096_v18 = vrot.slane %v24168_v39, 2  ;;  %v7098_v11 = vrot.slane %v24196_v6, 2 }
 0x59d   : > { %v24495_v39 = vsel %vm1274_vm3, %v7098_v11, %v7099_v29  ;;  %v15041_v11 = vld [vmem:[%s26895_s1 + $0x170] sm:$0xff] }
 0x59e   : > { %18527 = vmatmul.mubr.msk.f32.gmra.mrb[52].mxu0 %vm319_vm0, %v24450_v49  ;;  %27451 = vst [vmem:[#allocation19_spill] sm:$0xff] %v24495_v39 }
 0x59f   : > { %18529 = vmatprep.mubr.msk.f32.mxu0 %vm319_vm0, %v24456_v46  ;;  %v24476_v46 = vsel %vm1274_vm3, %v7089_v15, %v7091_v42  ;;  %v7101_v15 = vrot.slane %v24191_v59, 2  ;;  %v7103_v42 = vrot.slane %v24216_v54, 2 }
 0x5a0   : > { %27449 = vst [vmem:[#allocation17_spill] sm:$0xff] %v24476_v46 }
 0x5a1   : > { %v24508_v59 = vsel %vm1274_vm3, %v7103_v42, %v7104_v52  ;;  %v27456_v42 = vld [vmem:[#allocation47_spill] sm:$0xff] }
 0x5a2   : > { %18530 = vmatmul.mubr.msk.f32.gmra.mrb[54].mxu0 %vm319_vm0, %v24463_v25  ;;  %27453 = vst [vmem:[#allocation23_spill] sm:$0xff] %v24508_v59 }
 0x5a3   : > { %18532 = vmatprep.mubr.msk.f32.mxu0 %vm319_vm0, %v24469_v32  ;;  %v24489_v32 = vsel %vm1274_vm3, %v7094_v58, %v7096_v18  ;;  %v7106_v58 = vrot.slane %v24212_v50, 2  ;;  %v15042_v50 = vld [vmem:[%s26895_s1 + $0x178] sm:$0xff] }
 0x5a5   : > { %v24513_v18 = vsel %vm1274_vm3, %v7104_v52, %v7106_v58  ;;  %v27459_v52 = vld [vmem:[#allocation50_spill] sm:$0xff]  ;;  %v27460_v58 = vld [vmem:[#allocation51_spill] sm:$0xff] }
 0x5a6   : > { %18533 = vmatmul.mubr.msk.f32.gmra.mrb[56].mxu0 %vm319_vm0, %v24476_v46  ;;  %27454 = vst [vmem:[#allocation28_spill] sm:$0xff] %v24513_v18 }
 0x5a7   : > { %18535 = vmatprep.mubr.msk.f32.mxu0 %vm319_vm0, %v24482_v53  ;;  %v24502_v53 = vsel %vm1274_vm3, %v7099_v29, %v7101_v15  ;;  %v19884_v29 = vpack.c.bf16 %v15042_v50, %v15041_v11  ;;  %v27455_v15 = vld [vmem:[#allocation37_spill] sm:$0xff]  ;;  %v27461_v11 = vld [vmem:[#allocation52_spill] sm:$0xff] }
 0x5a8   : > { %27452 = vst [vmem:[#allocation22_spill] sm:$0xff] %v24502_v53  ;;  %v27462_v50 = vld [vmem:[#allocation24_spill] sm:$0xff] }
 0x5aa   : > { %18536 = vmatmul.mubr.msk.f32.gmra.mrb[58].mxu0 %vm319_vm0, %v24489_v32 }
 0x5ab   : > { %18538 = vmatprep.mubr.msk.f32.mxu0 %vm319_vm0, %v24495_v39 }
 0x5ae   : > { %18539 = vmatmul.mubr.msk.f32.gmra.mrb[60].mxu0 %vm319_vm0, %v24502_v53 }
 0x5af   : > { %18541 = vmatprep.mubr.msk.f32.mxu0 %vm319_vm0, %v24508_v59 }
 0x5b2   : > { %18542 = vmatmul.mubr.msk.f32.gmra.mrb[62].mxu0 %vm319_vm0, %v24513_v18 }
 0x5b3   : > { %18548 = vmatprep.mubr.msk.f32.mxu0 %vm319_vm0, %v23900_v40  ;;  %v24584_v40 = vld [vmem:[#allocation2 + $0x180] sm:$0xff] }
 0x5b6   : > { %18549 = vmatmul.mubr.msk.f32.vlgmr.msra.gmra.mrb[32].mxu0 %vm319_vm0, %v23902_v1  ;;  %v24588_v1 = vld [vmem:[#allocation2 + $0x188] sm:$0xff] }
 0x5b7   : > { %19883 = vmatpush3.bf16.msra.mxu0 %v24320_v16  ;;  %18551 = vmatprep.mubr.msk.f32.mxu0 %vm319_vm0, %v23921_v12  ;;  %v15043_v12 = vld [vmem:[%s26895_s1 + $0x180] sm:$0xff] }
 0x5b8   : > { %19885 = vmatprep.subr.bf16.mxu0 %v19884_v29 }
 0x5ba   : > { %18552 = vmatmul.mubr.msk.f32.gmra.mrb[34].mxu0 %vm319_vm0, %v23923_v37  ;;  %v15044_v37 = vld [vmem:[%s26895_s1 + $0x188] sm:$0xff] }
 0x5bb   : > { %18554 = vmatprep.mubr.msk.f32.mxu0 %vm319_vm0, %v23944_v61  ;;  %v19888_v16 = vpack.c.bf16 %v15044_v37, %v15043_v12  ;;  %v27464_v12 = vld [vmem:[#allocation27_spill] sm:$0xff]  ;;  %v27465_v37 = vld [vmem:[#allocation29_spill] sm:$0xff] }
 0x5be   : > { %18555 = vmatmul.mubr.msk.f32.gmra.mrb[36].mxu0 %vm319_vm0, %v23946_v0 }
 0x5bf   : > { %18557 = vmatprep.mubr.msk.f32.mxu0 %vm319_vm0, %v23967_v5 }
 0x5c2   : > { %18558 = vmatmul.mubr.msk.f32.gmra.mrb[38].mxu0 %vm319_vm0, %v23969_v45 }
 0x5c3   : > { %18560 = vmatprep.mubr.msk.f32.mxu0 %vm319_vm0, %v23990_v22 }
 0x5c6   : > { %18561 = vmatmul.mubr.msk.f32.gmra.mrb[40].mxu0 %vm319_vm0, %v23992_v14 }
 0x5c7   : > { %18563 = vmatprep.mubr.msk.f32.mxu0 %vm319_vm0, %v24013_v44 }
 0x5ca   : > { %18564 = vmatmul.mubr.msk.f32.gmra.mrb[42].mxu0 %vm319_vm0, %v24015_v38 }
 0x5cb   : > { %18566 = vmatprep.mubr.msk.f32.mxu0 %vm319_vm0, %v24036_v23 }
 0x5ce   : > { %18567 = vmatmul.mubr.msk.f32.gmra.mrb[44].mxu0 %vm319_vm0, %v24038_v20 }
 0x5cf   : > { %18569 = vmatprep.mubr.msk.f32.mxu0 %vm319_vm0, %v24059_v2 }
 0x5d2   : > { %18570 = vmatmul.mubr.msk.f32.gmra.mrb[46].mxu0 %vm319_vm0, %v24061_v10 }
 0x5d3   : > { %18572 = vmatprep.mubr.msk.f32.mxu0 %vm319_vm0, %v24082_v4 }
 0x5d6   : > { %18573 = vmatmul.mubr.msk.f32.gmra.mrb[48].mxu0 %vm319_vm0, %v24084_v33 }
 0x5d7   : > { %18575 = vmatprep.mubr.msk.f32.mxu0 %vm319_vm0, %v24105_v51 }
 0x5da   : > { %18576 = vmatmul.mubr.msk.f32.gmra.mrb[50].mxu0 %vm319_vm0, %v24107_v17 }
 0x5db   : > { %18578 = vmatprep.mubr.msk.f32.mxu0 %vm319_vm0, %v24128_v34 }
 0x5de   : > { %18579 = vmatmul.mubr.msk.f32.gmra.mrb[52].mxu0 %vm319_vm0, %v24130_v47 }
 0x5df   : > { %18581 = vmatprep.mubr.msk.f32.mxu0 %vm319_vm0, %v24151_v30 }
 0x5e2   : > { %18582 = vmatmul.mubr.msk.f32.gmra.mrb[54].mxu0 %vm319_vm0, %v24153_v57 }
 0x5e3   : > { %18584 = vmatprep.mubr.msk.f32.mxu0 %vm319_vm0, %v24174_v41 }
 0x5e6   : > { %18585 = vmatmul.mubr.msk.f32.gmra.mrb[56].mxu0 %vm319_vm0, %v24176_v28 }
 0x5e7   : > { %18587 = vmatprep.mubr.msk.f32.mxu0 %vm319_vm0, %v24196_v6 }
 0x5ea   : > { %18588 = vmatmul.mubr.msk.f32.gmra.mrb[58].mxu0 %vm319_vm0, %v24198_v48 }
 0x5eb   : > { %18590 = vmatprep.mubr.msk.f32.mxu0 %vm319_vm0, %v24216_v54 }
 0x5ee   : > { %18591 = vmatmul.mubr.msk.f32.gmra.mrb[60].mxu0 %vm319_vm0, %v24218_v13 }
 0x5ef   : > { %18593 = vmatprep.mubr.msk.f32.mxu0 %vm319_vm0, %v24584_v40 }
 0x5f2   : > { %18594 = vmatmul.mubr.msk.f32.gmra.mrb[62].mxu0 %vm319_vm0, %v24588_v1 }
 0x5f3   : > { %18600 = vmatprep.mubr.msk.f32.mxu0 %vm319_vm0, %v23910_v27  ;;  %v27457_v27 = vld [vmem:[#allocation48_spill] sm:$0xff] }
 0x5f6   : > { %18601 = vmatmul.mubr.msk.f32.vlgmr.msra.gmra.mrb[32].mxu0 %vm319_vm0, %v23913_v36  ;;  %v27458_v36 = vld [vmem:[#allocation49_spill] sm:$0xff] }
 0x5f7   : > { %19887 = vmatpush3.bf16.msra.mxu0 %v19884_v29  ;;  %18603 = vmatprep.mubr.msk.f32.mxu0 %vm319_vm0, %v23933_v7  ;;  %v27463_v29 = vld [vmem:[#allocation26_spill] sm:$0xff] }
 0x5f8   : > { %19889 = vmatprep.subr.bf16.mxu0 %v19888_v16 }
 0x5fa   : > { %18604 = vmatmul.mubr.msk.f32.gmra.mrb[34].mxu0 %vm319_vm0, %v23936_v24 }
 0x5fb   : > { %18606 = vmatprep.mubr.msk.f32.mxu0 %vm319_vm0, %v23956_v8 }
 0x5fe   : > { %18607 = vmatmul.mubr.msk.f32.gmra.mrb[36].mxu0 %vm319_vm0, %v27455_v15 }
 0x5ff   : > { %18609 = vmatprep.mubr.msk.f32.mxu0 %vm319_vm0, %v27456_v42  ;;  %v27479_v42 = vld [vmem:[#allocation8_spill] sm:$0xff] }
 0x602   : > { %18610 = vmatmul.mubr.msk.f32.gmra.mrb[38].mxu0 %vm319_vm0, %v27457_v27  ;;  %v27478_v27 = vld [vmem:[#allocation7_spill] sm:$0xff] }
 0x603   : > { %18612 = vmatprep.mubr.msk.f32.mxu0 %vm319_vm0, %v27458_v36  ;;  %v27466_v36 = vld [vmem:[#allocation32_spill] sm:$0xff] }
 0x606   : > { %18613 = vmatmul.mubr.msk.f32.gmra.mrb[40].mxu0 %vm319_vm0, %v27459_v52  ;;  %v27467_v52 = vld [vmem:[#allocation15_spill] sm:$0xff] }
 0x607   : > { %18615 = vmatprep.mubr.msk.f32.mxu0 %vm319_vm0, %v27460_v58  ;;  %v27468_v58 = vld [vmem:[#allocation4_spill] sm:$0xff] }
 0x60a   : > { %18616 = vmatmul.mubr.msk.f32.gmra.mrb[42].mxu0 %vm319_vm0, %v27461_v11  ;;  %v27469_v11 = vld [vmem:[#allocation20_spill] sm:$0xff] }
 0x60b   : > { %18618 = vmatprep.mubr.msk.f32.mxu0 %vm319_vm0, %v27462_v50  ;;  %v27470_v50 = vld [vmem:[#allocation5_spill] sm:$0xff] }
 0x60e   : > { %18619 = vmatmul.mubr.msk.f32.gmra.mrb[44].mxu0 %vm319_vm0, %v27463_v29  ;;  %v27471_v29 = vld [vmem:[#allocation21_spill] sm:$0xff] }
 0x60f   : > { %18621 = vmatprep.mubr.msk.f32.mxu0 %vm319_vm0, %v27464_v12  ;;  %v27472_v12 = vld [vmem:[#allocation25_spill] sm:$0xff] }
 0x612   : > { %18622 = vmatmul.mubr.msk.f32.gmra.mrb[46].mxu0 %vm319_vm0, %v27465_v37  ;;  %v27473_v37 = vld [vmem:[#allocation31_spill] sm:$0xff] }
 0x613   : > { %18624 = vmatprep.mubr.msk.f32.mxu0 %vm319_vm0, %v27466_v36  ;;  %v27474_v36 = vld [vmem:[#allocation34_spill] sm:$0xff] }
 0x616   : > { %18625 = vmatmul.mubr.msk.f32.gmra.mrb[48].mxu0 %vm319_vm0, %v27467_v52  ;;  %v27475_v52 = vld [vmem:[#allocation36_spill] sm:$0xff] }
 0x617   : > { %18627 = vmatprep.mubr.msk.f32.mxu0 %vm319_vm0, %v27468_v58  ;;  %v27476_v58 = vld [vmem:[#allocation38_spill] sm:$0xff] }
 0x61a   : > { %18628 = vmatmul.mubr.msk.f32.gmra.mrb[50].mxu0 %vm319_vm0, %v27469_v11  ;;  %v7694_v11 = vrot.slane %v24588_v1, 1 }
 0x61b   : > { %18630 = vmatprep.mubr.msk.f32.mxu0 %vm319_vm0, %v27470_v50  ;;  %v7693_v50 = vrot.slane %v24584_v40, 1 }
 0x61e   : > { %18631 = vmatmul.mubr.msk.f32.gmra.mrb[52].mxu0 %vm319_vm0, %v27471_v29  ;;  %v27477_v29 = vld [vmem:[#allocation6_spill] sm:$0xff] }
 0x61f   : > { %18633 = vmatprep.mubr.msk.f32.mxu0 %vm319_vm0, %v27472_v12  ;;  %v6297_v12 = vld [vmem:[#allocation2 + $0x190] sm:$0x3] }
 0x622   : > { %18634 = vmatmul.mubr.msk.f32.gmra.mrb[54].mxu0 %vm319_vm0, %v27473_v37  ;;  %v7696_v37 = vrot.slane %v6297_v12, 1 }
 0x623   : > { %18636 = vmatprep.mubr.msk.f32.mxu0 %vm319_vm0, %v27474_v36 }
 0x626   : > { %18637 = vmatmul.mubr.msk.f32.gmra.mrb[56].mxu0 %vm319_vm0, %v27475_v52  ;;  %v24661_v52 = vsel %vm615_vm2, %v7693_v50, %v7694_v11 }
 0x627   : > { %18639 = vmatprep.mubr.msk.f32.mxu0 %vm319_vm0, %v27476_v58  ;;  %v24666_v58 = vsel %vm615_vm2, %v7694_v11, %v7696_v37  ;;  %v27484_v11 = vld [vmem:[#allocation44_spill] sm:$0xff]  ;;  %v27486_v37 = vld [vmem:[#allocation14_spill] sm:$0xff] }
 0x62a   : > { %18640 = vmatmul.mubr.msk.f32.gmra.mrb[58].mxu0 %vm319_vm0, %v27477_v29  ;;  %v15045_v29 = vld [vmem:[%s26895_s1 + $0x190] sm:$0xff] }
 0x62b   : > { %18642 = vmatprep.mubr.msk.f32.mxu0 %vm319_vm0, %v27478_v27  ;;  %v15046_v27 = vld [vmem:[%s26895_s1 + $0x198] sm:$0xff] }
 0x62c   : > { %v19892_v50 = vpack.c.bf16 %v15046_v27, %v15045_v29  ;;  %v27483_v27 = vld [vmem:[#allocation12_spill] sm:$0xff]  ;;  %v27485_v29 = vld [vmem:[#allocation13_spill] sm:$0xff] }
 0x62e   : > { %18643 = vmatmul.mubr.msk.f32.gmra.mrb[60].mxu0 %vm319_vm0, %v27479_v42 }
 0x62f   : > { %18645 = vmatprep.mubr.msk.f32.mxu0 %vm319_vm0, %v24661_v52 }
 0x632   : > { %18646 = vmatmul.mubr.msk.f32.gmra.mrb[62].mxu0 %vm319_vm0, %v24666_v58 }
 0x633   : > { %18652 = vmatprep.mubr.msk.f32.mxu0 %vm319_vm0, %v24325_v31  ;;  %v27480_v31 = vld [vmem:[#allocation9_spill] sm:$0xff] }
 0x636   : > { %18653 = vmatmul.mubr.msk.f32.vlgmr.msra.gmra.mrb[32].mxu0 %vm319_vm0, %v24333_v19  ;;  %v27481_v19 = vld [vmem:[#allocation10_spill] sm:$0xff] }
 0x637   : > { %19891 = vmatpush3.bf16.msra.mxu0 %v19888_v16  ;;  %18655 = vmatprep.mubr.msk.f32.mxu0 %vm319_vm0, %v24339_v43  ;;  %v27482_v16 = vld [vmem:[#allocation11_spill] sm:$0xff] }
 0x638   : > { %19893 = vmatprep.subr.bf16.mxu0 %v19892_v50 }
 0x63a   : > { %18656 = vmatmul.mubr.msk.f32.gmra.mrb[34].mxu0 %vm319_vm0, %v24346_v63 }
 0x63b   : > { %18658 = vmatprep.mubr.msk.f32.mxu0 %vm319_vm0, %v24352_v35 }
 0x63e   : > { %18659 = vmatmul.mubr.msk.f32.gmra.mrb[36].mxu0 %vm319_vm0, %v24359_v60 }
 0x63f   : > { %18661 = vmatprep.mubr.msk.f32.mxu0 %vm319_vm0, %v24365_v9 }
 0x642   : > { %18662 = vmatmul.mubr.msk.f32.gmra.mrb[38].mxu0 %vm319_vm0, %v24372_v62 }
 0x643   : > { %18664 = vmatprep.mubr.msk.f32.mxu0 %vm319_vm0, %v27480_v31 }
 0x646   : > { %18665 = vmatmul.mubr.msk.f32.gmra.mrb[40].mxu0 %vm319_vm0, %v24385_v55 }
 0x647   : > { %18667 = vmatprep.mubr.msk.f32.mxu0 %vm319_vm0, %v27481_v19 }
 0x64a   : > { %18668 = vmatmul.mubr.msk.f32.gmra.mrb[42].mxu0 %vm319_vm0, %v24398_v3 }
 0x64b   : > { %18670 = vmatprep.mubr.msk.f32.mxu0 %vm319_vm0, %v27482_v16 }
 0x64e   : > { %18671 = vmatmul.mubr.msk.f32.gmra.mrb[44].mxu0 %vm319_vm0, %v24411_v26 }
 0x64f   : > { %18673 = vmatprep.mubr.msk.f32.mxu0 %vm319_vm0, %v27483_v27  ;;  %v27487_v27 = vld [vmem:[#allocation16_spill] sm:$0xff] }
 0x652   : > { %18674 = vmatmul.mubr.msk.f32.gmra.mrb[46].mxu0 %vm319_vm0, %v24424_v21 }
 0x653   : > { %18676 = vmatprep.mubr.msk.f32.mxu0 %vm319_vm0, %v27484_v11  ;;  %v27488_v11 = vld [vmem:[#allocation18_spill] sm:$0xff] }
 0x656   : > { %18677 = vmatmul.mubr.msk.f32.gmra.mrb[48].mxu0 %vm319_vm0, %v24437_v56 }
 0x657   : > { %18679 = vmatprep.mubr.msk.f32.mxu0 %vm319_vm0, %v27485_v29 }
 0x65a   : > { %18680 = vmatmul.mubr.msk.f32.gmra.mrb[50].mxu0 %vm319_vm0, %v24450_v49  ;;  %v7960_v49 = vrot.slane %v24588_v1, 2 }
 0x65b   : > { %18682 = vmatprep.mubr.msk.f32.mxu0 %vm319_vm0, %v27486_v37  ;;  %v7959_v37 = vrot.slane %v24584_v40, 2 }
 0x65e   : > { %18683 = vmatmul.mubr.msk.f32.gmra.mrb[52].mxu0 %vm319_vm0, %v24463_v25 }
 0x65f   : > { %18685 = vmatprep.mubr.msk.f32.mxu0 %vm319_vm0, %v27487_v27 }
 0x662   : > { %18686 = vmatmul.mubr.msk.f32.gmra.mrb[54].mxu0 %vm319_vm0, %v24476_v46  ;;  %v7962_v46 = vrot.slane %v6297_v12, 2  ;;  %v15048_v12 = vld [vmem:[%s26895_s1 + $0x1a8] sm:$0xff] }
 0x663   : > { %18688 = vmatprep.mubr.msk.f32.mxu0 %vm319_vm0, %v27488_v11  ;;  %v24739_v11 = vsel %vm1274_vm3, %v7959_v37, %v7960_v49 }
 0x666   : > { %18689 = vmatmul.mubr.msk.f32.gmra.mrb[56].mxu0 %vm319_vm0, %v24489_v32 }
 0x667   : > { %18691 = vmatprep.mubr.msk.f32.mxu0 %vm319_vm0, %v24495_v39  ;;  %v24744_v39 = vsel %vm1274_vm3, %v7960_v49, %v7962_v46  ;;  %v27510_v49 = vld [vmem:[#allocation7_spill] sm:$0xff] }
 0x66a   : > { %18692 = vmatmul.mubr.msk.f32.gmra.mrb[58].mxu0 %vm319_vm0, %v24502_v53  ;;  %v15047_v53 = vld [vmem:[%s26895_s1 + $0x1a0] sm:$0xff] }
 0x66b   : > { %18694 = vmatprep.mubr.msk.f32.mxu0 %vm319_vm0, %v24508_v59  ;;  %v19896_v37 = vpack.c.bf16 %v15048_v12, %v15047_v53  ;;  %v21270_v59 = vld [vmem:[#allocation2 + $0x38] sm:$0xff] }
 0x66e   : > { %18695 = vmatmul.mubr.msk.f32.gmra.mrb[60].mxu0 %vm319_vm0, %v24513_v18  ;;  %v21269_v18 = vld [vmem:[#allocation2 + $0x30] sm:$0xff] }
 0x66f   : > { %18697 = vmatprep.mubr.msk.f32.mxu0 %vm319_vm0, %v24739_v11 }
 0x672   : > { %18698 = vmatmul.mubr.msk.f32.gmra.mrb[62].mxu0 %vm319_vm0, %v24744_v39 }
 0x673   : > { %18704 = vmatprep.mubr.msk.f32.mxu0 %vm319_vm0, %v21269_v18 }
 0x676   : > { %18705 = vmatmul.mubr.msk.f32.vlgmr.msra.gmra.mrb[32].mxu0 %vm319_vm0, %v21270_v59  ;;  %v6300_v59 = vld [vmem:[#allocation2 + $0x1a8] sm:$0x3] }
 0x677   : > { %19895 = vmatpush3.bf16.msra.mxu0 %v19892_v50  ;;  %18707 = vmatprep.mubr.msk.f32.mxu0 %vm319_vm0, %v23944_v61  ;;  %v24810_v61 = vld [vmem:[#allocation2 + $0x198] sm:$0xff]  ;;  %v8492_v18 = vrot.slane %v6300_v59, 1 }
 0x678   : > { %19897 = vmatprep.subr.bf16.mxu0 %v19896_v37  ;;  %v8489_v46 = vrot.slane %v24810_v61, 1 }
 0x67a   : > { %18708 = vmatmul.mubr.msk.f32.gmra.mrb[34].mxu0 %vm319_vm0, %v23946_v0  ;;  %v24816_v0 = vld [vmem:[#allocation2 + $0x1a0] sm:$0xff] }
 0x67b   : > { %18710 = vmatprep.mubr.msk.f32.mxu0 %vm319_vm0, %v23967_v5  ;;  %v9179_v5 = vld [vmem:[%s26897_s3 + $0x10] sm:$0xff]  ;;  %v8490_v53 = vrot.slane %v24816_v0, 1 }
 0x67e   : > { %18711 = vmatmul.mubr.msk.f32.gmra.mrb[36].mxu0 %vm319_vm0, %v23969_v45  ;;  %v9180_v45 = vld [vmem:[%s26897_s3 + $0x18] sm:$0xff] }
 0x67f   : > { %18713 = vmatprep.mubr.msk.f32.mxu0 %vm319_vm0, %v23990_v22  ;;  %v11935_v22 = vld [vmem:[%s26899_s5 + $0x10] sm:$0xff] }
 0x682   : > { %18714 = vmatmul.mubr.msk.f32.gmra.mrb[38].mxu0 %vm319_vm0, %v23992_v14  ;;  %v19900_v14 = vpack.c.bf16 %v9180_v45, %v9179_v5  ;;  %v9182_v5 = vld [vmem:[%s26897_s3 + $0x28] sm:$0xff]  ;;  %v11937_v45 = vld [vmem:[%s26899_s5 + $0x20] sm:$0xff] }
 0x683   : > { %18716 = vmatprep.mubr.msk.f32.mxu0 %vm319_vm0, %v24013_v44  ;;  %v11936_v44 = vld [vmem:[%s26899_s5 + $0x18] sm:$0xff] }
 0x684   : > { %19901 = vmatprep.subr.bf16.mxu1 %v19900_v14 }
 0x685   : > { %19903 = vmatpush3.bf16.msra.mxu1 %v19900_v14  ;;  %v11938_v14 = vld [vmem:[%s26899_s5 + $0x28] sm:$0xff] }
 0x686   : > { %18717 = vmatmul.mubr.msk.f32.gmra.mrb[40].mxu0 %vm319_vm0, %v24015_v38  ;;  %v19936_v38 = vpack.c.bf16 %v11936_v44, %v11935_v22  ;;  %v25005_v44 = vpack.c.bf16 %v11938_v14, %v11937_v45 }
 0x687   : > { %18719 = vmatprep.mubr.msk.f32.mxu0 %vm319_vm0, %v24036_v23  ;;  %v27490_v23 = vld [vmem:[#allocation48_spill] sm:$0xff] }
 0x68a   : > { %18720 = vmatmul.mubr.msk.f32.gmra.mrb[42].mxu0 %vm319_vm0, %v24038_v20  ;;  %v27491_v20 = vld [vmem:[#allocation49_spill] sm:$0xff] }
 0x68b   : > { %18722 = vmatprep.mubr.msk.f32.mxu0 %vm319_vm0, %v24059_v2  ;;  %v27495_v2 = vld [vmem:[#allocation24_spill] sm:$0xff] }
 0x68e   : > { %18723 = vmatmul.mubr.msk.f32.gmra.mrb[44].mxu0 %vm319_vm0, %v24061_v10  ;;  %v27496_v10 = vld [vmem:[#allocation26_spill] sm:$0xff] }
 0x68f   : > { %18725 = vmatprep.mubr.msk.f32.mxu0 %vm319_vm0, %v24082_v4  ;;  %v27497_v4 = vld [vmem:[#allocation27_spill] sm:$0xff] }
 0x692   : > { %18726 = vmatmul.mubr.msk.f32.gmra.mrb[46].mxu0 %vm319_vm0, %v24084_v33  ;;  %v27498_v33 = vld [vmem:[#allocation29_spill] sm:$0xff] }
 0x693   : > { %18728 = vmatprep.mubr.msk.f32.mxu0 %vm319_vm0, %v24105_v51  ;;  %v27501_v51 = vld [vmem:[#allocation4_spill] sm:$0xff] }
 0x696   : > { %18729 = vmatmul.mubr.msk.f32.gmra.mrb[48].mxu0 %vm319_vm0, %v24107_v17  ;;  %v27502_v17 = vld [vmem:[#allocation20_spill] sm:$0xff] }
 0x697   : > { %18731 = vmatprep.mubr.msk.f32.mxu0 %vm319_vm0, %v24128_v34  ;;  %v27500_v34 = vld [vmem:[#allocation15_spill] sm:$0xff] }
 0x69a   : > { %18732 = vmatmul.mubr.msk.f32.gmra.mrb[50].mxu0 %vm319_vm0, %v24130_v47  ;;  %v27503_v47 = vld [vmem:[#allocation5_spill] sm:$0xff] }
 0x69b   : > { %18734 = vmatprep.mubr.msk.f32.mxu0 %vm319_vm0, %v24151_v30  ;;  %v27499_v30 = vld [vmem:[#allocation32_spill] sm:$0xff] }
 0x69e   : > { %18735 = vmatmul.mubr.msk.f32.gmra.mrb[52].mxu0 %vm319_vm0, %v24153_v57  ;;  %v27504_v57 = vld [vmem:[#allocation21_spill] sm:$0xff] }
 0x69f   : > { %18737 = vmatprep.mubr.msk.f32.mxu0 %vm319_vm0, %v24174_v41  ;;  %v27492_v41 = vld [vmem:[#allocation50_spill] sm:$0xff] }
 0x6a2   : > { %18738 = vmatmul.mubr.msk.f32.gmra.mrb[54].mxu0 %vm319_vm0, %v24176_v28  ;;  %v27505_v28 = vld [vmem:[#allocation25_spill] sm:$0xff] }
 0x6a3   : > { %18740 = vmatprep.mubr.msk.f32.mxu0 %vm319_vm0, %v24196_v6  ;;  %v27506_v6 = vld [vmem:[#allocation31_spill] sm:$0xff] }
 0x6a6   : > { %18741 = vmatmul.mubr.msk.f32.gmra.mrb[56].mxu0 %vm319_vm0, %v24198_v48  ;;  %v27507_v48 = vld [vmem:[#allocation36_spill] sm:$0xff] }
 0x6a7   : > { %18743 = vmatprep.mubr.msk.f32.mxu0 %vm319_vm0, %v24216_v54  ;;  %v27508_v54 = vld [vmem:[#allocation38_spill] sm:$0xff] }
 0x6aa   : > { %18744 = vmatmul.mubr.msk.f32.gmra.mrb[58].mxu0 %vm319_vm0, %v24218_v13  ;;  %v27509_v13 = vld [vmem:[#allocation6_spill] sm:$0xff] }
 0x6ab   : > { %18746 = vmatprep.mubr.msk.f32.mxu0 %vm319_vm0, %v24584_v40  ;;  %v8491_v40 = vsel %vm615_vm2, %v8489_v46, %v8490_v53 }
 0x6ae   : > { %18747 = vmatmul.mubr.msk.f32.gmra.mrb[60].mxu0 %vm319_vm0, %v24588_v1  ;;  %v8493_v1 = vsel %vm615_vm2, %v8490_v53, %v8492_v18 }
 0x6af   : > { %18749 = vmatprep.mubr.msk.f32.mxu0 %vm319_vm0, %v24810_v61 }
 0x6b2   : > { %18750 = vmatmul.mubr.msk.f32.gmra.mrb[62].mxu0 %vm319_vm0, %v24816_v0 }
 0x6b3   : > { %18756 = vmatprep.mubr.msk.f32.mxu0 %vm319_vm0, %v23933_v7  ;;  %v27489_v7 = vld [vmem:[#allocation47_spill] sm:$0xff] }
 0x6b6   : > { %18757 = vmatmul.mubr.msk.f32.vlgmr.msra.gmra.mrb[32].mxu0 %vm319_vm0, %v23936_v24  ;;  %v27493_v24 = vld [vmem:[#allocation51_spill] sm:$0xff] }
 0x6b7   : > { %19899 = vmatpush3.bf16.msra.mxu0 %v19896_v37  ;;  %18759 = vmatprep.mubr.msk.f32.mxu0 %vm319_vm0, %v23956_v8  ;;  %v27494_v8 = vld [vmem:[#allocation52_spill] sm:$0xff]  ;;  %v11934_v37 = vld [vmem:[%s26899_s5 + $0x8] sm:$0xff] }
 0x6b8   : > { %19937 = vmatprep.subr.bf16.mxu0 %v19936_v38 }
 0x6ba   : > { %18760 = vmatmul.mubr.msk.f32.gmra.mrb[34].mxu0 %vm319_vm0, %v27455_v15 }
 0x6bb   : > { %18762 = vmatprep.mubr.msk.f32.mxu0 %vm319_vm0, %v27489_v7 }
 0x6be   : > { %18763 = vmatmul.mubr.msk.f32.gmra.mrb[36].mxu0 %vm319_vm0, %v27490_v23 }
 0x6bf   : > { %18765 = vmatprep.mubr.msk.f32.mxu0 %vm319_vm0, %v27491_v20 }
 0x6c2   : > { %18766 = vmatmul.mubr.msk.f32.gmra.mrb[38].mxu0 %vm319_vm0, %v27492_v41 }
 0x6c3   : > { %18768 = vmatprep.mubr.msk.f32.mxu0 %vm319_vm0, %v27493_v24 }
 0x6c6   : > { %18769 = vmatmul.mubr.msk.f32.gmra.mrb[40].mxu0 %vm319_vm0, %v27494_v8 }
 0x6c7   : > { %18771 = vmatprep.mubr.msk.f32.mxu0 %vm319_vm0, %v27495_v2 }
 0x6ca   : > { %18772 = vmatmul.mubr.msk.f32.gmra.mrb[42].mxu0 %vm319_vm0, %v27496_v10 }
 0x6cb   : > { %18774 = vmatprep.mubr.msk.f32.mxu0 %vm319_vm0, %v27497_v4 }
 0x6ce   : > { %18775 = vmatmul.mubr.msk.f32.gmra.mrb[44].mxu0 %vm319_vm0, %v27498_v33 }
 0x6cf   : > { %18777 = vmatprep.mubr.msk.f32.mxu0 %vm319_vm0, %v27499_v30 }
 0x6d2   : > { %18778 = vmatmul.mubr.msk.f32.gmra.mrb[46].mxu0 %vm319_vm0, %v27500_v34 }
 0x6d3   : > { %18780 = vmatprep.mubr.msk.f32.mxu0 %vm319_vm0, %v27501_v51 }
 0x6d6   : > { %18781 = vmatmul.mubr.msk.f32.gmra.mrb[48].mxu0 %vm319_vm0, %v27502_v17 }
 0x6d7   : > { %18783 = vmatprep.mubr.msk.f32.mxu0 %vm319_vm0, %v27503_v47 }
 0x6da   : > { %18784 = vmatmul.mubr.msk.f32.gmra.mrb[50].mxu0 %vm319_vm0, %v27504_v57 }
 0x6db   : > { %18786 = vmatprep.mubr.msk.f32.mxu0 %vm319_vm0, %v27505_v28 }
 0x6de   : > { %18787 = vmatmul.mubr.msk.f32.gmra.mrb[52].mxu0 %vm319_vm0, %v27506_v6 }
 0x6df   : > { %18789 = vmatprep.mubr.msk.f32.mxu0 %vm319_vm0, %v27474_v36  ;;  %v24964_v36 = vld [vmem:[#allocation3] sm:$0xff] }
 0x6e2   : > { %18790 = vmatmul.mubr.msk.f32.gmra.mrb[54].mxu0 %vm319_vm0, %v27507_v48 }
 0x6e3   : > { %18792 = vmatprep.mubr.msk.f32.mxu0 %vm319_vm0, %v27508_v54 }
 0x6e6   : > { %18793 = vmatmul.mubr.msk.f32.gmra.mrb[56].mxu0 %vm319_vm0, %v27509_v13 }
 0x6e7   : > { %18795 = vmatprep.mubr.msk.f32.mxu0 %vm319_vm0, %v27510_v49 }
 0x6ea   : > { %18796 = vmatmul.mubr.msk.f32.gmra.mrb[58].mxu0 %vm319_vm0, %v27479_v42 }
 0x6eb   : > { %18798 = vmatprep.mubr.msk.f32.mxu0 %vm319_vm0, %v24661_v52  ;;  %v24966_v52 = vld [vmem:[#allocation3 + $0x8] sm:$0xff] }
 0x6ec   : > { %v9245_v50 = vrot.slane %v24966_v52, 1 }
 0x6ee   : > { %18799 = vmatmul.mubr.msk.f32.gmra.mrb[60].mxu0 %vm319_vm0, %v24666_v58  ;;  %v9244_v58 = vrot.slane %v24964_v36, 1 }
 0x6ef   : > { %18801 = vmatprep.mubr.msk.f32.mxu0 %vm319_vm0, %v8491_v40 }
 0x6f2   : > { %18802 = vmatmul.mubr.msk.f32.gmra.mrb[62].mxu0 %vm319_vm0, %v8493_v1 }
 0x6f3   : > { %18808 = vmatprep.mubr.msk.f32.mxu0 %vm319_vm0, %v24339_v43  ;;  %v27511_v43 = vld [vmem:[#allocation12_spill] sm:$0xff] }
 0x6f6   : > { %18809 = vmatmul.mubr.msk.f32.vlgmr.msra.gmra.mrb[32].mxu0 %vm319_vm0, %v24346_v63  ;;  %v27512_v63 = vld [vmem:[#allocation44_spill] sm:$0xff] }
 0x6f7   : > { %18811 = vmatprep.mubr.msk.f32.mxu0 %vm319_vm0, %v24352_v35  ;;  %19939 = vmatpush3.bf16.msra.mxu0 %v19936_v38  ;;  %v27513_v35 = vld [vmem:[#allocation45_spill] sm:$0xff]  ;;  %v25012_v38 = vld [vmem:[%s26896_s2 + $0x2] ss:$0 sm:$0xff] }
 0x6fa   : > { %18812 = vmatmul.mubr.msk.f32.gmra.mrb[34].mxu0 %vm319_vm0, %v24359_v60  ;;  %v27514_v60 = vld [vmem:[#allocation14_spill] sm:$0xff] }
 0x6fb   : > { %18814 = vmatprep.mubr.msk.f32.mxu0 %vm319_vm0, %v24365_v9  ;;  %v27515_v9 = vld [vmem:[#allocation17_spill] sm:$0xff] }
 0x6fe   : > { %18815 = vmatmul.mubr.msk.f32.gmra.mrb[36].mxu0 %vm319_vm0, %v24372_v62  ;;  %v27516_v62 = vld [vmem:[#allocation18_spill] sm:$0xff] }
 0x6ff   : > { %18817 = vmatprep.mubr.msk.f32.mxu0 %vm319_vm0, %v27480_v31  ;;  %v24970_v31 = vld [vmem:[#allocation3 + $0x10] sm:$0x3] }
 0x702   : > { %18818 = vmatmul.mubr.msk.f32.gmra.mrb[38].mxu0 %vm319_vm0, %v24385_v55  ;;  %v27518_v55 = vld [vmem:[#allocation22_spill] sm:$0xff] }
 0x703   : > { %18820 = vmatprep.mubr.msk.f32.mxu0 %vm319_vm0, %v27481_v19  ;;  %v9247_v19 = vrot.slane %v24970_v31, 1 }
 0x706   : > { %18821 = vmatmul.mubr.msk.f32.gmra.mrb[40].mxu0 %vm319_vm0, %v24398_v3  ;;  %v27517_v3 = vld [vmem:[#allocation19_spill] sm:$0xff] }
 0x707   : > { %18823 = vmatprep.mubr.msk.f32.mxu0 %vm319_vm0, %v27482_v16  ;;  %v9248_v16 = vsel %vm615_vm2, %v9245_v50, %v9247_v19 }
 0x70a   : > { %18824 = vmatmul.mubr.msk.f32.gmra.mrb[42].mxu0 %vm319_vm0, %v24411_v26  ;;  %v27519_v26 = vld [vmem:[#allocation23_spill] sm:$0xff] }
 0x70b   : > { %18826 = vmatprep.mubr.msk.f32.mxu0 %vm319_vm0, %v27511_v43 }
 0x70e   : > { %18827 = vmatmul.mubr.msk.f32.gmra.mrb[44].mxu0 %vm319_vm0, %v24424_v21  ;;  %v8755_v21 = vrot.slane %v24810_v61, 2 }
 0x70f   : > { %18829 = vmatprep.mubr.msk.f32.mxu0 %vm319_vm0, %v27512_v63 }
 0x712   : > { %18830 = vmatmul.mubr.msk.f32.gmra.mrb[46].mxu0 %vm319_vm0, %v24437_v56  ;;  %v8756_v56 = vrot.slane %v24816_v0, 2  ;;  %v9181_v0 = vld [vmem:[%s26897_s3 + $0x20] sm:$0xff] }
 0x713   : > { %18832 = vmatprep.mubr.msk.f32.mxu0 %vm319_vm0, %v27485_v29  ;;  %v11933_v29 = vld [vmem:[%s26899_s5] sm:$0xff]  ;;  %v25000_v22 = vpack.c.bf16 %v9182_v5, %v9181_v0 }
 0x714   : > { %v8757_v15 = vsel %vm1274_vm3, %v8755_v21, %v8756_v56  ;;  %v19940_v61 = vpack.c.bf16 %v11934_v37, %v11933_v29 }
 0x716   : > { %18833 = vmatmul.mubr.msk.f32.gmra.mrb[48].mxu0 %vm319_vm0, %v27513_v35  ;;  %19941 = vmatprep.subr.bf16.mxu0 %v19940_v61 }
 0x717   : > { %18835 = vmatprep.mubr.msk.f32.mxu0 %vm319_vm0, %v27514_v60 }
 0x71a   : > { %18836 = vmatmul.mubr.msk.f32.gmra.mrb[50].mxu0 %vm319_vm0, %v24463_v25  ;;  %v27520_v25 = vld [vmem:[#allocation28_spill] sm:$0xff] }
 0x71b   : > { %18838 = vmatprep.mubr.msk.f32.mxu0 %vm319_vm0, %v27487_v27  ;;  %v9177_v27 = vld [vmem:[%s26897_s3] sm:$0xff] }
 0x71e   : > { %18839 = vmatmul.mubr.msk.f32.gmra.mrb[52].mxu0 %vm319_vm0, %v27515_v9 }
 0x71f   : > { %18841 = vmatprep.mubr.msk.f32.mxu0 %vm319_vm0, %v27516_v62 }
 0x722   : > { %18842 = vmatmul.mubr.msk.f32.gmra.mrb[54].mxu0 %vm319_vm0, %v24489_v32  ;;  %v8758_v32 = vrot.slane %v6300_v59, 2 }
 0x723   : > { %18844 = vmatprep.mubr.msk.f32.mxu0 %vm319_vm0, %v27517_v3 }
 0x724   : > { %v8759_v42 = vsel %vm1274_vm3, %v8756_v56, %v8758_v32 }
 0x726   : > { %18845 = vmatmul.mubr.msk.f32.gmra.mrb[56].mxu0 %vm319_vm0, %v27518_v55 }
 0x727   : > { %18847 = vmatprep.mubr.msk.f32.mxu0 %vm319_vm0, %v27519_v26 }
 0x72a   : > { %18848 = vmatmul.mubr.msk.f32.gmra.mrb[58].mxu0 %vm319_vm0, %v27520_v25 }
 0x72b   : > { %18850 = vmatprep.mubr.msk.f32.mxu0 %vm319_vm0, %v24739_v11  ;;  %v9178_v11 = vld [vmem:[%s26897_s3 + $0x8] sm:$0xff] }
 0x72c   : > { %v19904_v12 = vpack.c.bf16 %v9178_v11, %v9177_v27 }
 0x72e   : > { %18851 = vmatmul.mubr.msk.f32.gmra.mrb[60].mxu0 %vm319_vm0, %v24744_v39  ;;  %v9246_v39 = vsel %vm615_vm2, %v9244_v58, %v9245_v50  ;;  %19905 = vmatprep.subr.bf16.mxu1 %v19904_v12 }
 0x72f   : > { %18853 = vmatprep.mubr.msk.f32.mxu0 %vm319_vm0, %v8757_v15  ;;  %18860 = vmatprep.mubr.msk.f32.mxu1 %vm319_vm0, %v9246_v39 }
 0x730   : > { %18861 = vmatmul.mubr.msk.f32.vlgmr.msra.gmra.mrb[64].mxu1 %vm319_vm0, %v9248_v16 }
 0x731   : > { %19907 = vmatpush3.bf16.msra.mxu1 %v19904_v12 }
 0x732   : > { %18854 = vmatmul.mubr.msk.f32.gmra.mrb[62].mxu0 %vm319_vm0, %v8759_v42  ;;  %19909 = vmatprep.subr.bf16.mxu1 %v25000_v22 }
 0x733   : > { %19328 = vmatprep.mubr.msk.f32.mxu0 %vm319_vm0, %v9246_v39 }
 0x736   : > { %19329 = vmatmul.mubr.msk.f32.vlgmr.msra.gmra.mrb[64].mxu0 %vm319_vm0, %v9248_v16 }
 0x737   : > { %19943 = vmatpush3.bf16.msra.mxu0 %v19940_v61 }
 0x738   : > { %19945 = vmatprep.subr.bf16.mxu0 %v25005_v44 }
 0x7c9   : > { %v18810_v7 = vpop.f32.mrb[32].mxu0 }
 0x7ca   : > { %v9028_v23 = vadd.f32 %v18810_v7, %v25012_v38  ;;  %v8830_v20 = vpop.f32.mrb[33].mxu0 }
 0x7cb   : > { %v9027_v41 = vadd.f32 %v25012_v38, %v8830_v20 }
 0x7cc   : > { %v9060_v24 = vmax.f32 %v9028_v23, 0.0 }
 0x7cd   : > { %v9059_v8 = vmax.f32 %v9027_v41, 0.0  ;;  %v18813_v2 = vpop.f32.mrb[34].mxu0 }
 0x7ce   : > { %9092 = vst.msk [vmem:[#allocation3 + $0x21] sm:$0xff] %vm319_vm0, %v9060_v24  ;;  %v9030_v10 = vadd.f32 %v18813_v2, %v25012_v38  ;;  %v8840_v4 = vpop.f32.mrb[35].mxu0 }
 0x7cf   : > { %9091 = vst.msk [vmem:[#allocation3 + $0x19] sm:$0xff] %vm319_vm0, %v9059_v8  ;;  %v9029_v33 = vadd.f32 %v25012_v38, %v8840_v4 }
 0x7d0   : > { %v9062_v30 = vmax.f32 %v9030_v10, 0.0 }
 0x7d1   : > { %v9061_v34 = vmax.f32 %v9029_v33, 0.0  ;;  %v18816_v51 = vpop.f32.mrb[36].mxu0 }
 0x7d2   : > { %9094 = vst.msk [vmem:[#allocation3 + $0x39] sm:$0xff] %vm319_vm0, %v9062_v30  ;;  %v9032_v17 = vadd.f32 %v18816_v51, %v25012_v38  ;;  %v8850_v47 = vpop.f32.mrb[37].mxu0 }
 0x7d3   : > { %9093 = vst.msk [vmem:[#allocation3 + $0x31] sm:$0xff] %vm319_vm0, %v9061_v34  ;;  %v9031_v57 = vadd.f32 %v25012_v38, %v8850_v47 }
 0x7d4   : > { %v9064_v28 = vmax.f32 %v9032_v17, 0.0 }
 0x7d5   : > { %v9063_v6 = vmax.f32 %v9031_v57, 0.0  ;;  %v18819_v48 = vpop.f32.mrb[38].mxu0  ;;  %v25024_v54 = vld [vmem:[#allocation3 + $0x28] sm:$0x3] }
 0x7d6   : > { %9096 = vst.msk [vmem:[#allocation3 + $0x51] sm:$0xff] %vm319_vm0, %v9064_v28  ;;  %v9034_v13 = vadd.f32 %v18819_v48, %v25012_v38  ;;  %v8860_v49 = vpop.f32.mrb[39].mxu0  ;;  %v25028_v46 = vld [vmem:[#allocation3 + $0x18] sm:$0xff]  ;;  %v25030_v53 = vld [vmem:[#allocation3 + $0x20] sm:$0xff]  ;;  %v9252_v59 = vrot.slane %v25024_v54, 1 }
 0x7d7   : > { %9095 = vst.msk [vmem:[#allocation3 + $0x49] sm:$0xff] %vm319_vm0, %v9063_v6  ;;  %v9033_v18 = vadd.f32 %v25012_v38, %v8860_v49  ;;  %v9249_v40 = vrot.slane %v25028_v46, 1  ;;  %v9250_v1 = vrot.slane %v25030_v53, 1 }
 0x7d8   : > { %v9066_v43 = vmax.f32 %v9034_v13, 0.0 }
 0x7d9   : > { %v9065_v63 = vmax.f32 %v9033_v18, 0.0  ;;  %v18822_v35 = vpop.f32.mrb[40].mxu0  ;;  %v25038_v60 = vsel %vm615_vm2, %v9249_v40, %v9250_v1  ;;  %v25041_v9 = vsel %vm615_vm2, %v9250_v1, %v9252_v59  ;;  %v25043_v62 = vld [vmem:[#allocation3 + $0x40] sm:$0x3] }
 0x7da   : > { %9098 = vst.msk [vmem:[#allocation3 + $0x69] sm:$0xff] %vm319_vm0, %v9066_v43  ;;  %v9036_v3 = vadd.f32 %v18822_v35, %v25012_v38  ;;  %v8870_v55 = vpop.f32.mrb[41].mxu0  ;;  %18863 = vmatprep.mubr.msk.f32.mxu1 %vm319_vm0, %v25038_v60  ;;  %19331 = vmatprep.mubr.msk.f32.mxu0 %vm319_vm0, %v25038_v60  ;;  %v25051_v26 = vld [vmem:[#allocation3 + $0x30] sm:$0xff]  ;;  %v25053_v21 = vld [vmem:[#allocation3 + $0x38] sm:$0xff]  ;;  %v9257_v56 = vrot.slane %v25043_v62, 1 }
 0x7db   : > { %9097 = vst.msk [vmem:[#allocation3 + $0x61] sm:$0xff] %vm319_vm0, %v9065_v63  ;;  %v9035_v25 = vadd.f32 %v25012_v38, %v8870_v55  ;;  %18864 = vmatmul.mubr.msk.f32.gmra.mrb[66].mxu1 %vm319_vm0, %v25041_v9  ;;  %19332 = vmatmul.mubr.msk.f32.gmra.mrb[66].mxu0 %vm319_vm0, %v25041_v9  ;;  %v9254_v32 = vrot.slane %v25051_v26, 1  ;;  %v9255_v15 = vrot.slane %v25053_v21, 1 }
 0x7dc   : > { %v9068_v42 = vmax.f32 %v9036_v3, 0.0 }
 0x7dd   : > { %v9067_v58 = vmax.f32 %v9035_v25, 0.0  ;;  %v18825_v50 = vpop.f32.mrb[42].mxu0  ;;  %v25065_v19 = vsel %vm615_vm2, %v9254_v32, %v9255_v15  ;;  %v25068_v39 = vsel %vm615_vm2, %v9255_v15, %v9257_v56  ;;  %v25070_v16 = vld [vmem:[#allocation3 + $0x58] sm:$0x3] }
 0x7de   : > { %27521 = vst [vmem:[#allocation30_spill] sm:$0xff] %v25068_v39  ;;  %9100 = vst.msk [vmem:[#allocation3 + $0x81] sm:$0xff] %vm319_vm0, %v9068_v42  ;;  %v9038_v27 = vadd.f32 %v18825_v50, %v25012_v38  ;;  %v8880_v11 = vpop.f32.mrb[43].mxu0  ;;  %18866 = vmatprep.mubr.msk.f32.mxu1 %vm319_vm0, %v25065_v19  ;;  %19334 = vmatprep.mubr.msk.f32.mxu0 %vm319_vm0, %v25065_v19  ;;  %v25078_v29 = vld [vmem:[#allocation3 + $0x48] sm:$0xff]  ;;  %v25080_v12 = vld [vmem:[#allocation3 + $0x50] sm:$0xff]  ;;  %v9262_v37 = vrot.slane %v25070_v16, 1 }
 0x7df   : > { %9099 = vst.msk [vmem:[#allocation3 + $0x79] sm:$0xff] %vm319_vm0, %v9067_v58  ;;  %v9037_v61 = vadd.f32 %v25012_v38, %v8880_v11  ;;  %18867 = vmatmul.mubr.msk.f32.gmra.mrb[68].mxu1 %vm319_vm0, %v25068_v39  ;;  %19335 = vmatmul.mubr.msk.f32.gmra.mrb[68].mxu0 %vm319_vm0, %v25068_v39  ;;  %v9259_v0 = vrot.slane %v25078_v29, 1  ;;  %v9260_v5 = vrot.slane %v25080_v12, 1  ;;  %v9912_v39 = vrot.slane %v25051_v26, 2 }
 0x7e0   : > { %v9070_v45 = vmax.f32 %v9038_v27, 0.0 }
 0x7e1   : > { %v9069_v14 = vmax.f32 %v9037_v61, 0.0  ;;  %v18828_v7 = vpop.f32.mrb[44].mxu0  ;;  %v25092_v23 = vsel %vm615_vm2, %v9259_v0, %v9260_v5  ;;  %v25095_v20 = vsel %vm615_vm2, %v9260_v5, %v9262_v37  ;;  %v25097_v41 = vld [vmem:[#allocation3 + $0x70] sm:$0x3] }
 0x7e2   : > { %27522 = vst [vmem:[#allocation33_spill] sm:$0xff] %v25092_v23  ;;  %27523 = vst [vmem:[#allocation35_spill] sm:$0xff] %v25095_v20  ;;  %v9040_v24 = vadd.f32 %v18828_v7, %v25012_v38  ;;  %v8890_v8 = vpop.f32.mrb[45].mxu0  ;;  %18869 = vmatprep.mubr.msk.f32.mxu1 %vm319_vm0, %v25092_v23  ;;  %19337 = vmatprep.mubr.msk.f32.mxu0 %vm319_vm0, %v25092_v23  ;;  %v25105_v2 = vld [vmem:[#allocation3 + $0x60] sm:$0xff]  ;;  %v25107_v10 = vld [vmem:[#allocation3 + $0x68] sm:$0xff]  ;;  %v9267_v4 = vrot.slane %v25097_v41, 1 }
 0x7e3   : > { %9102 = vst.msk [vmem:[#allocation3 + $0x99] sm:$0xff] %vm319_vm0, %v9070_v45  ;;  %9101 = vst.msk [vmem:[#allocation3 + $0x91] sm:$0xff] %vm319_vm0, %v9069_v14  ;;  %v9039_v33 = vadd.f32 %v25012_v38, %v8890_v8  ;;  %18870 = vmatmul.mubr.msk.f32.gmra.mrb[70].mxu1 %vm319_vm0, %v25095_v20  ;;  %19338 = vmatmul.mubr.msk.f32.gmra.mrb[70].mxu0 %vm319_vm0, %v25095_v20  ;;  %v9264_v30 = vrot.slane %v25105_v2, 1  ;;  %v9265_v34 = vrot.slane %v25107_v10, 1 }
 0x7e4   : > { %v9072_v51 = vmax.f32 %v9040_v24, 0.0 }
 0x7e5   : > { %v9071_v17 = vmax.f32 %v9039_v33, 0.0  ;;  %v18831_v47 = vpop.f32.mrb[46].mxu0  ;;  %v25119_v57 = vsel %vm615_vm2, %v9264_v30, %v9265_v34  ;;  %v25122_v28 = vsel %vm615_vm2, %v9265_v34, %v9267_v4  ;;  %v25124_v6 = vld [vmem:[#allocation3 + $0x88] sm:$0x3] }
 0x7e6   : > { %27524 = vst [vmem:[#allocation39_spill] sm:$0xff] %v25119_v57  ;;  %27525 = vst [vmem:[#allocation40_spill] sm:$0xff] %v25122_v28  ;;  %v9042_v48 = vadd.f32 %v18831_v47, %v25012_v38  ;;  %v8900_v13 = vpop.f32.mrb[47].mxu0  ;;  %18872 = vmatprep.mubr.msk.f32.mxu1 %vm319_vm0, %v25119_v57  ;;  %19340 = vmatprep.mubr.msk.f32.mxu0 %vm319_vm0, %v25119_v57  ;;  %v25132_v49 = vld [vmem:[#allocation3 + $0x78] sm:$0xff]  ;;  %v25134_v59 = vld [vmem:[#allocation3 + $0x80] sm:$0xff]  ;;  %v9272_v18 = vrot.slane %v25124_v6, 1 }
 0x7e7   : > { %9104 = vst.msk [vmem:[#allocation3 + $0xb1] sm:$0xff] %vm319_vm0, %v9072_v51  ;;  %9103 = vst.msk [vmem:[#allocation3 + $0xa9] sm:$0xff] %vm319_vm0, %v9071_v17  ;;  %v9041_v40 = vadd.f32 %v25012_v38, %v8900_v13  ;;  %18873 = vmatmul.mubr.msk.f32.gmra.mrb[72].mxu1 %vm319_vm0, %v25122_v28  ;;  %19341 = vmatmul.mubr.msk.f32.gmra.mrb[72].mxu0 %vm319_vm0, %v25122_v28  ;;  %v9269_v1 = vrot.slane %v25132_v49, 1  ;;  %v9270_v43 = vrot.slane %v25134_v59, 1  ;;  %v9910_v57 = vrot.slane %v25024_v54, 2 }
 0x7e8   : > { %v9074_v63 = vmax.f32 %v9042_v48, 0.0 }
 0x7e9   : > { %v9073_v35 = vmax.f32 %v9041_v40, 0.0  ;;  %v18834_v3 = vpop.f32.mrb[48].mxu0  ;;  %v25146_v55 = vsel %vm615_vm2, %v9269_v1, %v9270_v43  ;;  %v25149_v56 = vsel %vm615_vm2, %v9270_v43, %v9272_v18 }
 0x7ea   : > { %27526 = vst [vmem:[#allocation41_spill] sm:$0xff] %v25146_v55  ;;  %27527 = vst [vmem:[#allocation42_spill] sm:$0xff] %v25149_v56  ;;  %v25151_v25 = vld [vmem:[#allocation3 + $0xa0] sm:$0x3]  ;;  %v9044_v32 = vadd.f32 %v18834_v3, %v25012_v38  ;;  %v8910_v15 = vpop.f32.mrb[49].mxu0  ;;  %18875 = vmatprep.mubr.msk.f32.mxu1 %vm319_vm0, %v25146_v55  ;;  %19343 = vmatprep.mubr.msk.f32.mxu0 %vm319_vm0, %v25146_v55  ;;  %v25159_v42 = vld [vmem:[#allocation3 + $0x90] sm:$0xff] }
 0x7eb   : > { %9106 = vst.msk [vmem:[#allocation3 + $0xc9] sm:$0xff] %vm319_vm0, %v9074_v63  ;;  %v25161_v58 = vld [vmem:[#allocation3 + $0x98] sm:$0xff]  ;;  %v9277_v50 = vrot.slane %v25151_v25, 1  ;;  %9105 = vst.msk [vmem:[#allocation3 + $0xc1] sm:$0xff] %vm319_vm0, %v9073_v35  ;;  %v9043_v27 = vadd.f32 %v25012_v38, %v8910_v15  ;;  %18876 = vmatmul.mubr.msk.f32.gmra.mrb[74].mxu1 %vm319_vm0, %v25149_v56  ;;  %19344 = vmatmul.mubr.msk.f32.gmra.mrb[74].mxu0 %vm319_vm0, %v25149_v56  ;;  %v9274_v11 = vrot.slane %v25159_v42, 1 }
 0x7ec   : > { %v9275_v37 = vrot.slane %v25161_v58, 1  ;;  %v9076_v61 = vmax.f32 %v9044_v32, 0.0 }
 0x7ed   : > { %v9075_v0 = vmax.f32 %v9043_v27, 0.0  ;;  %v18837_v5 = vpop.f32.mrb[50].mxu0 }
 0x7ee   : > { %v25173_v45 = vsel %vm615_vm2, %v9274_v11, %v9275_v37  ;;  %v25176_v14 = vsel %vm615_vm2, %v9275_v37, %v9277_v50  ;;  %v25178_v7 = vld [vmem:[#allocation3 + $0xb8] sm:$0x3]  ;;  %9108 = vst.msk [vmem:[#allocation3 + $0xe1] sm:$0xff] %vm319_vm0, %v9076_v61  ;;  %v9046_v24 = vadd.f32 %v18837_v5, %v25012_v38  ;;  %v8920_v8 = vpop.f32.mrb[51].mxu0  ;;  %v25186_v4 = vld [vmem:[#allocation3 + $0xa8] sm:$0xff]  ;;  %v25188_v33 = vld [vmem:[#allocation3 + $0xb0] sm:$0xff] }
 0x7ef   : > { %27528 = vst [vmem:[#allocation43_spill] sm:$0xff] %v25173_v45  ;;  %27529 = vst [vmem:[#allocation46_spill] sm:$0xff] %v25176_v14  ;;  %18878 = vmatprep.mubr.msk.f32.mxu1 %vm319_vm0, %v25173_v45  ;;  %19346 = vmatprep.mubr.msk.f32.mxu0 %vm319_vm0, %v25173_v45  ;;  %v9282_v30 = vrot.slane %v25178_v7, 1  ;;  %v9045_v34 = vadd.f32 %v25012_v38, %v8920_v8  ;;  %v9279_v51 = vrot.slane %v25186_v4, 1  ;;  %v9280_v17 = vrot.slane %v25188_v33, 1 }
 0x7f0   : > { %9107 = vst.msk [vmem:[#allocation3 + $0xd9] sm:$0xff] %vm319_vm0, %v9075_v0  ;;  %18879 = vmatmul.mubr.msk.f32.gmra.mrb[76].mxu1 %vm319_vm0, %v25176_v14  ;;  %19347 = vmatmul.mubr.msk.f32.gmra.mrb[76].mxu0 %vm319_vm0, %v25176_v14  ;;  %v9078_v47 = vmax.f32 %v9046_v24, 0.0 }
 0x7f1   : > { %v9077_v48 = vmax.f32 %v9045_v34, 0.0  ;;  %v18840_v13 = vpop.f32.mrb[52].mxu0  ;;  %v25200_v18 = vsel %vm615_vm2, %v9279_v51, %v9280_v17  ;;  %v25203_v40 = vsel %vm615_vm2, %v9280_v17, %v9282_v30 }
 0x7f2   : > { %27530 = vst [vmem:[#allocation37_spill] sm:$0xff] %v25200_v18  ;;  %27531 = vst [vmem:[#allocation34_spill] sm:$0xff] %v25203_v40  ;;  %v25205_v1 = vld [vmem:[#allocation3 + $0xd0] sm:$0x3]  ;;  %v9048_v43 = vadd.f32 %v18840_v13, %v25012_v38  ;;  %v8930_v63 = vpop.f32.mrb[53].mxu0  ;;  %18881 = vmatprep.mubr.msk.f32.mxu1 %vm319_vm0, %v25200_v18  ;;  %19349 = vmatprep.mubr.msk.f32.mxu0 %vm319_vm0, %v25200_v18  ;;  %v25213_v35 = vld [vmem:[#allocation3 + $0xc0] sm:$0xff] }
 0x7f3   : > { %9110 = vst.msk [vmem:[#allocation3 + $0xf9] sm:$0xff] %vm319_vm0, %v9078_v47  ;;  %v25215_v3 = vld [vmem:[#allocation3 + $0xc8] sm:$0xff]  ;;  %v9287_v32 = vrot.slane %v25205_v1, 1  ;;  %9109 = vst.msk [vmem:[#allocation3 + $0xf1] sm:$0xff] %vm319_vm0, %v9077_v48  ;;  %v9047_v15 = vadd.f32 %v25012_v38, %v8930_v63  ;;  %v9284_v50 = vrot.slane %v25213_v35, 1 }
 0x7f4   : > { %18882 = vmatmul.mubr.msk.f32.gmra.mrb[78].mxu1 %vm319_vm0, %v25203_v40  ;;  %19350 = vmatmul.mubr.msk.f32.gmra.mrb[78].mxu0 %vm319_vm0, %v25203_v40  ;;  %v9285_v27 = vrot.slane %v25215_v3, 1  ;;  %v9080_v11 = vmax.f32 %v9048_v43, 0.0 }
 0x7f5   : > { %v9079_v37 = vmax.f32 %v9047_v15, 0.0  ;;  %v18843_v61 = vpop.f32.mrb[54].mxu0  ;;  %v25232_v24 = vld [vmem:[#allocation3 + $0xe8] sm:$0x3] }
 0x7f6   : > { %v25227_v0 = vsel %vm615_vm2, %v9284_v50, %v9285_v27  ;;  %v25230_v5 = vsel %vm615_vm2, %v9285_v27, %v9287_v32  ;;  %9112 = vst.msk [vmem:[#allocation3 + $0x111] sm:$0xff] %vm319_vm0, %v9080_v11  ;;  %v9050_v8 = vadd.f32 %v18843_v61, %v25012_v38  ;;  %v8940_v30 = vpop.f32.mrb[55].mxu0  ;;  %v9292_v17 = vrot.slane %v25232_v24, 1 }
 0x7f7   : > { %27532 = vst [vmem:[#allocation8_spill] sm:$0xff] %v25227_v0  ;;  %27533 = vst [vmem:[#allocation9_spill] sm:$0xff] %v25230_v5  ;;  %18884 = vmatprep.mubr.msk.f32.mxu1 %vm319_vm0, %v25227_v0  ;;  %19352 = vmatprep.mubr.msk.f32.mxu0 %vm319_vm0, %v25227_v0  ;;  %v25240_v34 = vld [vmem:[#allocation3 + $0xd8] sm:$0xff]  ;;  %v25242_v51 = vld [vmem:[#allocation3 + $0xe0] sm:$0xff]  ;;  %v9049_v47 = vadd.f32 %v25012_v38, %v8940_v30 }
 0x7f8   : > { %9111 = vst.msk [vmem:[#allocation3 + $0x109] sm:$0xff] %vm319_vm0, %v9079_v37  ;;  %18885 = vmatmul.mubr.msk.f32.gmra.mrb[80].mxu1 %vm319_vm0, %v25230_v5  ;;  %19353 = vmatmul.mubr.msk.f32.gmra.mrb[80].mxu0 %vm319_vm0, %v25230_v5  ;;  %v9289_v48 = vrot.slane %v25240_v34, 1  ;;  %v9290_v13 = vrot.slane %v25242_v51, 1  ;;  %v9082_v43 = vmax.f32 %v9050_v8, 0.0 }
 0x7f9   : > { %v9081_v63 = vmax.f32 %v9049_v47, 0.0  ;;  %v18846_v32 = vpop.f32.mrb[56].mxu0 }
 0x7fa   : > { %v25254_v15 = vsel %vm615_vm2, %v9289_v48, %v9290_v13  ;;  %v25257_v50 = vsel %vm615_vm2, %v9290_v13, %v9292_v17  ;;  %v25259_v27 = vld [vmem:[#allocation3 + $0x100] sm:$0x3]  ;;  %9114 = vst.msk [vmem:[#allocation3 + $0x129] sm:$0xff] %vm319_vm0, %v9082_v43  ;;  %v9052_v11 = vadd.f32 %v18846_v32, %v25012_v38  ;;  %v8950_v37 = vpop.f32.mrb[57].mxu0  ;;  %v25267_v61 = vld [vmem:[#allocation3 + $0xf0] sm:$0xff]  ;;  %v25269_v8 = vld [vmem:[#allocation3 + $0xf8] sm:$0xff] }
 0x7fb   : > { %27534 = vst [vmem:[#allocation10_spill] sm:$0xff] %v25254_v15  ;;  %27535 = vst [vmem:[#allocation11_spill] sm:$0xff] %v25257_v50  ;;  %18887 = vmatprep.mubr.msk.f32.mxu1 %vm319_vm0, %v25254_v15  ;;  %19355 = vmatprep.mubr.msk.f32.mxu0 %vm319_vm0, %v25254_v15  ;;  %v9297_v30 = vrot.slane %v25259_v27, 1  ;;  %v9051_v17 = vadd.f32 %v25012_v38, %v8950_v37  ;;  %v9294_v47 = vrot.slane %v25267_v61, 1  ;;  %v9295_v48 = vrot.slane %v25269_v8, 1 }
 0x7fc   : > { %9113 = vst.msk [vmem:[#allocation3 + $0x121] sm:$0xff] %vm319_vm0, %v9081_v63  ;;  %18888 = vmatmul.mubr.msk.f32.gmra.mrb[82].mxu1 %vm319_vm0, %v25257_v50  ;;  %19356 = vmatmul.mubr.msk.f32.gmra.mrb[82].mxu0 %vm319_vm0, %v25257_v50  ;;  %v9084_v13 = vmax.f32 %v9052_v11, 0.0 }
 0x7fd   : > { %v9083_v43 = vmax.f32 %v9051_v17, 0.0  ;;  %v18849_v32 = vpop.f32.mrb[58].mxu0  ;;  %v25281_v15 = vsel %vm615_vm2, %v9294_v47, %v9295_v48  ;;  %v25284_v63 = vsel %vm615_vm2, %v9295_v48, %v9297_v30  ;;  %v25286_v37 = vld [vmem:[#allocation3 + $0x118] sm:$0x3] }
 0x7fe   : > { %27536 = vst [vmem:[#allocation13_spill] sm:$0xff] %v25281_v15  ;;  %27537 = vst [vmem:[#allocation16_spill] sm:$0xff] %v25284_v63  ;;  %v9054_v5 = vadd.f32 %v18849_v32, %v25012_v38  ;;  %v8960_v50 = vpop.f32.mrb[59].mxu0  ;;  %18890 = vmatprep.mubr.msk.f32.mxu1 %vm319_vm0, %v25281_v15  ;;  %19358 = vmatprep.mubr.msk.f32.mxu0 %vm319_vm0, %v25281_v15  ;;  %v9302_v30 = vrot.slane %v25286_v37, 1 }
 0x7ff   : > { %9116 = vst.msk [vmem:[#allocation3 + $0x141] sm:$0xff] %vm319_vm0, %v9084_v13  ;;  %v25294_v11 = vld [vmem:[#allocation3 + $0x108] sm:$0xff]  ;;  %v25296_v17 = vld [vmem:[#allocation3 + $0x110] sm:$0xff]  ;;  %9115 = vst.msk [vmem:[#allocation3 + $0x139] sm:$0xff] %vm319_vm0, %v9083_v43  ;;  %v9053_v47 = vadd.f32 %v25012_v38, %v8960_v50 }
 0x800   : > { %18891 = vmatmul.mubr.msk.f32.gmra.mrb[84].mxu1 %vm319_vm0, %v25284_v63  ;;  %19359 = vmatmul.mubr.msk.f32.gmra.mrb[84].mxu0 %vm319_vm0, %v25284_v63  ;;  %v9299_v48 = vrot.slane %v25294_v11, 1  ;;  %v9300_v13 = vrot.slane %v25296_v17, 1  ;;  %v9086_v32 = vmax.f32 %v9054_v5, 0.0 }
 0x801   : > { %v9085_v15 = vmax.f32 %v9053_v47, 0.0  ;;  %v18852_v0 = vpop.f32.mrb[60].mxu0  ;;  %v25313_v50 = vld [vmem:[#allocation3 + $0x130] sm:$0x3] }
 0x802   : > { %v25308_v40 = vsel %vm615_vm2, %v9299_v48, %v9300_v13  ;;  %v25311_v43 = vsel %vm615_vm2, %v9300_v13, %v9302_v30  ;;  %9118 = vst.msk [vmem:[#allocation3 + $0x159] sm:$0xff] %vm319_vm0, %v9086_v32  ;;  %v9056_v18 = vadd.f32 %v18852_v0, %v25012_v38  ;;  %v8970_v63 = vpop.f32.mrb[61].mxu0  ;;  %v9307_v30 = vrot.slane %v25313_v50, 1 }
 0x803   : > { %27538 = vst [vmem:[#allocation47_spill] sm:$0xff] %v25308_v40  ;;  %27539 = vst [vmem:[#allocation48_spill] sm:$0xff] %v25311_v43  ;;  %18893 = vmatprep.mubr.msk.f32.mxu1 %vm319_vm0, %v25308_v40  ;;  %19361 = vmatprep.mubr.msk.f32.mxu0 %vm319_vm0, %v25308_v40  ;;  %v25321_v5 = vld [vmem:[#allocation3 + $0x120] sm:$0xff]  ;;  %v25323_v47 = vld [vmem:[#allocation3 + $0x128] sm:$0xff]  ;;  %v9055_v48 = vadd.f32 %v25012_v38, %v8970_v63 }
 0x804   : > { %9117 = vst.msk [vmem:[#allocation3 + $0x151] sm:$0xff] %vm319_vm0, %v9085_v15  ;;  %18894 = vmatmul.mubr.msk.f32.gmra.mrb[86].mxu1 %vm319_vm0, %v25311_v43  ;;  %19362 = vmatmul.mubr.msk.f32.gmra.mrb[86].mxu0 %vm319_vm0, %v25311_v43  ;;  %v9304_v0 = vrot.slane %v25321_v5, 1  ;;  %v9305_v13 = vrot.slane %v25323_v47, 1  ;;  %v9088_v32 = vmax.f32 %v9056_v18, 0.0 }
 0x805   : > { %v9087_v40 = vmax.f32 %v9055_v48, 0.0  ;;  %v18855_v14 = vpop.f32.mrb[62].mxu0 }
 0x806   : > { %v25335_v45 = vsel %vm615_vm2, %v9304_v0, %v9305_v13  ;;  %v25338_v15 = vsel %vm615_vm2, %v9305_v13, %v9307_v30  ;;  %v25340_v63 = vld [vmem:[#allocation3 + $0x148] sm:$0x3]  ;;  %9120 = vst.msk [vmem:[#allocation3 + $0x171] sm:$0xff] %vm319_vm0, %v9088_v32  ;;  %v9058_v56 = vadd.f32 %v18855_v14, %v25012_v38  ;;  %v8980_v43 = vpop.f32.mrb[63].mxu0  ;;  %v25348_v18 = vld [vmem:[#allocation3 + $0x138] sm:$0xff]  ;;  %v25350_v48 = vld [vmem:[#allocation3 + $0x140] sm:$0xff] }
 0x807   : > { %27540 = vst [vmem:[#allocation49_spill] sm:$0xff] %v25335_v45  ;;  %27541 = vst [vmem:[#allocation50_spill] sm:$0xff] %v25338_v15  ;;  %18896 = vmatprep.mubr.msk.f32.mxu1 %vm319_vm0, %v25335_v45  ;;  %19364 = vmatprep.mubr.msk.f32.mxu0 %vm319_vm0, %v25335_v45  ;;  %v9312_v30 = vrot.slane %v25340_v63, 1  ;;  %v9057_v0 = vadd.f32 %v25012_v38, %v8980_v43  ;;  %v9309_v14 = vrot.slane %v25348_v18, 1  ;;  %v9310_v13 = vrot.slane %v25350_v48, 1 }
 0x808   : > { %9119 = vst.msk [vmem:[#allocation3 + $0x169] sm:$0xff] %vm319_vm0, %v9087_v40  ;;  %18897 = vmatmul.mubr.msk.f32.gmra.mrb[88].mxu1 %vm319_vm0, %v25338_v15  ;;  %19365 = vmatmul.mubr.msk.f32.gmra.mrb[88].mxu0 %vm319_vm0, %v25338_v15  ;;  %v9090_v32 = vmax.f32 %v9058_v56, 0.0  ;;  %v9908_v15 = vrot.slane %v25030_v53, 2 }
 0x809   : > { %v9089_v45 = vmax.f32 %v9057_v0, 0.0  ;;  %v25362_v55 = vsel %vm615_vm2, %v9309_v14, %v9310_v13  ;;  %v25365_v28 = vsel %vm615_vm2, %v9310_v13, %v9312_v30  ;;  %v25367_v40 = vld [vmem:[#allocation3 + $0x160] sm:$0x3] }
 0x80a   : > { %27542 = vst [vmem:[#allocation51_spill] sm:$0xff] %v25362_v55  ;;  %27543 = vst [vmem:[#allocation52_spill] sm:$0xff] %v25365_v28  ;;  %18899 = vmatprep.mubr.msk.f32.mxu1 %vm319_vm0, %v25362_v55  ;;  %19367 = vmatprep.mubr.msk.f32.mxu0 %vm319_vm0, %v25362_v55  ;;  %v9317_v43 = vrot.slane %v25367_v40, 1  ;;  %v25611_v54 = vsel %vm1274_vm3, %v9908_v15, %v9910_v57  ;;  %v9918_v57 = vrot.slane %v25080_v12, 2 }
 0x80b   : > { %9122 = vst.msk [vmem:[#allocation3 + $0x189] sm:$0xff] %vm319_vm0, %v9090_v32  ;;  %v25374_v38 = vld [vmem:[#allocation3 + $0x150] sm:$0xff]  ;;  %v25376_v56 = vld [vmem:[#allocation3 + $0x158] sm:$0xff]  ;;  %9121 = vst.msk [vmem:[#allocation3 + $0x181] sm:$0xff] %vm319_vm0, %v9089_v45 }
 0x80c   : > { %18900 = vmatmul.mubr.msk.f32.gmra.mrb[90].mxu1 %vm319_vm0, %v25365_v28  ;;  %19368 = vmatmul.mubr.msk.f32.gmra.mrb[90].mxu0 %vm319_vm0, %v25365_v28  ;;  %v9314_v30 = vrot.slane %v25374_v38, 1  ;;  %v9315_v0 = vrot.slane %v25376_v56, 1 }
 0x80d   : > { %v25392_v32 = vld [vmem:[#allocation3 + $0x178] sm:$0x3] }
 0x80e   : > { %v25387_v14 = vsel %vm615_vm2, %v9314_v30, %v9315_v0  ;;  %v25390_v13 = vsel %vm615_vm2, %v9315_v0, %v9317_v43  ;;  %v9322_v55 = vrot.slane %v25392_v32, 1 }
 0x80f   : > { %27544 = vst [vmem:[#allocation24_spill] sm:$0xff] %v25387_v14  ;;  %27545 = vst [vmem:[#allocation26_spill] sm:$0xff] %v25390_v13  ;;  %18902 = vmatprep.mubr.msk.f32.mxu1 %vm319_vm0, %v25387_v14  ;;  %19370 = vmatprep.mubr.msk.f32.mxu0 %vm319_vm0, %v25387_v14  ;;  %v25398_v45 = vld [vmem:[#allocation3 + $0x168] sm:$0xff]  ;;  %v25400_v28 = vld [vmem:[#allocation3 + $0x170] sm:$0xff] }
 0x810   : > { %18903 = vmatmul.mubr.msk.f32.gmra.mrb[92].mxu1 %vm319_vm0, %v25390_v13  ;;  %19371 = vmatmul.mubr.msk.f32.gmra.mrb[92].mxu0 %vm319_vm0, %v25390_v13  ;;  %v9319_v43 = vrot.slane %v25398_v45, 1  ;;  %v9320_v30 = vrot.slane %v25400_v28, 1  ;;  %v9183_v13 = vld [vmem:[%s26897_s3 + $0x30] sm:$0xff] }
 0x812   : > { %v25410_v0 = vsel %vm615_vm2, %v9319_v43, %v9320_v30  ;;  %v25413_v14 = vsel %vm615_vm2, %v9320_v30, %v9322_v55  ;;  %v9184_v55 = vld [vmem:[%s26897_s3 + $0x38] sm:$0xff]  ;;  %v11939_v43 = vld [vmem:[%s26899_s5 + $0x30] sm:$0xff] }
 0x813   : > { %27546 = vst [vmem:[#allocation27_spill] sm:$0xff] %v25410_v0  ;;  %27547 = vst [vmem:[#allocation29_spill] sm:$0xff] %v25413_v14  ;;  %18905 = vmatprep.mubr.msk.f32.mxu1 %vm319_vm0, %v25410_v0  ;;  %19373 = vmatprep.mubr.msk.f32.mxu0 %vm319_vm0, %v25410_v0  ;;  %v11940_v30 = vld [vmem:[%s26899_s5 + $0x38] sm:$0xff]  ;;  %v25439_v0 = vpack.c.bf16 %v9184_v55, %v9183_v13  ;;  %v9905_v13 = vrot.slane %v24970_v31, 2  ;;  %v11941_v31 = vld [vmem:[%s26899_s5 + $0x40] sm:$0xff] }
 0x814   : > { %18906 = vmatmul.mubr.msk.f32.gmra.mrb[94].mxu1 %vm319_vm0, %v25413_v14  ;;  %19374 = vmatmul.mubr.msk.f32.gmra.mrb[94].mxu0 %vm319_vm0, %v25413_v14  ;;  %v25441_v14 = vpack.c.bf16 %v11940_v30, %v11939_v43  ;;  %v11942_v43 = vld [vmem:[%s26899_s5 + $0x48] sm:$0xff] }
 0x815   : > { %18912 = vmatprep.mubr.msk.f32.mxu1 %vm319_vm0, %v24964_v36  ;;  %19380 = vmatprep.mubr.msk.f32.mxu0 %vm319_vm0, %v24964_v36  ;;  %v25595_v23 = vpack.c.bf16 %v11942_v43, %v11941_v31  ;;  %v9927_v31 = vrot.slane %v25132_v49, 2  ;;  %v9928_v43 = vrot.slane %v25134_v59, 2 }
 0x818   : > { %18913 = vmatmul.mubr.msk.f32.vlgmr.msra.gmra.mrb[64].mxu1 %vm319_vm0, %v24966_v52  ;;  %19381 = vmatmul.mubr.msk.f32.vlgmr.msra.gmra.mrb[64].mxu0 %vm319_vm0, %v24966_v52 }
 0x819   : > { %19911 = vmatpush3.bf16.msra.mxu1 %v25000_v22  ;;  %19947 = vmatpush3.bf16.msra.mxu0 %v25005_v44  ;;  %v9902_v22 = vrot.slane %v24964_v36, 2  ;;  %v9903_v44 = vrot.slane %v24966_v52, 2  ;;  %v9185_v36 = vld [vmem:[%s26897_s3 + $0x40] sm:$0xff]  ;;  %v9186_v52 = vld [vmem:[%s26897_s3 + $0x48] sm:$0xff] }
 0x81a   : > { %18915 = vmatprep.mubr.msk.f32.mxu1 %vm319_vm0, %v25028_v46  ;;  %19383 = vmatprep.mubr.msk.f32.mxu0 %vm319_vm0, %v25028_v46  ;;  %v25593_v20 = vpack.c.bf16 %v9186_v52, %v9185_v36  ;;  %v9925_v36 = vrot.slane %v25097_v41, 2 }
 0x81b   : > { %19913 = vmatprep.subr.bf16.mxu1 %v25439_v0  ;;  %19949 = vmatprep.subr.bf16.mxu0 %v25441_v14  ;;  %v9904_v55 = vsel %vm1274_vm3, %v9902_v22, %v9903_v44  ;;  %v9906_v30 = vsel %vm1274_vm3, %v9903_v44, %v9905_v13  ;;  %v9907_v22 = vrot.slane %v25028_v46, 2  ;;  %v9922_v44 = vrot.slane %v25105_v2, 2 }
 0x81c   : > { %18916 = vmatmul.mubr.msk.f32.gmra.mrb[66].mxu1 %vm319_vm0, %v25030_v53  ;;  %19384 = vmatmul.mubr.msk.f32.gmra.mrb[66].mxu0 %vm319_vm0, %v25030_v53  ;;  %v9915_v53 = vrot.slane %v25043_v62, 2  ;;  %v9923_v13 = vrot.slane %v25107_v10, 2 }
 0x81d   : > { %18918 = vmatprep.mubr.msk.f32.mxu1 %vm319_vm0, %v25051_v26  ;;  %19386 = vmatprep.mubr.msk.f32.mxu0 %vm319_vm0, %v25051_v26  ;;  %v25604_v46 = vsel %vm1274_vm3, %v9907_v22, %v9908_v15  ;;  %v9920_v15 = vrot.slane %v25070_v16, 2  ;;  %v25672_v22 = vsel %vm1274_vm3, %v9927_v31, %v9928_v43  ;;  %v9942_v31 = vrot.slane %v25213_v35, 2 }
 0x81e   : > { %v25655_v52 = vsel %vm1274_vm3, %v9922_v44, %v9923_v13  ;;  %v25664_v41 = vsel %vm1274_vm3, %v9923_v13, %v9925_v36  ;;  %v9938_v44 = vrot.slane %v25188_v33, 2  ;;  %v9940_v13 = vrot.slane %v25178_v7, 2 }
 0x81f   : > { %v25647_v16 = vsel %vm1274_vm3, %v9918_v57, %v9920_v15  ;;  %v9937_v15 = vrot.slane %v25186_v4, 2 }
 0x820   : > { %18919 = vmatmul.mubr.msk.f32.gmra.mrb[68].mxu1 %vm319_vm0, %v25053_v21  ;;  %19387 = vmatmul.mubr.msk.f32.gmra.mrb[68].mxu0 %vm319_vm0, %v25053_v21  ;;  %v25715_v7 = vsel %vm1274_vm3, %v9938_v44, %v9940_v13  ;;  %v9952_v13 = vrot.slane %v25267_v61, 2 }
 0x821   : > { %18921 = vmatprep.mubr.msk.f32.mxu1 %vm319_vm0, %v25078_v29  ;;  %19389 = vmatprep.mubr.msk.f32.mxu0 %vm319_vm0, %v25078_v29  ;;  %v25706_v36 = vsel %vm1274_vm3, %v9937_v15, %v9938_v44  ;;  %v9950_v15 = vrot.slane %v25232_v24, 2 }
 0x824   : > { %18922 = vmatmul.mubr.msk.f32.gmra.mrb[70].mxu1 %vm319_vm0, %v25080_v12  ;;  %19390 = vmatmul.mubr.msk.f32.gmra.mrb[70].mxu0 %vm319_vm0, %v25080_v12 }
 0x825   : > { %18924 = vmatprep.mubr.msk.f32.mxu1 %vm319_vm0, %v25105_v2  ;;  %19392 = vmatprep.mubr.msk.f32.mxu0 %vm319_vm0, %v25105_v2 }
 0x828   : > { %18925 = vmatmul.mubr.msk.f32.gmra.mrb[72].mxu1 %vm319_vm0, %v25107_v10  ;;  %19393 = vmatmul.mubr.msk.f32.gmra.mrb[72].mxu0 %vm319_vm0, %v25107_v10 }
 0x829   : > { %18927 = vmatprep.mubr.msk.f32.mxu1 %vm319_vm0, %v25132_v49  ;;  %19395 = vmatprep.mubr.msk.f32.mxu0 %vm319_vm0, %v25132_v49 }
 0x82c   : > { %18928 = vmatmul.mubr.msk.f32.gmra.mrb[74].mxu1 %vm319_vm0, %v25134_v59  ;;  %19396 = vmatmul.mubr.msk.f32.gmra.mrb[74].mxu0 %vm319_vm0, %v25134_v59 }
 0x82d   : > { %18930 = vmatprep.mubr.msk.f32.mxu1 %vm319_vm0, %v25159_v42  ;;  %19398 = vmatprep.mubr.msk.f32.mxu0 %vm319_vm0, %v25159_v42 }
 0x830   : > { %18931 = vmatmul.mubr.msk.f32.gmra.mrb[76].mxu1 %vm319_vm0, %v25161_v58  ;;  %19399 = vmatmul.mubr.msk.f32.gmra.mrb[76].mxu0 %vm319_vm0, %v25161_v58 }
 0x831   : > { %18933 = vmatprep.mubr.msk.f32.mxu1 %vm319_vm0, %v25186_v4  ;;  %19401 = vmatprep.mubr.msk.f32.mxu0 %vm319_vm0, %v25186_v4 }
 0x834   : > { %18934 = vmatmul.mubr.msk.f32.gmra.mrb[78].mxu1 %vm319_vm0, %v25188_v33  ;;  %19402 = vmatmul.mubr.msk.f32.gmra.mrb[78].mxu0 %vm319_vm0, %v25188_v33 }
 0x835   : > { %18936 = vmatprep.mubr.msk.f32.mxu1 %vm319_vm0, %v25213_v35  ;;  %19404 = vmatprep.mubr.msk.f32.mxu0 %vm319_vm0, %v25213_v35 }
 0x838   : > { %18937 = vmatmul.mubr.msk.f32.gmra.mrb[80].mxu1 %vm319_vm0, %v25215_v3  ;;  %19405 = vmatmul.mubr.msk.f32.gmra.mrb[80].mxu0 %vm319_vm0, %v25215_v3 }
 0x839   : > { %18939 = vmatprep.mubr.msk.f32.mxu1 %vm319_vm0, %v25240_v34  ;;  %19407 = vmatprep.mubr.msk.f32.mxu0 %vm319_vm0, %v25240_v34 }
 0x83c   : > { %18940 = vmatmul.mubr.msk.f32.gmra.mrb[82].mxu1 %vm319_vm0, %v25242_v51  ;;  %19408 = vmatmul.mubr.msk.f32.gmra.mrb[82].mxu0 %vm319_vm0, %v25242_v51 }
 0x83d   : > { %18942 = vmatprep.mubr.msk.f32.mxu1 %vm319_vm0, %v25267_v61  ;;  %19410 = vmatprep.mubr.msk.f32.mxu0 %vm319_vm0, %v25267_v61 }
 0x840   : > { %18943 = vmatmul.mubr.msk.f32.gmra.mrb[84].mxu1 %vm319_vm0, %v25269_v8  ;;  %19411 = vmatmul.mubr.msk.f32.gmra.mrb[84].mxu0 %vm319_vm0, %v25269_v8 }
 0x841   : > { %18945 = vmatprep.mubr.msk.f32.mxu1 %vm319_vm0, %v25294_v11  ;;  %19413 = vmatprep.mubr.msk.f32.mxu0 %vm319_vm0, %v25294_v11 }
 0x844   : > { %18946 = vmatmul.mubr.msk.f32.gmra.mrb[86].mxu1 %vm319_vm0, %v25296_v17  ;;  %19414 = vmatmul.mubr.msk.f32.gmra.mrb[86].mxu0 %vm319_vm0, %v25296_v17 }
 0x845   : > { %18948 = vmatprep.mubr.msk.f32.mxu1 %vm319_vm0, %v25321_v5  ;;  %19416 = vmatprep.mubr.msk.f32.mxu0 %vm319_vm0, %v25321_v5 }
 0x848   : > { %18949 = vmatmul.mubr.msk.f32.gmra.mrb[88].mxu1 %vm319_vm0, %v25323_v47  ;;  %19417 = vmatmul.mubr.msk.f32.gmra.mrb[88].mxu0 %vm319_vm0, %v25323_v47 }
 0x849   : > { %18951 = vmatprep.mubr.msk.f32.mxu1 %vm319_vm0, %v25348_v18  ;;  %19419 = vmatprep.mubr.msk.f32.mxu0 %vm319_vm0, %v25348_v18 }
 0x84c   : > { %18952 = vmatmul.mubr.msk.f32.gmra.mrb[90].mxu1 %vm319_vm0, %v25350_v48  ;;  %19420 = vmatmul.mubr.msk.f32.gmra.mrb[90].mxu0 %vm319_vm0, %v25350_v48 }
 0x84d   : > { %18954 = vmatprep.mubr.msk.f32.mxu1 %vm319_vm0, %v25374_v38  ;;  %19422 = vmatprep.mubr.msk.f32.mxu0 %vm319_vm0, %v25374_v38 }
 0x850   : > { %18955 = vmatmul.mubr.msk.f32.gmra.mrb[92].mxu1 %vm319_vm0, %v25376_v56  ;;  %19423 = vmatmul.mubr.msk.f32.gmra.mrb[92].mxu0 %vm319_vm0, %v25376_v56 }
 0x851   : > { %18957 = vmatprep.mubr.msk.f32.mxu1 %vm319_vm0, %v25398_v45  ;;  %19425 = vmatprep.mubr.msk.f32.mxu0 %vm319_vm0, %v25398_v45 }
 0x854   : > { %18958 = vmatmul.mubr.msk.f32.gmra.mrb[94].mxu1 %vm319_vm0, %v25400_v28  ;;  %19426 = vmatmul.mubr.msk.f32.gmra.mrb[94].mxu0 %vm319_vm0, %v25400_v28 }
 0x855   : > { %18964 = vmatprep.mubr.msk.f32.mxu1 %vm319_vm0, %v9904_v55  ;;  %19432 = vmatprep.mubr.msk.f32.mxu0 %vm319_vm0, %v9904_v55  ;;  %v9913_v55 = vrot.slane %v25053_v21, 2 }
 0x857   : > { %v25630_v62 = vsel %vm1274_vm3, %v9913_v55, %v9915_v53  ;;  %v9933_v53 = vrot.slane %v25161_v58, 2 }
 0x858   : > { %18965 = vmatmul.mubr.msk.f32.vlgmr.msra.gmra.mrb[64].mxu1 %vm319_vm0, %v9906_v30  ;;  %19433 = vmatmul.mubr.msk.f32.vlgmr.msra.gmra.mrb[64].mxu0 %vm319_vm0, %v9906_v30  ;;  %v9930_v30 = vrot.slane %v25124_v6, 2 }
 0x859   : > { %19915 = vmatpush3.bf16.msra.mxu1 %v25439_v0  ;;  %19951 = vmatpush3.bf16.msra.mxu0 %v25441_v14  ;;  %v25621_v14 = vsel %vm1274_vm3, %v9912_v39, %v9913_v55  ;;  %v9917_v0 = vrot.slane %v25078_v29, 2  ;;  %v9932_v55 = vrot.slane %v25159_v42, 2 }
 0x85a   : > { %18967 = vmatprep.mubr.msk.f32.mxu1 %vm319_vm0, %v25604_v46  ;;  %19435 = vmatprep.mubr.msk.f32.mxu0 %vm319_vm0, %v25604_v46  ;;  %v25681_v6 = vsel %vm1274_vm3, %v9928_v43, %v9930_v30  ;;  %v9943_v43 = vrot.slane %v25215_v3, 2  ;;  %v9945_v30 = vrot.slane %v25205_v1, 2 }
 0x85b   : > { %19917 = vmatprep.subr.bf16.mxu1 %v25593_v20  ;;  %19953 = vmatprep.subr.bf16.mxu0 %v25595_v23  ;;  %v25638_v39 = vsel %vm1274_vm3, %v9917_v0, %v9918_v57  ;;  %v9935_v0 = vrot.slane %v25151_v25, 2  ;;  %v25689_v57 = vsel %vm1274_vm3, %v9932_v55, %v9933_v53 }
 0x85c   : > { %18968 = vmatmul.mubr.msk.f32.gmra.mrb[66].mxu1 %vm319_vm0, %v25611_v54  ;;  %19436 = vmatmul.mubr.msk.f32.gmra.mrb[66].mxu0 %vm319_vm0, %v25611_v54  ;;  %v25723_v55 = vsel %vm1274_vm3, %v9942_v31, %v9943_v43  ;;  %v25732_v1 = vsel %vm1274_vm3, %v9943_v43, %v9945_v30  ;;  %v9953_v31 = vrot.slane %v25269_v8, 2  ;;  %v9955_v43 = vrot.slane %v25259_v27, 2 }
 0x85d   : > { %18970 = vmatprep.mubr.msk.f32.mxu1 %vm319_vm0, %v25621_v14  ;;  %19438 = vmatprep.mubr.msk.f32.mxu0 %vm319_vm0, %v25621_v14  ;;  %v25698_v25 = vsel %vm1274_vm3, %v9933_v53, %v9935_v0  ;;  %v9947_v53 = vrot.slane %v25240_v34, 2  ;;  %v9948_v0 = vrot.slane %v25242_v51, 2  ;;  %27548 = vst [vmem:[#allocation32_spill] sm:$0xff] %v25732_v1 }
 0x85e   : > { %v25757_v30 = vsel %vm1274_vm3, %v9952_v13, %v9953_v31  ;;  %v25766_v27 = vsel %vm1274_vm3, %v9953_v31, %v9955_v43  ;;  %v9962_v13 = vrot.slane %v25321_v5, 2  ;;  %v9965_v31 = vrot.slane %v25313_v50, 2 }
 0x85f   : > { %v25740_v44 = vsel %vm1274_vm3, %v9947_v53, %v9948_v0  ;;  %v25749_v24 = vsel %vm1274_vm3, %v9948_v0, %v9950_v15  ;;  %v9957_v53 = vrot.slane %v25294_v11, 2  ;;  %27550 = vst [vmem:[#allocation4_spill] sm:$0xff] %v25766_v27  ;;  %v9960_v0 = vrot.slane %v25286_v37, 2 }
 0x860   : > { %18971 = vmatmul.mubr.msk.f32.gmra.mrb[68].mxu1 %vm319_vm0, %v25630_v62  ;;  %19439 = vmatmul.mubr.msk.f32.gmra.mrb[68].mxu0 %vm319_vm0, %v25630_v62  ;;  %27549 = vst [vmem:[#allocation15_spill] sm:$0xff] %v25749_v24 }
 0x861   : > { %18973 = vmatprep.mubr.msk.f32.mxu1 %vm319_vm0, %v25638_v39  ;;  %19441 = vmatprep.mubr.msk.f32.mxu0 %vm319_vm0, %v25638_v39 }
 0x864   : > { %18974 = vmatmul.mubr.msk.f32.gmra.mrb[70].mxu1 %vm319_vm0, %v25647_v16  ;;  %19442 = vmatmul.mubr.msk.f32.gmra.mrb[70].mxu0 %vm319_vm0, %v25647_v16 }
 0x865   : > { %18976 = vmatprep.mubr.msk.f32.mxu1 %vm319_vm0, %v25655_v52  ;;  %19444 = vmatprep.mubr.msk.f32.mxu0 %vm319_vm0, %v25655_v52 }
 0x868   : > { %18977 = vmatmul.mubr.msk.f32.gmra.mrb[72].mxu1 %vm319_vm0, %v25664_v41  ;;  %19445 = vmatmul.mubr.msk.f32.gmra.mrb[72].mxu0 %vm319_vm0, %v25664_v41 }
 0x869   : > { %18979 = vmatprep.mubr.msk.f32.mxu1 %vm319_vm0, %v25672_v22  ;;  %19447 = vmatprep.mubr.msk.f32.mxu0 %vm319_vm0, %v25672_v22 }
 0x86c   : > { %18980 = vmatmul.mubr.msk.f32.gmra.mrb[74].mxu1 %vm319_vm0, %v25681_v6  ;;  %19448 = vmatmul.mubr.msk.f32.gmra.mrb[74].mxu0 %vm319_vm0, %v25681_v6 }
 0x86d   : > { %18982 = vmatprep.mubr.msk.f32.mxu1 %vm319_vm0, %v25689_v57  ;;  %19450 = vmatprep.mubr.msk.f32.mxu0 %vm319_vm0, %v25689_v57 }
 0x870   : > { %18983 = vmatmul.mubr.msk.f32.gmra.mrb[76].mxu1 %vm319_vm0, %v25698_v25  ;;  %19451 = vmatmul.mubr.msk.f32.gmra.mrb[76].mxu0 %vm319_vm0, %v25698_v25 }
 0x871   : > { %18985 = vmatprep.mubr.msk.f32.mxu1 %vm319_vm0, %v25706_v36  ;;  %19453 = vmatprep.mubr.msk.f32.mxu0 %vm319_vm0, %v25706_v36 }
 0x874   : > { %18986 = vmatmul.mubr.msk.f32.gmra.mrb[78].mxu1 %vm319_vm0, %v25715_v7  ;;  %19454 = vmatmul.mubr.msk.f32.gmra.mrb[78].mxu0 %vm319_vm0, %v25715_v7 }
 0x875   : > { %18988 = vmatprep.mubr.msk.f32.mxu1 %vm319_vm0, %v25723_v55  ;;  %19456 = vmatprep.mubr.msk.f32.mxu0 %vm319_vm0, %v25723_v55 }
 0x878   : > { %18989 = vmatmul.mubr.msk.f32.gmra.mrb[80].mxu1 %vm319_vm0, %v25732_v1  ;;  %19457 = vmatmul.mubr.msk.f32.gmra.mrb[80].mxu0 %vm319_vm0, %v25732_v1  ;;  %v9958_v1 = vrot.slane %v25296_v17, 2 }
 0x879   : > { %18991 = vmatprep.mubr.msk.f32.mxu1 %vm319_vm0, %v25740_v44  ;;  %19459 = vmatprep.mubr.msk.f32.mxu0 %vm319_vm0, %v25740_v44 }
 0x87a   : > { %v25774_v15 = vsel %vm1274_vm3, %v9957_v53, %v9958_v1  ;;  %v25783_v37 = vsel %vm1274_vm3, %v9958_v1, %v9960_v0  ;;  %v9967_v53 = vrot.slane %v25348_v18, 2  ;;  %v9970_v1 = vrot.slane %v25340_v63, 2 }
 0x87b   : > { %27551 = vst [vmem:[#allocation20_spill] sm:$0xff] %v25783_v37 }
 0x87c   : > { %18992 = vmatmul.mubr.msk.f32.gmra.mrb[82].mxu1 %vm319_vm0, %v25749_v24  ;;  %19460 = vmatmul.mubr.msk.f32.gmra.mrb[82].mxu0 %vm319_vm0, %v25749_v24  ;;  %v9963_v24 = vrot.slane %v25323_v47, 2 }
 0x87d   : > { %18994 = vmatprep.mubr.msk.f32.mxu1 %vm319_vm0, %v25757_v30  ;;  %19462 = vmatprep.mubr.msk.f32.mxu0 %vm319_vm0, %v25757_v30 }
 0x87e   : > { %v25791_v43 = vsel %vm1274_vm3, %v9962_v13, %v9963_v24  ;;  %v25800_v50 = vsel %vm1274_vm3, %v9963_v24, %v9965_v31  ;;  %v9972_v13 = vrot.slane %v25374_v38, 2  ;;  %v9975_v24 = vrot.slane %v25367_v40, 2 }
 0x87f   : > { %27552 = vst [vmem:[#allocation5_spill] sm:$0xff] %v25800_v50 }
 0x880   : > { %18995 = vmatmul.mubr.msk.f32.gmra.mrb[84].mxu1 %vm319_vm0, %v25766_v27  ;;  %19463 = vmatmul.mubr.msk.f32.gmra.mrb[84].mxu0 %vm319_vm0, %v25766_v27  ;;  %v9968_v27 = vrot.slane %v25350_v48, 2 }
 0x881   : > { %18997 = vmatprep.mubr.msk.f32.mxu1 %vm319_vm0, %v25774_v15  ;;  %19465 = vmatprep.mubr.msk.f32.mxu0 %vm319_vm0, %v25774_v15 }
 0x882   : > { %v25808_v0 = vsel %vm1274_vm3, %v9967_v53, %v9968_v27  ;;  %v25817_v63 = vsel %vm1274_vm3, %v9968_v27, %v9970_v1  ;;  %v9977_v53 = vrot.slane %v25398_v45, 2  ;;  %v9980_v27 = vrot.slane %v25392_v32, 2  ;;  %v9187_v32 = vld [vmem:[%s26897_s3 + $0x50] sm:$0xff] }
 0x883   : > { %27553 = vst [vmem:[#allocation21_spill] sm:$0xff] %v25808_v0  ;;  %27554 = vst [vmem:[#allocation25_spill] sm:$0xff] %v25817_v63 }
 0x884   : > { %18998 = vmatmul.mubr.msk.f32.gmra.mrb[86].mxu1 %vm319_vm0, %v25783_v37  ;;  %19466 = vmatmul.mubr.msk.f32.gmra.mrb[86].mxu0 %vm319_vm0, %v25783_v37  ;;  %v9973_v37 = vrot.slane %v25376_v56, 2 }
 0x885   : > { %19000 = vmatprep.mubr.msk.f32.mxu1 %vm319_vm0, %v25791_v43  ;;  %19468 = vmatprep.mubr.msk.f32.mxu0 %vm319_vm0, %v25791_v43 }
 0x886   : > { %v25825_v31 = vsel %vm1274_vm3, %v9972_v13, %v9973_v37  ;;  %v25834_v40 = vsel %vm1274_vm3, %v9973_v37, %v9975_v24  ;;  %v9188_v13 = vld [vmem:[%s26897_s3 + $0x58] sm:$0xff]  ;;  %v11943_v24 = vld [vmem:[%s26899_s5 + $0x50] sm:$0xff] }
 0x887   : > { %27555 = vst [vmem:[#allocation31_spill] sm:$0xff] %v25825_v31  ;;  %27556 = vst [vmem:[#allocation36_spill] sm:$0xff] %v25834_v40 }
 0x888   : > { %19001 = vmatmul.mubr.msk.f32.gmra.mrb[88].mxu1 %vm319_vm0, %v25800_v50  ;;  %19469 = vmatmul.mubr.msk.f32.gmra.mrb[88].mxu0 %vm319_vm0, %v25800_v50  ;;  %v9978_v50 = vrot.slane %v25400_v28, 2 }
 0x889   : > { %19003 = vmatprep.mubr.msk.f32.mxu1 %vm319_vm0, %v25808_v0  ;;  %19471 = vmatprep.mubr.msk.f32.mxu0 %vm319_vm0, %v25808_v0 }
 0x88a   : > { %v25842_v1 = vsel %vm1274_vm3, %v9977_v53, %v9978_v50  ;;  %v25849_v37 = vsel %vm1274_vm3, %v9978_v50, %v9980_v27  ;;  %v11944_v50 = vld [vmem:[%s26899_s5 + $0x58] sm:$0xff]  ;;  %v21271_v53 = vld [vmem:[#allocation3 + $0x18] sm:$0xff]  ;;  %v25869_v27 = vpack.c.bf16 %v9188_v13, %v9187_v32  ;;  %v26137_v13 = vld [vmem:[#allocation3 + $0x190] sm:$0x3] }
 0x88b   : > { %27557 = vst [vmem:[#allocation38_spill] sm:$0xff] %v25842_v1  ;;  %27558 = vst [vmem:[#allocation6_spill] sm:$0xff] %v25849_v37 }
 0x88c   : > { %19004 = vmatmul.mubr.msk.f32.gmra.mrb[90].mxu1 %vm319_vm0, %v25817_v63  ;;  %19472 = vmatmul.mubr.msk.f32.gmra.mrb[90].mxu0 %vm319_vm0, %v25817_v63 }
 0x88d   : > { %19006 = vmatprep.mubr.msk.f32.mxu1 %vm319_vm0, %v25825_v31  ;;  %19474 = vmatprep.mubr.msk.f32.mxu0 %vm319_vm0, %v25825_v31 }
 0x890   : > { %19007 = vmatmul.mubr.msk.f32.gmra.mrb[92].mxu1 %vm319_vm0, %v25834_v40  ;;  %19475 = vmatmul.mubr.msk.f32.gmra.mrb[92].mxu0 %vm319_vm0, %v25834_v40 }
 0x891   : > { %19009 = vmatprep.mubr.msk.f32.mxu1 %vm319_vm0, %v25842_v1  ;;  %19477 = vmatprep.mubr.msk.f32.mxu0 %vm319_vm0, %v25842_v1  ;;  %v21272_v1 = vld [vmem:[#allocation3 + $0x20] sm:$0xff] }
 0x894   : > { %19010 = vmatmul.mubr.msk.f32.gmra.mrb[94].mxu1 %vm319_vm0, %v25849_v37  ;;  %19478 = vmatmul.mubr.msk.f32.gmra.mrb[94].mxu0 %vm319_vm0, %v25849_v37  ;;  %v25871_v37 = vpack.c.bf16 %v11944_v50, %v11943_v24  ;;  %v27584_v24 = vld [vmem:[#allocation27_spill] sm:$0xff]  ;;  %v10570_v50 = vrot.slane %v26137_v13, 1 }
 0x895   : > { %19016 = vmatprep.mubr.msk.f32.mxu1 %vm319_vm0, %v21271_v53  ;;  %19484 = vmatprep.mubr.msk.f32.mxu0 %vm319_vm0, %v21271_v53  ;;  %v27585_v53 = vld [vmem:[#allocation29_spill] sm:$0xff] }
 0x898   : > { %19017 = vmatmul.mubr.msk.f32.vlgmr.msra.gmra.mrb[64].mxu1 %vm319_vm0, %v21272_v1  ;;  %19485 = vmatmul.mubr.msk.f32.vlgmr.msra.gmra.mrb[64].mxu0 %vm319_vm0, %v21272_v1  ;;  %v27583_v1 = vld [vmem:[#allocation26_spill] sm:$0xff] }
 0x899   : > { %19919 = vmatpush3.bf16.msra.mxu1 %v25593_v20  ;;  %19955 = vmatpush3.bf16.msra.mxu0 %v25595_v23  ;;  %v11945_v23 = vld [vmem:[%s26899_s5 + $0x60] sm:$0xff]  ;;  %v11946_v20 = vld [vmem:[%s26899_s5 + $0x68] sm:$0xff] }
 0x89a   : > { %19019 = vmatprep.mubr.msk.f32.mxu1 %vm319_vm0, %v25051_v26  ;;  %19487 = vmatprep.mubr.msk.f32.mxu0 %vm319_vm0, %v25051_v26  ;;  %v25991_v26 = vld [vmem:[#allocation3 + $0x180] sm:$0xff] }
 0x89b   : > { %19921 = vmatprep.subr.bf16.mxu1 %v25869_v27  ;;  %19957 = vmatprep.subr.bf16.mxu0 %v25871_v37 }
 0x89c   : > { %19020 = vmatmul.mubr.msk.f32.gmra.mrb[66].mxu1 %vm319_vm0, %v25053_v21  ;;  %19488 = vmatmul.mubr.msk.f32.gmra.mrb[66].mxu0 %vm319_vm0, %v25053_v21  ;;  %v25997_v21 = vld [vmem:[#allocation3 + $0x188] sm:$0xff] }
 0x89d   : > { %19022 = vmatprep.mubr.msk.f32.mxu1 %vm319_vm0, %v25078_v29  ;;  %19490 = vmatprep.mubr.msk.f32.mxu0 %vm319_vm0, %v25078_v29  ;;  %v9189_v29 = vld [vmem:[%s26897_s3 + $0x60] sm:$0xff]  ;;  %v10568_v32 = vrot.slane %v25997_v21, 1 }
 0x8a0   : > { %19023 = vmatmul.mubr.msk.f32.gmra.mrb[68].mxu1 %vm319_vm0, %v25080_v12  ;;  %19491 = vmatmul.mubr.msk.f32.gmra.mrb[68].mxu0 %vm319_vm0, %v25080_v12  ;;  %v9190_v12 = vld [vmem:[%s26897_s3 + $0x68] sm:$0xff] }
 0x8a1   : > { %19025 = vmatprep.mubr.msk.f32.mxu1 %vm319_vm0, %v25105_v2  ;;  %19493 = vmatprep.mubr.msk.f32.mxu0 %vm319_vm0, %v25105_v2  ;;  %v26019_v2 = vpack.c.bf16 %v9190_v12, %v9189_v29  ;;  %v26156_v29 = vsel %vm615_vm2, %v10568_v32, %v10570_v50  ;;  %v9191_v12 = vld [vmem:[%s26897_s3 + $0x70] sm:$0xff] }
 0x8a4   : > { %19026 = vmatmul.mubr.msk.f32.gmra.mrb[70].mxu1 %vm319_vm0, %v25107_v10  ;;  %19494 = vmatmul.mubr.msk.f32.gmra.mrb[70].mxu0 %vm319_vm0, %v25107_v10  ;;  %v26021_v10 = vpack.c.bf16 %v11946_v20, %v11945_v23  ;;  %v9192_v23 = vld [vmem:[%s26897_s3 + $0x78] sm:$0xff]  ;;  %v11947_v20 = vld [vmem:[%s26899_s5 + $0x70] sm:$0xff] }
 0x8a5   : > { %19028 = vmatprep.mubr.msk.f32.mxu1 %vm319_vm0, %v25132_v49  ;;  %19496 = vmatprep.mubr.msk.f32.mxu0 %vm319_vm0, %v25132_v49  ;;  %v27562_v49 = vld [vmem:[#allocation39_spill] sm:$0xff] }
 0x8a8   : > { %19029 = vmatmul.mubr.msk.f32.gmra.mrb[72].mxu1 %vm319_vm0, %v25134_v59  ;;  %19497 = vmatmul.mubr.msk.f32.gmra.mrb[72].mxu0 %vm319_vm0, %v25134_v59  ;;  %v27563_v59 = vld [vmem:[#allocation40_spill] sm:$0xff] }
 0x8a9   : > { %19031 = vmatprep.mubr.msk.f32.mxu1 %vm319_vm0, %v25159_v42  ;;  %19499 = vmatprep.mubr.msk.f32.mxu0 %vm319_vm0, %v25159_v42  ;;  %v27564_v42 = vld [vmem:[#allocation41_spill] sm:$0xff] }
 0x8ac   : > { %19032 = vmatmul.mubr.msk.f32.gmra.mrb[74].mxu1 %vm319_vm0, %v25161_v58  ;;  %19500 = vmatmul.mubr.msk.f32.gmra.mrb[74].mxu0 %vm319_vm0, %v25161_v58  ;;  %v27565_v58 = vld [vmem:[#allocation42_spill] sm:$0xff] }
 0x8ad   : > { %19034 = vmatprep.mubr.msk.f32.mxu1 %vm319_vm0, %v25186_v4  ;;  %19502 = vmatprep.mubr.msk.f32.mxu0 %vm319_vm0, %v25186_v4  ;;  %v27566_v4 = vld [vmem:[#allocation43_spill] sm:$0xff] }
 0x8b0   : > { %19035 = vmatmul.mubr.msk.f32.gmra.mrb[76].mxu1 %vm319_vm0, %v25188_v33  ;;  %19503 = vmatmul.mubr.msk.f32.gmra.mrb[76].mxu0 %vm319_vm0, %v25188_v33  ;;  %v27567_v33 = vld [vmem:[#allocation46_spill] sm:$0xff] }
 0x8b1   : > { %19037 = vmatprep.mubr.msk.f32.mxu1 %vm319_vm0, %v25213_v35  ;;  %19505 = vmatprep.mubr.msk.f32.mxu0 %vm319_vm0, %v25213_v35  ;;  %v27568_v35 = vld [vmem:[#allocation37_spill] sm:$0xff] }
 0x8b4   : > { %19038 = vmatmul.mubr.msk.f32.gmra.mrb[78].mxu1 %vm319_vm0, %v25215_v3  ;;  %19506 = vmatmul.mubr.msk.f32.gmra.mrb[78].mxu0 %vm319_vm0, %v25215_v3  ;;  %v27569_v3 = vld [vmem:[#allocation34_spill] sm:$0xff] }
 0x8b5   : > { %19040 = vmatprep.mubr.msk.f32.mxu1 %vm319_vm0, %v25240_v34  ;;  %19508 = vmatprep.mubr.msk.f32.mxu0 %vm319_vm0, %v25240_v34  ;;  %v27570_v34 = vld [vmem:[#allocation8_spill] sm:$0xff] }
 0x8b8   : > { %19041 = vmatmul.mubr.msk.f32.gmra.mrb[80].mxu1 %vm319_vm0, %v25242_v51  ;;  %19509 = vmatmul.mubr.msk.f32.gmra.mrb[80].mxu0 %vm319_vm0, %v25242_v51  ;;  %v27571_v51 = vld [vmem:[#allocation9_spill] sm:$0xff] }
 0x8b9   : > { %19043 = vmatprep.mubr.msk.f32.mxu1 %vm319_vm0, %v25267_v61  ;;  %19511 = vmatprep.mubr.msk.f32.mxu0 %vm319_vm0, %v25267_v61  ;;  %v27572_v61 = vld [vmem:[#allocation10_spill] sm:$0xff] }
 0x8bc   : > { %19044 = vmatmul.mubr.msk.f32.gmra.mrb[82].mxu1 %vm319_vm0, %v25269_v8  ;;  %19512 = vmatmul.mubr.msk.f32.gmra.mrb[82].mxu0 %vm319_vm0, %v25269_v8  ;;  %v27573_v8 = vld [vmem:[#allocation11_spill] sm:$0xff] }
 0x8bd   : > { %19046 = vmatprep.mubr.msk.f32.mxu1 %vm319_vm0, %v25294_v11  ;;  %19514 = vmatprep.mubr.msk.f32.mxu0 %vm319_vm0, %v25294_v11  ;;  %v27574_v11 = vld [vmem:[#allocation13_spill] sm:$0xff] }
 0x8c0   : > { %19047 = vmatmul.mubr.msk.f32.gmra.mrb[84].mxu1 %vm319_vm0, %v25296_v17  ;;  %19515 = vmatmul.mubr.msk.f32.gmra.mrb[84].mxu0 %vm319_vm0, %v25296_v17  ;;  %v27575_v17 = vld [vmem:[#allocation16_spill] sm:$0xff] }
 0x8c1   : > { %19049 = vmatprep.mubr.msk.f32.mxu1 %vm319_vm0, %v25321_v5  ;;  %19517 = vmatprep.mubr.msk.f32.mxu0 %vm319_vm0, %v25321_v5  ;;  %v27576_v5 = vld [vmem:[#allocation47_spill] sm:$0xff] }
 0x8c4   : > { %19050 = vmatmul.mubr.msk.f32.gmra.mrb[86].mxu1 %vm319_vm0, %v25323_v47  ;;  %19518 = vmatmul.mubr.msk.f32.gmra.mrb[86].mxu0 %vm319_vm0, %v25323_v47  ;;  %v27577_v47 = vld [vmem:[#allocation48_spill] sm:$0xff] }
 0x8c5   : > { %19052 = vmatprep.mubr.msk.f32.mxu1 %vm319_vm0, %v25348_v18  ;;  %19520 = vmatprep.mubr.msk.f32.mxu0 %vm319_vm0, %v25348_v18  ;;  %v27578_v18 = vld [vmem:[#allocation49_spill] sm:$0xff] }
 0x8c8   : > { %19053 = vmatmul.mubr.msk.f32.gmra.mrb[88].mxu1 %vm319_vm0, %v25350_v48  ;;  %19521 = vmatmul.mubr.msk.f32.gmra.mrb[88].mxu0 %vm319_vm0, %v25350_v48  ;;  %v27579_v48 = vld [vmem:[#allocation50_spill] sm:$0xff] }
 0x8c9   : > { %19055 = vmatprep.mubr.msk.f32.mxu1 %vm319_vm0, %v25374_v38  ;;  %19523 = vmatprep.mubr.msk.f32.mxu0 %vm319_vm0, %v25374_v38  ;;  %v27580_v38 = vld [vmem:[#allocation51_spill] sm:$0xff] }
 0x8cc   : > { %19056 = vmatmul.mubr.msk.f32.gmra.mrb[90].mxu1 %vm319_vm0, %v25376_v56  ;;  %19524 = vmatmul.mubr.msk.f32.gmra.mrb[90].mxu0 %vm319_vm0, %v25376_v56  ;;  %v27581_v56 = vld [vmem:[#allocation52_spill] sm:$0xff] }
 0x8cd   : > { %19058 = vmatprep.mubr.msk.f32.mxu1 %vm319_vm0, %v25398_v45  ;;  %19526 = vmatprep.mubr.msk.f32.mxu0 %vm319_vm0, %v25398_v45  ;;  %v27582_v45 = vld [vmem:[#allocation24_spill] sm:$0xff] }
 0x8d0   : > { %19059 = vmatmul.mubr.msk.f32.gmra.mrb[92].mxu1 %vm319_vm0, %v25400_v28  ;;  %19527 = vmatmul.mubr.msk.f32.gmra.mrb[92].mxu0 %vm319_vm0, %v25400_v28  ;;  %v27561_v28 = vld [vmem:[#allocation35_spill] sm:$0xff] }
 0x8d1   : > { %19061 = vmatprep.mubr.msk.f32.mxu1 %vm319_vm0, %v25991_v26  ;;  %19529 = vmatprep.mubr.msk.f32.mxu0 %vm319_vm0, %v25991_v26 }
 0x8d4   : > { %19062 = vmatmul.mubr.msk.f32.gmra.mrb[94].mxu1 %vm319_vm0, %v25997_v21  ;;  %19530 = vmatmul.mubr.msk.f32.gmra.mrb[94].mxu0 %vm319_vm0, %v25997_v21 }
 0x8d5   : > { %19068 = vmatprep.mubr.msk.f32.mxu1 %vm319_vm0, %v25038_v60  ;;  %19536 = vmatprep.mubr.msk.f32.mxu0 %vm319_vm0, %v25038_v60  ;;  %v27559_v60 = vld [vmem:[#allocation30_spill] sm:$0xff] }
 0x8d8   : > { %19069 = vmatmul.mubr.msk.f32.vlgmr.msra.gmra.mrb[64].mxu1 %vm319_vm0, %v25041_v9  ;;  %19537 = vmatmul.mubr.msk.f32.vlgmr.msra.gmra.mrb[64].mxu0 %vm319_vm0, %v25041_v9  ;;  %v27560_v9 = vld [vmem:[#allocation33_spill] sm:$0xff] }
 0x8d9   : > { %19923 = vmatpush3.bf16.msra.mxu1 %v25869_v27  ;;  %19959 = vmatpush3.bf16.msra.mxu0 %v25871_v37  ;;  %v10567_v37 = vrot.slane %v25991_v26, 1 }
 0x8da   : > { %19071 = vmatprep.mubr.msk.f32.mxu1 %vm319_vm0, %v25065_v19  ;;  %19539 = vmatprep.mubr.msk.f32.mxu0 %vm319_vm0, %v25065_v19 }
 0x8db   : > { %19925 = vmatprep.subr.bf16.mxu1 %v26019_v2  ;;  %19961 = vmatprep.subr.bf16.mxu0 %v26021_v10  ;;  %v26149_v27 = vsel %vm615_vm2, %v10567_v37, %v10568_v32  ;;  %v11948_v37 = vld [vmem:[%s26899_s5 + $0x78] sm:$0xff]  ;;  %v26178_v32 = vpack.c.bf16 %v9192_v23, %v9191_v12  ;;  %v27590_v12 = vld [vmem:[#allocation5_spill] sm:$0xff]  ;;  %v10833_v23 = vrot.slane %v25991_v26, 2 }
 0x8dc   : > { %19072 = vmatmul.mubr.msk.f32.gmra.mrb[66].mxu1 %vm319_vm0, %v27559_v60  ;;  %19540 = vmatmul.mubr.msk.f32.gmra.mrb[66].mxu0 %vm319_vm0, %v27559_v60  ;;  %v26180_v50 = vpack.c.bf16 %v11948_v37, %v11947_v20  ;;  %v10834_v20 = vrot.slane %v25997_v21, 2  ;;  %v27591_v37 = vld [vmem:[#allocation38_spill] sm:$0xff] }
 0x8dd   : > { %19074 = vmatprep.mubr.msk.f32.mxu1 %vm319_vm0, %v27560_v9  ;;  %19542 = vmatprep.mubr.msk.f32.mxu0 %vm319_vm0, %v27560_v9 }
 0x8e0   : > { %19075 = vmatmul.mubr.msk.f32.gmra.mrb[68].mxu1 %vm319_vm0, %v27561_v28  ;;  %19543 = vmatmul.mubr.msk.f32.gmra.mrb[68].mxu0 %vm319_vm0, %v27561_v28 }
 0x8e1   : > { %19077 = vmatprep.mubr.msk.f32.mxu1 %vm319_vm0, %v27562_v49  ;;  %19545 = vmatprep.mubr.msk.f32.mxu0 %vm319_vm0, %v27562_v49 }
 0x8e4   : > { %19078 = vmatmul.mubr.msk.f32.gmra.mrb[70].mxu1 %vm319_vm0, %v27563_v59  ;;  %19546 = vmatmul.mubr.msk.f32.gmra.mrb[70].mxu0 %vm319_vm0, %v27563_v59 }
 0x8e5   : > { %19080 = vmatprep.mubr.msk.f32.mxu1 %vm319_vm0, %v27564_v42  ;;  %19548 = vmatprep.mubr.msk.f32.mxu0 %vm319_vm0, %v27564_v42 }
 0x8e8   : > { %19081 = vmatmul.mubr.msk.f32.gmra.mrb[72].mxu1 %vm319_vm0, %v27565_v58  ;;  %19549 = vmatmul.mubr.msk.f32.gmra.mrb[72].mxu0 %vm319_vm0, %v27565_v58 }
 0x8e9   : > { %19083 = vmatprep.mubr.msk.f32.mxu1 %vm319_vm0, %v27566_v4  ;;  %19551 = vmatprep.mubr.msk.f32.mxu0 %vm319_vm0, %v27566_v4 }
 0x8ec   : > { %19084 = vmatmul.mubr.msk.f32.gmra.mrb[74].mxu1 %vm319_vm0, %v27567_v33  ;;  %19552 = vmatmul.mubr.msk.f32.gmra.mrb[74].mxu0 %vm319_vm0, %v27567_v33 }
 0x8ed   : > { %19086 = vmatprep.mubr.msk.f32.mxu1 %vm319_vm0, %v27568_v35  ;;  %19554 = vmatprep.mubr.msk.f32.mxu0 %vm319_vm0, %v27568_v35 }
 0x8f0   : > { %19087 = vmatmul.mubr.msk.f32.gmra.mrb[76].mxu1 %vm319_vm0, %v27569_v3  ;;  %19555 = vmatmul.mubr.msk.f32.gmra.mrb[76].mxu0 %vm319_vm0, %v27569_v3 }
 0x8f1   : > { %19089 = vmatprep.mubr.msk.f32.mxu1 %vm319_vm0, %v27570_v34  ;;  %19557 = vmatprep.mubr.msk.f32.mxu0 %vm319_vm0, %v27570_v34 }
 0x8f4   : > { %19090 = vmatmul.mubr.msk.f32.gmra.mrb[78].mxu1 %vm319_vm0, %v27571_v51  ;;  %19558 = vmatmul.mubr.msk.f32.gmra.mrb[78].mxu0 %vm319_vm0, %v27571_v51 }
 0x8f5   : > { %19092 = vmatprep.mubr.msk.f32.mxu1 %vm319_vm0, %v27572_v61  ;;  %19560 = vmatprep.mubr.msk.f32.mxu0 %vm319_vm0, %v27572_v61 }
 0x8f8   : > { %19093 = vmatmul.mubr.msk.f32.gmra.mrb[80].mxu1 %vm319_vm0, %v27573_v8  ;;  %19561 = vmatmul.mubr.msk.f32.gmra.mrb[80].mxu0 %vm319_vm0, %v27573_v8 }
 0x8f9   : > { %19095 = vmatprep.mubr.msk.f32.mxu1 %vm319_vm0, %v27574_v11  ;;  %19563 = vmatprep.mubr.msk.f32.mxu0 %vm319_vm0, %v27574_v11 }
 0x8fc   : > { %19096 = vmatmul.mubr.msk.f32.gmra.mrb[82].mxu1 %vm319_vm0, %v27575_v17  ;;  %19564 = vmatmul.mubr.msk.f32.gmra.mrb[82].mxu0 %vm319_vm0, %v27575_v17 }
 0x8fd   : > { %19098 = vmatprep.mubr.msk.f32.mxu1 %vm319_vm0, %v27576_v5  ;;  %19566 = vmatprep.mubr.msk.f32.mxu0 %vm319_vm0, %v27576_v5 }
 0x900   : > { %19099 = vmatmul.mubr.msk.f32.gmra.mrb[84].mxu1 %vm319_vm0, %v27577_v47  ;;  %19567 = vmatmul.mubr.msk.f32.gmra.mrb[84].mxu0 %vm319_vm0, %v27577_v47 }
 0x901   : > { %19101 = vmatprep.mubr.msk.f32.mxu1 %vm319_vm0, %v27578_v18  ;;  %19569 = vmatprep.mubr.msk.f32.mxu0 %vm319_vm0, %v27578_v18 }
 0x904   : > { %19102 = vmatmul.mubr.msk.f32.gmra.mrb[86].mxu1 %vm319_vm0, %v27579_v48  ;;  %19570 = vmatmul.mubr.msk.f32.gmra.mrb[86].mxu0 %vm319_vm0, %v27579_v48 }
 0x905   : > { %19104 = vmatprep.mubr.msk.f32.mxu1 %vm319_vm0, %v27580_v38  ;;  %19572 = vmatprep.mubr.msk.f32.mxu0 %vm319_vm0, %v27580_v38 }
 0x908   : > { %19105 = vmatmul.mubr.msk.f32.gmra.mrb[88].mxu1 %vm319_vm0, %v27581_v56  ;;  %19573 = vmatmul.mubr.msk.f32.gmra.mrb[88].mxu0 %vm319_vm0, %v27581_v56 }
 0x909   : > { %19107 = vmatprep.mubr.msk.f32.mxu1 %vm319_vm0, %v27582_v45  ;;  %19575 = vmatprep.mubr.msk.f32.mxu0 %vm319_vm0, %v27582_v45 }
 0x90c   : > { %19108 = vmatmul.mubr.msk.f32.gmra.mrb[90].mxu1 %vm319_vm0, %v27583_v1  ;;  %19576 = vmatmul.mubr.msk.f32.gmra.mrb[90].mxu0 %vm319_vm0, %v27583_v1 }
 0x90d   : > { %19110 = vmatprep.mubr.msk.f32.mxu1 %vm319_vm0, %v27584_v24  ;;  %19578 = vmatprep.mubr.msk.f32.mxu0 %vm319_vm0, %v27584_v24 }
 0x910   : > { %19111 = vmatmul.mubr.msk.f32.gmra.mrb[92].mxu1 %vm319_vm0, %v27585_v53  ;;  %19579 = vmatmul.mubr.msk.f32.gmra.mrb[92].mxu0 %vm319_vm0, %v27585_v53 }
 0x911   : > { %19113 = vmatprep.mubr.msk.f32.mxu1 %vm319_vm0, %v26149_v27  ;;  %19581 = vmatprep.mubr.msk.f32.mxu0 %vm319_vm0, %v26149_v27 }
 0x914   : > { %19114 = vmatmul.mubr.msk.f32.gmra.mrb[94].mxu1 %vm319_vm0, %v26156_v29  ;;  %19582 = vmatmul.mubr.msk.f32.gmra.mrb[94].mxu0 %vm319_vm0, %v26156_v29 }
 0x915   : > { %19120 = vmatprep.mubr.msk.f32.mxu1 %vm319_vm0, %v25604_v46  ;;  %19588 = vmatprep.mubr.msk.f32.mxu0 %vm319_vm0, %v25604_v46  ;;  %v27586_v46 = vld [vmem:[#allocation32_spill] sm:$0xff] }
 0x918   : > { %19121 = vmatmul.mubr.msk.f32.vlgmr.msra.gmra.mrb[64].mxu1 %vm319_vm0, %v25611_v54  ;;  %19589 = vmatmul.mubr.msk.f32.vlgmr.msra.gmra.mrb[64].mxu0 %vm319_vm0, %v25611_v54  ;;  %v27587_v54 = vld [vmem:[#allocation15_spill] sm:$0xff] }
 0x919   : > { %19927 = vmatpush3.bf16.msra.mxu1 %v26019_v2  ;;  %19963 = vmatpush3.bf16.msra.mxu0 %v26021_v10  ;;  %v27588_v2 = vld [vmem:[#allocation4_spill] sm:$0xff] }
 0x91a   : > { %19123 = vmatprep.mubr.msk.f32.mxu1 %vm319_vm0, %v25621_v14  ;;  %19591 = vmatprep.mubr.msk.f32.mxu0 %vm319_vm0, %v25621_v14  ;;  %v27589_v10 = vld [vmem:[#allocation20_spill] sm:$0xff] }
 0x91b   : > { %19929 = vmatprep.subr.bf16.mxu1 %v26178_v32  ;;  %19965 = vmatprep.subr.bf16.mxu0 %v26180_v50 }
 0x91c   : > { %19124 = vmatmul.mubr.msk.f32.gmra.mrb[66].mxu1 %vm319_vm0, %v25630_v62  ;;  %19592 = vmatmul.mubr.msk.f32.gmra.mrb[66].mxu0 %vm319_vm0, %v25630_v62 }
 0x91d   : > { %19126 = vmatprep.mubr.msk.f32.mxu1 %vm319_vm0, %v25638_v39  ;;  %19594 = vmatprep.mubr.msk.f32.mxu0 %vm319_vm0, %v25638_v39 }
 0x920   : > { %19127 = vmatmul.mubr.msk.f32.gmra.mrb[68].mxu1 %vm319_vm0, %v25647_v16  ;;  %19595 = vmatmul.mubr.msk.f32.gmra.mrb[68].mxu0 %vm319_vm0, %v25647_v16 }
 0x921   : > { %19129 = vmatprep.mubr.msk.f32.mxu1 %vm319_vm0, %v25655_v52  ;;  %19597 = vmatprep.mubr.msk.f32.mxu0 %vm319_vm0, %v25655_v52 }
 0x924   : > { %19130 = vmatmul.mubr.msk.f32.gmra.mrb[70].mxu1 %vm319_vm0, %v25664_v41  ;;  %19598 = vmatmul.mubr.msk.f32.gmra.mrb[70].mxu0 %vm319_vm0, %v25664_v41 }
 0x925   : > { %19132 = vmatprep.mubr.msk.f32.mxu1 %vm319_vm0, %v25672_v22  ;;  %19600 = vmatprep.mubr.msk.f32.mxu0 %vm319_vm0, %v25672_v22 }
 0x928   : > { %19133 = vmatmul.mubr.msk.f32.gmra.mrb[72].mxu1 %vm319_vm0, %v25681_v6  ;;  %19601 = vmatmul.mubr.msk.f32.gmra.mrb[72].mxu0 %vm319_vm0, %v25681_v6 }
 0x929   : > { %19135 = vmatprep.mubr.msk.f32.mxu1 %vm319_vm0, %v25689_v57  ;;  %19603 = vmatprep.mubr.msk.f32.mxu0 %vm319_vm0, %v25689_v57 }
 0x92c   : > { %19136 = vmatmul.mubr.msk.f32.gmra.mrb[74].mxu1 %vm319_vm0, %v25698_v25  ;;  %19604 = vmatmul.mubr.msk.f32.gmra.mrb[74].mxu0 %vm319_vm0, %v25698_v25 }
 0x92d   : > { %19138 = vmatprep.mubr.msk.f32.mxu1 %vm319_vm0, %v25706_v36  ;;  %19606 = vmatprep.mubr.msk.f32.mxu0 %vm319_vm0, %v25706_v36 }
 0x930   : > { %19139 = vmatmul.mubr.msk.f32.gmra.mrb[76].mxu1 %vm319_vm0, %v25715_v7  ;;  %19607 = vmatmul.mubr.msk.f32.gmra.mrb[76].mxu0 %vm319_vm0, %v25715_v7 }
 0x931   : > { %19141 = vmatprep.mubr.msk.f32.mxu1 %vm319_vm0, %v25723_v55  ;;  %19609 = vmatprep.mubr.msk.f32.mxu0 %vm319_vm0, %v25723_v55 }
 0x934   : > { %19142 = vmatmul.mubr.msk.f32.gmra.mrb[78].mxu1 %vm319_vm0, %v27586_v46  ;;  %19610 = vmatmul.mubr.msk.f32.gmra.mrb[78].mxu0 %vm319_vm0, %v27586_v46 }
 0x935   : > { %19144 = vmatprep.mubr.msk.f32.mxu1 %vm319_vm0, %v25740_v44  ;;  %19612 = vmatprep.mubr.msk.f32.mxu0 %vm319_vm0, %v25740_v44 }
 0x938   : > { %19145 = vmatmul.mubr.msk.f32.gmra.mrb[80].mxu1 %vm319_vm0, %v27587_v54  ;;  %19613 = vmatmul.mubr.msk.f32.gmra.mrb[80].mxu0 %vm319_vm0, %v27587_v54 }
 0x939   : > { %19147 = vmatprep.mubr.msk.f32.mxu1 %vm319_vm0, %v25757_v30  ;;  %19615 = vmatprep.mubr.msk.f32.mxu0 %vm319_vm0, %v25757_v30 }
 0x93c   : > { %19148 = vmatmul.mubr.msk.f32.gmra.mrb[82].mxu1 %vm319_vm0, %v27588_v2  ;;  %19616 = vmatmul.mubr.msk.f32.gmra.mrb[82].mxu0 %vm319_vm0, %v27588_v2 }
 0x93d   : > { %19150 = vmatprep.mubr.msk.f32.mxu1 %vm319_vm0, %v25774_v15  ;;  %19618 = vmatprep.mubr.msk.f32.mxu0 %vm319_vm0, %v25774_v15 }
 0x940   : > { %19151 = vmatmul.mubr.msk.f32.gmra.mrb[84].mxu1 %vm319_vm0, %v27589_v10  ;;  %19619 = vmatmul.mubr.msk.f32.gmra.mrb[84].mxu0 %vm319_vm0, %v27589_v10 }
 0x941   : > { %19153 = vmatprep.mubr.msk.f32.mxu1 %vm319_vm0, %v25791_v43  ;;  %19621 = vmatprep.mubr.msk.f32.mxu0 %vm319_vm0, %v25791_v43 }
 0x944   : > { %19154 = vmatmul.mubr.msk.f32.gmra.mrb[86].mxu1 %vm319_vm0, %v27590_v12  ;;  %19622 = vmatmul.mubr.msk.f32.gmra.mrb[86].mxu0 %vm319_vm0, %v27590_v12  ;;  %v21275_v12 = vld [vmem:[#allocation3 + $0x48] sm:$0xff] }
 0x945   : > { %19156 = vmatprep.mubr.msk.f32.mxu1 %vm319_vm0, %v25808_v0  ;;  %19624 = vmatprep.mubr.msk.f32.mxu0 %vm319_vm0, %v25808_v0  ;;  %v27592_v0 = vld [vmem:[#allocation6_spill] sm:$0xff] }
 0x948   : > { %19157 = vmatmul.mubr.msk.f32.gmra.mrb[88].mxu1 %vm319_vm0, %v25817_v63  ;;  %19625 = vmatmul.mubr.msk.f32.gmra.mrb[88].mxu0 %vm319_vm0, %v25817_v63  ;;  %v10836_v63 = vrot.slane %v26137_v13, 2  ;;  %v9193_v13 = vld [vmem:[%s26897_s3 + $0x80] sm:$0xff] }
 0x949   : > { %19159 = vmatprep.mubr.msk.f32.mxu1 %vm319_vm0, %v25825_v31  ;;  %19627 = vmatprep.mubr.msk.f32.mxu0 %vm319_vm0, %v25825_v31 }
 0x94a   : > { %v26313_v31 = vsel %vm1274_vm3, %v10834_v20, %v10836_v63  ;;  %v11950_v63 = vld [vmem:[%s26899_s5 + $0x88] sm:$0xff] }
 0x94b   : > { %27594 = vst [vmem:[#allocation12_spill] sm:$0xff] %v26313_v31 }
 0x94c   : > { %19160 = vmatmul.mubr.msk.f32.gmra.mrb[90].mxu1 %vm319_vm0, %v25834_v40  ;;  %19628 = vmatmul.mubr.msk.f32.gmra.mrb[90].mxu0 %vm319_vm0, %v25834_v40  ;;  %v26306_v40 = vsel %vm1274_vm3, %v10833_v23, %v10834_v20  ;;  %v9194_v23 = vld [vmem:[%s26897_s3 + $0x88] sm:$0xff]  ;;  %v21273_v20 = vld [vmem:[#allocation3 + $0x30] sm:$0xff] }
 0x94d   : > { %19162 = vmatprep.mubr.msk.f32.mxu1 %vm319_vm0, %v27591_v37  ;;  %19630 = vmatprep.mubr.msk.f32.mxu0 %vm319_vm0, %v27591_v37  ;;  %27593 = vst [vmem:[#allocation7_spill] sm:$0xff] %v26306_v40  ;;  %v21274_v37 = vld [vmem:[#allocation3 + $0x38] sm:$0xff] }
 0x950   : > { %19163 = vmatmul.mubr.msk.f32.gmra.mrb[92].mxu1 %vm319_vm0, %v27592_v0  ;;  %19631 = vmatmul.mubr.msk.f32.gmra.mrb[92].mxu0 %vm319_vm0, %v27592_v0  ;;  %v26333_v0 = vpack.c.bf16 %v9194_v23, %v9193_v13  ;;  %v21277_v13 = vld [vmem:[#allocation3 + $0x60] sm:$0xff]  ;;  %v21282_v23 = vld [vmem:[#allocation3 + $0x98] sm:$0xff] }
 0x951   : > { %19165 = vmatprep.mubr.msk.f32.mxu1 %vm319_vm0, %v26306_v40  ;;  %19633 = vmatprep.mubr.msk.f32.mxu0 %vm319_vm0, %v26306_v40  ;;  %v11949_v40 = vld [vmem:[%s26899_s5 + $0x80] sm:$0xff] }
 0x954   : > { %19166 = vmatmul.mubr.msk.f32.gmra.mrb[94].mxu1 %vm319_vm0, %v26313_v31  ;;  %19634 = vmatmul.mubr.msk.f32.gmra.mrb[94].mxu0 %vm319_vm0, %v26313_v31  ;;  %v26335_v31 = vpack.c.bf16 %v11950_v63, %v11949_v40  ;;  %v21276_v40 = vld [vmem:[#allocation3 + $0x50] sm:$0xff]  ;;  %v21283_v63 = vld [vmem:[#allocation3 + $0xa8] sm:$0xff] }
 0x955   : > { %19172 = vmatprep.mubr.msk.f32.mxu1 %vm319_vm0, %v21273_v20  ;;  %19640 = vmatprep.mubr.msk.f32.mxu0 %vm319_vm0, %v21273_v20  ;;  %v21284_v20 = vld [vmem:[#allocation3 + $0xb0] sm:$0xff] }
 0x958   : > { %19173 = vmatmul.mubr.msk.f32.vlgmr.msra.gmra.mrb[64].mxu1 %vm319_vm0, %v21274_v37  ;;  %19641 = vmatmul.mubr.msk.f32.vlgmr.msra.gmra.mrb[64].mxu0 %vm319_vm0, %v21274_v37  ;;  %v21281_v37 = vld [vmem:[#allocation3 + $0x90] sm:$0xff] }
 0x959   : > { %19931 = vmatpush3.bf16.msra.mxu1 %v26178_v32  ;;  %19967 = vmatpush3.bf16.msra.mxu0 %v26180_v50  ;;  %v21278_v32 = vld [vmem:[#allocation3 + $0x68] sm:$0xff]  ;;  %v21279_v50 = vld [vmem:[#allocation3 + $0x78] sm:$0xff] }
 0x95a   : > { %19175 = vmatprep.mubr.msk.f32.mxu1 %vm319_vm0, %v21275_v12  ;;  %19643 = vmatprep.mubr.msk.f32.mxu0 %vm319_vm0, %v21275_v12  ;;  %v21280_v12 = vld [vmem:[#allocation3 + $0x80] sm:$0xff] }
 0x95b   : > { %19933 = vmatprep.subr.bf16.mxu1 %v26333_v0  ;;  %19969 = vmatprep.subr.bf16.mxu0 %v26335_v31 }
 0x95c   : > { %19176 = vmatmul.mubr.msk.f32.gmra.mrb[66].mxu1 %vm319_vm0, %v21276_v40  ;;  %19644 = vmatmul.mubr.msk.f32.gmra.mrb[66].mxu0 %vm319_vm0, %v21276_v40  ;;  %v21285_v40 = vld [vmem:[#allocation3 + $0xc0] sm:$0xff] }
 0x95d   : > { %19178 = vmatprep.mubr.msk.f32.mxu1 %vm319_vm0, %v21277_v13  ;;  %19646 = vmatprep.mubr.msk.f32.mxu0 %vm319_vm0, %v21277_v13  ;;  %v21286_v13 = vld [vmem:[#allocation3 + $0xc8] sm:$0xff] }
 0x960   : > { %19179 = vmatmul.mubr.msk.f32.gmra.mrb[68].mxu1 %vm319_vm0, %v21278_v32  ;;  %19647 = vmatmul.mubr.msk.f32.gmra.mrb[68].mxu0 %vm319_vm0, %v21278_v32  ;;  %v21287_v32 = vld [vmem:[#allocation3 + $0xd8] sm:$0xff] }
 0x961   : > { %19181 = vmatprep.mubr.msk.f32.mxu1 %vm319_vm0, %v21279_v50  ;;  %19649 = vmatprep.mubr.msk.f32.mxu0 %vm319_vm0, %v21279_v50  ;;  %v21288_v50 = vld [vmem:[#allocation3 + $0xe0] sm:$0xff] }
 0x964   : > { %19182 = vmatmul.mubr.msk.f32.gmra.mrb[70].mxu1 %vm319_vm0, %v21280_v12  ;;  %19650 = vmatmul.mubr.msk.f32.gmra.mrb[70].mxu0 %vm319_vm0, %v21280_v12  ;;  %v21289_v12 = vld [vmem:[#allocation3 + $0xf0] sm:$0xff] }
 0x965   : > { %19184 = vmatprep.mubr.msk.f32.mxu1 %vm319_vm0, %v21281_v37  ;;  %19652 = vmatprep.mubr.msk.f32.mxu0 %vm319_vm0, %v21281_v37  ;;  %v21290_v37 = vld [vmem:[#allocation3 + $0xf8] sm:$0xff] }
 0x968   : > { %19185 = vmatmul.mubr.msk.f32.gmra.mrb[72].mxu1 %vm319_vm0, %v21282_v23  ;;  %19653 = vmatmul.mubr.msk.f32.gmra.mrb[72].mxu0 %vm319_vm0, %v21282_v23  ;;  %v21291_v23 = vld [vmem:[#allocation3 + $0x108] sm:$0xff] }
 0x969   : > { %19187 = vmatprep.mubr.msk.f32.mxu1 %vm319_vm0, %v21283_v63  ;;  %19655 = vmatprep.mubr.msk.f32.mxu0 %vm319_vm0, %v21283_v63  ;;  %v21292_v63 = vld [vmem:[#allocation3 + $0x110] sm:$0xff] }
 0x96c   : > { %19188 = vmatmul.mubr.msk.f32.gmra.mrb[74].mxu1 %vm319_vm0, %v21284_v20  ;;  %19656 = vmatmul.mubr.msk.f32.gmra.mrb[74].mxu0 %vm319_vm0, %v21284_v20  ;;  %v21293_v20 = vld [vmem:[#allocation3 + $0x120] sm:$0xff] }
 0x96d   : > { %19190 = vmatprep.mubr.msk.f32.mxu1 %vm319_vm0, %v21285_v40  ;;  %19658 = vmatprep.mubr.msk.f32.mxu0 %vm319_vm0, %v21285_v40  ;;  %v21294_v40 = vld [vmem:[#allocation3 + $0x128] sm:$0xff] }
 0x970   : > { %19191 = vmatmul.mubr.msk.f32.gmra.mrb[76].mxu1 %vm319_vm0, %v21286_v13  ;;  %19659 = vmatmul.mubr.msk.f32.gmra.mrb[76].mxu0 %vm319_vm0, %v21286_v13  ;;  %v21295_v13 = vld [vmem:[#allocation3 + $0x138] sm:$0xff] }
 0x971   : > { %19193 = vmatprep.mubr.msk.f32.mxu1 %vm319_vm0, %v21287_v32  ;;  %19661 = vmatprep.mubr.msk.f32.mxu0 %vm319_vm0, %v21287_v32  ;;  %v21296_v32 = vld [vmem:[#allocation3 + $0x140] sm:$0xff] }
 0x974   : > { %19194 = vmatmul.mubr.msk.f32.gmra.mrb[78].mxu1 %vm319_vm0, %v21288_v50  ;;  %19662 = vmatmul.mubr.msk.f32.gmra.mrb[78].mxu0 %vm319_vm0, %v21288_v50  ;;  %v21297_v50 = vld [vmem:[#allocation3 + $0x150] sm:$0xff] }
 0x975   : > { %19196 = vmatprep.mubr.msk.f32.mxu1 %vm319_vm0, %v21289_v12  ;;  %19664 = vmatprep.mubr.msk.f32.mxu0 %vm319_vm0, %v21289_v12  ;;  %v21298_v12 = vld [vmem:[#allocation3 + $0x158] sm:$0xff] }
 0x978   : > { %19197 = vmatmul.mubr.msk.f32.gmra.mrb[80].mxu1 %vm319_vm0, %v21290_v37  ;;  %19665 = vmatmul.mubr.msk.f32.gmra.mrb[80].mxu0 %vm319_vm0, %v21290_v37  ;;  %v21299_v37 = vld [vmem:[#allocation3 + $0x168] sm:$0xff] }
 0x979   : > { %19199 = vmatprep.mubr.msk.f32.mxu1 %vm319_vm0, %v21291_v23  ;;  %19667 = vmatprep.mubr.msk.f32.mxu0 %vm319_vm0, %v21291_v23  ;;  %v21300_v23 = vld [vmem:[#allocation3 + $0x170] sm:$0xff] }
 0x97c   : > { %19200 = vmatmul.mubr.msk.f32.gmra.mrb[82].mxu1 %vm319_vm0, %v21292_v63  ;;  %19668 = vmatmul.mubr.msk.f32.gmra.mrb[82].mxu0 %vm319_vm0, %v21292_v63  ;;  %v26399_v63 = vld [vmem:[#allocation3 + $0x198] sm:$0xff] }
 0x97d   : > { %19202 = vmatprep.mubr.msk.f32.mxu1 %vm319_vm0, %v21293_v20  ;;  %19670 = vmatprep.mubr.msk.f32.mxu0 %vm319_vm0, %v21293_v20  ;;  %v26409_v20 = vld [vmem:[#allocation3 + $0x1a0] sm:$0xff] }
 0x980   : > { %19203 = vmatmul.mubr.msk.f32.gmra.mrb[84].mxu1 %vm319_vm0, %v21294_v40  ;;  %19671 = vmatmul.mubr.msk.f32.gmra.mrb[84].mxu0 %vm319_vm0, %v21294_v40 }
 0x981   : > { %19205 = vmatprep.mubr.msk.f32.mxu1 %vm319_vm0, %v21295_v13  ;;  %19673 = vmatprep.mubr.msk.f32.mxu0 %vm319_vm0, %v21295_v13 }
 0x984   : > { %19206 = vmatmul.mubr.msk.f32.gmra.mrb[86].mxu1 %vm319_vm0, %v21296_v32  ;;  %19674 = vmatmul.mubr.msk.f32.gmra.mrb[86].mxu0 %vm319_vm0, %v21296_v32 }
 0x985   : > { %19208 = vmatprep.mubr.msk.f32.mxu1 %vm319_vm0, %v21297_v50  ;;  %19676 = vmatprep.mubr.msk.f32.mxu0 %vm319_vm0, %v21297_v50 }
 0x988   : > { %19209 = vmatmul.mubr.msk.f32.gmra.mrb[88].mxu1 %vm319_vm0, %v21298_v12  ;;  %19677 = vmatmul.mubr.msk.f32.gmra.mrb[88].mxu0 %vm319_vm0, %v21298_v12 }
 0x989   : > { %19211 = vmatprep.mubr.msk.f32.mxu1 %vm319_vm0, %v21299_v37  ;;  %19679 = vmatprep.mubr.msk.f32.mxu0 %vm319_vm0, %v21299_v37 }
 0x98c   : > { %19212 = vmatmul.mubr.msk.f32.gmra.mrb[90].mxu1 %vm319_vm0, %v21300_v23  ;;  %19680 = vmatmul.mubr.msk.f32.gmra.mrb[90].mxu0 %vm319_vm0, %v21300_v23 }
 0x98d   : > { %19214 = vmatprep.mubr.msk.f32.mxu1 %vm319_vm0, %v25991_v26  ;;  %19682 = vmatprep.mubr.msk.f32.mxu0 %vm319_vm0, %v25991_v26 }
 0x990   : > { %19215 = vmatmul.mubr.msk.f32.gmra.mrb[92].mxu1 %vm319_vm0, %v25997_v21  ;;  %19683 = vmatmul.mubr.msk.f32.gmra.mrb[92].mxu0 %vm319_vm0, %v25997_v21 }
 0x991   : > { %19217 = vmatprep.mubr.msk.f32.mxu1 %vm319_vm0, %v26399_v63  ;;  %19685 = vmatprep.mubr.msk.f32.mxu0 %vm319_vm0, %v26399_v63 }
 0x994   : > { %19218 = vmatmul.mubr.msk.f32.gmra.mrb[94].mxu1 %vm319_vm0, %v26409_v20  ;;  %19686 = vmatmul.mubr.msk.f32.gmra.mrb[94].mxu0 %vm319_vm0, %v26409_v20 }
 0x995   : > { %19224 = vmatprep.mubr.msk.f32.mxu1 %vm319_vm0, %v25065_v19  ;;  %19692 = vmatprep.mubr.msk.f32.mxu0 %vm319_vm0, %v25065_v19  ;;  %v11363_v19 = vrot.slane %v26399_v63, 1 }
 0x998   : > { %19225 = vmatmul.mubr.msk.f32.vlgmr.msra.gmra.mrb[64].mxu1 %vm319_vm0, %v27559_v60  ;;  %19693 = vmatmul.mubr.msk.f32.vlgmr.msra.gmra.mrb[64].mxu0 %vm319_vm0, %v27559_v60 }
 0x999   : > { %19935 = vmatpush3.bf16.msra.mxu1 %v26333_v0  ;;  %19971 = vmatpush3.bf16.msra.mxu0 %v26335_v31  ;;  %v11364_v0 = vrot.slane %v26409_v20, 1  ;;  %v26527_v31 = vld [vmem:[#allocation3 + $0x1a8] sm:$0x3] }
 0x99a   : > { %19227 = vmatprep.mubr.msk.f32.mxu1 %vm319_vm0, %v27560_v9  ;;  %19695 = vmatprep.mubr.msk.f32.mxu0 %vm319_vm0, %v27560_v9  ;;  %v11366_v26 = vrot.slane %v26527_v31, 1 }
 0x99b   : > { %v11365_v21 = vsel %vm615_vm2, %v11363_v19, %v11364_v0 }
 0x99c   : > { %19228 = vmatmul.mubr.msk.f32.gmra.mrb[66].mxu1 %vm319_vm0, %v27561_v28  ;;  %19696 = vmatmul.mubr.msk.f32.gmra.mrb[66].mxu0 %vm319_vm0, %v27561_v28  ;;  %v11367_v60 = vsel %vm615_vm2, %v11364_v0, %v11366_v26 }
 0x99d   : > { %19230 = vmatprep.mubr.msk.f32.mxu1 %vm319_vm0, %v27562_v49  ;;  %19698 = vmatprep.mubr.msk.f32.mxu0 %vm319_vm0, %v27562_v49 }
 0x9a0   : > { %19231 = vmatmul.mubr.msk.f32.gmra.mrb[68].mxu1 %vm319_vm0, %v27563_v59  ;;  %19699 = vmatmul.mubr.msk.f32.gmra.mrb[68].mxu0 %vm319_vm0, %v27563_v59 }
 0x9a1   : > { %19233 = vmatprep.mubr.msk.f32.mxu1 %vm319_vm0, %v27564_v42  ;;  %19701 = vmatprep.mubr.msk.f32.mxu0 %vm319_vm0, %v27564_v42 }
 0x9a4   : > { %19234 = vmatmul.mubr.msk.f32.gmra.mrb[70].mxu1 %vm319_vm0, %v27565_v58  ;;  %19702 = vmatmul.mubr.msk.f32.gmra.mrb[70].mxu0 %vm319_vm0, %v27565_v58 }
 0x9a5   : > { %19236 = vmatprep.mubr.msk.f32.mxu1 %vm319_vm0, %v27566_v4  ;;  %19704 = vmatprep.mubr.msk.f32.mxu0 %vm319_vm0, %v27566_v4 }
 0x9a8   : > { %19237 = vmatmul.mubr.msk.f32.gmra.mrb[72].mxu1 %vm319_vm0, %v27567_v33  ;;  %19705 = vmatmul.mubr.msk.f32.gmra.mrb[72].mxu0 %vm319_vm0, %v27567_v33 }
 0x9a9   : > { %19239 = vmatprep.mubr.msk.f32.mxu1 %vm319_vm0, %v27568_v35  ;;  %19707 = vmatprep.mubr.msk.f32.mxu0 %vm319_vm0, %v27568_v35 }
 0x9ac   : > { %19240 = vmatmul.mubr.msk.f32.gmra.mrb[74].mxu1 %vm319_vm0, %v27569_v3  ;;  %19708 = vmatmul.mubr.msk.f32.gmra.mrb[74].mxu0 %vm319_vm0, %v27569_v3 }
 0x9ad   : > { %19242 = vmatprep.mubr.msk.f32.mxu1 %vm319_vm0, %v27570_v34  ;;  %19710 = vmatprep.mubr.msk.f32.mxu0 %vm319_vm0, %v27570_v34 }
 0x9b0   : > { %19243 = vmatmul.mubr.msk.f32.gmra.mrb[76].mxu1 %vm319_vm0, %v27571_v51  ;;  %19711 = vmatmul.mubr.msk.f32.gmra.mrb[76].mxu0 %vm319_vm0, %v27571_v51 }
 0x9b1   : > { %19245 = vmatprep.mubr.msk.f32.mxu1 %vm319_vm0, %v27572_v61  ;;  %19713 = vmatprep.mubr.msk.f32.mxu0 %vm319_vm0, %v27572_v61 }
 0x9b4   : > { %19246 = vmatmul.mubr.msk.f32.gmra.mrb[78].mxu1 %vm319_vm0, %v27573_v8  ;;  %19714 = vmatmul.mubr.msk.f32.gmra.mrb[78].mxu0 %vm319_vm0, %v27573_v8 }
 0x9b5   : > { %19248 = vmatprep.mubr.msk.f32.mxu1 %vm319_vm0, %v27574_v11  ;;  %19716 = vmatprep.mubr.msk.f32.mxu0 %vm319_vm0, %v27574_v11 }
 0x9b8   : > { %19249 = vmatmul.mubr.msk.f32.gmra.mrb[80].mxu1 %vm319_vm0, %v27575_v17  ;;  %19717 = vmatmul.mubr.msk.f32.gmra.mrb[80].mxu0 %vm319_vm0, %v27575_v17 }
 0x9b9   : > { %19251 = vmatprep.mubr.msk.f32.mxu1 %vm319_vm0, %v27576_v5  ;;  %19719 = vmatprep.mubr.msk.f32.mxu0 %vm319_vm0, %v27576_v5 }
 0x9bc   : > { %19252 = vmatmul.mubr.msk.f32.gmra.mrb[82].mxu1 %vm319_vm0, %v27577_v47  ;;  %19720 = vmatmul.mubr.msk.f32.gmra.mrb[82].mxu0 %vm319_vm0, %v27577_v47 }
 0x9bd   : > { %19254 = vmatprep.mubr.msk.f32.mxu1 %vm319_vm0, %v27578_v18  ;;  %19722 = vmatprep.mubr.msk.f32.mxu0 %vm319_vm0, %v27578_v18 }
 0x9c0   : > { %19255 = vmatmul.mubr.msk.f32.gmra.mrb[84].mxu1 %vm319_vm0, %v27579_v48  ;;  %19723 = vmatmul.mubr.msk.f32.gmra.mrb[84].mxu0 %vm319_vm0, %v27579_v48 }
 0x9c1   : > { %19257 = vmatprep.mubr.msk.f32.mxu1 %vm319_vm0, %v27580_v38  ;;  %19725 = vmatprep.mubr.msk.f32.mxu0 %vm319_vm0, %v27580_v38 }
 0x9c4   : > { %19258 = vmatmul.mubr.msk.f32.gmra.mrb[86].mxu1 %vm319_vm0, %v27581_v56  ;;  %19726 = vmatmul.mubr.msk.f32.gmra.mrb[86].mxu0 %vm319_vm0, %v27581_v56 }
 0x9c5   : > { %19260 = vmatprep.mubr.msk.f32.mxu1 %vm319_vm0, %v27582_v45  ;;  %19728 = vmatprep.mubr.msk.f32.mxu0 %vm319_vm0, %v27582_v45 }
 0x9c8   : > { %19261 = vmatmul.mubr.msk.f32.gmra.mrb[88].mxu1 %vm319_vm0, %v27583_v1  ;;  %19729 = vmatmul.mubr.msk.f32.gmra.mrb[88].mxu0 %vm319_vm0, %v27583_v1 }
 0x9c9   : > { %19263 = vmatprep.mubr.msk.f32.mxu1 %vm319_vm0, %v27584_v24  ;;  %19731 = vmatprep.mubr.msk.f32.mxu0 %vm319_vm0, %v27584_v24 }
 0x9cc   : > { %19264 = vmatmul.mubr.msk.f32.gmra.mrb[90].mxu1 %vm319_vm0, %v27585_v53  ;;  %19732 = vmatmul.mubr.msk.f32.gmra.mrb[90].mxu0 %vm319_vm0, %v27585_v53 }
 0x9cd   : > { %19266 = vmatprep.mubr.msk.f32.mxu1 %vm319_vm0, %v26149_v27  ;;  %19734 = vmatprep.mubr.msk.f32.mxu0 %vm319_vm0, %v26149_v27 }
 0x9d0   : > { %19267 = vmatmul.mubr.msk.f32.gmra.mrb[92].mxu1 %vm319_vm0, %v26156_v29  ;;  %19735 = vmatmul.mubr.msk.f32.gmra.mrb[92].mxu0 %vm319_vm0, %v26156_v29 }
 0x9d1   : > { %19269 = vmatprep.mubr.msk.f32.mxu1 %vm319_vm0, %v11365_v21  ;;  %19737 = vmatprep.mubr.msk.f32.mxu0 %vm319_vm0, %v11365_v21 }
 0x9d4   : > { %19270 = vmatmul.mubr.msk.f32.gmra.mrb[94].mxu1 %vm319_vm0, %v11367_v60  ;;  %19738 = vmatmul.mubr.msk.f32.gmra.mrb[94].mxu0 %vm319_vm0, %v11367_v60 }
 0x9d5   : > { %19276 = vmatprep.mubr.msk.f32.mxu1 %vm319_vm0, %v25621_v14  ;;  %19744 = vmatprep.mubr.msk.f32.mxu0 %vm319_vm0, %v25621_v14  ;;  %v27595_v14 = vld [vmem:[#allocation5_spill] sm:$0xff] }
 0x9d8   : > { %19277 = vmatmul.mubr.msk.f32.vlgmr.msra.gmra.mrb[64].mxu1 %vm319_vm0, %v25630_v62  ;;  %19745 = vmatmul.mubr.msk.f32.vlgmr.msra.gmra.mrb[64].mxu0 %vm319_vm0, %v25630_v62  ;;  %v27596_v62 = vld [vmem:[#allocation21_spill] sm:$0xff] }
 0x9d9   : > { %19279 = vmatprep.mubr.msk.f32.mxu1 %vm319_vm0, %v25638_v39  ;;  %19747 = vmatprep.mubr.msk.f32.mxu0 %vm319_vm0, %v25638_v39  ;;  %v27597_v39 = vld [vmem:[#allocation25_spill] sm:$0xff] }
 0x9dc   : > { %19280 = vmatmul.mubr.msk.f32.gmra.mrb[66].mxu1 %vm319_vm0, %v25647_v16  ;;  %19748 = vmatmul.mubr.msk.f32.gmra.mrb[66].mxu0 %vm319_vm0, %v25647_v16  ;;  %v27598_v16 = vld [vmem:[#allocation31_spill] sm:$0xff] }
 0x9dd   : > { %19282 = vmatprep.mubr.msk.f32.mxu1 %vm319_vm0, %v25655_v52  ;;  %19750 = vmatprep.mubr.msk.f32.mxu0 %vm319_vm0, %v25655_v52  ;;  %v27599_v52 = vld [vmem:[#allocation36_spill] sm:$0xff] }
 0x9e0   : > { %19283 = vmatmul.mubr.msk.f32.gmra.mrb[68].mxu1 %vm319_vm0, %v25664_v41  ;;  %19751 = vmatmul.mubr.msk.f32.gmra.mrb[68].mxu0 %vm319_vm0, %v25664_v41  ;;  %v27600_v41 = vld [vmem:[#allocation38_spill] sm:$0xff] }
 0x9e1   : > { %19285 = vmatprep.mubr.msk.f32.mxu1 %vm319_vm0, %v25672_v22  ;;  %19753 = vmatprep.mubr.msk.f32.mxu0 %vm319_vm0, %v25672_v22  ;;  %v11629_v22 = vrot.slane %v26399_v63, 2 }
 0x9e4   : > { %19286 = vmatmul.mubr.msk.f32.gmra.mrb[70].mxu1 %vm319_vm0, %v25681_v6  ;;  %19754 = vmatmul.mubr.msk.f32.gmra.mrb[70].mxu0 %vm319_vm0, %v25681_v6  ;;  %v11630_v6 = vrot.slane %v26409_v20, 2 }
 0x9e5   : > { %19288 = vmatprep.mubr.msk.f32.mxu1 %vm319_vm0, %v25689_v57  ;;  %19756 = vmatprep.mubr.msk.f32.mxu0 %vm319_vm0, %v25689_v57  ;;  %v27601_v57 = vld [vmem:[#allocation6_spill] sm:$0xff] }
 0x9e8   : > { %19289 = vmatmul.mubr.msk.f32.gmra.mrb[72].mxu1 %vm319_vm0, %v25698_v25  ;;  %19757 = vmatmul.mubr.msk.f32.gmra.mrb[72].mxu0 %vm319_vm0, %v25698_v25  ;;  %v27602_v25 = vld [vmem:[#allocation7_spill] sm:$0xff] }
 0x9e9   : > { %19291 = vmatprep.mubr.msk.f32.mxu1 %vm319_vm0, %v25706_v36  ;;  %19759 = vmatprep.mubr.msk.f32.mxu0 %vm319_vm0, %v25706_v36  ;;  %v11632_v36 = vrot.slane %v26527_v31, 2 }
 0x9ec   : > { %19292 = vmatmul.mubr.msk.f32.gmra.mrb[74].mxu1 %vm319_vm0, %v25715_v7  ;;  %19760 = vmatmul.mubr.msk.f32.gmra.mrb[74].mxu0 %vm319_vm0, %v25715_v7  ;;  %v11631_v7 = vsel %vm1274_vm3, %v11629_v22, %v11630_v6 }
 0x9ed   : > { %19294 = vmatprep.mubr.msk.f32.mxu1 %vm319_vm0, %v25723_v55  ;;  %19762 = vmatprep.mubr.msk.f32.mxu0 %vm319_vm0, %v25723_v55  ;;  %v27603_v55 = vld [vmem:[#allocation12_spill] sm:$0xff] }
 0x9f0   : > { %19295 = vmatmul.mubr.msk.f32.gmra.mrb[76].mxu1 %vm319_vm0, %v27586_v46  ;;  %19763 = vmatmul.mubr.msk.f32.gmra.mrb[76].mxu0 %vm319_vm0, %v27586_v46 }
 0x9f1   : > { %19297 = vmatprep.mubr.msk.f32.mxu1 %vm319_vm0, %v25740_v44  ;;  %19765 = vmatprep.mubr.msk.f32.mxu0 %vm319_vm0, %v25740_v44  ;;  %v11633_v44 = vsel %vm1274_vm3, %v11630_v6, %v11632_v36 }
 0x9f4   : > { %19298 = vmatmul.mubr.msk.f32.gmra.mrb[78].mxu1 %vm319_vm0, %v27587_v54  ;;  %19766 = vmatmul.mubr.msk.f32.gmra.mrb[78].mxu0 %vm319_vm0, %v27587_v54 }
 0x9f5   : > { %19300 = vmatprep.mubr.msk.f32.mxu1 %vm319_vm0, %v25757_v30  ;;  %19768 = vmatprep.mubr.msk.f32.mxu0 %vm319_vm0, %v25757_v30  ;;  %v26680_v30 = vld [vmem:[%s26898_s4] ss:$0 sm:$0xff] }
 0x9f8   : > { %19301 = vmatmul.mubr.msk.f32.gmra.mrb[80].mxu1 %vm319_vm0, %v27588_v2  ;;  %19769 = vmatmul.mubr.msk.f32.gmra.mrb[80].mxu0 %vm319_vm0, %v27588_v2 }
 0x9f9   : > { %19303 = vmatprep.mubr.msk.f32.mxu1 %vm319_vm0, %v25774_v15  ;;  %19771 = vmatprep.mubr.msk.f32.mxu0 %vm319_vm0, %v25774_v15  ;;  %v26685_v15 = vld [vmem:[%s26900_s6] ss:$0 sm:$0xff] }
 0x9fc   : > { %19304 = vmatmul.mubr.msk.f32.gmra.mrb[82].mxu1 %vm319_vm0, %v27589_v10  ;;  %19772 = vmatmul.mubr.msk.f32.gmra.mrb[82].mxu0 %vm319_vm0, %v27589_v10 }
 0x9fd   : > { %19306 = vmatprep.mubr.msk.f32.mxu1 %vm319_vm0, %v25791_v43  ;;  %19774 = vmatprep.mubr.msk.f32.mxu0 %vm319_vm0, %v25791_v43 }
 0xa00   : > { %19307 = vmatmul.mubr.msk.f32.gmra.mrb[84].mxu1 %vm319_vm0, %v27595_v14  ;;  %19775 = vmatmul.mubr.msk.f32.gmra.mrb[84].mxu0 %vm319_vm0, %v27595_v14 }
 0xa01   : > { %19309 = vmatprep.mubr.msk.f32.mxu1 %vm319_vm0, %v27596_v62  ;;  %19777 = vmatprep.mubr.msk.f32.mxu0 %vm319_vm0, %v27596_v62 }
 0xa04   : > { %19310 = vmatmul.mubr.msk.f32.gmra.mrb[86].mxu1 %vm319_vm0, %v27597_v39  ;;  %19778 = vmatmul.mubr.msk.f32.gmra.mrb[86].mxu0 %vm319_vm0, %v27597_v39 }
 0xa05   : > { %19312 = vmatprep.mubr.msk.f32.mxu1 %vm319_vm0, %v27598_v16  ;;  %19780 = vmatprep.mubr.msk.f32.mxu0 %vm319_vm0, %v27598_v16 }
 0xa08   : > { %19313 = vmatmul.mubr.msk.f32.gmra.mrb[88].mxu1 %vm319_vm0, %v27599_v52  ;;  %19781 = vmatmul.mubr.msk.f32.gmra.mrb[88].mxu0 %vm319_vm0, %v27599_v52 }
 0xa09   : > { %19315 = vmatprep.mubr.msk.f32.mxu1 %vm319_vm0, %v27600_v41  ;;  %19783 = vmatprep.mubr.msk.f32.mxu0 %vm319_vm0, %v27600_v41 }
 0xa0c   : > { %19316 = vmatmul.mubr.msk.f32.gmra.mrb[90].mxu1 %vm319_vm0, %v27601_v57  ;;  %19784 = vmatmul.mubr.msk.f32.gmra.mrb[90].mxu0 %vm319_vm0, %v27601_v57 }
 0xa0d   : > { %19318 = vmatprep.mubr.msk.f32.mxu1 %vm319_vm0, %v27602_v25  ;;  %19786 = vmatprep.mubr.msk.f32.mxu0 %vm319_vm0, %v27602_v25 }
 0xa10   : > { %19319 = vmatmul.mubr.msk.f32.gmra.mrb[92].mxu1 %vm319_vm0, %v27603_v55  ;;  %19787 = vmatmul.mubr.msk.f32.gmra.mrb[92].mxu0 %vm319_vm0, %v27603_v55 }
 0xa11   : > { %19321 = vmatprep.mubr.msk.f32.mxu1 %vm319_vm0, %v11631_v7  ;;  %19789 = vmatprep.mubr.msk.f32.mxu0 %vm319_vm0, %v11631_v7 }
 0xa14   : > { %19322 = vmatmul.mubr.msk.f32.gmra.mrb[94].mxu1 %vm319_vm0, %v11633_v44  ;;  %19790 = vmatmul.mubr.msk.f32.gmra.mrb[94].mxu0 %vm319_vm0, %v11633_v44 }
 0xaab   : > { %v19278_v43 = vpop.f32.mrb[64].mxu1  ;;  %v19746_v9 = vpop.f32.mrb[64].mxu0 }
 0xaac   : > { %v11902_v28 = vadd.f32 %v19278_v43, %v26680_v30  ;;  %v14208_v49 = vadd.f32 %v19746_v9, %v26685_v15  ;;  %v11704_v59 = vpop.f32.mrb[65].mxu1  ;;  %v14010_v42 = vpop.f32.mrb[65].mxu0 }
 0xaad   : > { %v11901_v58 = vadd.f32 %v26680_v30, %v11704_v59  ;;  %v14207_v4 = vadd.f32 %v26685_v15, %v14010_v42 }
 0xaae   : > { %v14240_v33 = vadd.f32 %v14208_v49, %v11902_v28  ;;  %14304 = vst.msk [vmem:[%s26691_s23 + $0x8] sm:$0xff] %vm319_vm0, %v14208_v49 }
 0xaaf   : > { %v14239_v35 = vadd.f32 %v14207_v4, %v11901_v58  ;;  %14303 = vst.msk [vmem:[%s26691_s23] sm:$0xff] %vm319_vm0, %v14207_v4  ;;  %v19281_v3 = vpop.f32.mrb[66].mxu1  ;;  %v19749_v34 = vpop.f32.mrb[66].mxu0 }
 0xab0   : > { %14272 = vst.msk [vmem:[%s26699_s29 + $0x8] sm:$0xff] %vm319_vm0, %v14240_v33  ;;  %v11904_v51 = vadd.f32 %v19281_v3, %v26680_v30  ;;  %v14210_v61 = vadd.f32 %v19749_v34, %v26685_v15  ;;  %v11714_v8 = vpop.f32.mrb[67].mxu1  ;;  %v14020_v11 = vpop.f32.mrb[67].mxu0 }
 0xab1   : > { %14271 = vst.msk [vmem:[%s26699_s29] sm:$0xff] %vm319_vm0, %v14239_v35  ;;  %v11903_v17 = vadd.f32 %v26680_v30, %v11714_v8  ;;  %v14209_v5 = vadd.f32 %v26685_v15, %v14020_v11 }
 0xab2   : > { %v14242_v47 = vadd.f32 %v14210_v61, %v11904_v51  ;;  %14306 = vst.msk [vmem:[%s26691_s23 + $0x18] sm:$0xff] %vm319_vm0, %v14210_v61 }
 0xab3   : > { %v14241_v18 = vadd.f32 %v14209_v5, %v11903_v17  ;;  %14305 = vst.msk [vmem:[%s26691_s23 + $0x10] sm:$0xff] %vm319_vm0, %v14209_v5  ;;  %v19284_v48 = vpop.f32.mrb[68].mxu1  ;;  %v19752_v38 = vpop.f32.mrb[68].mxu0 }
 0xab4   : > { %14274 = vst.msk [vmem:[%s26699_s29 + $0x18] sm:$0xff] %vm319_vm0, %v14242_v47  ;;  %v11906_v56 = vadd.f32 %v19284_v48, %v26680_v30  ;;  %v14212_v45 = vadd.f32 %v19752_v38, %v26685_v15  ;;  %v11724_v1 = vpop.f32.mrb[69].mxu1  ;;  %v14030_v24 = vpop.f32.mrb[69].mxu0 }
 0xab5   : > { %14273 = vst.msk [vmem:[%s26699_s29 + $0x10] sm:$0xff] %vm319_vm0, %v14241_v18  ;;  %v11905_v53 = vadd.f32 %v26680_v30, %v11724_v1  ;;  %v14211_v27 = vadd.f32 %v26685_v15, %v14030_v24 }
 0xab6   : > { %v14244_v29 = vadd.f32 %v14212_v45, %v11906_v56  ;;  %14308 = vst.msk [vmem:[%s26691_s23 + $0x28] sm:$0xff] %vm319_vm0, %v14212_v45 }
 0xab7   : > { %v14243_v46 = vadd.f32 %v14211_v27, %v11905_v53  ;;  %14307 = vst.msk [vmem:[%s26691_s23 + $0x20] sm:$0xff] %vm319_vm0, %v14211_v27  ;;  %v19287_v54 = vpop.f32.mrb[70].mxu1  ;;  %v19755_v2 = vpop.f32.mrb[70].mxu0 }
 0xab8   : > { %14276 = vst.msk [vmem:[%s26699_s29 + $0x28] sm:$0xff] %vm319_vm0, %v14244_v29  ;;  %v11908_v10 = vadd.f32 %v19287_v54, %v26680_v30  ;;  %v14214_v40 = vadd.f32 %v19755_v2, %v26685_v15  ;;  %v11734_v13 = vpop.f32.mrb[71].mxu1  ;;  %v14040_v32 = vpop.f32.mrb[71].mxu0 }
 0xab9   : > { %14275 = vst.msk [vmem:[%s26699_s29 + $0x20] sm:$0xff] %vm319_vm0, %v14243_v46  ;;  %v11907_v50 = vadd.f32 %v26680_v30, %v11734_v13  ;;  %v14213_v12 = vadd.f32 %v26685_v15, %v14040_v32 }
 0xaba   : > { %v14246_v37 = vadd.f32 %v14214_v40, %v11908_v10  ;;  %14310 = vst.msk [vmem:[%s26691_s23 + $0x38] sm:$0xff] %vm319_vm0, %v14214_v40 }
 0xabb   : > { %v14245_v23 = vadd.f32 %v14213_v12, %v11907_v50  ;;  %14309 = vst.msk [vmem:[%s26691_s23 + $0x30] sm:$0xff] %vm319_vm0, %v14213_v12  ;;  %v19290_v63 = vpop.f32.mrb[72].mxu1  ;;  %v19758_v20 = vpop.f32.mrb[72].mxu0 }
 0xabc   : > { %14278 = vst.msk [vmem:[%s26699_s29 + $0x38] sm:$0xff] %vm319_vm0, %v14246_v37  ;;  %v11910_v19 = vadd.f32 %v19290_v63, %v26680_v30  ;;  %v14216_v0 = vadd.f32 %v19758_v20, %v26685_v15  ;;  %v11744_v31 = vpop.f32.mrb[73].mxu1  ;;  %v14050_v26 = vpop.f32.mrb[73].mxu0 }
 0xabd   : > { %14277 = vst.msk [vmem:[%s26699_s29 + $0x30] sm:$0xff] %vm319_vm0, %v14245_v23  ;;  %v11909_v21 = vadd.f32 %v26680_v30, %v11744_v31  ;;  %v14215_v60 = vadd.f32 %v26685_v15, %v14050_v26 }
 0xabe   : > { %v14248_v14 = vadd.f32 %v14216_v0, %v11910_v19  ;;  %14312 = vst.msk [vmem:[%s26691_s23 + $0x48] sm:$0xff] %vm319_vm0, %v14216_v0 }
 0xabf   : > { %v14247_v62 = vadd.f32 %v14215_v60, %v11909_v21  ;;  %14311 = vst.msk [vmem:[%s26691_s23 + $0x40] sm:$0xff] %vm319_vm0, %v14215_v60  ;;  %v19293_v39 = vpop.f32.mrb[74].mxu1  ;;  %v19761_v16 = vpop.f32.mrb[74].mxu0 }
 0xac0   : > { %14280 = vst.msk [vmem:[%s26699_s29 + $0x48] sm:$0xff] %vm319_vm0, %v14248_v14  ;;  %v11912_v52 = vadd.f32 %v19293_v39, %v26680_v30  ;;  %v14218_v41 = vadd.f32 %v19761_v16, %v26685_v15  ;;  %v11754_v22 = vpop.f32.mrb[75].mxu1  ;;  %v14060_v6 = vpop.f32.mrb[75].mxu0 }
 0xac1   : > { %14279 = vst.msk [vmem:[%s26699_s29 + $0x40] sm:$0xff] %vm319_vm0, %v14247_v62  ;;  %v11911_v57 = vadd.f32 %v26680_v30, %v11754_v22  ;;  %v14217_v25 = vadd.f32 %v26685_v15, %v14060_v6 }
 0xac2   : > { %v14250_v36 = vadd.f32 %v14218_v41, %v11912_v52  ;;  %14314 = vst.msk [vmem:[%s26691_s23 + $0x58] sm:$0xff] %vm319_vm0, %v14218_v41 }
 0xac3   : > { %v14249_v7 = vadd.f32 %v14217_v25, %v11911_v57  ;;  %14313 = vst.msk [vmem:[%s26691_s23 + $0x50] sm:$0xff] %vm319_vm0, %v14217_v25  ;;  %v19296_v55 = vpop.f32.mrb[76].mxu1  ;;  %v19764_v44 = vpop.f32.mrb[76].mxu0 }
 0xac4   : > { %14282 = vst.msk [vmem:[%s26699_s29 + $0x58] sm:$0xff] %vm319_vm0, %v14250_v36  ;;  %v11914_v43 = vadd.f32 %v19296_v55, %v26680_v30  ;;  %v14220_v9 = vadd.f32 %v19764_v44, %v26685_v15  ;;  %v11764_v28 = vpop.f32.mrb[77].mxu1  ;;  %v14070_v49 = vpop.f32.mrb[77].mxu0 }
 0xac5   : > { %14281 = vst.msk [vmem:[%s26699_s29 + $0x50] sm:$0xff] %vm319_vm0, %v14249_v7  ;;  %v11913_v59 = vadd.f32 %v26680_v30, %v11764_v28  ;;  %v14219_v42 = vadd.f32 %v26685_v15, %v14070_v49 }
 0xac6   : > { %v14252_v58 = vadd.f32 %v14220_v9, %v11914_v43  ;;  %14316 = vst.msk [vmem:[%s26691_s23 + $0x68] sm:$0xff] %vm319_vm0, %v14220_v9 }
 0xac7   : > { %v14251_v4 = vadd.f32 %v14219_v42, %v11913_v59  ;;  %14315 = vst.msk [vmem:[%s26691_s23 + $0x60] sm:$0xff] %vm319_vm0, %v14219_v42  ;;  %v19299_v33 = vpop.f32.mrb[78].mxu1  ;;  %v19767_v35 = vpop.f32.mrb[78].mxu0 }
 0xac8   : > { %14284 = vst.msk [vmem:[%s26699_s29 + $0x68] sm:$0xff] %vm319_vm0, %v14252_v58  ;;  %v11916_v3 = vadd.f32 %v19299_v33, %v26680_v30  ;;  %v14222_v34 = vadd.f32 %v19767_v35, %v26685_v15  ;;  %v11774_v51 = vpop.f32.mrb[79].mxu1  ;;  %v14080_v61 = vpop.f32.mrb[79].mxu0 }
 0xac9   : > { %14283 = vst.msk [vmem:[%s26699_s29 + $0x60] sm:$0xff] %vm319_vm0, %v14251_v4  ;;  %v11915_v8 = vadd.f32 %v26680_v30, %v11774_v51  ;;  %v14221_v11 = vadd.f32 %v26685_v15, %v14080_v61 }
 0xaca   : > { %v14254_v17 = vadd.f32 %v14222_v34, %v11916_v3  ;;  %14318 = vst.msk [vmem:[%s26691_s23 + $0x78] sm:$0xff] %vm319_vm0, %v14222_v34 }
 0xacb   : > { %v14253_v5 = vadd.f32 %v14221_v11, %v11915_v8  ;;  %14317 = vst.msk [vmem:[%s26691_s23 + $0x70] sm:$0xff] %vm319_vm0, %v14221_v11  ;;  %v19302_v47 = vpop.f32.mrb[80].mxu1  ;;  %v19770_v18 = vpop.f32.mrb[80].mxu0 }
 0xacc   : > { %14286 = vst.msk [vmem:[%s26699_s29 + $0x78] sm:$0xff] %vm319_vm0, %v14254_v17  ;;  %v11918_v48 = vadd.f32 %v19302_v47, %v26680_v30  ;;  %v14224_v38 = vadd.f32 %v19770_v18, %v26685_v15  ;;  %v11784_v56 = vpop.f32.mrb[81].mxu1  ;;  %v14090_v45 = vpop.f32.mrb[81].mxu0 }
 0xacd   : > { %14285 = vst.msk [vmem:[%s26699_s29 + $0x70] sm:$0xff] %vm319_vm0, %v14253_v5  ;;  %v11917_v1 = vadd.f32 %v26680_v30, %v11784_v56  ;;  %v14223_v24 = vadd.f32 %v26685_v15, %v14090_v45 }
 0xace   : > { %v14256_v53 = vadd.f32 %v14224_v38, %v11918_v48  ;;  %14320 = vst.msk [vmem:[%s26691_s23 + $0x88] sm:$0xff] %vm319_vm0, %v14224_v38 }
 0xacf   : > { %v14255_v27 = vadd.f32 %v14223_v24, %v11917_v1  ;;  %14319 = vst.msk [vmem:[%s26691_s23 + $0x80] sm:$0xff] %vm319_vm0, %v14223_v24  ;;  %v19305_v29 = vpop.f32.mrb[82].mxu1  ;;  %v19773_v46 = vpop.f32.mrb[82].mxu0 }
 0xad0   : > { %14288 = vst.msk [vmem:[%s26699_s29 + $0x88] sm:$0xff] %vm319_vm0, %v14256_v53  ;;  %v11920_v54 = vadd.f32 %v19305_v29, %v26680_v30  ;;  %v14226_v2 = vadd.f32 %v19773_v46, %v26685_v15  ;;  %v11794_v10 = vpop.f32.mrb[83].mxu1  ;;  %v14100_v40 = vpop.f32.mrb[83].mxu0 }
 0xad1   : > { %14287 = vst.msk [vmem:[%s26699_s29 + $0x80] sm:$0xff] %vm319_vm0, %v14255_v27  ;;  %v11919_v13 = vadd.f32 %v26680_v30, %v11794_v10  ;;  %v14225_v32 = vadd.f32 %v26685_v15, %v14100_v40 }
 0xad2   : > { %v14258_v50 = vadd.f32 %v14226_v2, %v11920_v54  ;;  %14322 = vst.msk [vmem:[%s26691_s23 + $0x98] sm:$0xff] %vm319_vm0, %v14226_v2 }
 0xad3   : > { %v14257_v12 = vadd.f32 %v14225_v32, %v11919_v13  ;;  %14321 = vst.msk [vmem:[%s26691_s23 + $0x90] sm:$0xff] %vm319_vm0, %v14225_v32  ;;  %v19308_v37 = vpop.f32.mrb[84].mxu1  ;;  %v19776_v23 = vpop.f32.mrb[84].mxu0 }
 0xad4   : > { %14290 = vst.msk [vmem:[%s26699_s29 + $0x98] sm:$0xff] %vm319_vm0, %v14258_v50  ;;  %v11922_v63 = vadd.f32 %v19308_v37, %v26680_v30  ;;  %v14228_v20 = vadd.f32 %v19776_v23, %v26685_v15  ;;  %v11804_v19 = vpop.f32.mrb[85].mxu1  ;;  %v14110_v0 = vpop.f32.mrb[85].mxu0 }
 0xad5   : > { %14289 = vst.msk [vmem:[%s26699_s29 + $0x90] sm:$0xff] %vm319_vm0, %v14257_v12  ;;  %v11921_v31 = vadd.f32 %v26680_v30, %v11804_v19  ;;  %v14227_v26 = vadd.f32 %v26685_v15, %v14110_v0 }
 0xad6   : > { %v14260_v21 = vadd.f32 %v14228_v20, %v11922_v63  ;;  %14324 = vst.msk [vmem:[%s26691_s23 + $0xa8] sm:$0xff] %vm319_vm0, %v14228_v20 }
 0xad7   : > { %v14259_v60 = vadd.f32 %v14227_v26, %v11921_v31  ;;  %14323 = vst.msk [vmem:[%s26691_s23 + $0xa0] sm:$0xff] %vm319_vm0, %v14227_v26  ;;  %v19311_v14 = vpop.f32.mrb[86].mxu1  ;;  %v19779_v62 = vpop.f32.mrb[86].mxu0 }
 0xad8   : > { %14292 = vst.msk [vmem:[%s26699_s29 + $0xa8] sm:$0xff] %vm319_vm0, %v14260_v21  ;;  %v11924_v39 = vadd.f32 %v19311_v14, %v26680_v30  ;;  %v14230_v16 = vadd.f32 %v19779_v62, %v26685_v15  ;;  %v11814_v52 = vpop.f32.mrb[87].mxu1  ;;  %v14120_v41 = vpop.f32.mrb[87].mxu0 }
 0xad9   : > { %14291 = vst.msk [vmem:[%s26699_s29 + $0xa0] sm:$0xff] %vm319_vm0, %v14259_v60  ;;  %v11923_v22 = vadd.f32 %v26680_v30, %v11814_v52  ;;  %v14229_v6 = vadd.f32 %v26685_v15, %v14120_v41 }
 0xada   : > { %v14262_v57 = vadd.f32 %v14230_v16, %v11924_v39  ;;  %14326 = vst.msk [vmem:[%s26691_s23 + $0xb8] sm:$0xff] %vm319_vm0, %v14230_v16 }
 0xadb   : > { %v14261_v25 = vadd.f32 %v14229_v6, %v11923_v22  ;;  %14325 = vst.msk [vmem:[%s26691_s23 + $0xb0] sm:$0xff] %vm319_vm0, %v14229_v6  ;;  %v19314_v36 = vpop.f32.mrb[88].mxu1  ;;  %v19782_v7 = vpop.f32.mrb[88].mxu0 }
 0xadc   : > { %14294 = vst.msk [vmem:[%s26699_s29 + $0xb8] sm:$0xff] %vm319_vm0, %v14262_v57  ;;  %v11926_v55 = vadd.f32 %v19314_v36, %v26680_v30  ;;  %v14232_v44 = vadd.f32 %v19782_v7, %v26685_v15  ;;  %v11824_v43 = vpop.f32.mrb[89].mxu1  ;;  %v14130_v9 = vpop.f32.mrb[89].mxu0 }
 0xadd   : > { %14293 = vst.msk [vmem:[%s26699_s29 + $0xb0] sm:$0xff] %vm319_vm0, %v14261_v25  ;;  %v11925_v28 = vadd.f32 %v26680_v30, %v11824_v43  ;;  %v14231_v49 = vadd.f32 %v26685_v15, %v14130_v9 }
 0xade   : > { %v14264_v59 = vadd.f32 %v14232_v44, %v11926_v55  ;;  %14328 = vst.msk [vmem:[%s26691_s23 + $0xc8] sm:$0xff] %vm319_vm0, %v14232_v44 }
 0xadf   : > { %v14263_v42 = vadd.f32 %v14231_v49, %v11925_v28  ;;  %14327 = vst.msk [vmem:[%s26691_s23 + $0xc0] sm:$0xff] %vm319_vm0, %v14231_v49  ;;  %v19317_v58 = vpop.f32.mrb[90].mxu1  ;;  %v19785_v4 = vpop.f32.mrb[90].mxu0 }
 0xae0   : > { %14296 = vst.msk [vmem:[%s26699_s29 + $0xc8] sm:$0xff] %vm319_vm0, %v14264_v59  ;;  %v11928_v33 = vadd.f32 %v19317_v58, %v26680_v30  ;;  %v14234_v35 = vadd.f32 %v19785_v4, %v26685_v15  ;;  %v11834_v3 = vpop.f32.mrb[91].mxu1  ;;  %v14140_v34 = vpop.f32.mrb[91].mxu0 }
 0xae1   : > { %14295 = vst.msk [vmem:[%s26699_s29 + $0xc0] sm:$0xff] %vm319_vm0, %v14263_v42  ;;  %v11927_v51 = vadd.f32 %v26680_v30, %v11834_v3  ;;  %v14233_v61 = vadd.f32 %v26685_v15, %v14140_v34 }
 0xae2   : > { %v14266_v8 = vadd.f32 %v14234_v35, %v11928_v33  ;;  %14330 = vst.msk [vmem:[%s26691_s23 + $0xd8] sm:$0xff] %vm319_vm0, %v14234_v35 }
 0xae3   : > { %v14265_v11 = vadd.f32 %v14233_v61, %v11927_v51  ;;  %14329 = vst.msk [vmem:[%s26691_s23 + $0xd0] sm:$0xff] %vm319_vm0, %v14233_v61  ;;  %v19320_v17 = vpop.f32.mrb[92].mxu1  ;;  %v19788_v5 = vpop.f32.mrb[92].mxu0 }
 0xae4   : > { %14298 = vst.msk [vmem:[%s26699_s29 + $0xd8] sm:$0xff] %vm319_vm0, %v14266_v8  ;;  %v11930_v47 = vadd.f32 %v19320_v17, %v26680_v30  ;;  %v14236_v18 = vadd.f32 %v19788_v5, %v26685_v15  ;;  %v11844_v48 = vpop.f32.mrb[93].mxu1  ;;  %v14150_v38 = vpop.f32.mrb[93].mxu0 }
 0xae5   : > { %14297 = vst.msk [vmem:[%s26699_s29 + $0xd0] sm:$0xff] %vm319_vm0, %v14265_v11  ;;  %v11929_v56 = vadd.f32 %v26680_v30, %v11844_v48  ;;  %v14235_v45 = vadd.f32 %v26685_v15, %v14150_v38 }
 0xae6   : > { %v14268_v1 = vadd.f32 %v14236_v18, %v11930_v47  ;;  %14332 = vst.msk [vmem:[%s26691_s23 + $0xe8] sm:$0xff] %vm319_vm0, %v14236_v18 }
 0xae7   : > { %v14267_v24 = vadd.f32 %v14235_v45, %v11929_v56  ;;  %14331 = vst.msk [vmem:[%s26691_s23 + $0xe0] sm:$0xff] %vm319_vm0, %v14235_v45  ;;  %v19323_v53 = vpop.f32.mrb[94].mxu1  ;;  %v19791_v27 = vpop.f32.mrb[94].mxu0 }
 0xae8   : > { %14300 = vst.msk [vmem:[%s26699_s29 + $0xe8] sm:$0xff] %vm319_vm0, %v14268_v1  ;;  %v11932_v29 = vadd.f32 %v19323_v53, %v26680_v30  ;;  %v14238_v46 = vadd.f32 %v19791_v27, %v26685_v15  ;;  %v11854_v54 = vpop.f32.mrb[95].mxu1  ;;  %v14160_v2 = vpop.f32.mrb[95].mxu0 }
 0xae9   : > { %14299 = vst.msk [vmem:[%s26699_s29 + $0xe0] sm:$0xff] %vm319_vm0, %v14267_v24  ;;  %v11931_v10 = vadd.f32 %v26680_v30, %v11854_v54  ;;  %v14237_v40 = vadd.f32 %v26685_v15, %v14160_v2 }
 0xaea   : > { %v14270_v13 = vadd.f32 %v14238_v46, %v11932_v29  ;;  %14334 = vst.msk [vmem:[%s26691_s23 + $0xf8] sm:$0xff] %vm319_vm0, %v14238_v46 }
 0xaeb   : > { %v14269_v32 = vadd.f32 %v14237_v40, %v11931_v10  ;;  %14333 = vst.msk [vmem:[%s26691_s23 + $0xf0] sm:$0xff] %vm319_vm0, %v14237_v40 }
 0xaec   : > { %14302 = vst.msk [vmem:[%s26699_s29 + $0xf8] sm:$0xff] %vm319_vm0, %v14270_v13 }
 0xaed   : > { %14301 = vst.msk [vmem:[%s26699_s29 + $0xf0] sm:$0xff] %vm319_vm0, %v14269_v32 }
 0xaee PF: > { %s19_s27 = sadd.s32 1, %s21307_s27  }
 0xaef   : > { %p16_p4 = scmp.ge.s32.totalorder %s19_s27, 4  }
 0xaf1   :  { %18 = sbr.rel (!%p16_p4) target bundleno = 1 (0x1), region = 96 }

</bundles_post_ra>
